<compile_context>
chip_gen: v7x
topology: tpu7x:2x2x1
jax: 0.10.0
libtpu: 0.0.40
codegen_flags: <defaults>
</compile_context>

<pallas_src>
import numpy as np
import jax
import jax.numpy as jnp
from jax.experimental import pallas as pl
from jax.experimental.pallas import tpu as pltpu

EMB_DIM = 32
EDGE_DIM = 8
HEADS = 3
STEPS = 3
LRELU_SLOPE = 0.01   # torch LeakyReLU / F.leaky_relu default
GATV2_SLOPE = 0.2    # GATv2Conv negative_slope default
MASK_VAL = 1e30      # additive-mask magnitude (f32 safe)


def _leaky(z, slope):
    return jnp.where(z > 0, z, slope * z)


# ----------------------------------------------------------------------------
# Single fused kernel: runs the whole forward pass with everything in VMEM.
# ----------------------------------------------------------------------------
def fused_mmp_kernel(
    # data
    x_ref, ea_ref, adj_add_ref, has_in_ref, mask_add_ref, st_ref,
    # GraphNet weights (stacked over steps)
    wmx_ref, wme_ref, bm_ref, wagg_ref, bagg_ref,
    # GATv2 weights (stacked over steps-1 layers)
    wl_ref, bl_ref, wr_ref, br_ref, attblk_ref, batt_ref,
    # pooling weights
    wg_ref, bg_ref, wf_ref, bf_ref, wt_ref, bt_ref,
    # outputs
    xout_ref, gout_ref,
):
    N, D = x_ref.shape
    G = st_ref.shape[1]
    n_steps = wmx_ref.shape[0]
    n_heads = attblk_ref.shape[2]

    x = x_ref[...]                 # [N, D]
    ea = ea_ref[...]               # [N*N, Ed], row j*N + i  <->  edge j -> i (zeros if absent)
    adj_add = adj_add_ref[...]     # [N, N]   0 where edge j->i exists, -1e30 otherwise
    has_in = has_in_ref[...]       # [N, 1]   1 if node has any incoming edge
    mask_add = mask_add_ref[...]   # [N, N]   0 same-graph (incl. self), -1e30 otherwise
    st = st_ref[...]               # [N, G]   one-hot graph membership

    inv_heads = 1.0 / float(n_heads)
    x_att = None

    for step in range(n_steps):
        # -------- GraphNet step: message -> max-aggregation -> update --------
        xm = jnp.dot(x, wmx_ref[step], preferred_element_type=jnp.float32) + bm_ref[step]   # [N, D]
        em = jnp.dot(ea, wme_ref[step], preferred_element_type=jnp.float32)                 # [N*N, D]

        aggr = jnp.full((N, D), -MASK_VAL, dtype=jnp.float32)
        for j in range(N):  # unrolled running max over source nodes, vectorised over targets
            msg_j = _leaky(xm[j:j + 1, :] + em[j * N:(j + 1) * N, :], LRELU_SLOPE)          # [N, D]
            aggr = jnp.maximum(aggr, msg_j + adj_add[:, j:j + 1])
        aggr = jnp.where(has_in > 0.0, aggr, 0.0)   # PyG max-aggregation fill value

        if step == 0:
            xg = jnp.zeros((N, D), dtype=jnp.float32)          # x_att starts as zeros
        else:
            # reference quirk: xg = x_att[batch_ind]  -> rows 0..G-1 of x_att gathered per node
            xg = jnp.dot(st, x_att[:G, :], preferred_element_type=jnp.float32)

        cat = jnp.concatenate([x, xg, aggr], axis=1)                                        # [N, 3D]
        upd = jnp.dot(cat, wagg_ref[step], preferred_element_type=jnp.float32) + bagg_ref[step]
        x = _leaky(upd, LRELU_SLOPE) + x

        # -------- GATv2Conv (heads=H, concat=False) over per-graph complete graph --------
        if step < n_steps - 1:
            l_all = jnp.dot(x, wl_ref[step], preferred_element_type=jnp.float32) + bl_ref[step]  # [N, H*D]
            r_all = jnp.dot(x, wr_ref[step], preferred_element_type=jnp.float32) + br_ref[step]  # [N, H*D]

            # pairwise LeakyReLU(l_j + r_i), flat source-major layout: row j*N + i
            pair = jnp.concatenate(
                [_leaky(r_all + l_all[j:j + 1, :], GATV2_SLOPE) for j in range(N)], axis=0)      # [N*N, H*D]
            # one MXU matmul produces every head's attention logits at once
            scores_all = jnp.dot(pair, attblk_ref[step],
                                 preferred_element_type=jnp.float32)                            # [N*N, H]

            acc = jnp.zeros((N, D), dtype=jnp.float32)
            for h in range(n_heads):
                s = jnp.concatenate(
                    [scores_all[j * N:(j + 1) * N, h:h + 1] for j in range(N)], axis=1)          # [N, N]
                s = s + mask_add
                s = s - jnp.max(s, axis=-1, keepdims=True)
                p = jnp.exp(s)
                p = p * pl.reciprocal(jnp.sum(p, axis=-1, keepdims=True), approx=True)
                acc = acc + jnp.dot(p, l_all[:, h * D:(h + 1) * D],
                                    preferred_element_type=jnp.float32)
            x_att = _leaky(acc * inv_heads + batt_ref[step], LRELU_SLOPE)

    # -------- GlobalPooling: GlobalAttention (per-graph softmax) + transform --------
    gate = jnp.dot(x, wg_ref[...], preferred_element_type=jnp.float32) + bg_ref[...]        # [N, 1]
    feat = _leaky(jnp.dot(x, wf_ref[...], preferred_element_type=jnp.float32) + bf_ref[...],
                  LRELU_SLOPE)                                                              # [N, D]

    pooled_rows = []
    for g in range(G):
        sel = st[:, g:g + 1]                                  # [N, 1]
        gmask = gate + (sel - 1.0) * MASK_VAL                 # additive per-graph mask
        gmax = jnp.max(gmask, axis=0, keepdims=True)          # per-graph max -> stable softmax
        e = jnp.exp(gmask - gmax)                             # exactly 0 outside graph g
        denom = jnp.sum(e, axis=0, keepdims=True)
        alpha = e * pl.reciprocal(denom, approx=True)
        pooled_rows.append(jnp.sum(alpha * feat, axis=0, keepdims=True))                    # [1, D]
    pooled = jnp.concatenate(pooled_rows, axis=0)                                           # [G, D]
    gout = _leaky(jnp.dot(pooled, wt_ref[...], preferred_element_type=jnp.float32) + bt_ref[...],
                  LRELU_SLOPE)

    xout_ref[...] = x
    gout_ref[...] = gout


# ----------------------------------------------------------------------------
# Glue: densify graph structure, stack weights, call the fused kernel once.
# ----------------------------------------------------------------------------
def complete_block_mask(data_lens):
    n = int(sum(data_lens))
    m = np.zeros((n, n), np.float32)
    s = 0
    for l in data_lens:
        m[s:s + l, s:s + l] = 1.0
        s += l
    return jnp.asarray(m)


def _att_block_matrix(att_vec):
    """[H, D] per-head attention vectors -> block-diagonal [H*D, H] matrix."""
    h_, d_ = att_vec.shape
    blk = jnp.zeros((h_ * d_, h_), jnp.float32)
    for h in range(h_):
        blk = blk.at[h * d_:(h + 1) * d_, h].set(att_vec[h])
    return blk


def multi_message_passing_with_attention(x, edge_attr, edge_index, batch_ind,
                                          num_graphs, data_lens, params):
    N, D = x.shape
    G = int(num_graphs)
    Ed = edge_attr.shape[1]
    src = edge_index[0]
    dst = edge_index[1]

    # dense graph structure (target-major adjacency, source-major flat edge features)
    adj = jnp.zeros((N, N), jnp.float32).at[dst, src].set(1.0)          # adj[target, source]
    adj_add = (adj - 1.0) * MASK_VAL
    has_in = (jnp.max(adj, axis=1, keepdims=True) > 0.0).astype(jnp.float32)
    ea_flat = jnp.zeros((N * N, Ed), jnp.float32).at[src * N + dst].set(edge_attr)

    mask = complete_block_mask(data_lens)                               # block-diag complete graph
    mask_add = (mask - 1.0) * MASK_VAL
    st = (batch_ind[:, None] == jnp.arange(G, dtype=batch_ind.dtype)[None, :]).astype(jnp.float32)

    # stack per-step weights
    gnn = params["gnn"]
    wm_x = jnp.stack([p["wm_x"] for p in gnn])                          # [S, D, D]
    wm_e = jnp.stack([p["wm_e"] for p in gnn])                          # [S, Ed, D]
    bm = jnp.stack([p["bm"] for p in gnn])                              # [S, 1, D]
    wagg = jnp.stack([jnp.concatenate([p["wa_x"], p["wa_g"], p["wa_a"]], axis=0) for p in gnn])  # [S, 3D, D]
    bagg = jnp.stack([p["ba"] for p in gnn])                            # [S, 1, D]

    att = params["att"]
    wl = jnp.stack([p["wl"] for p in att])                              # [A, D, H*D]
    bl = jnp.stack([p["bl"] for p in att])                              # [A, 1, H*D]
    wr = jnp.stack([p["wr"] for p in att])                              # [A, D, H*D]
    br = jnp.stack([p["br"] for p in att])                              # [A, 1, H*D]
    attblk = jnp.stack([_att_block_matrix(p["att"]) for p in att])      # [A, H*D, H]
    batt = jnp.stack([p["bias"] for p in att])                          # [A, 1, D]

    pool = params["pool"]

    inputs = (x, ea_flat, adj_add, has_in, mask_add, st,
              wm_x, wm_e, bm, wagg, bagg,
              wl, bl, wr, br, attblk, batt,
              pool["wg"], pool["bg"], pool["wf"], pool["bf"], pool["wt"], pool["bt"])

    def full_spec(shape):
        nd = len(shape)
        return pl.BlockSpec(tuple(shape), lambda i, _nd=nd: (0,) * _nd)

    x_out, x_global = pl.pallas_call(
        fused_mmp_kernel,
        out_shape=(jax.ShapeDtypeStruct((N, D), jnp.float32),
                   jax.ShapeDtypeStruct((G, D), jnp.float32)),
        grid=(1,),
        in_specs=[full_spec(a.shape) for a in inputs],
        out_specs=[full_spec((N, D)), full_spec((G, D))],
        compiler_params=pltpu.CompilerParams(dimension_semantics=("arbitrary",)),
    )(*inputs)
    return x_out, x_global


def init_params(key):
    keys = iter(jax.random.split(key, 128))

    def w(shape):
        return jax.random.normal(next(keys), shape, jnp.float32) * 0.1

    gnn = [dict(wm_x=w((EMB_DIM, EMB_DIM)), wm_e=w((EDGE_DIM, EMB_DIM)), bm=w((1, EMB_DIM)),
                wa_x=w((EMB_DIM, EMB_DIM)), wa_g=w((EMB_DIM, EMB_DIM)),
                wa_a=w((EMB_DIM, EMB_DIM)), ba=w((1, EMB_DIM)))
           for _ in range(STEPS)]
    att = [dict(wl=w((EMB_DIM, HEADS * EMB_DIM)), bl=w((1, HEADS * EMB_DIM)),
                wr=w((EMB_DIM, HEADS * EMB_DIM)), br=w((1, HEADS * EMB_DIM)),
                att=w((HEADS, EMB_DIM)), bias=w((1, EMB_DIM)))
           for _ in range(STEPS - 1)]
    pool = dict(wg=w((EMB_DIM, 1)), bg=w((1, 1)),
                wf=w((EMB_DIM, EMB_DIM)), bf=w((1, EMB_DIM)),
                wt=w((EMB_DIM, EMB_DIM)), bt=w((1, EMB_DIM)))
    return dict(gnn=gnn, att=att, pool=pool)


if __name__ == "__main__":
    key = jax.random.PRNGKey(0)
    k_param, k_x, k_e = jax.random.split(key, 3)

    data_lens = [6, 10]            # two graphs, 16 nodes total
    num_graphs = len(data_lens)
    N = sum(data_lens)

    # bidirectional ring edges inside each graph (every node has incoming edges)
    edges = []
    start = 0
    for L in data_lens:
        for j in range(L):
            a = start + j
            b = start + (j + 1) % L
            edges.append((a, b))
            edges.append((b, a))
        start += L
    edge_index = jnp.asarray(np.array(edges, dtype=np.int32).T)    # [2, E]
    E = edge_index.shape[1]

    batch_ind = jnp.asarray(
        np.concatenate([np.full(L, g, np.int32) for g, L in enumerate(data_lens)]))

    x = jax.random.normal(k_x, (N, EMB_DIM), jnp.float32)
    edge_attr = jax.random.normal(k_e, (E, EDGE_DIM), jnp.float32)

    params = init_params(k_param)

    x_out, x_global = multi_message_passing_with_attention(
        x, edge_attr, edge_index, batch_ind, num_graphs, data_lens, params)
    x_out = jax.block_until_ready(x_out)
    x_global = jax.block_until_ready(x_global)

    assert x_out.shape == (N, EMB_DIM)
    assert x_global.shape == (num_graphs, EMB_DIM)
    assert bool(jnp.all(jnp.isfinite(x_out))) and bool(jnp.all(jnp.isfinite(x_global)))
    print("KERNEL_OK")
</pallas_src>

<mosaic_0001>
module attributes {stable_mosaic.version = 11 : i64} {
  func.func @fused_mmp_kernel(%arg0: i32, %arg1: memref<16x32xf32, #tpu.memory_space<vmem>>, %arg2: memref<256x8xf32, #tpu.memory_space<vmem>>, %arg3: memref<16x16xf32, #tpu.memory_space<vmem>>, %arg4: memref<16x1xf32, #tpu.memory_space<vmem>>, %arg5: memref<16x16xf32, #tpu.memory_space<vmem>>, %arg6: memref<16x2xf32, #tpu.memory_space<vmem>>, %arg7: memref<3x32x32xf32, #tpu.memory_space<vmem>>, %arg8: memref<3x8x32xf32, #tpu.memory_space<vmem>>, %arg9: memref<3x1x32xf32, #tpu.memory_space<vmem>>, %arg10: memref<3x96x32xf32, #tpu.memory_space<vmem>>, %arg11: memref<3x1x32xf32, #tpu.memory_space<vmem>>, %arg12: memref<2x32x96xf32, #tpu.memory_space<vmem>>, %arg13: memref<2x1x96xf32, #tpu.memory_space<vmem>>, %arg14: memref<2x32x96xf32, #tpu.memory_space<vmem>>, %arg15: memref<2x1x96xf32, #tpu.memory_space<vmem>>, %arg16: memref<2x96x3xf32, #tpu.memory_space<vmem>>, %arg17: memref<2x1x32xf32, #tpu.memory_space<vmem>>, %arg18: memref<32x1xf32, #tpu.memory_space<vmem>>, %arg19: memref<1x1xf32, #tpu.memory_space<vmem>>, %arg20: memref<32x32xf32, #tpu.memory_space<vmem>>, %arg21: memref<1x32xf32, #tpu.memory_space<vmem>>, %arg22: memref<32x32xf32, #tpu.memory_space<vmem>>, %arg23: memref<1x32xf32, #tpu.memory_space<vmem>>, %arg24: memref<16x32xf32, #tpu.memory_space<vmem>>, %arg25: memref<2x32xf32, #tpu.memory_space<vmem>>) attributes {dimension_semantics = [#tpu.dimension_semantics<arbitrary>], iteration_bounds = array<i64: 1>, scalar_prefetch = 0 : i64, scratch_operands = 0 : i64, tpu.core_type = #tpu.core_type<tc>, window_params = [{pipeline_mode = #tpu.pipeline_mode<synchronous>, transform_indices = @transform_0, window_bounds = array<i64: 16, 32>}, {pipeline_mode = #tpu.pipeline_mode<synchronous>, transform_indices = @transform_1, window_bounds = array<i64: 256, 8>}, {pipeline_mode = #tpu.pipeline_mode<synchronous>, transform_indices = @transform_2, window_bounds = array<i64: 16, 16>}, {pipeline_mode = #tpu.pipeline_mode<synchronous>, transform_indices = @transform_3, window_bounds = array<i64: 16, 1>}, {pipeline_mode = #tpu.pipeline_mode<synchronous>, transform_indices = @transform_4, window_bounds = array<i64: 16, 16>}, {pipeline_mode = #tpu.pipeline_mode<synchronous>, transform_indices = @transform_5, window_bounds = array<i64: 16, 2>}, {pipeline_mode = #tpu.pipeline_mode<synchronous>, transform_indices = @transform_6, window_bounds = array<i64: 3, 32, 32>}, {pipeline_mode = #tpu.pipeline_mode<synchronous>, transform_indices = @transform_7, window_bounds = array<i64: 3, 8, 32>}, {pipeline_mode = #tpu.pipeline_mode<synchronous>, transform_indices = @transform_8, window_bounds = array<i64: 3, 1, 32>}, {pipeline_mode = #tpu.pipeline_mode<synchronous>, transform_indices = @transform_9, window_bounds = array<i64: 3, 96, 32>}, {pipeline_mode = #tpu.pipeline_mode<synchronous>, transform_indices = @transform_10, window_bounds = array<i64: 3, 1, 32>}, {pipeline_mode = #tpu.pipeline_mode<synchronous>, transform_indices = @transform_11, window_bounds = array<i64: 2, 32, 96>}, {pipeline_mode = #tpu.pipeline_mode<synchronous>, transform_indices = @transform_12, window_bounds = array<i64: 2, 1, 96>}, {pipeline_mode = #tpu.pipeline_mode<synchronous>, transform_indices = @transform_13, window_bounds = array<i64: 2, 32, 96>}, {pipeline_mode = #tpu.pipeline_mode<synchronous>, transform_indices = @transform_14, window_bounds = array<i64: 2, 1, 96>}, {pipeline_mode = #tpu.pipeline_mode<synchronous>, transform_indices = @transform_15, window_bounds = array<i64: 2, 96, 3>}, {pipeline_mode = #tpu.pipeline_mode<synchronous>, transform_indices = @transform_16, window_bounds = array<i64: 2, 1, 32>}, {pipeline_mode = #tpu.pipeline_mode<synchronous>, transform_indices = @transform_17, window_bounds = array<i64: 32, 1>}, {pipeline_mode = #tpu.pipeline_mode<synchronous>, transform_indices = @transform_18, window_bounds = array<i64: 1, 1>}, {pipeline_mode = #tpu.pipeline_mode<synchronous>, transform_indices = @transform_19, window_bounds = array<i64: 32, 32>}, {pipeline_mode = #tpu.pipeline_mode<synchronous>, transform_indices = @transform_20, window_bounds = array<i64: 1, 32>}, {pipeline_mode = #tpu.pipeline_mode<synchronous>, transform_indices = @transform_21, window_bounds = array<i64: 32, 32>}, {pipeline_mode = #tpu.pipeline_mode<synchronous>, transform_indices = @transform_22, window_bounds = array<i64: 1, 32>}, {pipeline_mode = #tpu.pipeline_mode<synchronous>, transform_indices = @transform_23, window_bounds = array<i64: 16, 32>}, {pipeline_mode = #tpu.pipeline_mode<synchronous>, transform_indices = @transform_24, window_bounds = array<i64: 2, 32>}]} {
    %c0 = arith.constant 0 : index
    %c0_0 = arith.constant 0 : index
    %0 = vector.load %arg1[%c0, %c0_0] : memref<16x32xf32, #tpu.memory_space<vmem>>, vector<16x32xf32>
    %c0_1 = arith.constant 0 : index
    %c0_2 = arith.constant 0 : index
    %1 = vector.load %arg2[%c0_1, %c0_2] : memref<256x8xf32, #tpu.memory_space<vmem>>, vector<256x8xf32>
    %c0_3 = arith.constant 0 : index
    %c0_4 = arith.constant 0 : index
    %2 = vector.load %arg3[%c0_3, %c0_4] : memref<16x16xf32, #tpu.memory_space<vmem>>, vector<16x16xf32>
    %c0_5 = arith.constant 0 : index
    %c0_6 = arith.constant 0 : index
    %3 = vector.load %arg4[%c0_5, %c0_6] : memref<16x1xf32, #tpu.memory_space<vmem>>, vector<16x1xf32>
    %c0_7 = arith.constant 0 : index
    %c0_8 = arith.constant 0 : index
    %4 = vector.load %arg5[%c0_7, %c0_8] : memref<16x16xf32, #tpu.memory_space<vmem>>, vector<16x16xf32>
    %c0_9 = arith.constant 0 : index
    %c0_10 = arith.constant 0 : index
    %5 = vector.load %arg6[%c0_9, %c0_10] : memref<16x2xf32, #tpu.memory_space<vmem>>, vector<16x2xf32>
    %c0_11 = arith.constant 0 : index
    %c0_12 = arith.constant 0 : index
    %c0_13 = arith.constant 0 : index
    %6 = vector.load %arg7[%c0_11, %c0_12, %c0_13] : memref<3x32x32xf32, #tpu.memory_space<vmem>>, vector<1x32x32xf32>
    %7 = vector.shape_cast %6 : vector<1x32x32xf32> to vector<32x32xf32>
    %cst = arith.constant dense<0.000000e+00> : vector<16x32xf32>
    %8 = tpu.matmul %0, %7, %cst {dimension_numbers = #tpu.dot_dimension_numbers<[1], [0], [0], [1], [0, 0, 1, 1], [], []>} : vector<16x32xf32>, vector<32x32xf32>, vector<16x32xf32> -> vector<16x32xf32>
    %c0_14 = arith.constant 0 : index
    %c0_15 = arith.constant 0 : index
    %c0_16 = arith.constant 0 : index
    %9 = vector.load %arg9[%c0_14, %c0_15, %c0_16] : memref<3x1x32xf32, #tpu.memory_space<vmem>>, vector<1x1x32xf32>
    %10 = vector.shape_cast %9 : vector<1x1x32xf32> to vector<1x32xf32>
    %11 = vector.broadcast %10 : vector<1x32xf32> to vector<16x32xf32>
    %12 = arith.addf %8, %11 : vector<16x32xf32>
    %c0_17 = arith.constant 0 : index
    %c0_18 = arith.constant 0 : index
    %c0_19 = arith.constant 0 : index
    %13 = vector.load %arg8[%c0_17, %c0_18, %c0_19] : memref<3x8x32xf32, #tpu.memory_space<vmem>>, vector<1x8x32xf32>
    %14 = vector.shape_cast %13 : vector<1x8x32xf32> to vector<8x32xf32>
    %cst_20 = arith.constant dense<0.000000e+00> : vector<256x32xf32>
    %15 = tpu.matmul %1, %14, %cst_20 {dimension_numbers = #tpu.dot_dimension_numbers<[1], [0], [0], [1], [0, 0, 1, 1], [], []>} : vector<256x8xf32>, vector<8x32xf32>, vector<256x32xf32> -> vector<256x32xf32>
    %cst_21 = arith.constant -1.000000e+30 : f32
    %16 = vector.broadcast %cst_21 : f32 to vector<16x32xf32>
    %17 = vector.extract_strided_slice %12 {offsets = [0, 0], sizes = [1, 32], strides = [1, 1]} : vector<16x32xf32> to vector<1x32xf32>
    %18 = vector.extract_strided_slice %15 {offsets = [0, 0], sizes = [16, 32], strides = [1, 1]} : vector<256x32xf32> to vector<16x32xf32>
    %19 = vector.broadcast %17 : vector<1x32xf32> to vector<16x32xf32>
    %20 = arith.addf %19, %18 : vector<16x32xf32>
    %cst_22 = arith.constant 0.000000e+00 : f32
    %21 = vector.broadcast %cst_22 : f32 to vector<16x32xf32>
    %22 = arith.cmpf ogt, %20, %21 : vector<16x32xf32>
    %cst_23 = arith.constant 0.00999999977 : f32
    %23 = vector.broadcast %cst_23 : f32 to vector<16x32xf32>
    %24 = arith.mulf %23, %20 : vector<16x32xf32>
    %25 = arith.select %22, %20, %24 : vector<16x32xi1>, vector<16x32xf32>
    %26 = vector.extract_strided_slice %2 {offsets = [0, 0], sizes = [16, 1], strides = [1, 1]} : vector<16x16xf32> to vector<16x1xf32>
    %27 = vector.broadcast %26 : vector<16x1xf32> to vector<16x32xf32>
    %28 = arith.addf %25, %27 : vector<16x32xf32>
    %29 = arith.maximumf %16, %28 : vector<16x32xf32>
    %30 = vector.extract_strided_slice %12 {offsets = [1, 0], sizes = [1, 32], strides = [1, 1]} : vector<16x32xf32> to vector<1x32xf32>
    %31 = vector.extract_strided_slice %15 {offsets = [16, 0], sizes = [16, 32], strides = [1, 1]} : vector<256x32xf32> to vector<16x32xf32>
    %32 = vector.broadcast %30 : vector<1x32xf32> to vector<16x32xf32>
    %33 = arith.addf %32, %31 : vector<16x32xf32>
    %cst_24 = arith.constant 0.000000e+00 : f32
    %34 = vector.broadcast %cst_24 : f32 to vector<16x32xf32>
    %35 = arith.cmpf ogt, %33, %34 : vector<16x32xf32>
    %cst_25 = arith.constant 0.00999999977 : f32
    %36 = vector.broadcast %cst_25 : f32 to vector<16x32xf32>
    %37 = arith.mulf %36, %33 : vector<16x32xf32>
    %38 = arith.select %35, %33, %37 : vector<16x32xi1>, vector<16x32xf32>
    %39 = vector.extract_strided_slice %2 {offsets = [0, 1], sizes = [16, 1], strides = [1, 1]} : vector<16x16xf32> to vector<16x1xf32>
    %40 = vector.broadcast %39 : vector<16x1xf32> to vector<16x32xf32>
    %41 = arith.addf %38, %40 : vector<16x32xf32>
    %42 = arith.maximumf %29, %41 : vector<16x32xf32>
    %43 = vector.extract_strided_slice %12 {offsets = [2, 0], sizes = [1, 32], strides = [1, 1]} : vector<16x32xf32> to vector<1x32xf32>
    %44 = vector.extract_strided_slice %15 {offsets = [32, 0], sizes = [16, 32], strides = [1, 1]} : vector<256x32xf32> to vector<16x32xf32>
    %45 = vector.broadcast %43 : vector<1x32xf32> to vector<16x32xf32>
    %46 = arith.addf %45, %44 : vector<16x32xf32>
    %cst_26 = arith.constant 0.000000e+00 : f32
    %47 = vector.broadcast %cst_26 : f32 to vector<16x32xf32>
    %48 = arith.cmpf ogt, %46, %47 : vector<16x32xf32>
    %cst_27 = arith.constant 0.00999999977 : f32
    %49 = vector.broadcast %cst_27 : f32 to vector<16x32xf32>
    %50 = arith.mulf %49, %46 : vector<16x32xf32>
    %51 = arith.select %48, %46, %50 : vector<16x32xi1>, vector<16x32xf32>
    %52 = vector.extract_strided_slice %2 {offsets = [0, 2], sizes = [16, 1], strides = [1, 1]} : vector<16x16xf32> to vector<16x1xf32>
    %53 = vector.broadcast %52 : vector<16x1xf32> to vector<16x32xf32>
    %54 = arith.addf %51, %53 : vector<16x32xf32>
    %55 = arith.maximumf %42, %54 : vector<16x32xf32>
    %56 = vector.extract_strided_slice %12 {offsets = [3, 0], sizes = [1, 32], strides = [1, 1]} : vector<16x32xf32> to vector<1x32xf32>
    %57 = vector.extract_strided_slice %15 {offsets = [48, 0], sizes = [16, 32], strides = [1, 1]} : vector<256x32xf32> to vector<16x32xf32>
    %58 = vector.broadcast %56 : vector<1x32xf32> to vector<16x32xf32>
    %59 = arith.addf %58, %57 : vector<16x32xf32>
    %cst_28 = arith.constant 0.000000e+00 : f32
    %60 = vector.broadcast %cst_28 : f32 to vector<16x32xf32>
    %61 = arith.cmpf ogt, %59, %60 : vector<16x32xf32>
    %cst_29 = arith.constant 0.00999999977 : f32
    %62 = vector.broadcast %cst_29 : f32 to vector<16x32xf32>
    %63 = arith.mulf %62, %59 : vector<16x32xf32>
    %64 = arith.select %61, %59, %63 : vector<16x32xi1>, vector<16x32xf32>
    %65 = vector.extract_strided_slice %2 {offsets = [0, 3], sizes = [16, 1], strides = [1, 1]} : vector<16x16xf32> to vector<16x1xf32>
    %66 = vector.broadcast %65 : vector<16x1xf32> to vector<16x32xf32>
    %67 = arith.addf %64, %66 : vector<16x32xf32>
    %68 = arith.maximumf %55, %67 : vector<16x32xf32>
    %69 = vector.extract_strided_slice %12 {offsets = [4, 0], sizes = [1, 32], strides = [1, 1]} : vector<16x32xf32> to vector<1x32xf32>
    %70 = vector.extract_strided_slice %15 {offsets = [64, 0], sizes = [16, 32], strides = [1, 1]} : vector<256x32xf32> to vector<16x32xf32>
    %71 = vector.broadcast %69 : vector<1x32xf32> to vector<16x32xf32>
    %72 = arith.addf %71, %70 : vector<16x32xf32>
    %cst_30 = arith.constant 0.000000e+00 : f32
    %73 = vector.broadcast %cst_30 : f32 to vector<16x32xf32>
    %74 = arith.cmpf ogt, %72, %73 : vector<16x32xf32>
    %cst_31 = arith.constant 0.00999999977 : f32
    %75 = vector.broadcast %cst_31 : f32 to vector<16x32xf32>
    %76 = arith.mulf %75, %72 : vector<16x32xf32>
    %77 = arith.select %74, %72, %76 : vector<16x32xi1>, vector<16x32xf32>
    %78 = vector.extract_strided_slice %2 {offsets = [0, 4], sizes = [16, 1], strides = [1, 1]} : vector<16x16xf32> to vector<16x1xf32>
    %79 = vector.broadcast %78 : vector<16x1xf32> to vector<16x32xf32>
    %80 = arith.addf %77, %79 : vector<16x32xf32>
    %81 = arith.maximumf %68, %80 : vector<16x32xf32>
    %82 = vector.extract_strided_slice %12 {offsets = [5, 0], sizes = [1, 32], strides = [1, 1]} : vector<16x32xf32> to vector<1x32xf32>
    %83 = vector.extract_strided_slice %15 {offsets = [80, 0], sizes = [16, 32], strides = [1, 1]} : vector<256x32xf32> to vector<16x32xf32>
    %84 = vector.broadcast %82 : vector<1x32xf32> to vector<16x32xf32>
    %85 = arith.addf %84, %83 : vector<16x32xf32>
    %cst_32 = arith.constant 0.000000e+00 : f32
    %86 = vector.broadcast %cst_32 : f32 to vector<16x32xf32>
    %87 = arith.cmpf ogt, %85, %86 : vector<16x32xf32>
    %cst_33 = arith.constant 0.00999999977 : f32
    %88 = vector.broadcast %cst_33 : f32 to vector<16x32xf32>
    %89 = arith.mulf %88, %85 : vector<16x32xf32>
    %90 = arith.select %87, %85, %89 : vector<16x32xi1>, vector<16x32xf32>
    %91 = vector.extract_strided_slice %2 {offsets = [0, 5], sizes = [16, 1], strides = [1, 1]} : vector<16x16xf32> to vector<16x1xf32>
    %92 = vector.broadcast %91 : vector<16x1xf32> to vector<16x32xf32>
    %93 = arith.addf %90, %92 : vector<16x32xf32>
    %94 = arith.maximumf %81, %93 : vector<16x32xf32>
    %95 = vector.extract_strided_slice %12 {offsets = [6, 0], sizes = [1, 32], strides = [1, 1]} : vector<16x32xf32> to vector<1x32xf32>
    %96 = vector.extract_strided_slice %15 {offsets = [96, 0], sizes = [16, 32], strides = [1, 1]} : vector<256x32xf32> to vector<16x32xf32>
    %97 = vector.broadcast %95 : vector<1x32xf32> to vector<16x32xf32>
    %98 = arith.addf %97, %96 : vector<16x32xf32>
    %cst_34 = arith.constant 0.000000e+00 : f32
    %99 = vector.broadcast %cst_34 : f32 to vector<16x32xf32>
    %100 = arith.cmpf ogt, %98, %99 : vector<16x32xf32>
    %cst_35 = arith.constant 0.00999999977 : f32
    %101 = vector.broadcast %cst_35 : f32 to vector<16x32xf32>
    %102 = arith.mulf %101, %98 : vector<16x32xf32>
    %103 = arith.select %100, %98, %102 : vector<16x32xi1>, vector<16x32xf32>
    %104 = vector.extract_strided_slice %2 {offsets = [0, 6], sizes = [16, 1], strides = [1, 1]} : vector<16x16xf32> to vector<16x1xf32>
    %105 = vector.broadcast %104 : vector<16x1xf32> to vector<16x32xf32>
    %106 = arith.addf %103, %105 : vector<16x32xf32>
    %107 = arith.maximumf %94, %106 : vector<16x32xf32>
    %108 = vector.extract_strided_slice %12 {offsets = [7, 0], sizes = [1, 32], strides = [1, 1]} : vector<16x32xf32> to vector<1x32xf32>
    %109 = vector.extract_strided_slice %15 {offsets = [112, 0], sizes = [16, 32], strides = [1, 1]} : vector<256x32xf32> to vector<16x32xf32>
    %110 = vector.broadcast %108 : vector<1x32xf32> to vector<16x32xf32>
    %111 = arith.addf %110, %109 : vector<16x32xf32>
    %cst_36 = arith.constant 0.000000e+00 : f32
    %112 = vector.broadcast %cst_36 : f32 to vector<16x32xf32>
    %113 = arith.cmpf ogt, %111, %112 : vector<16x32xf32>
    %cst_37 = arith.constant 0.00999999977 : f32
    %114 = vector.broadcast %cst_37 : f32 to vector<16x32xf32>
    %115 = arith.mulf %114, %111 : vector<16x32xf32>
    %116 = arith.select %113, %111, %115 : vector<16x32xi1>, vector<16x32xf32>
    %117 = vector.extract_strided_slice %2 {offsets = [0, 7], sizes = [16, 1], strides = [1, 1]} : vector<16x16xf32> to vector<16x1xf32>
    %118 = vector.broadcast %117 : vector<16x1xf32> to vector<16x32xf32>
    %119 = arith.addf %116, %118 : vector<16x32xf32>
    %120 = arith.maximumf %107, %119 : vector<16x32xf32>
    %121 = vector.extract_strided_slice %12 {offsets = [8, 0], sizes = [1, 32], strides = [1, 1]} : vector<16x32xf32> to vector<1x32xf32>
    %122 = vector.extract_strided_slice %15 {offsets = [128, 0], sizes = [16, 32], strides = [1, 1]} : vector<256x32xf32> to vector<16x32xf32>
    %123 = vector.broadcast %121 : vector<1x32xf32> to vector<16x32xf32>
    %124 = arith.addf %123, %122 : vector<16x32xf32>
    %cst_38 = arith.constant 0.000000e+00 : f32
    %125 = vector.broadcast %cst_38 : f32 to vector<16x32xf32>
    %126 = arith.cmpf ogt, %124, %125 : vector<16x32xf32>
    %cst_39 = arith.constant 0.00999999977 : f32
    %127 = vector.broadcast %cst_39 : f32 to vector<16x32xf32>
    %128 = arith.mulf %127, %124 : vector<16x32xf32>
    %129 = arith.select %126, %124, %128 : vector<16x32xi1>, vector<16x32xf32>
    %130 = vector.extract_strided_slice %2 {offsets = [0, 8], sizes = [16, 1], strides = [1, 1]} : vector<16x16xf32> to vector<16x1xf32>
    %131 = vector.broadcast %130 : vector<16x1xf32> to vector<16x32xf32>
    %132 = arith.addf %129, %131 : vector<16x32xf32>
    %133 = arith.maximumf %120, %132 : vector<16x32xf32>
    %134 = vector.extract_strided_slice %12 {offsets = [9, 0], sizes = [1, 32], strides = [1, 1]} : vector<16x32xf32> to vector<1x32xf32>
    %135 = vector.extract_strided_slice %15 {offsets = [144, 0], sizes = [16, 32], strides = [1, 1]} : vector<256x32xf32> to vector<16x32xf32>
    %136 = vector.broadcast %134 : vector<1x32xf32> to vector<16x32xf32>
    %137 = arith.addf %136, %135 : vector<16x32xf32>
    %cst_40 = arith.constant 0.000000e+00 : f32
    %138 = vector.broadcast %cst_40 : f32 to vector<16x32xf32>
    %139 = arith.cmpf ogt, %137, %138 : vector<16x32xf32>
    %cst_41 = arith.constant 0.00999999977 : f32
    %140 = vector.broadcast %cst_41 : f32 to vector<16x32xf32>
    %141 = arith.mulf %140, %137 : vector<16x32xf32>
    %142 = arith.select %139, %137, %141 : vector<16x32xi1>, vector<16x32xf32>
    %143 = vector.extract_strided_slice %2 {offsets = [0, 9], sizes = [16, 1], strides = [1, 1]} : vector<16x16xf32> to vector<16x1xf32>
    %144 = vector.broadcast %143 : vector<16x1xf32> to vector<16x32xf32>
    %145 = arith.addf %142, %144 : vector<16x32xf32>
    %146 = arith.maximumf %133, %145 : vector<16x32xf32>
    %147 = vector.extract_strided_slice %12 {offsets = [10, 0], sizes = [1, 32], strides = [1, 1]} : vector<16x32xf32> to vector<1x32xf32>
    %148 = vector.extract_strided_slice %15 {offsets = [160, 0], sizes = [16, 32], strides = [1, 1]} : vector<256x32xf32> to vector<16x32xf32>
    %149 = vector.broadcast %147 : vector<1x32xf32> to vector<16x32xf32>
    %150 = arith.addf %149, %148 : vector<16x32xf32>
    %cst_42 = arith.constant 0.000000e+00 : f32
    %151 = vector.broadcast %cst_42 : f32 to vector<16x32xf32>
    %152 = arith.cmpf ogt, %150, %151 : vector<16x32xf32>
    %cst_43 = arith.constant 0.00999999977 : f32
    %153 = vector.broadcast %cst_43 : f32 to vector<16x32xf32>
    %154 = arith.mulf %153, %150 : vector<16x32xf32>
    %155 = arith.select %152, %150, %154 : vector<16x32xi1>, vector<16x32xf32>
    %156 = vector.extract_strided_slice %2 {offsets = [0, 10], sizes = [16, 1], strides = [1, 1]} : vector<16x16xf32> to vector<16x1xf32>
    %157 = vector.broadcast %156 : vector<16x1xf32> to vector<16x32xf32>
    %158 = arith.addf %155, %157 : vector<16x32xf32>
    %159 = arith.maximumf %146, %158 : vector<16x32xf32>
    %160 = vector.extract_strided_slice %12 {offsets = [11, 0], sizes = [1, 32], strides = [1, 1]} : vector<16x32xf32> to vector<1x32xf32>
    %161 = vector.extract_strided_slice %15 {offsets = [176, 0], sizes = [16, 32], strides = [1, 1]} : vector<256x32xf32> to vector<16x32xf32>
    %162 = vector.broadcast %160 : vector<1x32xf32> to vector<16x32xf32>
    %163 = arith.addf %162, %161 : vector<16x32xf32>
    %cst_44 = arith.constant 0.000000e+00 : f32
    %164 = vector.broadcast %cst_44 : f32 to vector<16x32xf32>
    %165 = arith.cmpf ogt, %163, %164 : vector<16x32xf32>
    %cst_45 = arith.constant 0.00999999977 : f32
    %166 = vector.broadcast %cst_45 : f32 to vector<16x32xf32>
    %167 = arith.mulf %166, %163 : vector<16x32xf32>
    %168 = arith.select %165, %163, %167 : vector<16x32xi1>, vector<16x32xf32>
    %169 = vector.extract_strided_slice %2 {offsets = [0, 11], sizes = [16, 1], strides = [1, 1]} : vector<16x16xf32> to vector<16x1xf32>
    %170 = vector.broadcast %169 : vector<16x1xf32> to vector<16x32xf32>
    %171 = arith.addf %168, %170 : vector<16x32xf32>
    %172 = arith.maximumf %159, %171 : vector<16x32xf32>
    %173 = vector.extract_strided_slice %12 {offsets = [12, 0], sizes = [1, 32], strides = [1, 1]} : vector<16x32xf32> to vector<1x32xf32>
    %174 = vector.extract_strided_slice %15 {offsets = [192, 0], sizes = [16, 32], strides = [1, 1]} : vector<256x32xf32> to vector<16x32xf32>
    %175 = vector.broadcast %173 : vector<1x32xf32> to vector<16x32xf32>
    %176 = arith.addf %175, %174 : vector<16x32xf32>
    %cst_46 = arith.constant 0.000000e+00 : f32
    %177 = vector.broadcast %cst_46 : f32 to vector<16x32xf32>
    %178 = arith.cmpf ogt, %176, %177 : vector<16x32xf32>
    %cst_47 = arith.constant 0.00999999977 : f32
    %179 = vector.broadcast %cst_47 : f32 to vector<16x32xf32>
    %180 = arith.mulf %179, %176 : vector<16x32xf32>
    %181 = arith.select %178, %176, %180 : vector<16x32xi1>, vector<16x32xf32>
    %182 = vector.extract_strided_slice %2 {offsets = [0, 12], sizes = [16, 1], strides = [1, 1]} : vector<16x16xf32> to vector<16x1xf32>
    %183 = vector.broadcast %182 : vector<16x1xf32> to vector<16x32xf32>
    %184 = arith.addf %181, %183 : vector<16x32xf32>
    %185 = arith.maximumf %172, %184 : vector<16x32xf32>
    %186 = vector.extract_strided_slice %12 {offsets = [13, 0], sizes = [1, 32], strides = [1, 1]} : vector<16x32xf32> to vector<1x32xf32>
    %187 = vector.extract_strided_slice %15 {offsets = [208, 0], sizes = [16, 32], strides = [1, 1]} : vector<256x32xf32> to vector<16x32xf32>
    %188 = vector.broadcast %186 : vector<1x32xf32> to vector<16x32xf32>
    %189 = arith.addf %188, %187 : vector<16x32xf32>
    %cst_48 = arith.constant 0.000000e+00 : f32
    %190 = vector.broadcast %cst_48 : f32 to vector<16x32xf32>
    %191 = arith.cmpf ogt, %189, %190 : vector<16x32xf32>
    %cst_49 = arith.constant 0.00999999977 : f32
    %192 = vector.broadcast %cst_49 : f32 to vector<16x32xf32>
    %193 = arith.mulf %192, %189 : vector<16x32xf32>
    %194 = arith.select %191, %189, %193 : vector<16x32xi1>, vector<16x32xf32>
    %195 = vector.extract_strided_slice %2 {offsets = [0, 13], sizes = [16, 1], strides = [1, 1]} : vector<16x16xf32> to vector<16x1xf32>
    %196 = vector.broadcast %195 : vector<16x1xf32> to vector<16x32xf32>
    %197 = arith.addf %194, %196 : vector<16x32xf32>
    %198 = arith.maximumf %185, %197 : vector<16x32xf32>
    %199 = vector.extract_strided_slice %12 {offsets = [14, 0], sizes = [1, 32], strides = [1, 1]} : vector<16x32xf32> to vector<1x32xf32>
    %200 = vector.extract_strided_slice %15 {offsets = [224, 0], sizes = [16, 32], strides = [1, 1]} : vector<256x32xf32> to vector<16x32xf32>
    %201 = vector.broadcast %199 : vector<1x32xf32> to vector<16x32xf32>
    %202 = arith.addf %201, %200 : vector<16x32xf32>
    %cst_50 = arith.constant 0.000000e+00 : f32
    %203 = vector.broadcast %cst_50 : f32 to vector<16x32xf32>
    %204 = arith.cmpf ogt, %202, %203 : vector<16x32xf32>
    %cst_51 = arith.constant 0.00999999977 : f32
    %205 = vector.broadcast %cst_51 : f32 to vector<16x32xf32>
    %206 = arith.mulf %205, %202 : vector<16x32xf32>
    %207 = arith.select %204, %202, %206 : vector<16x32xi1>, vector<16x32xf32>
    %208 = vector.extract_strided_slice %2 {offsets = [0, 14], sizes = [16, 1], strides = [1, 1]} : vector<16x16xf32> to vector<16x1xf32>
    %209 = vector.broadcast %208 : vector<16x1xf32> to vector<16x32xf32>
    %210 = arith.addf %207, %209 : vector<16x32xf32>
    %211 = arith.maximumf %198, %210 : vector<16x32xf32>
    %212 = vector.extract_strided_slice %12 {offsets = [15, 0], sizes = [1, 32], strides = [1, 1]} : vector<16x32xf32> to vector<1x32xf32>
    %213 = vector.extract_strided_slice %15 {offsets = [240, 0], sizes = [16, 32], strides = [1, 1]} : vector<256x32xf32> to vector<16x32xf32>
    %214 = vector.broadcast %212 : vector<1x32xf32> to vector<16x32xf32>
    %215 = arith.addf %214, %213 : vector<16x32xf32>
    %cst_52 = arith.constant 0.000000e+00 : f32
    %216 = vector.broadcast %cst_52 : f32 to vector<16x32xf32>
    %217 = arith.cmpf ogt, %215, %216 : vector<16x32xf32>
    %cst_53 = arith.constant 0.00999999977 : f32
    %218 = vector.broadcast %cst_53 : f32 to vector<16x32xf32>
    %219 = arith.mulf %218, %215 : vector<16x32xf32>
    %220 = arith.select %217, %215, %219 : vector<16x32xi1>, vector<16x32xf32>
    %221 = vector.extract_strided_slice %2 {offsets = [0, 15], sizes = [16, 1], strides = [1, 1]} : vector<16x16xf32> to vector<16x1xf32>
    %222 = vector.broadcast %221 : vector<16x1xf32> to vector<16x32xf32>
    %223 = arith.addf %220, %222 : vector<16x32xf32>
    %224 = arith.maximumf %211, %223 : vector<16x32xf32>
    %cst_54 = arith.constant 0.000000e+00 : f32
    %225 = vector.broadcast %cst_54 : f32 to vector<16x1xf32>
    %226 = arith.cmpf ogt, %3, %225 : vector<16x1xf32>
    %cst_55 = arith.constant 0.000000e+00 : f32
    %227 = vector.shape_cast %226 : vector<16x1xi1> to vector<16x1xi1>
    %228 = vector.broadcast %227 : vector<16x1xi1> to vector<16x32xi1>
    %229 = vector.broadcast %cst_55 : f32 to vector<16x32xf32>
    %230 = arith.select %228, %224, %229 : vector<16x32xi1>, vector<16x32xf32>
    %cst_56 = arith.constant 0.000000e+00 : f32
    %231 = vector.broadcast %cst_56 : f32 to vector<16x32xf32>
    %232 = tpu.concatenate %0, %231, %230 in 1 : vector<16x32xf32>, vector<16x32xf32>, vector<16x32xf32> -> vector<16x96xf32>
    %c0_57 = arith.constant 0 : index
    %c0_58 = arith.constant 0 : index
    %c0_59 = arith.constant 0 : index
    %233 = vector.load %arg10[%c0_57, %c0_58, %c0_59] : memref<3x96x32xf32, #tpu.memory_space<vmem>>, vector<1x96x32xf32>
    %234 = vector.shape_cast %233 : vector<1x96x32xf32> to vector<96x32xf32>
    %cst_60 = arith.constant dense<0.000000e+00> : vector<16x32xf32>
    %235 = tpu.matmul %232, %234, %cst_60 {dimension_numbers = #tpu.dot_dimension_numbers<[1], [0], [0], [1], [0, 0, 1, 1], [], []>} : vector<16x96xf32>, vector<96x32xf32>, vector<16x32xf32> -> vector<16x32xf32>
    %c0_61 = arith.constant 0 : index
    %c0_62 = arith.constant 0 : index
    %c0_63 = arith.constant 0 : index
    %236 = vector.load %arg11[%c0_61, %c0_62, %c0_63] : memref<3x1x32xf32, #tpu.memory_space<vmem>>, vector<1x1x32xf32>
    %237 = vector.shape_cast %236 : vector<1x1x32xf32> to vector<1x32xf32>
    %238 = vector.broadcast %237 : vector<1x32xf32> to vector<16x32xf32>
    %239 = arith.addf %235, %238 : vector<16x32xf32>
    %cst_64 = arith.constant 0.000000e+00 : f32
    %240 = vector.broadcast %cst_64 : f32 to vector<16x32xf32>
    %241 = arith.cmpf ogt, %239, %240 : vector<16x32xf32>
    %cst_65 = arith.constant 0.00999999977 : f32
    %242 = vector.broadcast %cst_65 : f32 to vector<16x32xf32>
    %243 = arith.mulf %242, %239 : vector<16x32xf32>
    %244 = arith.select %241, %239, %243 : vector<16x32xi1>, vector<16x32xf32>
    %245 = arith.addf %244, %0 : vector<16x32xf32>
    %c0_66 = arith.constant 0 : index
    %c0_67 = arith.constant 0 : index
    %c0_68 = arith.constant 0 : index
    %246 = vector.load %arg12[%c0_66, %c0_67, %c0_68] : memref<2x32x96xf32, #tpu.memory_space<vmem>>, vector<1x32x96xf32>
    %247 = vector.shape_cast %246 : vector<1x32x96xf32> to vector<32x96xf32>
    %cst_69 = arith.constant dense<0.000000e+00> : vector<16x96xf32>
    %248 = tpu.matmul %245, %247, %cst_69 {dimension_numbers = #tpu.dot_dimension_numbers<[1], [0], [0], [1], [0, 0, 1, 1], [], []>} : vector<16x32xf32>, vector<32x96xf32>, vector<16x96xf32> -> vector<16x96xf32>
    %c0_70 = arith.constant 0 : index
    %c0_71 = arith.constant 0 : index
    %c0_72 = arith.constant 0 : index
    %249 = vector.load %arg13[%c0_70, %c0_71, %c0_72] : memref<2x1x96xf32, #tpu.memory_space<vmem>>, vector<1x1x96xf32>
    %250 = vector.shape_cast %249 : vector<1x1x96xf32> to vector<1x96xf32>
    %251 = vector.broadcast %250 : vector<1x96xf32> to vector<16x96xf32>
    %252 = arith.addf %248, %251 : vector<16x96xf32>
    %c0_73 = arith.constant 0 : index
    %c0_74 = arith.constant 0 : index
    %c0_75 = arith.constant 0 : index
    %253 = vector.load %arg14[%c0_73, %c0_74, %c0_75] : memref<2x32x96xf32, #tpu.memory_space<vmem>>, vector<1x32x96xf32>
    %254 = vector.shape_cast %253 : vector<1x32x96xf32> to vector<32x96xf32>
    %cst_76 = arith.constant dense<0.000000e+00> : vector<16x96xf32>
    %255 = tpu.matmul %245, %254, %cst_76 {dimension_numbers = #tpu.dot_dimension_numbers<[1], [0], [0], [1], [0, 0, 1, 1], [], []>} : vector<16x32xf32>, vector<32x96xf32>, vector<16x96xf32> -> vector<16x96xf32>
    %c0_77 = arith.constant 0 : index
    %c0_78 = arith.constant 0 : index
    %c0_79 = arith.constant 0 : index
    %256 = vector.load %arg15[%c0_77, %c0_78, %c0_79] : memref<2x1x96xf32, #tpu.memory_space<vmem>>, vector<1x1x96xf32>
    %257 = vector.shape_cast %256 : vector<1x1x96xf32> to vector<1x96xf32>
    %258 = vector.broadcast %257 : vector<1x96xf32> to vector<16x96xf32>
    %259 = arith.addf %255, %258 : vector<16x96xf32>
    %260 = vector.extract_strided_slice %252 {offsets = [0, 0], sizes = [1, 96], strides = [1, 1]} : vector<16x96xf32> to vector<1x96xf32>
    %261 = vector.broadcast %260 : vector<1x96xf32> to vector<16x96xf32>
    %262 = arith.addf %259, %261 : vector<16x96xf32>
    %cst_80 = arith.constant 0.000000e+00 : f32
    %263 = vector.broadcast %cst_80 : f32 to vector<16x96xf32>
    %264 = arith.cmpf ogt, %262, %263 : vector<16x96xf32>
    %cst_81 = arith.constant 2.000000e-01 : f32
    %265 = vector.broadcast %cst_81 : f32 to vector<16x96xf32>
    %266 = arith.mulf %265, %262 : vector<16x96xf32>
    %267 = arith.select %264, %262, %266 : vector<16x96xi1>, vector<16x96xf32>
    %268 = vector.extract_strided_slice %252 {offsets = [1, 0], sizes = [1, 96], strides = [1, 1]} : vector<16x96xf32> to vector<1x96xf32>
    %269 = vector.broadcast %268 : vector<1x96xf32> to vector<16x96xf32>
    %270 = arith.addf %259, %269 : vector<16x96xf32>
    %cst_82 = arith.constant 0.000000e+00 : f32
    %271 = vector.broadcast %cst_82 : f32 to vector<16x96xf32>
    %272 = arith.cmpf ogt, %270, %271 : vector<16x96xf32>
    %cst_83 = arith.constant 2.000000e-01 : f32
    %273 = vector.broadcast %cst_83 : f32 to vector<16x96xf32>
    %274 = arith.mulf %273, %270 : vector<16x96xf32>
    %275 = arith.select %272, %270, %274 : vector<16x96xi1>, vector<16x96xf32>
    %276 = vector.extract_strided_slice %252 {offsets = [2, 0], sizes = [1, 96], strides = [1, 1]} : vector<16x96xf32> to vector<1x96xf32>
    %277 = vector.broadcast %276 : vector<1x96xf32> to vector<16x96xf32>
    %278 = arith.addf %259, %277 : vector<16x96xf32>
    %cst_84 = arith.constant 0.000000e+00 : f32
    %279 = vector.broadcast %cst_84 : f32 to vector<16x96xf32>
    %280 = arith.cmpf ogt, %278, %279 : vector<16x96xf32>
    %cst_85 = arith.constant 2.000000e-01 : f32
    %281 = vector.broadcast %cst_85 : f32 to vector<16x96xf32>
    %282 = arith.mulf %281, %278 : vector<16x96xf32>
    %283 = arith.select %280, %278, %282 : vector<16x96xi1>, vector<16x96xf32>
    %284 = vector.extract_strided_slice %252 {offsets = [3, 0], sizes = [1, 96], strides = [1, 1]} : vector<16x96xf32> to vector<1x96xf32>
    %285 = vector.broadcast %284 : vector<1x96xf32> to vector<16x96xf32>
    %286 = arith.addf %259, %285 : vector<16x96xf32>
    %cst_86 = arith.constant 0.000000e+00 : f32
    %287 = vector.broadcast %cst_86 : f32 to vector<16x96xf32>
    %288 = arith.cmpf ogt, %286, %287 : vector<16x96xf32>
    %cst_87 = arith.constant 2.000000e-01 : f32
    %289 = vector.broadcast %cst_87 : f32 to vector<16x96xf32>
    %290 = arith.mulf %289, %286 : vector<16x96xf32>
    %291 = arith.select %288, %286, %290 : vector<16x96xi1>, vector<16x96xf32>
    %292 = vector.extract_strided_slice %252 {offsets = [4, 0], sizes = [1, 96], strides = [1, 1]} : vector<16x96xf32> to vector<1x96xf32>
    %293 = vector.broadcast %292 : vector<1x96xf32> to vector<16x96xf32>
    %294 = arith.addf %259, %293 : vector<16x96xf32>
    %cst_88 = arith.constant 0.000000e+00 : f32
    %295 = vector.broadcast %cst_88 : f32 to vector<16x96xf32>
    %296 = arith.cmpf ogt, %294, %295 : vector<16x96xf32>
    %cst_89 = arith.constant 2.000000e-01 : f32
    %297 = vector.broadcast %cst_89 : f32 to vector<16x96xf32>
    %298 = arith.mulf %297, %294 : vector<16x96xf32>
    %299 = arith.select %296, %294, %298 : vector<16x96xi1>, vector<16x96xf32>
    %300 = vector.extract_strided_slice %252 {offsets = [5, 0], sizes = [1, 96], strides = [1, 1]} : vector<16x96xf32> to vector<1x96xf32>
    %301 = vector.broadcast %300 : vector<1x96xf32> to vector<16x96xf32>
    %302 = arith.addf %259, %301 : vector<16x96xf32>
    %cst_90 = arith.constant 0.000000e+00 : f32
    %303 = vector.broadcast %cst_90 : f32 to vector<16x96xf32>
    %304 = arith.cmpf ogt, %302, %303 : vector<16x96xf32>
    %cst_91 = arith.constant 2.000000e-01 : f32
    %305 = vector.broadcast %cst_91 : f32 to vector<16x96xf32>
    %306 = arith.mulf %305, %302 : vector<16x96xf32>
    %307 = arith.select %304, %302, %306 : vector<16x96xi1>, vector<16x96xf32>
    %308 = vector.extract_strided_slice %252 {offsets = [6, 0], sizes = [1, 96], strides = [1, 1]} : vector<16x96xf32> to vector<1x96xf32>
    %309 = vector.broadcast %308 : vector<1x96xf32> to vector<16x96xf32>
    %310 = arith.addf %259, %309 : vector<16x96xf32>
    %cst_92 = arith.constant 0.000000e+00 : f32
    %311 = vector.broadcast %cst_92 : f32 to vector<16x96xf32>
    %312 = arith.cmpf ogt, %310, %311 : vector<16x96xf32>
    %cst_93 = arith.constant 2.000000e-01 : f32
    %313 = vector.broadcast %cst_93 : f32 to vector<16x96xf32>
    %314 = arith.mulf %313, %310 : vector<16x96xf32>
    %315 = arith.select %312, %310, %314 : vector<16x96xi1>, vector<16x96xf32>
    %316 = vector.extract_strided_slice %252 {offsets = [7, 0], sizes = [1, 96], strides = [1, 1]} : vector<16x96xf32> to vector<1x96xf32>
    %317 = vector.broadcast %316 : vector<1x96xf32> to vector<16x96xf32>
    %318 = arith.addf %259, %317 : vector<16x96xf32>
    %cst_94 = arith.constant 0.000000e+00 : f32
    %319 = vector.broadcast %cst_94 : f32 to vector<16x96xf32>
    %320 = arith.cmpf ogt, %318, %319 : vector<16x96xf32>
    %cst_95 = arith.constant 2.000000e-01 : f32
    %321 = vector.broadcast %cst_95 : f32 to vector<16x96xf32>
    %322 = arith.mulf %321, %318 : vector<16x96xf32>
    %323 = arith.select %320, %318, %322 : vector<16x96xi1>, vector<16x96xf32>
    %324 = vector.extract_strided_slice %252 {offsets = [8, 0], sizes = [1, 96], strides = [1, 1]} : vector<16x96xf32> to vector<1x96xf32>
    %325 = vector.broadcast %324 : vector<1x96xf32> to vector<16x96xf32>
    %326 = arith.addf %259, %325 : vector<16x96xf32>
    %cst_96 = arith.constant 0.000000e+00 : f32
    %327 = vector.broadcast %cst_96 : f32 to vector<16x96xf32>
    %328 = arith.cmpf ogt, %326, %327 : vector<16x96xf32>
    %cst_97 = arith.constant 2.000000e-01 : f32
    %329 = vector.broadcast %cst_97 : f32 to vector<16x96xf32>
    %330 = arith.mulf %329, %326 : vector<16x96xf32>
    %331 = arith.select %328, %326, %330 : vector<16x96xi1>, vector<16x96xf32>
    %332 = vector.extract_strided_slice %252 {offsets = [9, 0], sizes = [1, 96], strides = [1, 1]} : vector<16x96xf32> to vector<1x96xf32>
    %333 = vector.broadcast %332 : vector<1x96xf32> to vector<16x96xf32>
    %334 = arith.addf %259, %333 : vector<16x96xf32>
    %cst_98 = arith.constant 0.000000e+00 : f32
    %335 = vector.broadcast %cst_98 : f32 to vector<16x96xf32>
    %336 = arith.cmpf ogt, %334, %335 : vector<16x96xf32>
    %cst_99 = arith.constant 2.000000e-01 : f32
    %337 = vector.broadcast %cst_99 : f32 to vector<16x96xf32>
    %338 = arith.mulf %337, %334 : vector<16x96xf32>
    %339 = arith.select %336, %334, %338 : vector<16x96xi1>, vector<16x96xf32>
    %340 = vector.extract_strided_slice %252 {offsets = [10, 0], sizes = [1, 96], strides = [1, 1]} : vector<16x96xf32> to vector<1x96xf32>
    %341 = vector.broadcast %340 : vector<1x96xf32> to vector<16x96xf32>
    %342 = arith.addf %259, %341 : vector<16x96xf32>
    %cst_100 = arith.constant 0.000000e+00 : f32
    %343 = vector.broadcast %cst_100 : f32 to vector<16x96xf32>
    %344 = arith.cmpf ogt, %342, %343 : vector<16x96xf32>
    %cst_101 = arith.constant 2.000000e-01 : f32
    %345 = vector.broadcast %cst_101 : f32 to vector<16x96xf32>
    %346 = arith.mulf %345, %342 : vector<16x96xf32>
    %347 = arith.select %344, %342, %346 : vector<16x96xi1>, vector<16x96xf32>
    %348 = vector.extract_strided_slice %252 {offsets = [11, 0], sizes = [1, 96], strides = [1, 1]} : vector<16x96xf32> to vector<1x96xf32>
    %349 = vector.broadcast %348 : vector<1x96xf32> to vector<16x96xf32>
    %350 = arith.addf %259, %349 : vector<16x96xf32>
    %cst_102 = arith.constant 0.000000e+00 : f32
    %351 = vector.broadcast %cst_102 : f32 to vector<16x96xf32>
    %352 = arith.cmpf ogt, %350, %351 : vector<16x96xf32>
    %cst_103 = arith.constant 2.000000e-01 : f32
    %353 = vector.broadcast %cst_103 : f32 to vector<16x96xf32>
    %354 = arith.mulf %353, %350 : vector<16x96xf32>
    %355 = arith.select %352, %350, %354 : vector<16x96xi1>, vector<16x96xf32>
    %356 = vector.extract_strided_slice %252 {offsets = [12, 0], sizes = [1, 96], strides = [1, 1]} : vector<16x96xf32> to vector<1x96xf32>
    %357 = vector.broadcast %356 : vector<1x96xf32> to vector<16x96xf32>
    %358 = arith.addf %259, %357 : vector<16x96xf32>
    %cst_104 = arith.constant 0.000000e+00 : f32
    %359 = vector.broadcast %cst_104 : f32 to vector<16x96xf32>
    %360 = arith.cmpf ogt, %358, %359 : vector<16x96xf32>
    %cst_105 = arith.constant 2.000000e-01 : f32
    %361 = vector.broadcast %cst_105 : f32 to vector<16x96xf32>
    %362 = arith.mulf %361, %358 : vector<16x96xf32>
    %363 = arith.select %360, %358, %362 : vector<16x96xi1>, vector<16x96xf32>
    %364 = vector.extract_strided_slice %252 {offsets = [13, 0], sizes = [1, 96], strides = [1, 1]} : vector<16x96xf32> to vector<1x96xf32>
    %365 = vector.broadcast %364 : vector<1x96xf32> to vector<16x96xf32>
    %366 = arith.addf %259, %365 : vector<16x96xf32>
    %cst_106 = arith.constant 0.000000e+00 : f32
    %367 = vector.broadcast %cst_106 : f32 to vector<16x96xf32>
    %368 = arith.cmpf ogt, %366, %367 : vector<16x96xf32>
    %cst_107 = arith.constant 2.000000e-01 : f32
    %369 = vector.broadcast %cst_107 : f32 to vector<16x96xf32>
    %370 = arith.mulf %369, %366 : vector<16x96xf32>
    %371 = arith.select %368, %366, %370 : vector<16x96xi1>, vector<16x96xf32>
    %372 = vector.extract_strided_slice %252 {offsets = [14, 0], sizes = [1, 96], strides = [1, 1]} : vector<16x96xf32> to vector<1x96xf32>
    %373 = vector.broadcast %372 : vector<1x96xf32> to vector<16x96xf32>
    %374 = arith.addf %259, %373 : vector<16x96xf32>
    %cst_108 = arith.constant 0.000000e+00 : f32
    %375 = vector.broadcast %cst_108 : f32 to vector<16x96xf32>
    %376 = arith.cmpf ogt, %374, %375 : vector<16x96xf32>
    %cst_109 = arith.constant 2.000000e-01 : f32
    %377 = vector.broadcast %cst_109 : f32 to vector<16x96xf32>
    %378 = arith.mulf %377, %374 : vector<16x96xf32>
    %379 = arith.select %376, %374, %378 : vector<16x96xi1>, vector<16x96xf32>
    %380 = vector.extract_strided_slice %252 {offsets = [15, 0], sizes = [1, 96], strides = [1, 1]} : vector<16x96xf32> to vector<1x96xf32>
    %381 = vector.broadcast %380 : vector<1x96xf32> to vector<16x96xf32>
    %382 = arith.addf %259, %381 : vector<16x96xf32>
    %cst_110 = arith.constant 0.000000e+00 : f32
    %383 = vector.broadcast %cst_110 : f32 to vector<16x96xf32>
    %384 = arith.cmpf ogt, %382, %383 : vector<16x96xf32>
    %cst_111 = arith.constant 2.000000e-01 : f32
    %385 = vector.broadcast %cst_111 : f32 to vector<16x96xf32>
    %386 = arith.mulf %385, %382 : vector<16x96xf32>
    %387 = arith.select %384, %382, %386 : vector<16x96xi1>, vector<16x96xf32>
    %388 = tpu.concatenate %267, %275, %283, %291, %299, %307, %315, %323, %331, %339, %347, %355, %363, %371, %379, %387 in 0 : vector<16x96xf32>, vector<16x96xf32>, vector<16x96xf32>, vector<16x96xf32>, vector<16x96xf32>, vector<16x96xf32>, vector<16x96xf32>, vector<16x96xf32>, vector<16x96xf32>, vector<16x96xf32>, vector<16x96xf32>, vector<16x96xf32>, vector<16x96xf32>, vector<16x96xf32>, vector<16x96xf32>, vector<16x96xf32> -> vector<256x96xf32>
    %c0_112 = arith.constant 0 : index
    %c0_113 = arith.constant 0 : index
    %c0_114 = arith.constant 0 : index
    %389 = vector.load %arg16[%c0_112, %c0_113, %c0_114] : memref<2x96x3xf32, #tpu.memory_space<vmem>>, vector<1x96x3xf32>
    %390 = vector.shape_cast %389 : vector<1x96x3xf32> to vector<96x3xf32>
    %cst_115 = arith.constant dense<0.000000e+00> : vector<256x3xf32>
    %391 = tpu.matmul %388, %390, %cst_115 {dimension_numbers = #tpu.dot_dimension_numbers<[1], [0], [0], [1], [0, 0, 1, 1], [], []>} : vector<256x96xf32>, vector<96x3xf32>, vector<256x3xf32> -> vector<256x3xf32>
    %cst_116 = arith.constant 0.000000e+00 : f32
    %392 = vector.broadcast %cst_116 : f32 to vector<16x32xf32>
    %393 = vector.extract_strided_slice %391 {offsets = [0, 0], sizes = [16, 1], strides = [1, 1]} : vector<256x3xf32> to vector<16x1xf32>
    %394 = vector.extract_strided_slice %391 {offsets = [16, 0], sizes = [16, 1], strides = [1, 1]} : vector<256x3xf32> to vector<16x1xf32>
    %395 = vector.extract_strided_slice %391 {offsets = [32, 0], sizes = [16, 1], strides = [1, 1]} : vector<256x3xf32> to vector<16x1xf32>
    %396 = vector.extract_strided_slice %391 {offsets = [48, 0], sizes = [16, 1], strides = [1, 1]} : vector<256x3xf32> to vector<16x1xf32>
    %397 = vector.extract_strided_slice %391 {offsets = [64, 0], sizes = [16, 1], strides = [1, 1]} : vector<256x3xf32> to vector<16x1xf32>
    %398 = vector.extract_strided_slice %391 {offsets = [80, 0], sizes = [16, 1], strides = [1, 1]} : vector<256x3xf32> to vector<16x1xf32>
    %399 = vector.extract_strided_slice %391 {offsets = [96, 0], sizes = [16, 1], strides = [1, 1]} : vector<256x3xf32> to vector<16x1xf32>
    %400 = vector.extract_strided_slice %391 {offsets = [112, 0], sizes = [16, 1], strides = [1, 1]} : vector<256x3xf32> to vector<16x1xf32>
    %401 = vector.extract_strided_slice %391 {offsets = [128, 0], sizes = [16, 1], strides = [1, 1]} : vector<256x3xf32> to vector<16x1xf32>
    %402 = vector.extract_strided_slice %391 {offsets = [144, 0], sizes = [16, 1], strides = [1, 1]} : vector<256x3xf32> to vector<16x1xf32>
    %403 = vector.extract_strided_slice %391 {offsets = [160, 0], sizes = [16, 1], strides = [1, 1]} : vector<256x3xf32> to vector<16x1xf32>
    %404 = vector.extract_strided_slice %391 {offsets = [176, 0], sizes = [16, 1], strides = [1, 1]} : vector<256x3xf32> to vector<16x1xf32>
    %405 = vector.extract_strided_slice %391 {offsets = [192, 0], sizes = [16, 1], strides = [1, 1]} : vector<256x3xf32> to vector<16x1xf32>
    %406 = vector.extract_strided_slice %391 {offsets = [208, 0], sizes = [16, 1], strides = [1, 1]} : vector<256x3xf32> to vector<16x1xf32>
    %407 = vector.extract_strided_slice %391 {offsets = [224, 0], sizes = [16, 1], strides = [1, 1]} : vector<256x3xf32> to vector<16x1xf32>
    %408 = vector.extract_strided_slice %391 {offsets = [240, 0], sizes = [16, 1], strides = [1, 1]} : vector<256x3xf32> to vector<16x1xf32>
    %409 = tpu.concatenate %393, %394, %395, %396, %397, %398, %399, %400, %401, %402, %403, %404, %405, %406, %407, %408 in 1 : vector<16x1xf32>, vector<16x1xf32>, vector<16x1xf32>, vector<16x1xf32>, vector<16x1xf32>, vector<16x1xf32>, vector<16x1xf32>, vector<16x1xf32>, vector<16x1xf32>, vector<16x1xf32>, vector<16x1xf32>, vector<16x1xf32>, vector<16x1xf32>, vector<16x1xf32>, vector<16x1xf32>, vector<16x1xf32> -> vector<16x16xf32>
    %410 = arith.addf %409, %4 : vector<16x16xf32>
    %cst_117 = arith.constant dense<0xFF800000> : vector<16xf32>
    %411 = vector.multi_reduction <maximumf>, %410, %cst_117 [1] : vector<16x16xf32> to vector<16xf32>
    %412 = vector.shape_cast %411 : vector<16xf32> to vector<16x1xf32>
    %413 = vector.broadcast %412 : vector<16x1xf32> to vector<16x16xf32>
    %414 = arith.subf %410, %413 : vector<16x16xf32>
    %415 = math.exp %414 : vector<16x16xf32>
    %cst_118 = arith.constant dense<0.000000e+00> : vector<16xf32>
    %416 = vector.multi_reduction <add>, %415, %cst_118 [1] : vector<16x16xf32> to vector<16xf32>
    %417 = vector.shape_cast %416 : vector<16xf32> to vector<16x1xf32>
    %418 = tpu.reciprocal %417 {approx = true} : vector<16x1xf32> -> vector<16x1xf32>
    %419 = vector.broadcast %418 : vector<16x1xf32> to vector<16x16xf32>
    %420 = arith.mulf %415, %419 : vector<16x16xf32>
    %421 = vector.extract_strided_slice %252 {offsets = [0, 0], sizes = [16, 32], strides = [1, 1]} : vector<16x96xf32> to vector<16x32xf32>
    %cst_119 = arith.constant dense<0.000000e+00> : vector<16x32xf32>
    %422 = tpu.matmul %420, %421, %cst_119 {dimension_numbers = #tpu.dot_dimension_numbers<[1], [0], [0], [1], [0, 0, 1, 1], [], []>} : vector<16x16xf32>, vector<16x32xf32>, vector<16x32xf32> -> vector<16x32xf32>
    %423 = arith.addf %392, %422 : vector<16x32xf32>
    %424 = vector.extract_strided_slice %391 {offsets = [0, 1], sizes = [16, 1], strides = [1, 1]} : vector<256x3xf32> to vector<16x1xf32>
    %425 = vector.extract_strided_slice %391 {offsets = [16, 1], sizes = [16, 1], strides = [1, 1]} : vector<256x3xf32> to vector<16x1xf32>
    %426 = vector.extract_strided_slice %391 {offsets = [32, 1], sizes = [16, 1], strides = [1, 1]} : vector<256x3xf32> to vector<16x1xf32>
    %427 = vector.extract_strided_slice %391 {offsets = [48, 1], sizes = [16, 1], strides = [1, 1]} : vector<256x3xf32> to vector<16x1xf32>
    %428 = vector.extract_strided_slice %391 {offsets = [64, 1], sizes = [16, 1], strides = [1, 1]} : vector<256x3xf32> to vector<16x1xf32>
    %429 = vector.extract_strided_slice %391 {offsets = [80, 1], sizes = [16, 1], strides = [1, 1]} : vector<256x3xf32> to vector<16x1xf32>
    %430 = vector.extract_strided_slice %391 {offsets = [96, 1], sizes = [16, 1], strides = [1, 1]} : vector<256x3xf32> to vector<16x1xf32>
    %431 = vector.extract_strided_slice %391 {offsets = [112, 1], sizes = [16, 1], strides = [1, 1]} : vector<256x3xf32> to vector<16x1xf32>
    %432 = vector.extract_strided_slice %391 {offsets = [128, 1], sizes = [16, 1], strides = [1, 1]} : vector<256x3xf32> to vector<16x1xf32>
    %433 = vector.extract_strided_slice %391 {offsets = [144, 1], sizes = [16, 1], strides = [1, 1]} : vector<256x3xf32> to vector<16x1xf32>
    %434 = vector.extract_strided_slice %391 {offsets = [160, 1], sizes = [16, 1], strides = [1, 1]} : vector<256x3xf32> to vector<16x1xf32>
    %435 = vector.extract_strided_slice %391 {offsets = [176, 1], sizes = [16, 1], strides = [1, 1]} : vector<256x3xf32> to vector<16x1xf32>
    %436 = vector.extract_strided_slice %391 {offsets = [192, 1], sizes = [16, 1], strides = [1, 1]} : vector<256x3xf32> to vector<16x1xf32>
    %437 = vector.extract_strided_slice %391 {offsets = [208, 1], sizes = [16, 1], strides = [1, 1]} : vector<256x3xf32> to vector<16x1xf32>
    %438 = vector.extract_strided_slice %391 {offsets = [224, 1], sizes = [16, 1], strides = [1, 1]} : vector<256x3xf32> to vector<16x1xf32>
    %439 = vector.extract_strided_slice %391 {offsets = [240, 1], sizes = [16, 1], strides = [1, 1]} : vector<256x3xf32> to vector<16x1xf32>
    %440 = tpu.concatenate %424, %425, %426, %427, %428, %429, %430, %431, %432, %433, %434, %435, %436, %437, %438, %439 in 1 : vector<16x1xf32>, vector<16x1xf32>, vector<16x1xf32>, vector<16x1xf32>, vector<16x1xf32>, vector<16x1xf32>, vector<16x1xf32>, vector<16x1xf32>, vector<16x1xf32>, vector<16x1xf32>, vector<16x1xf32>, vector<16x1xf32>, vector<16x1xf32>, vector<16x1xf32>, vector<16x1xf32>, vector<16x1xf32> -> vector<16x16xf32>
    %441 = arith.addf %440, %4 : vector<16x16xf32>
    %cst_120 = arith.constant dense<0xFF800000> : vector<16xf32>
    %442 = vector.multi_reduction <maximumf>, %441, %cst_120 [1] : vector<16x16xf32> to vector<16xf32>
    %443 = vector.shape_cast %442 : vector<16xf32> to vector<16x1xf32>
    %444 = vector.broadcast %443 : vector<16x1xf32> to vector<16x16xf32>
    %445 = arith.subf %441, %444 : vector<16x16xf32>
    %446 = math.exp %445 : vector<16x16xf32>
    %cst_121 = arith.constant dense<0.000000e+00> : vector<16xf32>
    %447 = vector.multi_reduction <add>, %446, %cst_121 [1] : vector<16x16xf32> to vector<16xf32>
    %448 = vector.shape_cast %447 : vector<16xf32> to vector<16x1xf32>
    %449 = tpu.reciprocal %448 {approx = true} : vector<16x1xf32> -> vector<16x1xf32>
    %450 = vector.broadcast %449 : vector<16x1xf32> to vector<16x16xf32>
    %451 = arith.mulf %446, %450 : vector<16x16xf32>
    %452 = vector.extract_strided_slice %252 {offsets = [0, 32], sizes = [16, 32], strides = [1, 1]} : vector<16x96xf32> to vector<16x32xf32>
    %cst_122 = arith.constant dense<0.000000e+00> : vector<16x32xf32>
    %453 = tpu.matmul %451, %452, %cst_122 {dimension_numbers = #tpu.dot_dimension_numbers<[1], [0], [0], [1], [0, 0, 1, 1], [], []>} : vector<16x16xf32>, vector<16x32xf32>, vector<16x32xf32> -> vector<16x32xf32>
    %454 = arith.addf %423, %453 : vector<16x32xf32>
    %455 = vector.extract_strided_slice %391 {offsets = [0, 2], sizes = [16, 1], strides = [1, 1]} : vector<256x3xf32> to vector<16x1xf32>
    %456 = vector.extract_strided_slice %391 {offsets = [16, 2], sizes = [16, 1], strides = [1, 1]} : vector<256x3xf32> to vector<16x1xf32>
    %457 = vector.extract_strided_slice %391 {offsets = [32, 2], sizes = [16, 1], strides = [1, 1]} : vector<256x3xf32> to vector<16x1xf32>
    %458 = vector.extract_strided_slice %391 {offsets = [48, 2], sizes = [16, 1], strides = [1, 1]} : vector<256x3xf32> to vector<16x1xf32>
    %459 = vector.extract_strided_slice %391 {offsets = [64, 2], sizes = [16, 1], strides = [1, 1]} : vector<256x3xf32> to vector<16x1xf32>
    %460 = vector.extract_strided_slice %391 {offsets = [80, 2], sizes = [16, 1], strides = [1, 1]} : vector<256x3xf32> to vector<16x1xf32>
    %461 = vector.extract_strided_slice %391 {offsets = [96, 2], sizes = [16, 1], strides = [1, 1]} : vector<256x3xf32> to vector<16x1xf32>
    %462 = vector.extract_strided_slice %391 {offsets = [112, 2], sizes = [16, 1], strides = [1, 1]} : vector<256x3xf32> to vector<16x1xf32>
    %463 = vector.extract_strided_slice %391 {offsets = [128, 2], sizes = [16, 1], strides = [1, 1]} : vector<256x3xf32> to vector<16x1xf32>
    %464 = vector.extract_strided_slice %391 {offsets = [144, 2], sizes = [16, 1], strides = [1, 1]} : vector<256x3xf32> to vector<16x1xf32>
    %465 = vector.extract_strided_slice %391 {offsets = [160, 2], sizes = [16, 1], strides = [1, 1]} : vector<256x3xf32> to vector<16x1xf32>
    %466 = vector.extract_strided_slice %391 {offsets = [176, 2], sizes = [16, 1], strides = [1, 1]} : vector<256x3xf32> to vector<16x1xf32>
    %467 = vector.extract_strided_slice %391 {offsets = [192, 2], sizes = [16, 1], strides = [1, 1]} : vector<256x3xf32> to vector<16x1xf32>
    %468 = vector.extract_strided_slice %391 {offsets = [208, 2], sizes = [16, 1], strides = [1, 1]} : vector<256x3xf32> to vector<16x1xf32>
    %469 = vector.extract_strided_slice %391 {offsets = [224, 2], sizes = [16, 1], strides = [1, 1]} : vector<256x3xf32> to vector<16x1xf32>
    %470 = vector.extract_strided_slice %391 {offsets = [240, 2], sizes = [16, 1], strides = [1, 1]} : vector<256x3xf32> to vector<16x1xf32>
    %471 = tpu.concatenate %455, %456, %457, %458, %459, %460, %461, %462, %463, %464, %465, %466, %467, %468, %469, %470 in 1 : vector<16x1xf32>, vector<16x1xf32>, vector<16x1xf32>, vector<16x1xf32>, vector<16x1xf32>, vector<16x1xf32>, vector<16x1xf32>, vector<16x1xf32>, vector<16x1xf32>, vector<16x1xf32>, vector<16x1xf32>, vector<16x1xf32>, vector<16x1xf32>, vector<16x1xf32>, vector<16x1xf32>, vector<16x1xf32> -> vector<16x16xf32>
    %472 = arith.addf %471, %4 : vector<16x16xf32>
    %cst_123 = arith.constant dense<0xFF800000> : vector<16xf32>
    %473 = vector.multi_reduction <maximumf>, %472, %cst_123 [1] : vector<16x16xf32> to vector<16xf32>
    %474 = vector.shape_cast %473 : vector<16xf32> to vector<16x1xf32>
    %475 = vector.broadcast %474 : vector<16x1xf32> to vector<16x16xf32>
    %476 = arith.subf %472, %475 : vector<16x16xf32>
    %477 = math.exp %476 : vector<16x16xf32>
    %cst_124 = arith.constant dense<0.000000e+00> : vector<16xf32>
    %478 = vector.multi_reduction <add>, %477, %cst_124 [1] : vector<16x16xf32> to vector<16xf32>
    %479 = vector.shape_cast %478 : vector<16xf32> to vector<16x1xf32>
    %480 = tpu.reciprocal %479 {approx = true} : vector<16x1xf32> -> vector<16x1xf32>
    %481 = vector.broadcast %480 : vector<16x1xf32> to vector<16x16xf32>
    %482 = arith.mulf %477, %481 : vector<16x16xf32>
    %483 = vector.extract_strided_slice %252 {offsets = [0, 64], sizes = [16, 32], strides = [1, 1]} : vector<16x96xf32> to vector<16x32xf32>
    %cst_125 = arith.constant dense<0.000000e+00> : vector<16x32xf32>
    %484 = tpu.matmul %482, %483, %cst_125 {dimension_numbers = #tpu.dot_dimension_numbers<[1], [0], [0], [1], [0, 0, 1, 1], [], []>} : vector<16x16xf32>, vector<16x32xf32>, vector<16x32xf32> -> vector<16x32xf32>
    %485 = arith.addf %454, %484 : vector<16x32xf32>
    %cst_126 = arith.constant 0.333333343 : f32
    %486 = vector.broadcast %cst_126 : f32 to vector<16x32xf32>
    %487 = arith.mulf %485, %486 : vector<16x32xf32>
    %c0_127 = arith.constant 0 : index
    %c0_128 = arith.constant 0 : index
    %c0_129 = arith.constant 0 : index
    %488 = vector.load %arg17[%c0_127, %c0_128, %c0_129] : memref<2x1x32xf32, #tpu.memory_space<vmem>>, vector<1x1x32xf32>
    %489 = vector.shape_cast %488 : vector<1x1x32xf32> to vector<1x32xf32>
    %490 = vector.broadcast %489 : vector<1x32xf32> to vector<16x32xf32>
    %491 = arith.addf %487, %490 : vector<16x32xf32>
    %cst_130 = arith.constant 0.000000e+00 : f32
    %492 = vector.broadcast %cst_130 : f32 to vector<16x32xf32>
    %493 = arith.cmpf ogt, %491, %492 : vector<16x32xf32>
    %cst_131 = arith.constant 0.00999999977 : f32
    %494 = vector.broadcast %cst_131 : f32 to vector<16x32xf32>
    %495 = arith.mulf %494, %491 : vector<16x32xf32>
    %496 = arith.select %493, %491, %495 : vector<16x32xi1>, vector<16x32xf32>
    %c1 = arith.constant 1 : index
    %c0_132 = arith.constant 0 : index
    %c0_133 = arith.constant 0 : index
    %497 = vector.load %arg7[%c1, %c0_132, %c0_133] : memref<3x32x32xf32, #tpu.memory_space<vmem>>, vector<1x32x32xf32>
    %498 = vector.shape_cast %497 : vector<1x32x32xf32> to vector<32x32xf32>
    %cst_134 = arith.constant dense<0.000000e+00> : vector<16x32xf32>
    %499 = tpu.matmul %245, %498, %cst_134 {dimension_numbers = #tpu.dot_dimension_numbers<[1], [0], [0], [1], [0, 0, 1, 1], [], []>} : vector<16x32xf32>, vector<32x32xf32>, vector<16x32xf32> -> vector<16x32xf32>
    %c1_135 = arith.constant 1 : index
    %c0_136 = arith.constant 0 : index
    %c0_137 = arith.constant 0 : index
    %500 = vector.load %arg9[%c1_135, %c0_136, %c0_137] : memref<3x1x32xf32, #tpu.memory_space<vmem>>, vector<1x1x32xf32>
    %501 = vector.shape_cast %500 : vector<1x1x32xf32> to vector<1x32xf32>
    %502 = vector.broadcast %501 : vector<1x32xf32> to vector<16x32xf32>
    %503 = arith.addf %499, %502 : vector<16x32xf32>
    %c1_138 = arith.constant 1 : index
    %c0_139 = arith.constant 0 : index
    %c0_140 = arith.constant 0 : index
    %504 = vector.load %arg8[%c1_138, %c0_139, %c0_140] : memref<3x8x32xf32, #tpu.memory_space<vmem>>, vector<1x8x32xf32>
    %505 = vector.shape_cast %504 : vector<1x8x32xf32> to vector<8x32xf32>
    %cst_141 = arith.constant dense<0.000000e+00> : vector<256x32xf32>
    %506 = tpu.matmul %1, %505, %cst_141 {dimension_numbers = #tpu.dot_dimension_numbers<[1], [0], [0], [1], [0, 0, 1, 1], [], []>} : vector<256x8xf32>, vector<8x32xf32>, vector<256x32xf32> -> vector<256x32xf32>
    %cst_142 = arith.constant -1.000000e+30 : f32
    %507 = vector.broadcast %cst_142 : f32 to vector<16x32xf32>
    %508 = vector.extract_strided_slice %503 {offsets = [0, 0], sizes = [1, 32], strides = [1, 1]} : vector<16x32xf32> to vector<1x32xf32>
    %509 = vector.extract_strided_slice %506 {offsets = [0, 0], sizes = [16, 32], strides = [1, 1]} : vector<256x32xf32> to vector<16x32xf32>
    %510 = vector.broadcast %508 : vector<1x32xf32> to vector<16x32xf32>
    %511 = arith.addf %510, %509 : vector<16x32xf32>
    %cst_143 = arith.constant 0.000000e+00 : f32
    %512 = vector.broadcast %cst_143 : f32 to vector<16x32xf32>
    %513 = arith.cmpf ogt, %511, %512 : vector<16x32xf32>
    %cst_144 = arith.constant 0.00999999977 : f32
    %514 = vector.broadcast %cst_144 : f32 to vector<16x32xf32>
    %515 = arith.mulf %514, %511 : vector<16x32xf32>
    %516 = arith.select %513, %511, %515 : vector<16x32xi1>, vector<16x32xf32>
    %517 = vector.extract_strided_slice %2 {offsets = [0, 0], sizes = [16, 1], strides = [1, 1]} : vector<16x16xf32> to vector<16x1xf32>
    %518 = vector.broadcast %517 : vector<16x1xf32> to vector<16x32xf32>
    %519 = arith.addf %516, %518 : vector<16x32xf32>
    %520 = arith.maximumf %507, %519 : vector<16x32xf32>
    %521 = vector.extract_strided_slice %503 {offsets = [1, 0], sizes = [1, 32], strides = [1, 1]} : vector<16x32xf32> to vector<1x32xf32>
    %522 = vector.extract_strided_slice %506 {offsets = [16, 0], sizes = [16, 32], strides = [1, 1]} : vector<256x32xf32> to vector<16x32xf32>
    %523 = vector.broadcast %521 : vector<1x32xf32> to vector<16x32xf32>
    %524 = arith.addf %523, %522 : vector<16x32xf32>
    %cst_145 = arith.constant 0.000000e+00 : f32
    %525 = vector.broadcast %cst_145 : f32 to vector<16x32xf32>
    %526 = arith.cmpf ogt, %524, %525 : vector<16x32xf32>
    %cst_146 = arith.constant 0.00999999977 : f32
    %527 = vector.broadcast %cst_146 : f32 to vector<16x32xf32>
    %528 = arith.mulf %527, %524 : vector<16x32xf32>
    %529 = arith.select %526, %524, %528 : vector<16x32xi1>, vector<16x32xf32>
    %530 = vector.extract_strided_slice %2 {offsets = [0, 1], sizes = [16, 1], strides = [1, 1]} : vector<16x16xf32> to vector<16x1xf32>
    %531 = vector.broadcast %530 : vector<16x1xf32> to vector<16x32xf32>
    %532 = arith.addf %529, %531 : vector<16x32xf32>
    %533 = arith.maximumf %520, %532 : vector<16x32xf32>
    %534 = vector.extract_strided_slice %503 {offsets = [2, 0], sizes = [1, 32], strides = [1, 1]} : vector<16x32xf32> to vector<1x32xf32>
    %535 = vector.extract_strided_slice %506 {offsets = [32, 0], sizes = [16, 32], strides = [1, 1]} : vector<256x32xf32> to vector<16x32xf32>
    %536 = vector.broadcast %534 : vector<1x32xf32> to vector<16x32xf32>
    %537 = arith.addf %536, %535 : vector<16x32xf32>
    %cst_147 = arith.constant 0.000000e+00 : f32
    %538 = vector.broadcast %cst_147 : f32 to vector<16x32xf32>
    %539 = arith.cmpf ogt, %537, %538 : vector<16x32xf32>
    %cst_148 = arith.constant 0.00999999977 : f32
    %540 = vector.broadcast %cst_148 : f32 to vector<16x32xf32>
    %541 = arith.mulf %540, %537 : vector<16x32xf32>
    %542 = arith.select %539, %537, %541 : vector<16x32xi1>, vector<16x32xf32>
    %543 = vector.extract_strided_slice %2 {offsets = [0, 2], sizes = [16, 1], strides = [1, 1]} : vector<16x16xf32> to vector<16x1xf32>
    %544 = vector.broadcast %543 : vector<16x1xf32> to vector<16x32xf32>
    %545 = arith.addf %542, %544 : vector<16x32xf32>
    %546 = arith.maximumf %533, %545 : vector<16x32xf32>
    %547 = vector.extract_strided_slice %503 {offsets = [3, 0], sizes = [1, 32], strides = [1, 1]} : vector<16x32xf32> to vector<1x32xf32>
    %548 = vector.extract_strided_slice %506 {offsets = [48, 0], sizes = [16, 32], strides = [1, 1]} : vector<256x32xf32> to vector<16x32xf32>
    %549 = vector.broadcast %547 : vector<1x32xf32> to vector<16x32xf32>
    %550 = arith.addf %549, %548 : vector<16x32xf32>
    %cst_149 = arith.constant 0.000000e+00 : f32
    %551 = vector.broadcast %cst_149 : f32 to vector<16x32xf32>
    %552 = arith.cmpf ogt, %550, %551 : vector<16x32xf32>
    %cst_150 = arith.constant 0.00999999977 : f32
    %553 = vector.broadcast %cst_150 : f32 to vector<16x32xf32>
    %554 = arith.mulf %553, %550 : vector<16x32xf32>
    %555 = arith.select %552, %550, %554 : vector<16x32xi1>, vector<16x32xf32>
    %556 = vector.extract_strided_slice %2 {offsets = [0, 3], sizes = [16, 1], strides = [1, 1]} : vector<16x16xf32> to vector<16x1xf32>
    %557 = vector.broadcast %556 : vector<16x1xf32> to vector<16x32xf32>
    %558 = arith.addf %555, %557 : vector<16x32xf32>
    %559 = arith.maximumf %546, %558 : vector<16x32xf32>
    %560 = vector.extract_strided_slice %503 {offsets = [4, 0], sizes = [1, 32], strides = [1, 1]} : vector<16x32xf32> to vector<1x32xf32>
    %561 = vector.extract_strided_slice %506 {offsets = [64, 0], sizes = [16, 32], strides = [1, 1]} : vector<256x32xf32> to vector<16x32xf32>
    %562 = vector.broadcast %560 : vector<1x32xf32> to vector<16x32xf32>
    %563 = arith.addf %562, %561 : vector<16x32xf32>
    %cst_151 = arith.constant 0.000000e+00 : f32
    %564 = vector.broadcast %cst_151 : f32 to vector<16x32xf32>
    %565 = arith.cmpf ogt, %563, %564 : vector<16x32xf32>
    %cst_152 = arith.constant 0.00999999977 : f32
    %566 = vector.broadcast %cst_152 : f32 to vector<16x32xf32>
    %567 = arith.mulf %566, %563 : vector<16x32xf32>
    %568 = arith.select %565, %563, %567 : vector<16x32xi1>, vector<16x32xf32>
    %569 = vector.extract_strided_slice %2 {offsets = [0, 4], sizes = [16, 1], strides = [1, 1]} : vector<16x16xf32> to vector<16x1xf32>
    %570 = vector.broadcast %569 : vector<16x1xf32> to vector<16x32xf32>
    %571 = arith.addf %568, %570 : vector<16x32xf32>
    %572 = arith.maximumf %559, %571 : vector<16x32xf32>
    %573 = vector.extract_strided_slice %503 {offsets = [5, 0], sizes = [1, 32], strides = [1, 1]} : vector<16x32xf32> to vector<1x32xf32>
    %574 = vector.extract_strided_slice %506 {offsets = [80, 0], sizes = [16, 32], strides = [1, 1]} : vector<256x32xf32> to vector<16x32xf32>
    %575 = vector.broadcast %573 : vector<1x32xf32> to vector<16x32xf32>
    %576 = arith.addf %575, %574 : vector<16x32xf32>
    %cst_153 = arith.constant 0.000000e+00 : f32
    %577 = vector.broadcast %cst_153 : f32 to vector<16x32xf32>
    %578 = arith.cmpf ogt, %576, %577 : vector<16x32xf32>
    %cst_154 = arith.constant 0.00999999977 : f32
    %579 = vector.broadcast %cst_154 : f32 to vector<16x32xf32>
    %580 = arith.mulf %579, %576 : vector<16x32xf32>
    %581 = arith.select %578, %576, %580 : vector<16x32xi1>, vector<16x32xf32>
    %582 = vector.extract_strided_slice %2 {offsets = [0, 5], sizes = [16, 1], strides = [1, 1]} : vector<16x16xf32> to vector<16x1xf32>
    %583 = vector.broadcast %582 : vector<16x1xf32> to vector<16x32xf32>
    %584 = arith.addf %581, %583 : vector<16x32xf32>
    %585 = arith.maximumf %572, %584 : vector<16x32xf32>
    %586 = vector.extract_strided_slice %503 {offsets = [6, 0], sizes = [1, 32], strides = [1, 1]} : vector<16x32xf32> to vector<1x32xf32>
    %587 = vector.extract_strided_slice %506 {offsets = [96, 0], sizes = [16, 32], strides = [1, 1]} : vector<256x32xf32> to vector<16x32xf32>
    %588 = vector.broadcast %586 : vector<1x32xf32> to vector<16x32xf32>
    %589 = arith.addf %588, %587 : vector<16x32xf32>
    %cst_155 = arith.constant 0.000000e+00 : f32
    %590 = vector.broadcast %cst_155 : f32 to vector<16x32xf32>
    %591 = arith.cmpf ogt, %589, %590 : vector<16x32xf32>
    %cst_156 = arith.constant 0.00999999977 : f32
    %592 = vector.broadcast %cst_156 : f32 to vector<16x32xf32>
    %593 = arith.mulf %592, %589 : vector<16x32xf32>
    %594 = arith.select %591, %589, %593 : vector<16x32xi1>, vector<16x32xf32>
    %595 = vector.extract_strided_slice %2 {offsets = [0, 6], sizes = [16, 1], strides = [1, 1]} : vector<16x16xf32> to vector<16x1xf32>
    %596 = vector.broadcast %595 : vector<16x1xf32> to vector<16x32xf32>
    %597 = arith.addf %594, %596 : vector<16x32xf32>
    %598 = arith.maximumf %585, %597 : vector<16x32xf32>
    %599 = vector.extract_strided_slice %503 {offsets = [7, 0], sizes = [1, 32], strides = [1, 1]} : vector<16x32xf32> to vector<1x32xf32>
    %600 = vector.extract_strided_slice %506 {offsets = [112, 0], sizes = [16, 32], strides = [1, 1]} : vector<256x32xf32> to vector<16x32xf32>
    %601 = vector.broadcast %599 : vector<1x32xf32> to vector<16x32xf32>
    %602 = arith.addf %601, %600 : vector<16x32xf32>
    %cst_157 = arith.constant 0.000000e+00 : f32
    %603 = vector.broadcast %cst_157 : f32 to vector<16x32xf32>
    %604 = arith.cmpf ogt, %602, %603 : vector<16x32xf32>
    %cst_158 = arith.constant 0.00999999977 : f32
    %605 = vector.broadcast %cst_158 : f32 to vector<16x32xf32>
    %606 = arith.mulf %605, %602 : vector<16x32xf32>
    %607 = arith.select %604, %602, %606 : vector<16x32xi1>, vector<16x32xf32>
    %608 = vector.extract_strided_slice %2 {offsets = [0, 7], sizes = [16, 1], strides = [1, 1]} : vector<16x16xf32> to vector<16x1xf32>
    %609 = vector.broadcast %608 : vector<16x1xf32> to vector<16x32xf32>
    %610 = arith.addf %607, %609 : vector<16x32xf32>
    %611 = arith.maximumf %598, %610 : vector<16x32xf32>
    %612 = vector.extract_strided_slice %503 {offsets = [8, 0], sizes = [1, 32], strides = [1, 1]} : vector<16x32xf32> to vector<1x32xf32>
    %613 = vector.extract_strided_slice %506 {offsets = [128, 0], sizes = [16, 32], strides = [1, 1]} : vector<256x32xf32> to vector<16x32xf32>
    %614 = vector.broadcast %612 : vector<1x32xf32> to vector<16x32xf32>
    %615 = arith.addf %614, %613 : vector<16x32xf32>
    %cst_159 = arith.constant 0.000000e+00 : f32
    %616 = vector.broadcast %cst_159 : f32 to vector<16x32xf32>
    %617 = arith.cmpf ogt, %615, %616 : vector<16x32xf32>
    %cst_160 = arith.constant 0.00999999977 : f32
    %618 = vector.broadcast %cst_160 : f32 to vector<16x32xf32>
    %619 = arith.mulf %618, %615 : vector<16x32xf32>
    %620 = arith.select %617, %615, %619 : vector<16x32xi1>, vector<16x32xf32>
    %621 = vector.extract_strided_slice %2 {offsets = [0, 8], sizes = [16, 1], strides = [1, 1]} : vector<16x16xf32> to vector<16x1xf32>
    %622 = vector.broadcast %621 : vector<16x1xf32> to vector<16x32xf32>
    %623 = arith.addf %620, %622 : vector<16x32xf32>
    %624 = arith.maximumf %611, %623 : vector<16x32xf32>
    %625 = vector.extract_strided_slice %503 {offsets = [9, 0], sizes = [1, 32], strides = [1, 1]} : vector<16x32xf32> to vector<1x32xf32>
    %626 = vector.extract_strided_slice %506 {offsets = [144, 0], sizes = [16, 32], strides = [1, 1]} : vector<256x32xf32> to vector<16x32xf32>
    %627 = vector.broadcast %625 : vector<1x32xf32> to vector<16x32xf32>
    %628 = arith.addf %627, %626 : vector<16x32xf32>
    %cst_161 = arith.constant 0.000000e+00 : f32
    %629 = vector.broadcast %cst_161 : f32 to vector<16x32xf32>
    %630 = arith.cmpf ogt, %628, %629 : vector<16x32xf32>
    %cst_162 = arith.constant 0.00999999977 : f32
    %631 = vector.broadcast %cst_162 : f32 to vector<16x32xf32>
    %632 = arith.mulf %631, %628 : vector<16x32xf32>
    %633 = arith.select %630, %628, %632 : vector<16x32xi1>, vector<16x32xf32>
    %634 = vector.extract_strided_slice %2 {offsets = [0, 9], sizes = [16, 1], strides = [1, 1]} : vector<16x16xf32> to vector<16x1xf32>
    %635 = vector.broadcast %634 : vector<16x1xf32> to vector<16x32xf32>
    %636 = arith.addf %633, %635 : vector<16x32xf32>
    %637 = arith.maximumf %624, %636 : vector<16x32xf32>
    %638 = vector.extract_strided_slice %503 {offsets = [10, 0], sizes = [1, 32], strides = [1, 1]} : vector<16x32xf32> to vector<1x32xf32>
    %639 = vector.extract_strided_slice %506 {offsets = [160, 0], sizes = [16, 32], strides = [1, 1]} : vector<256x32xf32> to vector<16x32xf32>
    %640 = vector.broadcast %638 : vector<1x32xf32> to vector<16x32xf32>
    %641 = arith.addf %640, %639 : vector<16x32xf32>
    %cst_163 = arith.constant 0.000000e+00 : f32
    %642 = vector.broadcast %cst_163 : f32 to vector<16x32xf32>
    %643 = arith.cmpf ogt, %641, %642 : vector<16x32xf32>
    %cst_164 = arith.constant 0.00999999977 : f32
    %644 = vector.broadcast %cst_164 : f32 to vector<16x32xf32>
    %645 = arith.mulf %644, %641 : vector<16x32xf32>
    %646 = arith.select %643, %641, %645 : vector<16x32xi1>, vector<16x32xf32>
    %647 = vector.extract_strided_slice %2 {offsets = [0, 10], sizes = [16, 1], strides = [1, 1]} : vector<16x16xf32> to vector<16x1xf32>
    %648 = vector.broadcast %647 : vector<16x1xf32> to vector<16x32xf32>
    %649 = arith.addf %646, %648 : vector<16x32xf32>
    %650 = arith.maximumf %637, %649 : vector<16x32xf32>
    %651 = vector.extract_strided_slice %503 {offsets = [11, 0], sizes = [1, 32], strides = [1, 1]} : vector<16x32xf32> to vector<1x32xf32>
    %652 = vector.extract_strided_slice %506 {offsets = [176, 0], sizes = [16, 32], strides = [1, 1]} : vector<256x32xf32> to vector<16x32xf32>
    %653 = vector.broadcast %651 : vector<1x32xf32> to vector<16x32xf32>
    %654 = arith.addf %653, %652 : vector<16x32xf32>
    %cst_165 = arith.constant 0.000000e+00 : f32
    %655 = vector.broadcast %cst_165 : f32 to vector<16x32xf32>
    %656 = arith.cmpf ogt, %654, %655 : vector<16x32xf32>
    %cst_166 = arith.constant 0.00999999977 : f32
    %657 = vector.broadcast %cst_166 : f32 to vector<16x32xf32>
    %658 = arith.mulf %657, %654 : vector<16x32xf32>
    %659 = arith.select %656, %654, %658 : vector<16x32xi1>, vector<16x32xf32>
    %660 = vector.extract_strided_slice %2 {offsets = [0, 11], sizes = [16, 1], strides = [1, 1]} : vector<16x16xf32> to vector<16x1xf32>
    %661 = vector.broadcast %660 : vector<16x1xf32> to vector<16x32xf32>
    %662 = arith.addf %659, %661 : vector<16x32xf32>
    %663 = arith.maximumf %650, %662 : vector<16x32xf32>
    %664 = vector.extract_strided_slice %503 {offsets = [12, 0], sizes = [1, 32], strides = [1, 1]} : vector<16x32xf32> to vector<1x32xf32>
    %665 = vector.extract_strided_slice %506 {offsets = [192, 0], sizes = [16, 32], strides = [1, 1]} : vector<256x32xf32> to vector<16x32xf32>
    %666 = vector.broadcast %664 : vector<1x32xf32> to vector<16x32xf32>
    %667 = arith.addf %666, %665 : vector<16x32xf32>
    %cst_167 = arith.constant 0.000000e+00 : f32
    %668 = vector.broadcast %cst_167 : f32 to vector<16x32xf32>
    %669 = arith.cmpf ogt, %667, %668 : vector<16x32xf32>
    %cst_168 = arith.constant 0.00999999977 : f32
    %670 = vector.broadcast %cst_168 : f32 to vector<16x32xf32>
    %671 = arith.mulf %670, %667 : vector<16x32xf32>
    %672 = arith.select %669, %667, %671 : vector<16x32xi1>, vector<16x32xf32>
    %673 = vector.extract_strided_slice %2 {offsets = [0, 12], sizes = [16, 1], strides = [1, 1]} : vector<16x16xf32> to vector<16x1xf32>
    %674 = vector.broadcast %673 : vector<16x1xf32> to vector<16x32xf32>
    %675 = arith.addf %672, %674 : vector<16x32xf32>
    %676 = arith.maximumf %663, %675 : vector<16x32xf32>
    %677 = vector.extract_strided_slice %503 {offsets = [13, 0], sizes = [1, 32], strides = [1, 1]} : vector<16x32xf32> to vector<1x32xf32>
    %678 = vector.extract_strided_slice %506 {offsets = [208, 0], sizes = [16, 32], strides = [1, 1]} : vector<256x32xf32> to vector<16x32xf32>
    %679 = vector.broadcast %677 : vector<1x32xf32> to vector<16x32xf32>
    %680 = arith.addf %679, %678 : vector<16x32xf32>
    %cst_169 = arith.constant 0.000000e+00 : f32
    %681 = vector.broadcast %cst_169 : f32 to vector<16x32xf32>
    %682 = arith.cmpf ogt, %680, %681 : vector<16x32xf32>
    %cst_170 = arith.constant 0.00999999977 : f32
    %683 = vector.broadcast %cst_170 : f32 to vector<16x32xf32>
    %684 = arith.mulf %683, %680 : vector<16x32xf32>
    %685 = arith.select %682, %680, %684 : vector<16x32xi1>, vector<16x32xf32>
    %686 = vector.extract_strided_slice %2 {offsets = [0, 13], sizes = [16, 1], strides = [1, 1]} : vector<16x16xf32> to vector<16x1xf32>
    %687 = vector.broadcast %686 : vector<16x1xf32> to vector<16x32xf32>
    %688 = arith.addf %685, %687 : vector<16x32xf32>
    %689 = arith.maximumf %676, %688 : vector<16x32xf32>
    %690 = vector.extract_strided_slice %503 {offsets = [14, 0], sizes = [1, 32], strides = [1, 1]} : vector<16x32xf32> to vector<1x32xf32>
    %691 = vector.extract_strided_slice %506 {offsets = [224, 0], sizes = [16, 32], strides = [1, 1]} : vector<256x32xf32> to vector<16x32xf32>
    %692 = vector.broadcast %690 : vector<1x32xf32> to vector<16x32xf32>
    %693 = arith.addf %692, %691 : vector<16x32xf32>
    %cst_171 = arith.constant 0.000000e+00 : f32
    %694 = vector.broadcast %cst_171 : f32 to vector<16x32xf32>
    %695 = arith.cmpf ogt, %693, %694 : vector<16x32xf32>
    %cst_172 = arith.constant 0.00999999977 : f32
    %696 = vector.broadcast %cst_172 : f32 to vector<16x32xf32>
    %697 = arith.mulf %696, %693 : vector<16x32xf32>
    %698 = arith.select %695, %693, %697 : vector<16x32xi1>, vector<16x32xf32>
    %699 = vector.extract_strided_slice %2 {offsets = [0, 14], sizes = [16, 1], strides = [1, 1]} : vector<16x16xf32> to vector<16x1xf32>
    %700 = vector.broadcast %699 : vector<16x1xf32> to vector<16x32xf32>
    %701 = arith.addf %698, %700 : vector<16x32xf32>
    %702 = arith.maximumf %689, %701 : vector<16x32xf32>
    %703 = vector.extract_strided_slice %503 {offsets = [15, 0], sizes = [1, 32], strides = [1, 1]} : vector<16x32xf32> to vector<1x32xf32>
    %704 = vector.extract_strided_slice %506 {offsets = [240, 0], sizes = [16, 32], strides = [1, 1]} : vector<256x32xf32> to vector<16x32xf32>
    %705 = vector.broadcast %703 : vector<1x32xf32> to vector<16x32xf32>
    %706 = arith.addf %705, %704 : vector<16x32xf32>
    %cst_173 = arith.constant 0.000000e+00 : f32
    %707 = vector.broadcast %cst_173 : f32 to vector<16x32xf32>
    %708 = arith.cmpf ogt, %706, %707 : vector<16x32xf32>
    %cst_174 = arith.constant 0.00999999977 : f32
    %709 = vector.broadcast %cst_174 : f32 to vector<16x32xf32>
    %710 = arith.mulf %709, %706 : vector<16x32xf32>
    %711 = arith.select %708, %706, %710 : vector<16x32xi1>, vector<16x32xf32>
    %712 = vector.extract_strided_slice %2 {offsets = [0, 15], sizes = [16, 1], strides = [1, 1]} : vector<16x16xf32> to vector<16x1xf32>
    %713 = vector.broadcast %712 : vector<16x1xf32> to vector<16x32xf32>
    %714 = arith.addf %711, %713 : vector<16x32xf32>
    %715 = arith.maximumf %702, %714 : vector<16x32xf32>
    %cst_175 = arith.constant 0.000000e+00 : f32
    %716 = vector.broadcast %cst_175 : f32 to vector<16x1xf32>
    %717 = arith.cmpf ogt, %3, %716 : vector<16x1xf32>
    %cst_176 = arith.constant 0.000000e+00 : f32
    %718 = vector.shape_cast %717 : vector<16x1xi1> to vector<16x1xi1>
    %719 = vector.broadcast %718 : vector<16x1xi1> to vector<16x32xi1>
    %720 = vector.broadcast %cst_176 : f32 to vector<16x32xf32>
    %721 = arith.select %719, %715, %720 : vector<16x32xi1>, vector<16x32xf32>
    %722 = vector.extract_strided_slice %496 {offsets = [0, 0], sizes = [2, 32], strides = [1, 1]} : vector<16x32xf32> to vector<2x32xf32>
    %cst_177 = arith.constant dense<0.000000e+00> : vector<16x32xf32>
    %723 = tpu.matmul %5, %722, %cst_177 {dimension_numbers = #tpu.dot_dimension_numbers<[1], [0], [0], [1], [0, 0, 1, 1], [], []>} : vector<16x2xf32>, vector<2x32xf32>, vector<16x32xf32> -> vector<16x32xf32>
    %724 = tpu.concatenate %245, %723, %721 in 1 : vector<16x32xf32>, vector<16x32xf32>, vector<16x32xf32> -> vector<16x96xf32>
    %c1_178 = arith.constant 1 : index
    %c0_179 = arith.constant 0 : index
    %c0_180 = arith.constant 0 : index
    %725 = vector.load %arg10[%c1_178, %c0_179, %c0_180] : memref<3x96x32xf32, #tpu.memory_space<vmem>>, vector<1x96x32xf32>
    %726 = vector.shape_cast %725 : vector<1x96x32xf32> to vector<96x32xf32>
    %cst_181 = arith.constant dense<0.000000e+00> : vector<16x32xf32>
    %727 = tpu.matmul %724, %726, %cst_181 {dimension_numbers = #tpu.dot_dimension_numbers<[1], [0], [0], [1], [0, 0, 1, 1], [], []>} : vector<16x96xf32>, vector<96x32xf32>, vector<16x32xf32> -> vector<16x32xf32>
    %c1_182 = arith.constant 1 : index
    %c0_183 = arith.constant 0 : index
    %c0_184 = arith.constant 0 : index
    %728 = vector.load %arg11[%c1_182, %c0_183, %c0_184] : memref<3x1x32xf32, #tpu.memory_space<vmem>>, vector<1x1x32xf32>
    %729 = vector.shape_cast %728 : vector<1x1x32xf32> to vector<1x32xf32>
    %730 = vector.broadcast %729 : vector<1x32xf32> to vector<16x32xf32>
    %731 = arith.addf %727, %730 : vector<16x32xf32>
    %cst_185 = arith.constant 0.000000e+00 : f32
    %732 = vector.broadcast %cst_185 : f32 to vector<16x32xf32>
    %733 = arith.cmpf ogt, %731, %732 : vector<16x32xf32>
    %cst_186 = arith.constant 0.00999999977 : f32
    %734 = vector.broadcast %cst_186 : f32 to vector<16x32xf32>
    %735 = arith.mulf %734, %731 : vector<16x32xf32>
    %736 = arith.select %733, %731, %735 : vector<16x32xi1>, vector<16x32xf32>
    %737 = arith.addf %736, %245 : vector<16x32xf32>
    %c1_187 = arith.constant 1 : index
    %c0_188 = arith.constant 0 : index
    %c0_189 = arith.constant 0 : index
    %738 = vector.load %arg12[%c1_187, %c0_188, %c0_189] : memref<2x32x96xf32, #tpu.memory_space<vmem>>, vector<1x32x96xf32>
    %739 = vector.shape_cast %738 : vector<1x32x96xf32> to vector<32x96xf32>
    %cst_190 = arith.constant dense<0.000000e+00> : vector<16x96xf32>
    %740 = tpu.matmul %737, %739, %cst_190 {dimension_numbers = #tpu.dot_dimension_numbers<[1], [0], [0], [1], [0, 0, 1, 1], [], []>} : vector<16x32xf32>, vector<32x96xf32>, vector<16x96xf32> -> vector<16x96xf32>
    %c1_191 = arith.constant 1 : index
    %c0_192 = arith.constant 0 : index
    %c0_193 = arith.constant 0 : index
    %741 = vector.load %arg13[%c1_191, %c0_192, %c0_193] : memref<2x1x96xf32, #tpu.memory_space<vmem>>, vector<1x1x96xf32>
    %742 = vector.shape_cast %741 : vector<1x1x96xf32> to vector<1x96xf32>
    %743 = vector.broadcast %742 : vector<1x96xf32> to vector<16x96xf32>
    %744 = arith.addf %740, %743 : vector<16x96xf32>
    %c1_194 = arith.constant 1 : index
    %c0_195 = arith.constant 0 : index
    %c0_196 = arith.constant 0 : index
    %745 = vector.load %arg14[%c1_194, %c0_195, %c0_196] : memref<2x32x96xf32, #tpu.memory_space<vmem>>, vector<1x32x96xf32>
    %746 = vector.shape_cast %745 : vector<1x32x96xf32> to vector<32x96xf32>
    %cst_197 = arith.constant dense<0.000000e+00> : vector<16x96xf32>
    %747 = tpu.matmul %737, %746, %cst_197 {dimension_numbers = #tpu.dot_dimension_numbers<[1], [0], [0], [1], [0, 0, 1, 1], [], []>} : vector<16x32xf32>, vector<32x96xf32>, vector<16x96xf32> -> vector<16x96xf32>
    %c1_198 = arith.constant 1 : index
    %c0_199 = arith.constant 0 : index
    %c0_200 = arith.constant 0 : index
    %748 = vector.load %arg15[%c1_198, %c0_199, %c0_200] : memref<2x1x96xf32, #tpu.memory_space<vmem>>, vector<1x1x96xf32>
    %749 = vector.shape_cast %748 : vector<1x1x96xf32> to vector<1x96xf32>
    %750 = vector.broadcast %749 : vector<1x96xf32> to vector<16x96xf32>
    %751 = arith.addf %747, %750 : vector<16x96xf32>
    %752 = vector.extract_strided_slice %744 {offsets = [0, 0], sizes = [1, 96], strides = [1, 1]} : vector<16x96xf32> to vector<1x96xf32>
    %753 = vector.broadcast %752 : vector<1x96xf32> to vector<16x96xf32>
    %754 = arith.addf %751, %753 : vector<16x96xf32>
    %cst_201 = arith.constant 0.000000e+00 : f32
    %755 = vector.broadcast %cst_201 : f32 to vector<16x96xf32>
    %756 = arith.cmpf ogt, %754, %755 : vector<16x96xf32>
    %cst_202 = arith.constant 2.000000e-01 : f32
    %757 = vector.broadcast %cst_202 : f32 to vector<16x96xf32>
    %758 = arith.mulf %757, %754 : vector<16x96xf32>
    %759 = arith.select %756, %754, %758 : vector<16x96xi1>, vector<16x96xf32>
    %760 = vector.extract_strided_slice %744 {offsets = [1, 0], sizes = [1, 96], strides = [1, 1]} : vector<16x96xf32> to vector<1x96xf32>
    %761 = vector.broadcast %760 : vector<1x96xf32> to vector<16x96xf32>
    %762 = arith.addf %751, %761 : vector<16x96xf32>
    %cst_203 = arith.constant 0.000000e+00 : f32
    %763 = vector.broadcast %cst_203 : f32 to vector<16x96xf32>
    %764 = arith.cmpf ogt, %762, %763 : vector<16x96xf32>
    %cst_204 = arith.constant 2.000000e-01 : f32
    %765 = vector.broadcast %cst_204 : f32 to vector<16x96xf32>
    %766 = arith.mulf %765, %762 : vector<16x96xf32>
    %767 = arith.select %764, %762, %766 : vector<16x96xi1>, vector<16x96xf32>
    %768 = vector.extract_strided_slice %744 {offsets = [2, 0], sizes = [1, 96], strides = [1, 1]} : vector<16x96xf32> to vector<1x96xf32>
    %769 = vector.broadcast %768 : vector<1x96xf32> to vector<16x96xf32>
    %770 = arith.addf %751, %769 : vector<16x96xf32>
    %cst_205 = arith.constant 0.000000e+00 : f32
    %771 = vector.broadcast %cst_205 : f32 to vector<16x96xf32>
    %772 = arith.cmpf ogt, %770, %771 : vector<16x96xf32>
    %cst_206 = arith.constant 2.000000e-01 : f32
    %773 = vector.broadcast %cst_206 : f32 to vector<16x96xf32>
    %774 = arith.mulf %773, %770 : vector<16x96xf32>
    %775 = arith.select %772, %770, %774 : vector<16x96xi1>, vector<16x96xf32>
    %776 = vector.extract_strided_slice %744 {offsets = [3, 0], sizes = [1, 96], strides = [1, 1]} : vector<16x96xf32> to vector<1x96xf32>
    %777 = vector.broadcast %776 : vector<1x96xf32> to vector<16x96xf32>
    %778 = arith.addf %751, %777 : vector<16x96xf32>
    %cst_207 = arith.constant 0.000000e+00 : f32
    %779 = vector.broadcast %cst_207 : f32 to vector<16x96xf32>
    %780 = arith.cmpf ogt, %778, %779 : vector<16x96xf32>
    %cst_208 = arith.constant 2.000000e-01 : f32
    %781 = vector.broadcast %cst_208 : f32 to vector<16x96xf32>
    %782 = arith.mulf %781, %778 : vector<16x96xf32>
    %783 = arith.select %780, %778, %782 : vector<16x96xi1>, vector<16x96xf32>
    %784 = vector.extract_strided_slice %744 {offsets = [4, 0], sizes = [1, 96], strides = [1, 1]} : vector<16x96xf32> to vector<1x96xf32>
    %785 = vector.broadcast %784 : vector<1x96xf32> to vector<16x96xf32>
    %786 = arith.addf %751, %785 : vector<16x96xf32>
    %cst_209 = arith.constant 0.000000e+00 : f32
    %787 = vector.broadcast %cst_209 : f32 to vector<16x96xf32>
    %788 = arith.cmpf ogt, %786, %787 : vector<16x96xf32>
    %cst_210 = arith.constant 2.000000e-01 : f32
    %789 = vector.broadcast %cst_210 : f32 to vector<16x96xf32>
    %790 = arith.mulf %789, %786 : vector<16x96xf32>
    %791 = arith.select %788, %786, %790 : vector<16x96xi1>, vector<16x96xf32>
    %792 = vector.extract_strided_slice %744 {offsets = [5, 0], sizes = [1, 96], strides = [1, 1]} : vector<16x96xf32> to vector<1x96xf32>
    %793 = vector.broadcast %792 : vector<1x96xf32> to vector<16x96xf32>
    %794 = arith.addf %751, %793 : vector<16x96xf32>
    %cst_211 = arith.constant 0.000000e+00 : f32
    %795 = vector.broadcast %cst_211 : f32 to vector<16x96xf32>
    %796 = arith.cmpf ogt, %794, %795 : vector<16x96xf32>
    %cst_212 = arith.constant 2.000000e-01 : f32
    %797 = vector.broadcast %cst_212 : f32 to vector<16x96xf32>
    %798 = arith.mulf %797, %794 : vector<16x96xf32>
    %799 = arith.select %796, %794, %798 : vector<16x96xi1>, vector<16x96xf32>
    %800 = vector.extract_strided_slice %744 {offsets = [6, 0], sizes = [1, 96], strides = [1, 1]} : vector<16x96xf32> to vector<1x96xf32>
    %801 = vector.broadcast %800 : vector<1x96xf32> to vector<16x96xf32>
    %802 = arith.addf %751, %801 : vector<16x96xf32>
    %cst_213 = arith.constant 0.000000e+00 : f32
    %803 = vector.broadcast %cst_213 : f32 to vector<16x96xf32>
    %804 = arith.cmpf ogt, %802, %803 : vector<16x96xf32>
    %cst_214 = arith.constant 2.000000e-01 : f32
    %805 = vector.broadcast %cst_214 : f32 to vector<16x96xf32>
    %806 = arith.mulf %805, %802 : vector<16x96xf32>
    %807 = arith.select %804, %802, %806 : vector<16x96xi1>, vector<16x96xf32>
    %808 = vector.extract_strided_slice %744 {offsets = [7, 0], sizes = [1, 96], strides = [1, 1]} : vector<16x96xf32> to vector<1x96xf32>
    %809 = vector.broadcast %808 : vector<1x96xf32> to vector<16x96xf32>
    %810 = arith.addf %751, %809 : vector<16x96xf32>
    %cst_215 = arith.constant 0.000000e+00 : f32
    %811 = vector.broadcast %cst_215 : f32 to vector<16x96xf32>
    %812 = arith.cmpf ogt, %810, %811 : vector<16x96xf32>
    %cst_216 = arith.constant 2.000000e-01 : f32
    %813 = vector.broadcast %cst_216 : f32 to vector<16x96xf32>
    %814 = arith.mulf %813, %810 : vector<16x96xf32>
    %815 = arith.select %812, %810, %814 : vector<16x96xi1>, vector<16x96xf32>
    %816 = vector.extract_strided_slice %744 {offsets = [8, 0], sizes = [1, 96], strides = [1, 1]} : vector<16x96xf32> to vector<1x96xf32>
    %817 = vector.broadcast %816 : vector<1x96xf32> to vector<16x96xf32>
    %818 = arith.addf %751, %817 : vector<16x96xf32>
    %cst_217 = arith.constant 0.000000e+00 : f32
    %819 = vector.broadcast %cst_217 : f32 to vector<16x96xf32>
    %820 = arith.cmpf ogt, %818, %819 : vector<16x96xf32>
    %cst_218 = arith.constant 2.000000e-01 : f32
    %821 = vector.broadcast %cst_218 : f32 to vector<16x96xf32>
    %822 = arith.mulf %821, %818 : vector<16x96xf32>
    %823 = arith.select %820, %818, %822 : vector<16x96xi1>, vector<16x96xf32>
    %824 = vector.extract_strided_slice %744 {offsets = [9, 0], sizes = [1, 96], strides = [1, 1]} : vector<16x96xf32> to vector<1x96xf32>
    %825 = vector.broadcast %824 : vector<1x96xf32> to vector<16x96xf32>
    %826 = arith.addf %751, %825 : vector<16x96xf32>
    %cst_219 = arith.constant 0.000000e+00 : f32
    %827 = vector.broadcast %cst_219 : f32 to vector<16x96xf32>
    %828 = arith.cmpf ogt, %826, %827 : vector<16x96xf32>
    %cst_220 = arith.constant 2.000000e-01 : f32
    %829 = vector.broadcast %cst_220 : f32 to vector<16x96xf32>
    %830 = arith.mulf %829, %826 : vector<16x96xf32>
    %831 = arith.select %828, %826, %830 : vector<16x96xi1>, vector<16x96xf32>
    %832 = vector.extract_strided_slice %744 {offsets = [10, 0], sizes = [1, 96], strides = [1, 1]} : vector<16x96xf32> to vector<1x96xf32>
    %833 = vector.broadcast %832 : vector<1x96xf32> to vector<16x96xf32>
    %834 = arith.addf %751, %833 : vector<16x96xf32>
    %cst_221 = arith.constant 0.000000e+00 : f32
    %835 = vector.broadcast %cst_221 : f32 to vector<16x96xf32>
    %836 = arith.cmpf ogt, %834, %835 : vector<16x96xf32>
    %cst_222 = arith.constant 2.000000e-01 : f32
    %837 = vector.broadcast %cst_222 : f32 to vector<16x96xf32>
    %838 = arith.mulf %837, %834 : vector<16x96xf32>
    %839 = arith.select %836, %834, %838 : vector<16x96xi1>, vector<16x96xf32>
    %840 = vector.extract_strided_slice %744 {offsets = [11, 0], sizes = [1, 96], strides = [1, 1]} : vector<16x96xf32> to vector<1x96xf32>
    %841 = vector.broadcast %840 : vector<1x96xf32> to vector<16x96xf32>
    %842 = arith.addf %751, %841 : vector<16x96xf32>
    %cst_223 = arith.constant 0.000000e+00 : f32
    %843 = vector.broadcast %cst_223 : f32 to vector<16x96xf32>
    %844 = arith.cmpf ogt, %842, %843 : vector<16x96xf32>
    %cst_224 = arith.constant 2.000000e-01 : f32
    %845 = vector.broadcast %cst_224 : f32 to vector<16x96xf32>
    %846 = arith.mulf %845, %842 : vector<16x96xf32>
    %847 = arith.select %844, %842, %846 : vector<16x96xi1>, vector<16x96xf32>
    %848 = vector.extract_strided_slice %744 {offsets = [12, 0], sizes = [1, 96], strides = [1, 1]} : vector<16x96xf32> to vector<1x96xf32>
    %849 = vector.broadcast %848 : vector<1x96xf32> to vector<16x96xf32>
    %850 = arith.addf %751, %849 : vector<16x96xf32>
    %cst_225 = arith.constant 0.000000e+00 : f32
    %851 = vector.broadcast %cst_225 : f32 to vector<16x96xf32>
    %852 = arith.cmpf ogt, %850, %851 : vector<16x96xf32>
    %cst_226 = arith.constant 2.000000e-01 : f32
    %853 = vector.broadcast %cst_226 : f32 to vector<16x96xf32>
    %854 = arith.mulf %853, %850 : vector<16x96xf32>
    %855 = arith.select %852, %850, %854 : vector<16x96xi1>, vector<16x96xf32>
    %856 = vector.extract_strided_slice %744 {offsets = [13, 0], sizes = [1, 96], strides = [1, 1]} : vector<16x96xf32> to vector<1x96xf32>
    %857 = vector.broadcast %856 : vector<1x96xf32> to vector<16x96xf32>
    %858 = arith.addf %751, %857 : vector<16x96xf32>
    %cst_227 = arith.constant 0.000000e+00 : f32
    %859 = vector.broadcast %cst_227 : f32 to vector<16x96xf32>
    %860 = arith.cmpf ogt, %858, %859 : vector<16x96xf32>
    %cst_228 = arith.constant 2.000000e-01 : f32
    %861 = vector.broadcast %cst_228 : f32 to vector<16x96xf32>
    %862 = arith.mulf %861, %858 : vector<16x96xf32>
    %863 = arith.select %860, %858, %862 : vector<16x96xi1>, vector<16x96xf32>
    %864 = vector.extract_strided_slice %744 {offsets = [14, 0], sizes = [1, 96], strides = [1, 1]} : vector<16x96xf32> to vector<1x96xf32>
    %865 = vector.broadcast %864 : vector<1x96xf32> to vector<16x96xf32>
    %866 = arith.addf %751, %865 : vector<16x96xf32>
    %cst_229 = arith.constant 0.000000e+00 : f32
    %867 = vector.broadcast %cst_229 : f32 to vector<16x96xf32>
    %868 = arith.cmpf ogt, %866, %867 : vector<16x96xf32>
    %cst_230 = arith.constant 2.000000e-01 : f32
    %869 = vector.broadcast %cst_230 : f32 to vector<16x96xf32>
    %870 = arith.mulf %869, %866 : vector<16x96xf32>
    %871 = arith.select %868, %866, %870 : vector<16x96xi1>, vector<16x96xf32>
    %872 = vector.extract_strided_slice %744 {offsets = [15, 0], sizes = [1, 96], strides = [1, 1]} : vector<16x96xf32> to vector<1x96xf32>
    %873 = vector.broadcast %872 : vector<1x96xf32> to vector<16x96xf32>
    %874 = arith.addf %751, %873 : vector<16x96xf32>
    %cst_231 = arith.constant 0.000000e+00 : f32
    %875 = vector.broadcast %cst_231 : f32 to vector<16x96xf32>
    %876 = arith.cmpf ogt, %874, %875 : vector<16x96xf32>
    %cst_232 = arith.constant 2.000000e-01 : f32
    %877 = vector.broadcast %cst_232 : f32 to vector<16x96xf32>
    %878 = arith.mulf %877, %874 : vector<16x96xf32>
    %879 = arith.select %876, %874, %878 : vector<16x96xi1>, vector<16x96xf32>
    %880 = tpu.concatenate %759, %767, %775, %783, %791, %799, %807, %815, %823, %831, %839, %847, %855, %863, %871, %879 in 0 : vector<16x96xf32>, vector<16x96xf32>, vector<16x96xf32>, vector<16x96xf32>, vector<16x96xf32>, vector<16x96xf32>, vector<16x96xf32>, vector<16x96xf32>, vector<16x96xf32>, vector<16x96xf32>, vector<16x96xf32>, vector<16x96xf32>, vector<16x96xf32>, vector<16x96xf32>, vector<16x96xf32>, vector<16x96xf32> -> vector<256x96xf32>
    %c1_233 = arith.constant 1 : index
    %c0_234 = arith.constant 0 : index
    %c0_235 = arith.constant 0 : index
    %881 = vector.load %arg16[%c1_233, %c0_234, %c0_235] : memref<2x96x3xf32, #tpu.memory_space<vmem>>, vector<1x96x3xf32>
    %882 = vector.shape_cast %881 : vector<1x96x3xf32> to vector<96x3xf32>
    %cst_236 = arith.constant dense<0.000000e+00> : vector<256x3xf32>
    %883 = tpu.matmul %880, %882, %cst_236 {dimension_numbers = #tpu.dot_dimension_numbers<[1], [0], [0], [1], [0, 0, 1, 1], [], []>} : vector<256x96xf32>, vector<96x3xf32>, vector<256x3xf32> -> vector<256x3xf32>
    %cst_237 = arith.constant 0.000000e+00 : f32
    %884 = vector.broadcast %cst_237 : f32 to vector<16x32xf32>
    %885 = vector.extract_strided_slice %883 {offsets = [0, 0], sizes = [16, 1], strides = [1, 1]} : vector<256x3xf32> to vector<16x1xf32>
    %886 = vector.extract_strided_slice %883 {offsets = [16, 0], sizes = [16, 1], strides = [1, 1]} : vector<256x3xf32> to vector<16x1xf32>
    %887 = vector.extract_strided_slice %883 {offsets = [32, 0], sizes = [16, 1], strides = [1, 1]} : vector<256x3xf32> to vector<16x1xf32>
    %888 = vector.extract_strided_slice %883 {offsets = [48, 0], sizes = [16, 1], strides = [1, 1]} : vector<256x3xf32> to vector<16x1xf32>
    %889 = vector.extract_strided_slice %883 {offsets = [64, 0], sizes = [16, 1], strides = [1, 1]} : vector<256x3xf32> to vector<16x1xf32>
    %890 = vector.extract_strided_slice %883 {offsets = [80, 0], sizes = [16, 1], strides = [1, 1]} : vector<256x3xf32> to vector<16x1xf32>
    %891 = vector.extract_strided_slice %883 {offsets = [96, 0], sizes = [16, 1], strides = [1, 1]} : vector<256x3xf32> to vector<16x1xf32>
    %892 = vector.extract_strided_slice %883 {offsets = [112, 0], sizes = [16, 1], strides = [1, 1]} : vector<256x3xf32> to vector<16x1xf32>
    %893 = vector.extract_strided_slice %883 {offsets = [128, 0], sizes = [16, 1], strides = [1, 1]} : vector<256x3xf32> to vector<16x1xf32>
    %894 = vector.extract_strided_slice %883 {offsets = [144, 0], sizes = [16, 1], strides = [1, 1]} : vector<256x3xf32> to vector<16x1xf32>
    %895 = vector.extract_strided_slice %883 {offsets = [160, 0], sizes = [16, 1], strides = [1, 1]} : vector<256x3xf32> to vector<16x1xf32>
    %896 = vector.extract_strided_slice %883 {offsets = [176, 0], sizes = [16, 1], strides = [1, 1]} : vector<256x3xf32> to vector<16x1xf32>
    %897 = vector.extract_strided_slice %883 {offsets = [192, 0], sizes = [16, 1], strides = [1, 1]} : vector<256x3xf32> to vector<16x1xf32>
    %898 = vector.extract_strided_slice %883 {offsets = [208, 0], sizes = [16, 1], strides = [1, 1]} : vector<256x3xf32> to vector<16x1xf32>
    %899 = vector.extract_strided_slice %883 {offsets = [224, 0], sizes = [16, 1], strides = [1, 1]} : vector<256x3xf32> to vector<16x1xf32>
    %900 = vector.extract_strided_slice %883 {offsets = [240, 0], sizes = [16, 1], strides = [1, 1]} : vector<256x3xf32> to vector<16x1xf32>
    %901 = tpu.concatenate %885, %886, %887, %888, %889, %890, %891, %892, %893, %894, %895, %896, %897, %898, %899, %900 in 1 : vector<16x1xf32>, vector<16x1xf32>, vector<16x1xf32>, vector<16x1xf32>, vector<16x1xf32>, vector<16x1xf32>, vector<16x1xf32>, vector<16x1xf32>, vector<16x1xf32>, vector<16x1xf32>, vector<16x1xf32>, vector<16x1xf32>, vector<16x1xf32>, vector<16x1xf32>, vector<16x1xf32>, vector<16x1xf32> -> vector<16x16xf32>
    %902 = arith.addf %901, %4 : vector<16x16xf32>
    %cst_238 = arith.constant dense<0xFF800000> : vector<16xf32>
    %903 = vector.multi_reduction <maximumf>, %902, %cst_238 [1] : vector<16x16xf32> to vector<16xf32>
    %904 = vector.shape_cast %903 : vector<16xf32> to vector<16x1xf32>
    %905 = vector.broadcast %904 : vector<16x1xf32> to vector<16x16xf32>
    %906 = arith.subf %902, %905 : vector<16x16xf32>
    %907 = math.exp %906 : vector<16x16xf32>
    %cst_239 = arith.constant dense<0.000000e+00> : vector<16xf32>
    %908 = vector.multi_reduction <add>, %907, %cst_239 [1] : vector<16x16xf32> to vector<16xf32>
    %909 = vector.shape_cast %908 : vector<16xf32> to vector<16x1xf32>
    %910 = tpu.reciprocal %909 {approx = true} : vector<16x1xf32> -> vector<16x1xf32>
    %911 = vector.broadcast %910 : vector<16x1xf32> to vector<16x16xf32>
    %912 = arith.mulf %907, %911 : vector<16x16xf32>
    %913 = vector.extract_strided_slice %744 {offsets = [0, 0], sizes = [16, 32], strides = [1, 1]} : vector<16x96xf32> to vector<16x32xf32>
    %cst_240 = arith.constant dense<0.000000e+00> : vector<16x32xf32>
    %914 = tpu.matmul %912, %913, %cst_240 {dimension_numbers = #tpu.dot_dimension_numbers<[1], [0], [0], [1], [0, 0, 1, 1], [], []>} : vector<16x16xf32>, vector<16x32xf32>, vector<16x32xf32> -> vector<16x32xf32>
    %915 = arith.addf %884, %914 : vector<16x32xf32>
    %916 = vector.extract_strided_slice %883 {offsets = [0, 1], sizes = [16, 1], strides = [1, 1]} : vector<256x3xf32> to vector<16x1xf32>
    %917 = vector.extract_strided_slice %883 {offsets = [16, 1], sizes = [16, 1], strides = [1, 1]} : vector<256x3xf32> to vector<16x1xf32>
    %918 = vector.extract_strided_slice %883 {offsets = [32, 1], sizes = [16, 1], strides = [1, 1]} : vector<256x3xf32> to vector<16x1xf32>
    %919 = vector.extract_strided_slice %883 {offsets = [48, 1], sizes = [16, 1], strides = [1, 1]} : vector<256x3xf32> to vector<16x1xf32>
    %920 = vector.extract_strided_slice %883 {offsets = [64, 1], sizes = [16, 1], strides = [1, 1]} : vector<256x3xf32> to vector<16x1xf32>
    %921 = vector.extract_strided_slice %883 {offsets = [80, 1], sizes = [16, 1], strides = [1, 1]} : vector<256x3xf32> to vector<16x1xf32>
    %922 = vector.extract_strided_slice %883 {offsets = [96, 1], sizes = [16, 1], strides = [1, 1]} : vector<256x3xf32> to vector<16x1xf32>
    %923 = vector.extract_strided_slice %883 {offsets = [112, 1], sizes = [16, 1], strides = [1, 1]} : vector<256x3xf32> to vector<16x1xf32>
    %924 = vector.extract_strided_slice %883 {offsets = [128, 1], sizes = [16, 1], strides = [1, 1]} : vector<256x3xf32> to vector<16x1xf32>
    %925 = vector.extract_strided_slice %883 {offsets = [144, 1], sizes = [16, 1], strides = [1, 1]} : vector<256x3xf32> to vector<16x1xf32>
    %926 = vector.extract_strided_slice %883 {offsets = [160, 1], sizes = [16, 1], strides = [1, 1]} : vector<256x3xf32> to vector<16x1xf32>
    %927 = vector.extract_strided_slice %883 {offsets = [176, 1], sizes = [16, 1], strides = [1, 1]} : vector<256x3xf32> to vector<16x1xf32>
    %928 = vector.extract_strided_slice %883 {offsets = [192, 1], sizes = [16, 1], strides = [1, 1]} : vector<256x3xf32> to vector<16x1xf32>
    %929 = vector.extract_strided_slice %883 {offsets = [208, 1], sizes = [16, 1], strides = [1, 1]} : vector<256x3xf32> to vector<16x1xf32>
    %930 = vector.extract_strided_slice %883 {offsets = [224, 1], sizes = [16, 1], strides = [1, 1]} : vector<256x3xf32> to vector<16x1xf32>
    %931 = vector.extract_strided_slice %883 {offsets = [240, 1], sizes = [16, 1], strides = [1, 1]} : vector<256x3xf32> to vector<16x1xf32>
    %932 = tpu.concatenate %916, %917, %918, %919, %920, %921, %922, %923, %924, %925, %926, %927, %928, %929, %930, %931 in 1 : vector<16x1xf32>, vector<16x1xf32>, vector<16x1xf32>, vector<16x1xf32>, vector<16x1xf32>, vector<16x1xf32>, vector<16x1xf32>, vector<16x1xf32>, vector<16x1xf32>, vector<16x1xf32>, vector<16x1xf32>, vector<16x1xf32>, vector<16x1xf32>, vector<16x1xf32>, vector<16x1xf32>, vector<16x1xf32> -> vector<16x16xf32>
    %933 = arith.addf %932, %4 : vector<16x16xf32>
    %cst_241 = arith.constant dense<0xFF800000> : vector<16xf32>
    %934 = vector.multi_reduction <maximumf>, %933, %cst_241 [1] : vector<16x16xf32> to vector<16xf32>
    %935 = vector.shape_cast %934 : vector<16xf32> to vector<16x1xf32>
    %936 = vector.broadcast %935 : vector<16x1xf32> to vector<16x16xf32>
    %937 = arith.subf %933, %936 : vector<16x16xf32>
    %938 = math.exp %937 : vector<16x16xf32>
    %cst_242 = arith.constant dense<0.000000e+00> : vector<16xf32>
    %939 = vector.multi_reduction <add>, %938, %cst_242 [1] : vector<16x16xf32> to vector<16xf32>
    %940 = vector.shape_cast %939 : vector<16xf32> to vector<16x1xf32>
    %941 = tpu.reciprocal %940 {approx = true} : vector<16x1xf32> -> vector<16x1xf32>
    %942 = vector.broadcast %941 : vector<16x1xf32> to vector<16x16xf32>
    %943 = arith.mulf %938, %942 : vector<16x16xf32>
    %944 = vector.extract_strided_slice %744 {offsets = [0, 32], sizes = [16, 32], strides = [1, 1]} : vector<16x96xf32> to vector<16x32xf32>
    %cst_243 = arith.constant dense<0.000000e+00> : vector<16x32xf32>
    %945 = tpu.matmul %943, %944, %cst_243 {dimension_numbers = #tpu.dot_dimension_numbers<[1], [0], [0], [1], [0, 0, 1, 1], [], []>} : vector<16x16xf32>, vector<16x32xf32>, vector<16x32xf32> -> vector<16x32xf32>
    %946 = arith.addf %915, %945 : vector<16x32xf32>
    %947 = vector.extract_strided_slice %883 {offsets = [0, 2], sizes = [16, 1], strides = [1, 1]} : vector<256x3xf32> to vector<16x1xf32>
    %948 = vector.extract_strided_slice %883 {offsets = [16, 2], sizes = [16, 1], strides = [1, 1]} : vector<256x3xf32> to vector<16x1xf32>
    %949 = vector.extract_strided_slice %883 {offsets = [32, 2], sizes = [16, 1], strides = [1, 1]} : vector<256x3xf32> to vector<16x1xf32>
    %950 = vector.extract_strided_slice %883 {offsets = [48, 2], sizes = [16, 1], strides = [1, 1]} : vector<256x3xf32> to vector<16x1xf32>
    %951 = vector.extract_strided_slice %883 {offsets = [64, 2], sizes = [16, 1], strides = [1, 1]} : vector<256x3xf32> to vector<16x1xf32>
    %952 = vector.extract_strided_slice %883 {offsets = [80, 2], sizes = [16, 1], strides = [1, 1]} : vector<256x3xf32> to vector<16x1xf32>
    %953 = vector.extract_strided_slice %883 {offsets = [96, 2], sizes = [16, 1], strides = [1, 1]} : vector<256x3xf32> to vector<16x1xf32>
    %954 = vector.extract_strided_slice %883 {offsets = [112, 2], sizes = [16, 1], strides = [1, 1]} : vector<256x3xf32> to vector<16x1xf32>
    %955 = vector.extract_strided_slice %883 {offsets = [128, 2], sizes = [16, 1], strides = [1, 1]} : vector<256x3xf32> to vector<16x1xf32>
    %956 = vector.extract_strided_slice %883 {offsets = [144, 2], sizes = [16, 1], strides = [1, 1]} : vector<256x3xf32> to vector<16x1xf32>
    %957 = vector.extract_strided_slice %883 {offsets = [160, 2], sizes = [16, 1], strides = [1, 1]} : vector<256x3xf32> to vector<16x1xf32>
    %958 = vector.extract_strided_slice %883 {offsets = [176, 2], sizes = [16, 1], strides = [1, 1]} : vector<256x3xf32> to vector<16x1xf32>
    %959 = vector.extract_strided_slice %883 {offsets = [192, 2], sizes = [16, 1], strides = [1, 1]} : vector<256x3xf32> to vector<16x1xf32>
    %960 = vector.extract_strided_slice %883 {offsets = [208, 2], sizes = [16, 1], strides = [1, 1]} : vector<256x3xf32> to vector<16x1xf32>
    %961 = vector.extract_strided_slice %883 {offsets = [224, 2], sizes = [16, 1], strides = [1, 1]} : vector<256x3xf32> to vector<16x1xf32>
    %962 = vector.extract_strided_slice %883 {offsets = [240, 2], sizes = [16, 1], strides = [1, 1]} : vector<256x3xf32> to vector<16x1xf32>
    %963 = tpu.concatenate %947, %948, %949, %950, %951, %952, %953, %954, %955, %956, %957, %958, %959, %960, %961, %962 in 1 : vector<16x1xf32>, vector<16x1xf32>, vector<16x1xf32>, vector<16x1xf32>, vector<16x1xf32>, vector<16x1xf32>, vector<16x1xf32>, vector<16x1xf32>, vector<16x1xf32>, vector<16x1xf32>, vector<16x1xf32>, vector<16x1xf32>, vector<16x1xf32>, vector<16x1xf32>, vector<16x1xf32>, vector<16x1xf32> -> vector<16x16xf32>
    %964 = arith.addf %963, %4 : vector<16x16xf32>
    %cst_244 = arith.constant dense<0xFF800000> : vector<16xf32>
    %965 = vector.multi_reduction <maximumf>, %964, %cst_244 [1] : vector<16x16xf32> to vector<16xf32>
    %966 = vector.shape_cast %965 : vector<16xf32> to vector<16x1xf32>
    %967 = vector.broadcast %966 : vector<16x1xf32> to vector<16x16xf32>
    %968 = arith.subf %964, %967 : vector<16x16xf32>
    %969 = math.exp %968 : vector<16x16xf32>
    %cst_245 = arith.constant dense<0.000000e+00> : vector<16xf32>
    %970 = vector.multi_reduction <add>, %969, %cst_245 [1] : vector<16x16xf32> to vector<16xf32>
    %971 = vector.shape_cast %970 : vector<16xf32> to vector<16x1xf32>
    %972 = tpu.reciprocal %971 {approx = true} : vector<16x1xf32> -> vector<16x1xf32>
    %973 = vector.broadcast %972 : vector<16x1xf32> to vector<16x16xf32>
    %974 = arith.mulf %969, %973 : vector<16x16xf32>
    %975 = vector.extract_strided_slice %744 {offsets = [0, 64], sizes = [16, 32], strides = [1, 1]} : vector<16x96xf32> to vector<16x32xf32>
    %cst_246 = arith.constant dense<0.000000e+00> : vector<16x32xf32>
    %976 = tpu.matmul %974, %975, %cst_246 {dimension_numbers = #tpu.dot_dimension_numbers<[1], [0], [0], [1], [0, 0, 1, 1], [], []>} : vector<16x16xf32>, vector<16x32xf32>, vector<16x32xf32> -> vector<16x32xf32>
    %977 = arith.addf %946, %976 : vector<16x32xf32>
    %cst_247 = arith.constant 0.333333343 : f32
    %978 = vector.broadcast %cst_247 : f32 to vector<16x32xf32>
    %979 = arith.mulf %977, %978 : vector<16x32xf32>
    %c1_248 = arith.constant 1 : index
    %c0_249 = arith.constant 0 : index
    %c0_250 = arith.constant 0 : index
    %980 = vector.load %arg17[%c1_248, %c0_249, %c0_250] : memref<2x1x32xf32, #tpu.memory_space<vmem>>, vector<1x1x32xf32>
    %981 = vector.shape_cast %980 : vector<1x1x32xf32> to vector<1x32xf32>
    %982 = vector.broadcast %981 : vector<1x32xf32> to vector<16x32xf32>
    %983 = arith.addf %979, %982 : vector<16x32xf32>
    %cst_251 = arith.constant 0.000000e+00 : f32
    %984 = vector.broadcast %cst_251 : f32 to vector<16x32xf32>
    %985 = arith.cmpf ogt, %983, %984 : vector<16x32xf32>
    %cst_252 = arith.constant 0.00999999977 : f32
    %986 = vector.broadcast %cst_252 : f32 to vector<16x32xf32>
    %987 = arith.mulf %986, %983 : vector<16x32xf32>
    %988 = arith.select %985, %983, %987 : vector<16x32xi1>, vector<16x32xf32>
    %c2 = arith.constant 2 : index
    %c0_253 = arith.constant 0 : index
    %c0_254 = arith.constant 0 : index
    %989 = vector.load %arg7[%c2, %c0_253, %c0_254] : memref<3x32x32xf32, #tpu.memory_space<vmem>>, vector<1x32x32xf32>
    %990 = vector.shape_cast %989 : vector<1x32x32xf32> to vector<32x32xf32>
    %cst_255 = arith.constant dense<0.000000e+00> : vector<16x32xf32>
    %991 = tpu.matmul %737, %990, %cst_255 {dimension_numbers = #tpu.dot_dimension_numbers<[1], [0], [0], [1], [0, 0, 1, 1], [], []>} : vector<16x32xf32>, vector<32x32xf32>, vector<16x32xf32> -> vector<16x32xf32>
    %c2_256 = arith.constant 2 : index
    %c0_257 = arith.constant 0 : index
    %c0_258 = arith.constant 0 : index
    %992 = vector.load %arg9[%c2_256, %c0_257, %c0_258] : memref<3x1x32xf32, #tpu.memory_space<vmem>>, vector<1x1x32xf32>
    %993 = vector.shape_cast %992 : vector<1x1x32xf32> to vector<1x32xf32>
    %994 = vector.broadcast %993 : vector<1x32xf32> to vector<16x32xf32>
    %995 = arith.addf %991, %994 : vector<16x32xf32>
    %c2_259 = arith.constant 2 : index
    %c0_260 = arith.constant 0 : index
    %c0_261 = arith.constant 0 : index
    %996 = vector.load %arg8[%c2_259, %c0_260, %c0_261] : memref<3x8x32xf32, #tpu.memory_space<vmem>>, vector<1x8x32xf32>
    %997 = vector.shape_cast %996 : vector<1x8x32xf32> to vector<8x32xf32>
    %cst_262 = arith.constant dense<0.000000e+00> : vector<256x32xf32>
    %998 = tpu.matmul %1, %997, %cst_262 {dimension_numbers = #tpu.dot_dimension_numbers<[1], [0], [0], [1], [0, 0, 1, 1], [], []>} : vector<256x8xf32>, vector<8x32xf32>, vector<256x32xf32> -> vector<256x32xf32>
    %cst_263 = arith.constant -1.000000e+30 : f32
    %999 = vector.broadcast %cst_263 : f32 to vector<16x32xf32>
    %1000 = vector.extract_strided_slice %995 {offsets = [0, 0], sizes = [1, 32], strides = [1, 1]} : vector<16x32xf32> to vector<1x32xf32>
    %1001 = vector.extract_strided_slice %998 {offsets = [0, 0], sizes = [16, 32], strides = [1, 1]} : vector<256x32xf32> to vector<16x32xf32>
    %1002 = vector.broadcast %1000 : vector<1x32xf32> to vector<16x32xf32>
    %1003 = arith.addf %1002, %1001 : vector<16x32xf32>
    %cst_264 = arith.constant 0.000000e+00 : f32
    %1004 = vector.broadcast %cst_264 : f32 to vector<16x32xf32>
    %1005 = arith.cmpf ogt, %1003, %1004 : vector<16x32xf32>
    %cst_265 = arith.constant 0.00999999977 : f32
    %1006 = vector.broadcast %cst_265 : f32 to vector<16x32xf32>
    %1007 = arith.mulf %1006, %1003 : vector<16x32xf32>
    %1008 = arith.select %1005, %1003, %1007 : vector<16x32xi1>, vector<16x32xf32>
    %1009 = vector.extract_strided_slice %2 {offsets = [0, 0], sizes = [16, 1], strides = [1, 1]} : vector<16x16xf32> to vector<16x1xf32>
    %1010 = vector.broadcast %1009 : vector<16x1xf32> to vector<16x32xf32>
    %1011 = arith.addf %1008, %1010 : vector<16x32xf32>
    %1012 = arith.maximumf %999, %1011 : vector<16x32xf32>
    %1013 = vector.extract_strided_slice %995 {offsets = [1, 0], sizes = [1, 32], strides = [1, 1]} : vector<16x32xf32> to vector<1x32xf32>
    %1014 = vector.extract_strided_slice %998 {offsets = [16, 0], sizes = [16, 32], strides = [1, 1]} : vector<256x32xf32> to vector<16x32xf32>
    %1015 = vector.broadcast %1013 : vector<1x32xf32> to vector<16x32xf32>
    %1016 = arith.addf %1015, %1014 : vector<16x32xf32>
    %cst_266 = arith.constant 0.000000e+00 : f32
    %1017 = vector.broadcast %cst_266 : f32 to vector<16x32xf32>
    %1018 = arith.cmpf ogt, %1016, %1017 : vector<16x32xf32>
    %cst_267 = arith.constant 0.00999999977 : f32
    %1019 = vector.broadcast %cst_267 : f32 to vector<16x32xf32>
    %1020 = arith.mulf %1019, %1016 : vector<16x32xf32>
    %1021 = arith.select %1018, %1016, %1020 : vector<16x32xi1>, vector<16x32xf32>
    %1022 = vector.extract_strided_slice %2 {offsets = [0, 1], sizes = [16, 1], strides = [1, 1]} : vector<16x16xf32> to vector<16x1xf32>
    %1023 = vector.broadcast %1022 : vector<16x1xf32> to vector<16x32xf32>
    %1024 = arith.addf %1021, %1023 : vector<16x32xf32>
    %1025 = arith.maximumf %1012, %1024 : vector<16x32xf32>
    %1026 = vector.extract_strided_slice %995 {offsets = [2, 0], sizes = [1, 32], strides = [1, 1]} : vector<16x32xf32> to vector<1x32xf32>
    %1027 = vector.extract_strided_slice %998 {offsets = [32, 0], sizes = [16, 32], strides = [1, 1]} : vector<256x32xf32> to vector<16x32xf32>
    %1028 = vector.broadcast %1026 : vector<1x32xf32> to vector<16x32xf32>
    %1029 = arith.addf %1028, %1027 : vector<16x32xf32>
    %cst_268 = arith.constant 0.000000e+00 : f32
    %1030 = vector.broadcast %cst_268 : f32 to vector<16x32xf32>
    %1031 = arith.cmpf ogt, %1029, %1030 : vector<16x32xf32>
    %cst_269 = arith.constant 0.00999999977 : f32
    %1032 = vector.broadcast %cst_269 : f32 to vector<16x32xf32>
    %1033 = arith.mulf %1032, %1029 : vector<16x32xf32>
    %1034 = arith.select %1031, %1029, %1033 : vector<16x32xi1>, vector<16x32xf32>
    %1035 = vector.extract_strided_slice %2 {offsets = [0, 2], sizes = [16, 1], strides = [1, 1]} : vector<16x16xf32> to vector<16x1xf32>
    %1036 = vector.broadcast %1035 : vector<16x1xf32> to vector<16x32xf32>
    %1037 = arith.addf %1034, %1036 : vector<16x32xf32>
    %1038 = arith.maximumf %1025, %1037 : vector<16x32xf32>
    %1039 = vector.extract_strided_slice %995 {offsets = [3, 0], sizes = [1, 32], strides = [1, 1]} : vector<16x32xf32> to vector<1x32xf32>
    %1040 = vector.extract_strided_slice %998 {offsets = [48, 0], sizes = [16, 32], strides = [1, 1]} : vector<256x32xf32> to vector<16x32xf32>
    %1041 = vector.broadcast %1039 : vector<1x32xf32> to vector<16x32xf32>
    %1042 = arith.addf %1041, %1040 : vector<16x32xf32>
    %cst_270 = arith.constant 0.000000e+00 : f32
    %1043 = vector.broadcast %cst_270 : f32 to vector<16x32xf32>
    %1044 = arith.cmpf ogt, %1042, %1043 : vector<16x32xf32>
    %cst_271 = arith.constant 0.00999999977 : f32
    %1045 = vector.broadcast %cst_271 : f32 to vector<16x32xf32>
    %1046 = arith.mulf %1045, %1042 : vector<16x32xf32>
    %1047 = arith.select %1044, %1042, %1046 : vector<16x32xi1>, vector<16x32xf32>
    %1048 = vector.extract_strided_slice %2 {offsets = [0, 3], sizes = [16, 1], strides = [1, 1]} : vector<16x16xf32> to vector<16x1xf32>
    %1049 = vector.broadcast %1048 : vector<16x1xf32> to vector<16x32xf32>
    %1050 = arith.addf %1047, %1049 : vector<16x32xf32>
    %1051 = arith.maximumf %1038, %1050 : vector<16x32xf32>
    %1052 = vector.extract_strided_slice %995 {offsets = [4, 0], sizes = [1, 32], strides = [1, 1]} : vector<16x32xf32> to vector<1x32xf32>
    %1053 = vector.extract_strided_slice %998 {offsets = [64, 0], sizes = [16, 32], strides = [1, 1]} : vector<256x32xf32> to vector<16x32xf32>
    %1054 = vector.broadcast %1052 : vector<1x32xf32> to vector<16x32xf32>
    %1055 = arith.addf %1054, %1053 : vector<16x32xf32>
    %cst_272 = arith.constant 0.000000e+00 : f32
    %1056 = vector.broadcast %cst_272 : f32 to vector<16x32xf32>
    %1057 = arith.cmpf ogt, %1055, %1056 : vector<16x32xf32>
    %cst_273 = arith.constant 0.00999999977 : f32
    %1058 = vector.broadcast %cst_273 : f32 to vector<16x32xf32>
    %1059 = arith.mulf %1058, %1055 : vector<16x32xf32>
    %1060 = arith.select %1057, %1055, %1059 : vector<16x32xi1>, vector<16x32xf32>
    %1061 = vector.extract_strided_slice %2 {offsets = [0, 4], sizes = [16, 1], strides = [1, 1]} : vector<16x16xf32> to vector<16x1xf32>
    %1062 = vector.broadcast %1061 : vector<16x1xf32> to vector<16x32xf32>
    %1063 = arith.addf %1060, %1062 : vector<16x32xf32>
    %1064 = arith.maximumf %1051, %1063 : vector<16x32xf32>
    %1065 = vector.extract_strided_slice %995 {offsets = [5, 0], sizes = [1, 32], strides = [1, 1]} : vector<16x32xf32> to vector<1x32xf32>
    %1066 = vector.extract_strided_slice %998 {offsets = [80, 0], sizes = [16, 32], strides = [1, 1]} : vector<256x32xf32> to vector<16x32xf32>
    %1067 = vector.broadcast %1065 : vector<1x32xf32> to vector<16x32xf32>
    %1068 = arith.addf %1067, %1066 : vector<16x32xf32>
    %cst_274 = arith.constant 0.000000e+00 : f32
    %1069 = vector.broadcast %cst_274 : f32 to vector<16x32xf32>
    %1070 = arith.cmpf ogt, %1068, %1069 : vector<16x32xf32>
    %cst_275 = arith.constant 0.00999999977 : f32
    %1071 = vector.broadcast %cst_275 : f32 to vector<16x32xf32>
    %1072 = arith.mulf %1071, %1068 : vector<16x32xf32>
    %1073 = arith.select %1070, %1068, %1072 : vector<16x32xi1>, vector<16x32xf32>
    %1074 = vector.extract_strided_slice %2 {offsets = [0, 5], sizes = [16, 1], strides = [1, 1]} : vector<16x16xf32> to vector<16x1xf32>
    %1075 = vector.broadcast %1074 : vector<16x1xf32> to vector<16x32xf32>
    %1076 = arith.addf %1073, %1075 : vector<16x32xf32>
    %1077 = arith.maximumf %1064, %1076 : vector<16x32xf32>
    %1078 = vector.extract_strided_slice %995 {offsets = [6, 0], sizes = [1, 32], strides = [1, 1]} : vector<16x32xf32> to vector<1x32xf32>
    %1079 = vector.extract_strided_slice %998 {offsets = [96, 0], sizes = [16, 32], strides = [1, 1]} : vector<256x32xf32> to vector<16x32xf32>
    %1080 = vector.broadcast %1078 : vector<1x32xf32> to vector<16x32xf32>
    %1081 = arith.addf %1080, %1079 : vector<16x32xf32>
    %cst_276 = arith.constant 0.000000e+00 : f32
    %1082 = vector.broadcast %cst_276 : f32 to vector<16x32xf32>
    %1083 = arith.cmpf ogt, %1081, %1082 : vector<16x32xf32>
    %cst_277 = arith.constant 0.00999999977 : f32
    %1084 = vector.broadcast %cst_277 : f32 to vector<16x32xf32>
    %1085 = arith.mulf %1084, %1081 : vector<16x32xf32>
    %1086 = arith.select %1083, %1081, %1085 : vector<16x32xi1>, vector<16x32xf32>
    %1087 = vector.extract_strided_slice %2 {offsets = [0, 6], sizes = [16, 1], strides = [1, 1]} : vector<16x16xf32> to vector<16x1xf32>
    %1088 = vector.broadcast %1087 : vector<16x1xf32> to vector<16x32xf32>
    %1089 = arith.addf %1086, %1088 : vector<16x32xf32>
    %1090 = arith.maximumf %1077, %1089 : vector<16x32xf32>
    %1091 = vector.extract_strided_slice %995 {offsets = [7, 0], sizes = [1, 32], strides = [1, 1]} : vector<16x32xf32> to vector<1x32xf32>
    %1092 = vector.extract_strided_slice %998 {offsets = [112, 0], sizes = [16, 32], strides = [1, 1]} : vector<256x32xf32> to vector<16x32xf32>
    %1093 = vector.broadcast %1091 : vector<1x32xf32> to vector<16x32xf32>
    %1094 = arith.addf %1093, %1092 : vector<16x32xf32>
    %cst_278 = arith.constant 0.000000e+00 : f32
    %1095 = vector.broadcast %cst_278 : f32 to vector<16x32xf32>
    %1096 = arith.cmpf ogt, %1094, %1095 : vector<16x32xf32>
    %cst_279 = arith.constant 0.00999999977 : f32
    %1097 = vector.broadcast %cst_279 : f32 to vector<16x32xf32>
    %1098 = arith.mulf %1097, %1094 : vector<16x32xf32>
    %1099 = arith.select %1096, %1094, %1098 : vector<16x32xi1>, vector<16x32xf32>
    %1100 = vector.extract_strided_slice %2 {offsets = [0, 7], sizes = [16, 1], strides = [1, 1]} : vector<16x16xf32> to vector<16x1xf32>
    %1101 = vector.broadcast %1100 : vector<16x1xf32> to vector<16x32xf32>
    %1102 = arith.addf %1099, %1101 : vector<16x32xf32>
    %1103 = arith.maximumf %1090, %1102 : vector<16x32xf32>
    %1104 = vector.extract_strided_slice %995 {offsets = [8, 0], sizes = [1, 32], strides = [1, 1]} : vector<16x32xf32> to vector<1x32xf32>
    %1105 = vector.extract_strided_slice %998 {offsets = [128, 0], sizes = [16, 32], strides = [1, 1]} : vector<256x32xf32> to vector<16x32xf32>
    %1106 = vector.broadcast %1104 : vector<1x32xf32> to vector<16x32xf32>
    %1107 = arith.addf %1106, %1105 : vector<16x32xf32>
    %cst_280 = arith.constant 0.000000e+00 : f32
    %1108 = vector.broadcast %cst_280 : f32 to vector<16x32xf32>
    %1109 = arith.cmpf ogt, %1107, %1108 : vector<16x32xf32>
    %cst_281 = arith.constant 0.00999999977 : f32
    %1110 = vector.broadcast %cst_281 : f32 to vector<16x32xf32>
    %1111 = arith.mulf %1110, %1107 : vector<16x32xf32>
    %1112 = arith.select %1109, %1107, %1111 : vector<16x32xi1>, vector<16x32xf32>
    %1113 = vector.extract_strided_slice %2 {offsets = [0, 8], sizes = [16, 1], strides = [1, 1]} : vector<16x16xf32> to vector<16x1xf32>
    %1114 = vector.broadcast %1113 : vector<16x1xf32> to vector<16x32xf32>
    %1115 = arith.addf %1112, %1114 : vector<16x32xf32>
    %1116 = arith.maximumf %1103, %1115 : vector<16x32xf32>
    %1117 = vector.extract_strided_slice %995 {offsets = [9, 0], sizes = [1, 32], strides = [1, 1]} : vector<16x32xf32> to vector<1x32xf32>
    %1118 = vector.extract_strided_slice %998 {offsets = [144, 0], sizes = [16, 32], strides = [1, 1]} : vector<256x32xf32> to vector<16x32xf32>
    %1119 = vector.broadcast %1117 : vector<1x32xf32> to vector<16x32xf32>
    %1120 = arith.addf %1119, %1118 : vector<16x32xf32>
    %cst_282 = arith.constant 0.000000e+00 : f32
    %1121 = vector.broadcast %cst_282 : f32 to vector<16x32xf32>
    %1122 = arith.cmpf ogt, %1120, %1121 : vector<16x32xf32>
    %cst_283 = arith.constant 0.00999999977 : f32
    %1123 = vector.broadcast %cst_283 : f32 to vector<16x32xf32>
    %1124 = arith.mulf %1123, %1120 : vector<16x32xf32>
    %1125 = arith.select %1122, %1120, %1124 : vector<16x32xi1>, vector<16x32xf32>
    %1126 = vector.extract_strided_slice %2 {offsets = [0, 9], sizes = [16, 1], strides = [1, 1]} : vector<16x16xf32> to vector<16x1xf32>
    %1127 = vector.broadcast %1126 : vector<16x1xf32> to vector<16x32xf32>
    %1128 = arith.addf %1125, %1127 : vector<16x32xf32>
    %1129 = arith.maximumf %1116, %1128 : vector<16x32xf32>
    %1130 = vector.extract_strided_slice %995 {offsets = [10, 0], sizes = [1, 32], strides = [1, 1]} : vector<16x32xf32> to vector<1x32xf32>
    %1131 = vector.extract_strided_slice %998 {offsets = [160, 0], sizes = [16, 32], strides = [1, 1]} : vector<256x32xf32> to vector<16x32xf32>
    %1132 = vector.broadcast %1130 : vector<1x32xf32> to vector<16x32xf32>
    %1133 = arith.addf %1132, %1131 : vector<16x32xf32>
    %cst_284 = arith.constant 0.000000e+00 : f32
    %1134 = vector.broadcast %cst_284 : f32 to vector<16x32xf32>
    %1135 = arith.cmpf ogt, %1133, %1134 : vector<16x32xf32>
    %cst_285 = arith.constant 0.00999999977 : f32
    %1136 = vector.broadcast %cst_285 : f32 to vector<16x32xf32>
    %1137 = arith.mulf %1136, %1133 : vector<16x32xf32>
    %1138 = arith.select %1135, %1133, %1137 : vector<16x32xi1>, vector<16x32xf32>
    %1139 = vector.extract_strided_slice %2 {offsets = [0, 10], sizes = [16, 1], strides = [1, 1]} : vector<16x16xf32> to vector<16x1xf32>
    %1140 = vector.broadcast %1139 : vector<16x1xf32> to vector<16x32xf32>
    %1141 = arith.addf %1138, %1140 : vector<16x32xf32>
    %1142 = arith.maximumf %1129, %1141 : vector<16x32xf32>
    %1143 = vector.extract_strided_slice %995 {offsets = [11, 0], sizes = [1, 32], strides = [1, 1]} : vector<16x32xf32> to vector<1x32xf32>
    %1144 = vector.extract_strided_slice %998 {offsets = [176, 0], sizes = [16, 32], strides = [1, 1]} : vector<256x32xf32> to vector<16x32xf32>
    %1145 = vector.broadcast %1143 : vector<1x32xf32> to vector<16x32xf32>
    %1146 = arith.addf %1145, %1144 : vector<16x32xf32>
    %cst_286 = arith.constant 0.000000e+00 : f32
    %1147 = vector.broadcast %cst_286 : f32 to vector<16x32xf32>
    %1148 = arith.cmpf ogt, %1146, %1147 : vector<16x32xf32>
    %cst_287 = arith.constant 0.00999999977 : f32
    %1149 = vector.broadcast %cst_287 : f32 to vector<16x32xf32>
    %1150 = arith.mulf %1149, %1146 : vector<16x32xf32>
    %1151 = arith.select %1148, %1146, %1150 : vector<16x32xi1>, vector<16x32xf32>
    %1152 = vector.extract_strided_slice %2 {offsets = [0, 11], sizes = [16, 1], strides = [1, 1]} : vector<16x16xf32> to vector<16x1xf32>
    %1153 = vector.broadcast %1152 : vector<16x1xf32> to vector<16x32xf32>
    %1154 = arith.addf %1151, %1153 : vector<16x32xf32>
    %1155 = arith.maximumf %1142, %1154 : vector<16x32xf32>
    %1156 = vector.extract_strided_slice %995 {offsets = [12, 0], sizes = [1, 32], strides = [1, 1]} : vector<16x32xf32> to vector<1x32xf32>
    %1157 = vector.extract_strided_slice %998 {offsets = [192, 0], sizes = [16, 32], strides = [1, 1]} : vector<256x32xf32> to vector<16x32xf32>
    %1158 = vector.broadcast %1156 : vector<1x32xf32> to vector<16x32xf32>
    %1159 = arith.addf %1158, %1157 : vector<16x32xf32>
    %cst_288 = arith.constant 0.000000e+00 : f32
    %1160 = vector.broadcast %cst_288 : f32 to vector<16x32xf32>
    %1161 = arith.cmpf ogt, %1159, %1160 : vector<16x32xf32>
    %cst_289 = arith.constant 0.00999999977 : f32
    %1162 = vector.broadcast %cst_289 : f32 to vector<16x32xf32>
    %1163 = arith.mulf %1162, %1159 : vector<16x32xf32>
    %1164 = arith.select %1161, %1159, %1163 : vector<16x32xi1>, vector<16x32xf32>
    %1165 = vector.extract_strided_slice %2 {offsets = [0, 12], sizes = [16, 1], strides = [1, 1]} : vector<16x16xf32> to vector<16x1xf32>
    %1166 = vector.broadcast %1165 : vector<16x1xf32> to vector<16x32xf32>
    %1167 = arith.addf %1164, %1166 : vector<16x32xf32>
    %1168 = arith.maximumf %1155, %1167 : vector<16x32xf32>
    %1169 = vector.extract_strided_slice %995 {offsets = [13, 0], sizes = [1, 32], strides = [1, 1]} : vector<16x32xf32> to vector<1x32xf32>
    %1170 = vector.extract_strided_slice %998 {offsets = [208, 0], sizes = [16, 32], strides = [1, 1]} : vector<256x32xf32> to vector<16x32xf32>
    %1171 = vector.broadcast %1169 : vector<1x32xf32> to vector<16x32xf32>
    %1172 = arith.addf %1171, %1170 : vector<16x32xf32>
    %cst_290 = arith.constant 0.000000e+00 : f32
    %1173 = vector.broadcast %cst_290 : f32 to vector<16x32xf32>
    %1174 = arith.cmpf ogt, %1172, %1173 : vector<16x32xf32>
    %cst_291 = arith.constant 0.00999999977 : f32
    %1175 = vector.broadcast %cst_291 : f32 to vector<16x32xf32>
    %1176 = arith.mulf %1175, %1172 : vector<16x32xf32>
    %1177 = arith.select %1174, %1172, %1176 : vector<16x32xi1>, vector<16x32xf32>
    %1178 = vector.extract_strided_slice %2 {offsets = [0, 13], sizes = [16, 1], strides = [1, 1]} : vector<16x16xf32> to vector<16x1xf32>
    %1179 = vector.broadcast %1178 : vector<16x1xf32> to vector<16x32xf32>
    %1180 = arith.addf %1177, %1179 : vector<16x32xf32>
    %1181 = arith.maximumf %1168, %1180 : vector<16x32xf32>
    %1182 = vector.extract_strided_slice %995 {offsets = [14, 0], sizes = [1, 32], strides = [1, 1]} : vector<16x32xf32> to vector<1x32xf32>
    %1183 = vector.extract_strided_slice %998 {offsets = [224, 0], sizes = [16, 32], strides = [1, 1]} : vector<256x32xf32> to vector<16x32xf32>
    %1184 = vector.broadcast %1182 : vector<1x32xf32> to vector<16x32xf32>
    %1185 = arith.addf %1184, %1183 : vector<16x32xf32>
    %cst_292 = arith.constant 0.000000e+00 : f32
    %1186 = vector.broadcast %cst_292 : f32 to vector<16x32xf32>
    %1187 = arith.cmpf ogt, %1185, %1186 : vector<16x32xf32>
    %cst_293 = arith.constant 0.00999999977 : f32
    %1188 = vector.broadcast %cst_293 : f32 to vector<16x32xf32>
    %1189 = arith.mulf %1188, %1185 : vector<16x32xf32>
    %1190 = arith.select %1187, %1185, %1189 : vector<16x32xi1>, vector<16x32xf32>
    %1191 = vector.extract_strided_slice %2 {offsets = [0, 14], sizes = [16, 1], strides = [1, 1]} : vector<16x16xf32> to vector<16x1xf32>
    %1192 = vector.broadcast %1191 : vector<16x1xf32> to vector<16x32xf32>
    %1193 = arith.addf %1190, %1192 : vector<16x32xf32>
    %1194 = arith.maximumf %1181, %1193 : vector<16x32xf32>
    %1195 = vector.extract_strided_slice %995 {offsets = [15, 0], sizes = [1, 32], strides = [1, 1]} : vector<16x32xf32> to vector<1x32xf32>
    %1196 = vector.extract_strided_slice %998 {offsets = [240, 0], sizes = [16, 32], strides = [1, 1]} : vector<256x32xf32> to vector<16x32xf32>
    %1197 = vector.broadcast %1195 : vector<1x32xf32> to vector<16x32xf32>
    %1198 = arith.addf %1197, %1196 : vector<16x32xf32>
    %cst_294 = arith.constant 0.000000e+00 : f32
    %1199 = vector.broadcast %cst_294 : f32 to vector<16x32xf32>
    %1200 = arith.cmpf ogt, %1198, %1199 : vector<16x32xf32>
    %cst_295 = arith.constant 0.00999999977 : f32
    %1201 = vector.broadcast %cst_295 : f32 to vector<16x32xf32>
    %1202 = arith.mulf %1201, %1198 : vector<16x32xf32>
    %1203 = arith.select %1200, %1198, %1202 : vector<16x32xi1>, vector<16x32xf32>
    %1204 = vector.extract_strided_slice %2 {offsets = [0, 15], sizes = [16, 1], strides = [1, 1]} : vector<16x16xf32> to vector<16x1xf32>
    %1205 = vector.broadcast %1204 : vector<16x1xf32> to vector<16x32xf32>
    %1206 = arith.addf %1203, %1205 : vector<16x32xf32>
    %1207 = arith.maximumf %1194, %1206 : vector<16x32xf32>
    %cst_296 = arith.constant 0.000000e+00 : f32
    %1208 = vector.broadcast %cst_296 : f32 to vector<16x1xf32>
    %1209 = arith.cmpf ogt, %3, %1208 : vector<16x1xf32>
    %cst_297 = arith.constant 0.000000e+00 : f32
    %1210 = vector.shape_cast %1209 : vector<16x1xi1> to vector<16x1xi1>
    %1211 = vector.broadcast %1210 : vector<16x1xi1> to vector<16x32xi1>
    %1212 = vector.broadcast %cst_297 : f32 to vector<16x32xf32>
    %1213 = arith.select %1211, %1207, %1212 : vector<16x32xi1>, vector<16x32xf32>
    %1214 = vector.extract_strided_slice %988 {offsets = [0, 0], sizes = [2, 32], strides = [1, 1]} : vector<16x32xf32> to vector<2x32xf32>
    %cst_298 = arith.constant dense<0.000000e+00> : vector<16x32xf32>
    %1215 = tpu.matmul %5, %1214, %cst_298 {dimension_numbers = #tpu.dot_dimension_numbers<[1], [0], [0], [1], [0, 0, 1, 1], [], []>} : vector<16x2xf32>, vector<2x32xf32>, vector<16x32xf32> -> vector<16x32xf32>
    %1216 = tpu.concatenate %737, %1215, %1213 in 1 : vector<16x32xf32>, vector<16x32xf32>, vector<16x32xf32> -> vector<16x96xf32>
    %c2_299 = arith.constant 2 : index
    %c0_300 = arith.constant 0 : index
    %c0_301 = arith.constant 0 : index
    %1217 = vector.load %arg10[%c2_299, %c0_300, %c0_301] : memref<3x96x32xf32, #tpu.memory_space<vmem>>, vector<1x96x32xf32>
    %1218 = vector.shape_cast %1217 : vector<1x96x32xf32> to vector<96x32xf32>
    %cst_302 = arith.constant dense<0.000000e+00> : vector<16x32xf32>
    %1219 = tpu.matmul %1216, %1218, %cst_302 {dimension_numbers = #tpu.dot_dimension_numbers<[1], [0], [0], [1], [0, 0, 1, 1], [], []>} : vector<16x96xf32>, vector<96x32xf32>, vector<16x32xf32> -> vector<16x32xf32>
    %c2_303 = arith.constant 2 : index
    %c0_304 = arith.constant 0 : index
    %c0_305 = arith.constant 0 : index
    %1220 = vector.load %arg11[%c2_303, %c0_304, %c0_305] : memref<3x1x32xf32, #tpu.memory_space<vmem>>, vector<1x1x32xf32>
    %1221 = vector.shape_cast %1220 : vector<1x1x32xf32> to vector<1x32xf32>
    %1222 = vector.broadcast %1221 : vector<1x32xf32> to vector<16x32xf32>
    %1223 = arith.addf %1219, %1222 : vector<16x32xf32>
    %cst_306 = arith.constant 0.000000e+00 : f32
    %1224 = vector.broadcast %cst_306 : f32 to vector<16x32xf32>
    %1225 = arith.cmpf ogt, %1223, %1224 : vector<16x32xf32>
    %cst_307 = arith.constant 0.00999999977 : f32
    %1226 = vector.broadcast %cst_307 : f32 to vector<16x32xf32>
    %1227 = arith.mulf %1226, %1223 : vector<16x32xf32>
    %1228 = arith.select %1225, %1223, %1227 : vector<16x32xi1>, vector<16x32xf32>
    %1229 = arith.addf %1228, %737 : vector<16x32xf32>
    %c0_308 = arith.constant 0 : index
    %c0_309 = arith.constant 0 : index
    %1230 = vector.load %arg18[%c0_308, %c0_309] : memref<32x1xf32, #tpu.memory_space<vmem>>, vector<32x1xf32>
    %cst_310 = arith.constant dense<0.000000e+00> : vector<16x1xf32>
    %1231 = tpu.matmul %1229, %1230, %cst_310 {dimension_numbers = #tpu.dot_dimension_numbers<[1], [0], [0], [1], [0, 0, 1, 1], [], []>} : vector<16x32xf32>, vector<32x1xf32>, vector<16x1xf32> -> vector<16x1xf32>
    %c0_311 = arith.constant 0 : index
    %c0_312 = arith.constant 0 : index
    %1232 = vector.load %arg19[%c0_311, %c0_312] : memref<1x1xf32, #tpu.memory_space<vmem>>, vector<1x1xf32>
    %1233 = vector.broadcast %1232 : vector<1x1xf32> to vector<16x1xf32>
    %1234 = arith.addf %1231, %1233 : vector<16x1xf32>
    %c0_313 = arith.constant 0 : index
    %c0_314 = arith.constant 0 : index
    %1235 = vector.load %arg20[%c0_313, %c0_314] : memref<32x32xf32, #tpu.memory_space<vmem>>, vector<32x32xf32>
    %cst_315 = arith.constant dense<0.000000e+00> : vector<16x32xf32>
    %1236 = tpu.matmul %1229, %1235, %cst_315 {dimension_numbers = #tpu.dot_dimension_numbers<[1], [0], [0], [1], [0, 0, 1, 1], [], []>} : vector<16x32xf32>, vector<32x32xf32>, vector<16x32xf32> -> vector<16x32xf32>
    %c0_316 = arith.constant 0 : index
    %c0_317 = arith.constant 0 : index
    %1237 = vector.load %arg21[%c0_316, %c0_317] : memref<1x32xf32, #tpu.memory_space<vmem>>, vector<1x32xf32>
    %1238 = vector.broadcast %1237 : vector<1x32xf32> to vector<16x32xf32>
    %1239 = arith.addf %1236, %1238 : vector<16x32xf32>
    %cst_318 = arith.constant 0.000000e+00 : f32
    %1240 = vector.broadcast %cst_318 : f32 to vector<16x32xf32>
    %1241 = arith.cmpf ogt, %1239, %1240 : vector<16x32xf32>
    %cst_319 = arith.constant 0.00999999977 : f32
    %1242 = vector.broadcast %cst_319 : f32 to vector<16x32xf32>
    %1243 = arith.mulf %1242, %1239 : vector<16x32xf32>
    %1244 = arith.select %1241, %1239, %1243 : vector<16x32xi1>, vector<16x32xf32>
    %1245 = vector.extract_strided_slice %5 {offsets = [0, 0], sizes = [16, 1], strides = [1, 1]} : vector<16x2xf32> to vector<16x1xf32>
    %cst_320 = arith.constant 1.000000e+00 : f32
    %1246 = vector.broadcast %cst_320 : f32 to vector<16x1xf32>
    %1247 = arith.subf %1245, %1246 : vector<16x1xf32>
    %cst_321 = arith.constant 1.000000e+30 : f32
    %1248 = vector.broadcast %cst_321 : f32 to vector<16x1xf32>
    %1249 = arith.mulf %1247, %1248 : vector<16x1xf32>
    %1250 = arith.addf %1234, %1249 : vector<16x1xf32>
    %cst_322 = arith.constant dense<0xFF800000> : vector<1xf32>
    %1251 = vector.multi_reduction <maximumf>, %1250, %cst_322 [0] : vector<16x1xf32> to vector<1xf32>
    %1252 = vector.shape_cast %1251 : vector<1xf32> to vector<1x1xf32>
    %1253 = vector.broadcast %1252 : vector<1x1xf32> to vector<16x1xf32>
    %1254 = arith.subf %1250, %1253 : vector<16x1xf32>
    %1255 = math.exp %1254 : vector<16x1xf32>
    %cst_323 = arith.constant dense<0.000000e+00> : vector<1xf32>
    %1256 = vector.multi_reduction <add>, %1255, %cst_323 [0] : vector<16x1xf32> to vector<1xf32>
    %1257 = vector.shape_cast %1256 : vector<1xf32> to vector<1x1xf32>
    %1258 = tpu.reciprocal %1257 {approx = true} : vector<1x1xf32> -> vector<1x1xf32>
    %1259 = vector.broadcast %1258 : vector<1x1xf32> to vector<16x1xf32>
    %1260 = arith.mulf %1255, %1259 : vector<16x1xf32>
    %1261 = vector.broadcast %1260 : vector<16x1xf32> to vector<16x32xf32>
    %1262 = arith.mulf %1261, %1244 : vector<16x32xf32>
    %cst_324 = arith.constant dense<0.000000e+00> : vector<32xf32>
    %1263 = vector.multi_reduction <add>, %1262, %cst_324 [0] : vector<16x32xf32> to vector<32xf32>
    %1264 = vector.shape_cast %1263 : vector<32xf32> to vector<1x32xf32>
    %1265 = vector.extract_strided_slice %5 {offsets = [0, 1], sizes = [16, 1], strides = [1, 1]} : vector<16x2xf32> to vector<16x1xf32>
    %cst_325 = arith.constant 1.000000e+00 : f32
    %1266 = vector.broadcast %cst_325 : f32 to vector<16x1xf32>
    %1267 = arith.subf %1265, %1266 : vector<16x1xf32>
    %cst_326 = arith.constant 1.000000e+30 : f32
    %1268 = vector.broadcast %cst_326 : f32 to vector<16x1xf32>
    %1269 = arith.mulf %1267, %1268 : vector<16x1xf32>
    %1270 = arith.addf %1234, %1269 : vector<16x1xf32>
    %cst_327 = arith.constant dense<0xFF800000> : vector<1xf32>
    %1271 = vector.multi_reduction <maximumf>, %1270, %cst_327 [0] : vector<16x1xf32> to vector<1xf32>
    %1272 = vector.shape_cast %1271 : vector<1xf32> to vector<1x1xf32>
    %1273 = vector.broadcast %1272 : vector<1x1xf32> to vector<16x1xf32>
    %1274 = arith.subf %1270, %1273 : vector<16x1xf32>
    %1275 = math.exp %1274 : vector<16x1xf32>
    %cst_328 = arith.constant dense<0.000000e+00> : vector<1xf32>
    %1276 = vector.multi_reduction <add>, %1275, %cst_328 [0] : vector<16x1xf32> to vector<1xf32>
    %1277 = vector.shape_cast %1276 : vector<1xf32> to vector<1x1xf32>
    %1278 = tpu.reciprocal %1277 {approx = true} : vector<1x1xf32> -> vector<1x1xf32>
    %1279 = vector.broadcast %1278 : vector<1x1xf32> to vector<16x1xf32>
    %1280 = arith.mulf %1275, %1279 : vector<16x1xf32>
    %1281 = vector.broadcast %1280 : vector<16x1xf32> to vector<16x32xf32>
    %1282 = arith.mulf %1281, %1244 : vector<16x32xf32>
    %cst_329 = arith.constant dense<0.000000e+00> : vector<32xf32>
    %1283 = vector.multi_reduction <add>, %1282, %cst_329 [0] : vector<16x32xf32> to vector<32xf32>
    %1284 = vector.shape_cast %1283 : vector<32xf32> to vector<1x32xf32>
    %1285 = tpu.concatenate %1264, %1284 in 0 : vector<1x32xf32>, vector<1x32xf32> -> vector<2x32xf32>
    %c0_330 = arith.constant 0 : index
    %c0_331 = arith.constant 0 : index
    %1286 = vector.load %arg22[%c0_330, %c0_331] : memref<32x32xf32, #tpu.memory_space<vmem>>, vector<32x32xf32>
    %cst_332 = arith.constant dense<0.000000e+00> : vector<2x32xf32>
    %1287 = tpu.matmul %1285, %1286, %cst_332 {dimension_numbers = #tpu.dot_dimension_numbers<[1], [0], [0], [1], [0, 0, 1, 1], [], []>} : vector<2x32xf32>, vector<32x32xf32>, vector<2x32xf32> -> vector<2x32xf32>
    %c0_333 = arith.constant 0 : index
    %c0_334 = arith.constant 0 : index
    %1288 = vector.load %arg23[%c0_333, %c0_334] : memref<1x32xf32, #tpu.memory_space<vmem>>, vector<1x32xf32>
    %1289 = vector.broadcast %1288 : vector<1x32xf32> to vector<2x32xf32>
    %1290 = arith.addf %1287, %1289 : vector<2x32xf32>
    %cst_335 = arith.constant 0.000000e+00 : f32
    %1291 = vector.broadcast %cst_335 : f32 to vector<2x32xf32>
    %1292 = arith.cmpf ogt, %1290, %1291 : vector<2x32xf32>
    %cst_336 = arith.constant 0.00999999977 : f32
    %1293 = vector.broadcast %cst_336 : f32 to vector<2x32xf32>
    %1294 = arith.mulf %1293, %1290 : vector<2x32xf32>
    %1295 = arith.select %1292, %1290, %1294 : vector<2x32xi1>, vector<2x32xf32>
    %c0_337 = arith.constant 0 : index
    %c0_338 = arith.constant 0 : index
    %1296 = vector.load %arg24[%c0_337, %c0_338] : memref<16x32xf32, #tpu.memory_space<vmem>>, vector<16x32xf32>
    tpu.vector_store %arg24[%c0_337, %c0_338], %1229 {strides = array<i32>} : memref<16x32xf32, #tpu.memory_space<vmem>>, vector<16x32xf32>,
    %c0_339 = arith.constant 0 : index
    %c0_340 = arith.constant 0 : index
    %1297 = vector.load %arg25[%c0_339, %c0_340] : memref<2x32xf32, #tpu.memory_space<vmem>>, vector<2x32xf32>
    tpu.vector_store %arg25[%c0_339, %c0_340], %1295 {strides = array<i32>} : memref<2x32xf32, #tpu.memory_space<vmem>>, vector<2x32xf32>,
    return
  }
  func.func @transform_0(%arg0: i32) -> (i32, i32) {
    %c0_i32 = arith.constant 0 : i32
    %c0_i32_0 = arith.constant 0 : i32
    %c0_i32_1 = arith.constant 0 : i32
    return %c0_i32, %c0_i32_0 : i32, i32
  }
  func.func @transform_1(%arg0: i32) -> (i32, i32) {
    %c0_i32 = arith.constant 0 : i32
    %c0_i32_0 = arith.constant 0 : i32
    %c0_i32_1 = arith.constant 0 : i32
    return %c0_i32, %c0_i32_0 : i32, i32
  }
  func.func @transform_2(%arg0: i32) -> (i32, i32) {
    %c0_i32 = arith.constant 0 : i32
    %c0_i32_0 = arith.constant 0 : i32
    %c0_i32_1 = arith.constant 0 : i32
    return %c0_i32, %c0_i32_0 : i32, i32
  }
  func.func @transform_3(%arg0: i32) -> (i32, i32) {
    %c0_i32 = arith.constant 0 : i32
    %c0_i32_0 = arith.constant 0 : i32
    %c0_i32_1 = arith.constant 0 : i32
    return %c0_i32, %c0_i32_0 : i32, i32
  }
  func.func @transform_4(%arg0: i32) -> (i32, i32) {
    %c0_i32 = arith.constant 0 : i32
    %c0_i32_0 = arith.constant 0 : i32
    %c0_i32_1 = arith.constant 0 : i32
    return %c0_i32, %c0_i32_0 : i32, i32
  }
  func.func @transform_5(%arg0: i32) -> (i32, i32) {
    %c0_i32 = arith.constant 0 : i32
    %c0_i32_0 = arith.constant 0 : i32
    %c0_i32_1 = arith.constant 0 : i32
    return %c0_i32, %c0_i32_0 : i32, i32
  }
  func.func @transform_6(%arg0: i32) -> (i32, i32, i32) {
    %c0_i32 = arith.constant 0 : i32
    %c0_i32_0 = arith.constant 0 : i32
    %c0_i32_1 = arith.constant 0 : i32
    %c0_i32_2 = arith.constant 0 : i32
    return %c0_i32, %c0_i32_0, %c0_i32_1 : i32, i32, i32
  }
  func.func @transform_7(%arg0: i32) -> (i32, i32, i32) {
    %c0_i32 = arith.constant 0 : i32
    %c0_i32_0 = arith.constant 0 : i32
    %c0_i32_1 = arith.constant 0 : i32
    %c0_i32_2 = arith.constant 0 : i32
    return %c0_i32, %c0_i32_0, %c0_i32_1 : i32, i32, i32
  }
  func.func @transform_8(%arg0: i32) -> (i32, i32, i32) {
    %c0_i32 = arith.constant 0 : i32
    %c0_i32_0 = arith.constant 0 : i32
    %c0_i32_1 = arith.constant 0 : i32
    %c0_i32_2 = arith.constant 0 : i32
    return %c0_i32, %c0_i32_0, %c0_i32_1 : i32, i32, i32
  }
  func.func @transform_9(%arg0: i32) -> (i32, i32, i32) {
    %c0_i32 = arith.constant 0 : i32
    %c0_i32_0 = arith.constant 0 : i32
    %c0_i32_1 = arith.constant 0 : i32
    %c0_i32_2 = arith.constant 0 : i32
    return %c0_i32, %c0_i32_0, %c0_i32_1 : i32, i32, i32
  }
  func.func @transform_10(%arg0: i32) -> (i32, i32, i32) {
    %c0_i32 = arith.constant 0 : i32
    %c0_i32_0 = arith.constant 0 : i32
    %c0_i32_1 = arith.constant 0 : i32
    %c0_i32_2 = arith.constant 0 : i32
    return %c0_i32, %c0_i32_0, %c0_i32_1 : i32, i32, i32
  }
  func.func @transform_11(%arg0: i32) -> (i32, i32, i32) {
    %c0_i32 = arith.constant 0 : i32
    %c0_i32_0 = arith.constant 0 : i32
    %c0_i32_1 = arith.constant 0 : i32
    %c0_i32_2 = arith.constant 0 : i32
    return %c0_i32, %c0_i32_0, %c0_i32_1 : i32, i32, i32
  }
  func.func @transform_12(%arg0: i32) -> (i32, i32, i32) {
    %c0_i32 = arith.constant 0 : i32
    %c0_i32_0 = arith.constant 0 : i32
    %c0_i32_1 = arith.constant 0 : i32
    %c0_i32_2 = arith.constant 0 : i32
    return %c0_i32, %c0_i32_0, %c0_i32_1 : i32, i32, i32
  }
  func.func @transform_13(%arg0: i32) -> (i32, i32, i32) {
    %c0_i32 = arith.constant 0 : i32
    %c0_i32_0 = arith.constant 0 : i32
    %c0_i32_1 = arith.constant 0 : i32
    %c0_i32_2 = arith.constant 0 : i32
    return %c0_i32, %c0_i32_0, %c0_i32_1 : i32, i32, i32
  }
  func.func @transform_14(%arg0: i32) -> (i32, i32, i32) {
    %c0_i32 = arith.constant 0 : i32
    %c0_i32_0 = arith.constant 0 : i32
    %c0_i32_1 = arith.constant 0 : i32
    %c0_i32_2 = arith.constant 0 : i32
    return %c0_i32, %c0_i32_0, %c0_i32_1 : i32, i32, i32
  }
  func.func @transform_15(%arg0: i32) -> (i32, i32, i32) {
    %c0_i32 = arith.constant 0 : i32
    %c0_i32_0 = arith.constant 0 : i32
    %c0_i32_1 = arith.constant 0 : i32
    %c0_i32_2 = arith.constant 0 : i32
    return %c0_i32, %c0_i32_0, %c0_i32_1 : i32, i32, i32
  }
  func.func @transform_16(%arg0: i32) -> (i32, i32, i32) {
    %c0_i32 = arith.constant 0 : i32
    %c0_i32_0 = arith.constant 0 : i32
    %c0_i32_1 = arith.constant 0 : i32
    %c0_i32_2 = arith.constant 0 : i32
    return %c0_i32, %c0_i32_0, %c0_i32_1 : i32, i32, i32
  }
  func.func @transform_17(%arg0: i32) -> (i32, i32) {
    %c0_i32 = arith.constant 0 : i32
    %c0_i32_0 = arith.constant 0 : i32
    %c0_i32_1 = arith.constant 0 : i32
    return %c0_i32, %c0_i32_0 : i32, i32
  }
  func.func @transform_18(%arg0: i32) -> (i32, i32) {
    %c0_i32 = arith.constant 0 : i32
    %c0_i32_0 = arith.constant 0 : i32
    %c0_i32_1 = arith.constant 0 : i32
    return %c0_i32, %c0_i32_0 : i32, i32
  }
  func.func @transform_19(%arg0: i32) -> (i32, i32) {
    %c0_i32 = arith.constant 0 : i32
    %c0_i32_0 = arith.constant 0 : i32
    %c0_i32_1 = arith.constant 0 : i32
    return %c0_i32, %c0_i32_0 : i32, i32
  }
  func.func @transform_20(%arg0: i32) -> (i32, i32) {
    %c0_i32 = arith.constant 0 : i32
    %c0_i32_0 = arith.constant 0 : i32
    %c0_i32_1 = arith.constant 0 : i32
    return %c0_i32, %c0_i32_0 : i32, i32
  }
  func.func @transform_21(%arg0: i32) -> (i32, i32) {
    %c0_i32 = arith.constant 0 : i32
    %c0_i32_0 = arith.constant 0 : i32
    %c0_i32_1 = arith.constant 0 : i32
    return %c0_i32, %c0_i32_0 : i32, i32
  }
  func.func @transform_22(%arg0: i32) -> (i32, i32) {
    %c0_i32 = arith.constant 0 : i32
    %c0_i32_0 = arith.constant 0 : i32
    %c0_i32_1 = arith.constant 0 : i32
    return %c0_i32, %c0_i32_0 : i32, i32
  }
  func.func @transform_23(%arg0: i32) -> (i32, i32) {
    %c0_i32 = arith.constant 0 : i32
    %c0_i32_0 = arith.constant 0 : i32
    %c0_i32_1 = arith.constant 0 : i32
    return %c0_i32, %c0_i32_0 : i32, i32
  }
  func.func @transform_24(%arg0: i32) -> (i32, i32) {
    %c0_i32 = arith.constant 0 : i32
    %c0_i32_0 = arith.constant 0 : i32
    %c0_i32_1 = arith.constant 0 : i32
    return %c0_i32, %c0_i32_0 : i32, i32
  }
}

</mosaic_0001>

<bundles_post_ra>
// kernel: tpu_custom_call.1
= control target key start
LH: loop header
LB: loop body
LE: loop exit
PB: predicated region body
PF: predicated region fallthrough
CT: control target
= control target key end

     0   :  { %s10207_s0 = inlined_call_operand.vmem [shape: f32[16,32], index: 0, kind: input, shape index: {}]   ;;  %s10208_s1 = inlined_call_operand.vmem [shape: f32[256,8], index: 1, kind: input, shape index: {}]   ;;  %s10209_s2 = inlined_call_operand.vmem [shape: f32[16,16], index: 2, kind: input, shape index: {}]   ;;  %s10210_s3 = inlined_call_operand.vmem [shape: f32[16,1], index: 3, kind: input, shape index: {}]   ;;  %s10211_s4 = inlined_call_operand.vmem [shape: f32[16,16], index: 4, kind: input, shape index: {}]   ;;  %s10212_s5 = inlined_call_operand.vmem [shape: f32[16,2], index: 5, kind: input, shape index: {}]   ;;  %s10213_s6 = inlined_call_operand.vmem [shape: f32[3,32,32], index: 6, kind: input, shape index: {}]   ;;  %s10214_s7 = inlined_call_operand.vmem [shape: f32[3,8,32], index: 7, kind: input, shape index: {}]   ;;  %s10215_s8 = inlined_call_operand.vmem [shape: f32[3,1,32], index: 8, kind: input, shape index: {}]   ;;  %s10216_s9 = inlined_call_operand.vmem [shape: f32[3,96,32], index: 9, kind: input, shape index: {}]   ;;  %s10217_s10 = inlined_call_operand.vmem [shape: f32[3,1,32], index: 10, kind: input, shape index: {}]   ;;  %s10218_s11 = inlined_call_operand.vmem [shape: f32[2,32,96], index: 11, kind: input, shape index: {}]   ;;  %s10219_s12 = inlined_call_operand.vmem [shape: f32[2,1,96], index: 12, kind: input, shape index: {}]   ;;  %s10220_s13 = inlined_call_operand.vmem [shape: f32[2,32,96], index: 13, kind: input, shape index: {}]   ;;  %s10221_s14 = inlined_call_operand.vmem [shape: f32[2,1,96], index: 14, kind: input, shape index: {}]   ;;  %s10222_s15 = inlined_call_operand.vmem [shape: f32[2,96,3], index: 15, kind: input, shape index: {}]   ;;  %s10223_s16 = inlined_call_operand.vmem [shape: f32[2,1,32], index: 16, kind: input, shape index: {}]   ;;  %s10224_s17 = inlined_call_operand.vmem [shape: f32[32,1], index: 17, kind: input, shape index: {}]   ;;  %s10225_s18 = inlined_call_operand.<no memory space> [shape: f32[1,1], index: 18, kind: input, shape index: {}]   ;;  %s10226_s19 = inlined_call_operand.vmem [shape: f32[32,32], index: 19, kind: input, shape index: {}]   ;;  %s10227_s20 = inlined_call_operand.vmem [shape: f32[1,32], index: 20, kind: input, shape index: {}]   ;;  %s10228_s21 = inlined_call_operand.vmem [shape: f32[32,32], index: 21, kind: input, shape index: {}]   ;;  %s10229_s22 = inlined_call_operand.vmem [shape: f32[1,32], index: 22, kind: input, shape index: {}]   ;;  %s10230_s23 = inlined_call_operand.hbm [shape: f32[16,32], index: 23, kind: output, shape index: {0}]   ;;  %s10231_s24 = inlined_call_operand.hbm [shape: f32[2,32], index: 24, kind: output, shape index: {1}]  }
   0x1   :  { %10387 = sst [smem:[#allocation75_spill]] %s10207_s0  ;;  %v30_v0 = vstv %s10225_s18 }
   0x2   :  { %10388 = sst [smem:[#allocation76_spill]] %s10208_s1  ;;  %31 = vst [vmem:[#allocation2] sm:$0x1] %v30_v0 }
   0x3   :  { %10389 = sst [smem:[#allocation77_spill]] %s10209_s2 }
   0x4   :  { %10390 = sst [smem:[#allocation78_spill]] %s10210_s3 }
   0x5   :  { %10391 = sst [smem:[#allocation79_spill]] %s10211_s4 }
   0x6   :  { %10392 = sst [smem:[#allocation80_spill]] %s10212_s5 }
   0x7   :  { %10393 = sst [smem:[#allocation81_spill]] %s10213_s6 }
   0x8   :  { %10394 = sst [smem:[#allocation82_spill]] %s10214_s7 }
   0x9   :  { %10395 = sst [smem:[#allocation83_spill]] %s10215_s8 }
   0xa   :  { %10396 = sst [smem:[#allocation84_spill]] %s10229_s22 }
   0xb   :  { %10397 = sst [smem:[#allocation85_spill]] %s10231_s24 }
   0xc   :  { %32 = vsyncpa [#allocation4], 0  ;;  %s10398_s6 = sld [smem:[#allocation82_spill]]  ;;  %s10399_s0 = sld [smem:[#allocation76_spill]]  ;;  %vm216_vm0 = vcmask 64512   ;;  %vm10354_vm1 = vcmask 261120  }
   0xd   :  { %s10400_s3 = sld [smem:[#allocation81_spill]]  ;;  %v7572_v10 = vmov 1   ;;  %s10401_s30 = sld [smem:[#allocation75_spill]]  ;;  %v7573_v13 = vmov 0  }
   0xe   :  { %7346 = vset.pattern.permute.xlu1 %v7572_v10  ;;  %7345 = vset.pattern.permute.xlu0 %v7573_v13  ;;  %s10402_s25 = sld [smem:[#allocation77_spill]] }
  0x12   :  { %v215_v1 = vld [vmem:[%s10398_s6] sm:$0xff]  ;;  %v83_v5 = vld [vmem:[%s10399_s0 + $0x8] sm:$0xff]  ;;  %v84_v6 = vld [vmem:[%s10399_s0 + $0x10] sm:$0xff] }
  0x13   :  { %v82_v2 = vld [vmem:[%s10399_s0] sm:$0xff]  ;;  %6547 = vmatprep.subr.mxu1 %v215_v1  ;;  %v123_v4 = vld [vmem:[%s10400_s3 + $0x8] sm:$0xff]  ;;  %v124_v8 = vld [vmem:[%s10400_s3 + $0x10] sm:$0xff] }
  0x14   :  { %v122_v3 = vld [vmem:[%s10400_s3] sm:$0xff]  ;;  %6549 = vmatprep.mubr.msk.f32.mxu1 %vm216_vm0, %v82_v2  ;;  %6548 = vmatpush3.msra.mxu1 %v215_v1  ;;  %v125_v9 = vld [vmem:[%s10400_s3 + $0x18] sm:$0xff]  ;;  %v87_v16 = vld [vmem:[%s10399_s0 + $0x28] sm:$0xff] }
  0x15   :  { %v7073_v7 = vpack.c.bf16 %v123_v4, %v122_v3  ;;  %6550 = vmatmul.mubr.msk.f32.vlgmr.msra.gmra.mrb[0].mxu1 %vm216_vm0, %v83_v5  ;;  %v7077_v11 = vpack.c.bf16 %v125_v9, %v124_v8  ;;  %v7771_v12 = vld [vmem:[%s10401_s30] sm:$0xff]  ;;  %v85_v14 = vld [vmem:[%s10399_s0 + $0x18] sm:$0xff]  ;;  %v7791_v17 = vld [vmem:[%s10401_s30 + $0x8] sm:$0xff] }
  0x16   :  { %6552 = vmatprep.mubr.msk.f32.mxu1 %vm216_vm0, %v84_v6  ;;  %6544 = vmatprep.mubr.msk.f32.mxu0 %vm10354_vm1, %v7771_v12  ;;  %v86_v15 = vld [vmem:[%s10399_s0 + $0x20] sm:$0xff]  ;;  %v88_v18 = vld [vmem:[%s10399_s0 + $0x30] sm:$0xff]  ;;  %v89_v20 = vld [vmem:[%s10399_s0 + $0x38] sm:$0xff] }
  0x17   :  { %7074 = vmatprep.subr.bf16.mxu0 %v7073_v7  ;;  %v7800_v19 = vld [vmem:[%s10402_s25] sm:$0xff]  ;;  %v7816_v22 = vld [vmem:[%s10402_s25 + $0x8] sm:$0xff] }
  0x18   :  { %7076 = vmatpush3.bf16.msra.mxu0 %v7073_v7  ;;  %v90_v21 = vld [vmem:[%s10399_s0 + $0x40] sm:$0xff]  ;;  %577 = vperm.xlu1 %7346, %v7800_v19  }
  0x19   :  { %7078 = vmatprep.subr.bf16.mxu0 %v7077_v11  ;;  %6553 = vmatmul.mubr.msk.f32.gmra.mrb[2].mxu1 %vm216_vm0, %v85_v14 }
  0x1a   :  { %6555 = vmatprep.mubr.msk.f32.mxu1 %vm216_vm0, %v86_v15  ;;  %552 = vperm.xlu0 %7345, %v7800_v19  }
  0x1c   :  { %7080 = vmatpush3.bf16.msra.mxu0 %v7077_v11 }
  0x1d   :  { %6556 = vmatmul.mubr.msk.f32.gmra.mrb[4].mxu1 %vm216_vm0, %v87_v16 }
  0x1e   :  { %6558 = vmatprep.mubr.msk.f32.mxu1 %vm216_vm0, %v88_v18 }
  0x1f   :  { %6545 = vmatmul.mubr.msk.f32.vlgmr.msra.gmra.mrb[0].mxu0 %vm10354_vm1, %v7791_v17 }
  0x20   :  { %33 = vsyncpa [#allocation6], 0  ;;  %v91_v23 = vld [vmem:[%s10399_s0 + $0x48] sm:$0xff]  ;;  %v92_v24 = vld [vmem:[%s10399_s0 + $0x50] sm:$0xff]  ;;  %581 = vperm.xlu1 %7346, %v7816_v22   ;;  %557 = vperm.xlu0 %7345, %v7816_v22   ;;  %v7574_v27 = vmov 2   ;;  %v7575_v30 = vmov 3  }
  0x21   :  { %6559 = vmatmul.mubr.msk.f32.gmra.mrb[6].mxu1 %vm216_vm0, %v89_v20  ;;  %v93_v25 = vld [vmem:[%s10399_s0 + $0x58] sm:$0xff]  ;;  %v94_v26 = vld [vmem:[%s10399_s0 + $0x60] sm:$0xff]  ;;  %v95_v28 = vld [vmem:[%s10399_s0 + $0x68] sm:$0xff]  ;;  %v7576_v33 = vmov 4   ;;  %v7577_v36 = vmov 5   ;;  %v7578_v39 = vmov 6  }
  0x22   :  { %6561 = vmatprep.mubr.msk.f32.mxu1 %vm216_vm0, %v90_v21  ;;  %v96_v29 = vld [vmem:[%s10399_s0 + $0x70] sm:$0xff]  ;;  %v97_v31 = vld [vmem:[%s10399_s0 + $0x78] sm:$0xff]  ;;  %v98_v32 = vld [vmem:[%s10399_s0 + $0x80] sm:$0xff]  ;;  %v7579_v42 = vmov 8   ;;  %v7580_v46 = vmov 9   ;;  %v7581_v48 = vmov 7  }
  0x23   :  { %v99_v34 = vld [vmem:[%s10399_s0 + $0x88] sm:$0xff]  ;;  %v100_v35 = vld [vmem:[%s10399_s0 + $0x90] sm:$0xff]  ;;  %v101_v37 = vld [vmem:[%s10399_s0 + $0x98] sm:$0xff]  ;;  %v7582_v51 = vmov 11   ;;  %v7583_v54 = vmov 12   ;;  %v7584_v56 = vmov 14  }
  0x24   :  { %7348 = vset.pattern.permute.xlu1 %v7574_v27  ;;  %7347 = vset.pattern.permute.xlu0 %v7574_v27  ;;  %v102_v38 = vld [vmem:[%s10399_s0 + $0xa0] sm:$0xff]  ;;  %v103_v40 = vld [vmem:[%s10399_s0 + $0xa8] sm:$0xff]  ;;  %v104_v41 = vld [vmem:[%s10399_s0 + $0xb0] sm:$0xff]  ;;  %v7585_v57 = vmov 10   ;;  %v7586_v58 = vmov 15   ;;  %v7587_v59 = vmov 13  }
  0x25   :  { %6562 = vmatmul.mubr.msk.f32.gmra.mrb[8].mxu1 %vm216_vm0, %v91_v23  ;;  %605 = vperm.xlu1 %7348, %v7816_v22   ;;  %v105_v43 = vld [vmem:[%s10399_s0 + $0xb8] sm:$0xff]  ;;  %v106_v44 = vld [vmem:[%s10399_s0 + $0xc0] sm:$0xff]  ;;  %v107_v45 = vld [vmem:[%s10399_s0 + $0xc8] sm:$0xff]  ;;  %s10403_s27 = sld [smem:[#allocation78_spill]]  ;;  %s10416_s25 = sld [smem:[#allocation83_spill]] }
  0x26   :  { %6564 = vmatprep.mubr.msk.f32.mxu1 %vm216_vm0, %v92_v24  ;;  %601 = vperm.xlu0 %7347, %v7800_v19   ;;  %v108_v47 = vld [vmem:[%s10399_s0 + $0xd0] sm:$0xff]  ;;  %v109_v49 = vld [vmem:[%s10399_s0 + $0xd8] sm:$0xff]  ;;  %v110_v50 = vld [vmem:[%s10399_s0 + $0xe0] sm:$0xff]  ;;  %s10377_s18 = smov 64   ;;  %s10375_s29 = smov 127  }
  0x27   :  { %v111_v52 = vld [vmem:[%s10399_s0 + $0xe8] sm:$0xff]  ;;  %v112_v53 = vld [vmem:[%s10399_s0 + $0xf0] sm:$0xff]  ;;  %v113_v55 = vld [vmem:[%s10399_s0 + $0xf8] sm:$0xff]  ;;  %s10370_s7 = smov 126   ;;  %s10368_s8 = smov 1  }
  0x28   :  { %v951_v0 = vld [vmem:[%s10216_s9] sm:$0xff]  ;;  %v952_v1 = vld [vmem:[%s10216_s9 + $0x8] sm:$0xff]  ;;  %v953_v2 = vld [vmem:[%s10216_s9 + $0x10] sm:$0xff]  ;;  %s10362_s4 = smov 3   ;;  %s10293_s1 = smov 4  }
  0x29   :  { %6565 = vmatmul.mubr.msk.f32.gmra.mrb[10].mxu1 %vm216_vm0, %v93_v25  ;;  %7349 = vset.pattern.permute.xlu1 %v7575_v30  ;;  %v7081_v3 = vpack.c.bf16 %v952_v1, %v951_v0  ;;  %v954_v4 = vld [vmem:[%s10216_s9 + $0x18] sm:$0xff]  ;;  %v955_v6 = vld [vmem:[%s10216_s9 + $0x20] sm:$0xff]  ;;  %v956_v7 = vld [vmem:[%s10216_s9 + $0x28] sm:$0xff]  ;;  %s10267_s5 = smov 5   ;;  %s10279_s26 = smov 6  }
  0x2a   :  { %6567 = vmatprep.mubr.msk.f32.mxu1 %vm216_vm0, %v94_v26  ;;  %7350 = vset.pattern.permute.xlu0 %v7575_v30  ;;  %v7085_v5 = vpack.c.bf16 %v954_v4, %v953_v2  ;;  %v7089_v8 = vpack.c.bf16 %v956_v7, %v955_v6  ;;  %v957_v10 = vld [vmem:[%s10216_s9 + $0x30] sm:$0xff]  ;;  %v958_v11 = vld [vmem:[%s10216_s9 + $0x38] sm:$0xff]  ;;  %v959_v14 = vld [vmem:[%s10216_s9 + $0x40] sm:$0xff]  ;;  %s10271_s28 = smov 8   ;;  %s10273_s2 = smov 9  }
  0x2b   :  { %625 = vperm.xlu1 %7349, %v7800_v19   ;;  %629 = vperm.xlu0 %7350, %v7816_v22   ;;  %v116_v60 = vld [vmem:[%s10403_s27] sm:$0xff]  ;;  %v117_v61 = vld [vmem:[%s10403_s27 + $0x8] sm:$0xff]  ;;  %v962_v20 = vld [vmem:[%s10216_s9 + $0x58] sm:$0xff]  ;;  %s10269_s27 = smov 7   ;;  %s10587_s22 = smov 2  }
  0x2c   :  { %vm924_vm2 = vcmp.gt.f32.partialorder %v116_v60, 0.0  ;;  %vm925_vm3 = vcmp.gt.f32.partialorder %v117_v61, 0.0  ;;  %7082 = vmatprep.subr.bf16.mxu0 %v7081_v3  ;;  %v960_v15 = vld [vmem:[%s10216_s9 + $0x48] sm:$0xff]  ;;  %s10596_s24 = smov 11  }
  0x2d   :  { %6568 = vmatmul.mubr.msk.f32.gmra.mrb[12].mxu1 %vm216_vm0, %v95_v28  ;;  %v926_v62 = vsel %vm924_vm2, 1, %v7573_v13  ;;  %v927_v63 = vsel %vm925_vm3, 1, %v7573_v13  ;;  %7084 = vmatpush3.bf16.msra.mxu0 %v7081_v3  ;;  %v7097_v18 = vpack.c.bf16 %v960_v15, %v959_v14 }
  0x2e   :  { %6570 = vmatprep.mubr.msk.f32.mxu1 %vm216_vm0, %v96_v29  ;;  %7086 = vmatprep.subr.bf16.mxu0 %v7085_v5 }
  0x2f   :  { %7351 = vset.pattern.permute.xlu1 %v7576_v33  ;;  %7352 = vset.pattern.permute.xlu0 %v7577_v36 }
  0x30   :  { %649 = vperm.xlu1 %7351, %v7800_v19   ;;  %673 = vperm.xlu0 %7352, %v7800_v19  }
  0x31   :  { %6571 = vmatmul.mubr.msk.f32.gmra.mrb[14].mxu1 %vm216_vm0, %v97_v31  ;;  %7088 = vmatpush3.bf16.msra.mxu0 %v7085_v5  ;;  %v538_v31 = vlaneseq }
  0x32   :  { %6573 = vmatprep.mubr.msk.f32.mxu1 %vm216_vm0, %v98_v32  ;;  %7090 = vmatprep.subr.bf16.mxu0 %v7089_v8 }
  0x34   :  { %653 = vperm.xlu1 %7351, %v7816_v22   ;;  %7355 = vset.pattern.permute.xlu0 %v7578_v39 }
  0x35   :  { %6574 = vmatmul.mubr.msk.f32.gmra.mrb[16].mxu1 %vm216_vm0, %v99_v34  ;;  %701 = vperm.xlu0 %7355, %v7816_v22  }
  0x36   :  { %6576 = vmatprep.mubr.msk.f32.mxu1 %vm216_vm0, %v100_v35  ;;  %7092 = vmatpush3.bf16.msra.mxu0 %v7089_v8  ;;  %v539_v35 = vshrl.u32 %v538_v31, 7 }
  0x38   :  { %7353 = vset.pattern.permute.xlu1 %v7577_v36 }
  0x39   :  { %6577 = vmatmul.mubr.msk.f32.gmra.mrb[18].mxu1 %vm216_vm0, %v101_v37  ;;  %677 = vperm.xlu1 %7353, %v7816_v22  }
  0x3a   :  { %6579 = vmatprep.mubr.msk.f32.mxu1 %vm216_vm0, %v102_v38  ;;  %7357 = vset.pattern.permute.xlu0 %v7579_v42  ;;  %v5937_v38 = vld [vmem:[%s10416_s25] ss:$0 sm:$0xff] }
  0x3b   :  { %745 = vperm.xlu0 %7357, %v7800_v19  }
  0x3d   :  { %6580 = vmatmul.mubr.msk.f32.gmra.mrb[20].mxu1 %vm216_vm0, %v103_v40  ;;  %7354 = vset.pattern.permute.xlu1 %v7578_v39  ;;  %v8015_v40 = vsub.s32 2, %v539_v35 }
  0x3e   :  { %6582 = vmatprep.mubr.msk.f32.mxu1 %vm216_vm0, %v104_v41  ;;  %697 = vperm.xlu1 %7354, %v7800_v19  }
  0x3f   :  { %7360 = vset.pattern.permute.xlu0 %v7580_v46  ;;  %10417 = vst [vmem:[#allocation21_spill] sm:$0xff] %v8015_v40 }
  0x40   :  { %773 = vperm.xlu0 %7360, %v7816_v22  }
  0x41   :  { %6583 = vmatmul.mubr.msk.f32.gmra.mrb[22].mxu1 %vm216_vm0, %v105_v43 }
  0x42   :  { %6585 = vmatprep.mubr.msk.f32.mxu1 %vm216_vm0, %v106_v44  ;;  %7356 = vset.pattern.permute.xlu1 %v7581_v48  ;;  %v8019_v44 = vsub.s32 0, %v539_v35 }
  0x43   :  { %721 = vperm.xlu1 %7356, %v7800_v19  }
  0x44   :  { %7362 = vset.pattern.permute.xlu0 %v7582_v51  ;;  %10419 = vst [vmem:[#allocation23_spill] sm:$0xff] %v8019_v44 }
  0x45   :  { %6586 = vmatmul.mubr.msk.f32.gmra.mrb[24].mxu1 %vm216_vm0, %v107_v45  ;;  %817 = vperm.xlu0 %7362, %v7800_v19   ;;  %v8021_v45 = vsub.s32 1, %v539_v35 }
  0x46   :  { %6588 = vmatprep.mubr.msk.f32.mxu1 %vm216_vm0, %v108_v47  ;;  %v8025_v47 = vsub.s32 4, %v539_v35 }
  0x47   :  { %725 = vperm.xlu1 %7356, %v7816_v22   ;;  %10420 = vst [vmem:[#allocation24_spill] sm:$0xff] %v8021_v45 }
  0x48   :  { %10422 = vst [vmem:[#allocation26_spill] sm:$0xff] %v8025_v47 }
  0x49   :  { %6589 = vmatmul.mubr.msk.f32.gmra.mrb[26].mxu1 %vm216_vm0, %v109_v49  ;;  %7365 = vset.pattern.permute.xlu0 %v7583_v54 }
  0x4a   :  { %6591 = vmatprep.mubr.msk.f32.mxu1 %vm216_vm0, %v110_v50  ;;  %845 = vperm.xlu0 %7365, %v7816_v22  }
  0x4b   :  { %7358 = vset.pattern.permute.xlu1 %v7579_v42 }
  0x4c   :  { %749 = vperm.xlu1 %7358, %v7816_v22  }
  0x4d   :  { %6592 = vmatmul.mubr.msk.f32.gmra.mrb[28].mxu1 %vm216_vm0, %v111_v52  ;;  %v8033_v52 = vsub.s32 6, %v539_v35 }
  0x4e   :  { %6594 = vmatprep.mubr.msk.f32.mxu1 %vm216_vm0, %v112_v53  ;;  %7367 = vset.pattern.permute.xlu0 %v7584_v56  ;;  %v8035_v53 = vsub.s32 7, %v539_v35 }
  0x4f   :  { %889 = vperm.xlu0 %7367, %v7800_v19   ;;  %10425 = vst [vmem:[#allocation29_spill] sm:$0xff] %v8033_v52 }
  0x50   :  { %7359 = vset.pattern.permute.xlu1 %v7580_v46  ;;  %v8023_v46 = vsub.s32 3, %v539_v35  ;;  %10426 = vst [vmem:[#allocation30_spill] sm:$0xff] %v8035_v53 }
  0x51   :  { %6595 = vmatmul.mubr.msk.f32.gmra.mrb[30].mxu1 %vm216_vm0, %v113_v55  ;;  %769 = vperm.xlu1 %7359, %v7800_v19  }
  0x52   :  { %10421 = vst [vmem:[#allocation25_spill] sm:$0xff] %v8023_v46 }
  0x53   :  { %7370 = vset.pattern.permute.xlu0 %v7586_v58 }
  0x54   :  { %917 = vperm.xlu0 %7370, %v7816_v22  }
  0x55   :  { %7361 = vset.pattern.permute.xlu1 %v7585_v57 }
  0x56   :  { %793 = vperm.xlu1 %7361, %v7800_v19  }
  0x58   :  { %7392 = vset.pattern.permute.xlu0 %v7573_v13 }
  0x5a   :  { %797 = vperm.xlu1 %7361, %v7816_v22  }
  0x5e   :  { %7363 = vset.pattern.permute.xlu1 %v7582_v51  ;;  %v8031_v51 = vsub.s32 5, %v539_v35 }
  0x5f   :  { %821 = vperm.xlu1 %7363, %v7816_v22  }
  0x60   :  { %10424 = vst [vmem:[#allocation28_spill] sm:$0xff] %v8031_v51 }
  0x63   :  { %7364 = vset.pattern.permute.xlu1 %v7583_v54 }
  0x64   :  { %841 = vperm.xlu1 %7364, %v7800_v19  }
  0x68   :  { %7366 = vset.pattern.permute.xlu1 %v7587_v59 }
  0x69   :  { %865 = vperm.xlu1 %7366, %v7800_v19  }
  0x6d   :  { %869 = vperm.xlu1 %7366, %v7816_v22  }
  0x71   :  { %7368 = vset.pattern.permute.xlu1 %v7584_v56 }
  0x72   :  { %893 = vperm.xlu1 %7368, %v7816_v22  }
  0x76   :  { %7369 = vset.pattern.permute.xlu1 %v7586_v58 }
  0x77   :  { %913 = vperm.xlu1 %7369, %v7800_v19   ;;  %v961_v19 = vld [vmem:[%s10216_s9 + $0x50] sm:$0xff] }
  0x78   :  { %v7101_v22 = vpack.c.bf16 %v962_v20, %v961_v19 }
  0x7b   :  { %7371 = vset.pattern.permute.xlu1 %v7573_v13  ;;  %v7093_v13 = vpack.c.bf16 %v958_v11, %v957_v10 }
  0x7c   :  { %929 = vperm.xlu1 %7371, %v926_v62  }
  0x7d   :  { %7094 = vmatprep.subr.bf16.mxu0 %v7093_v13 }
  0x7e   :  { %7096 = vmatpush3.bf16.msra.mxu0 %v7093_v13 }
  0x7f   :  { %7098 = vmatprep.subr.bf16.mxu0 %v7097_v18 }
  0x80   :  { %932 = vperm.xlu1 %7371, %v927_v63  }
  0x82   :  { %7100 = vmatpush3.bf16.msra.mxu0 %v7097_v18 }
  0x83   :  { %7102 = vmatprep.subr.bf16.mxu0 %v7101_v22 }
  0x86   :  { %7104 = vmatpush3.bf16.msra.mxu0 %v7101_v22 }
  0x97   :  { %v7970_v9 = vpop.permute.xlu1 %577 }
  0x98   :  { %10404 = vst [vmem:[#allocation9_spill] sm:$0xff] %v7970_v9 }
  0x99   :  { %v8008_v33 = vpop.permute.xlu0 %552 }
  0x9a   :  { %10414 = vst [vmem:[#allocation19_spill] sm:$0xff] %v8008_v33 }
  0x9f   :  { %v7984_v16 = vpop.permute.xlu1 %581  ;;  %v8017_v41 = vpop.permute.xlu0 %557 }
  0xa0   :  { %10405 = vst [vmem:[#allocation10_spill] sm:$0xff] %v7984_v16  ;;  %10418 = vst [vmem:[#allocation22_spill] sm:$0xff] %v8017_v41 }
  0xa4   :  { %v7992_v21 = vpop.permute.xlu1 %605 }
  0xa5   :  { %10406 = vst [vmem:[#allocation11_spill] sm:$0xff] %v7992_v21  ;;  %v8067_v10 = vpop.permute.xlu0 %601 }
  0xa6   :  { %10427 = vst [vmem:[#allocation31_spill] sm:$0xff] %v8067_v10 }
  0xaa   :  { %v7994_v23 = vpop.permute.xlu1 %625 }
  0xab   :  { %10407 = vst [vmem:[#allocation12_spill] sm:$0xff] %v7994_v23 }
  0xaf   :  { %v7996_v24 = vpop.permute.xlu1 %649 }
  0xb0   :  { %10408 = vst [vmem:[#allocation13_spill] sm:$0xff] %v7996_v24 }
  0xb3   :  { %v7998_v25 = vpop.permute.xlu1 %653 }
  0xb4   :  { %10409 = vst [vmem:[#allocation14_spill] sm:$0xff] %v7998_v25 }
  0xb8   :  { %v8000_v26 = vpop.permute.xlu1 %677 }
  0xb9   :  { %10410 = vst [vmem:[#allocation15_spill] sm:$0xff] %v8000_v26 }
  0xbd   :  { %v8002_v27 = vpop.permute.xlu1 %697 }
  0xbe   :  { %10411 = vst [vmem:[#allocation16_spill] sm:$0xff] %v8002_v27 }
  0xc2   :  { %v8004_v28 = vpop.permute.xlu1 %721 }
  0xc3   :  { %10412 = vst [vmem:[#allocation17_spill] sm:$0xff] %v8004_v28 }
  0xc6   :  { %v8006_v30 = vpop.permute.xlu1 %725 }
  0xc7   :  { %10413 = vst [vmem:[#allocation18_spill] sm:$0xff] %v8006_v30 }
  0xcb   :  { %v8010_v36 = vpop.permute.xlu1 %749 }
  0xcc   :  { %10415 = vst [vmem:[#allocation20_spill] sm:$0xff] %v8010_v36 }
  0xd0   :  { %v8029_v50 = vpop.permute.xlu1 %769 }
  0xd1   :  { %10423 = vst [vmem:[#allocation27_spill] sm:$0xff] %v8029_v50 }
  0xd5   :  { %v8069_v19 = vpop.permute.xlu1 %793 }
  0xd6   :  { %10428 = vst [vmem:[#allocation32_spill] sm:$0xff] %v8069_v19 }
  0xe8   :  { %v6551_v29 = vpop.f32.mrb[0].mxu1 }
  0xe9   :  { %v379_v32 = vpop.f32.mrb[1].mxu1 }
  0xec   :  { %v6554_v34 = vpop.f32.mrb[2].mxu1 }
  0xed   :  { %v389_v37 = vpop.f32.mrb[3].mxu1 }
  0xf0   :  { %v6557_v39 = vpop.f32.mrb[4].mxu1 }
  0xf1   :  { %v399_v43 = vpop.f32.mrb[5].mxu1 }
  0xf2   :  { %v6546_v42 = vpop.f32.mrb[0].mxu0 }
  0xf3   :  { %v8027_v48 = vadd.f32 %v6546_v42, %v5937_v38  ;;  %v206_v49 = vpop.f32.mrb[1].mxu0 }
  0xf4   :  { %v207_v54 = vadd.f32 %v5937_v38, %v206_v49  ;;  %v6560_v55 = vpop.f32.mrb[6].mxu1 }
  0xf5   :  { %v8039_v56 = vrot.slane %v8027_v48, %v8019_v44  ;;  %v8043_v57 = vrot.slane %v8027_v48, %v8021_v45  ;;  %v8047_v58 = vrot.slane %v8027_v48, %v8015_v40  ;;  %v8051_v59 = vrot.slane %v8027_v48, %v8023_v46  ;;  %v409_v0 = vpop.f32.mrb[7].mxu1 }
  0xf6   :  { %v591_v60 = vrot.slane %v207_v54, %v8015_v40  ;;  %v541_v61 = vrot.slane %v207_v54, %v8019_v44  ;;  %v567_v62 = vrot.slane %v207_v54, %v8021_v45  ;;  %v615_v63 = vrot.slane %v207_v54, %v8023_v46 }
  0xf7   :  { %v639_v1 = vrot.slane %v207_v54, %v8025_v47  ;;  %v8059_v2 = vrot.slane %v207_v54, %v8031_v51  ;;  %v8062_v3 = vrot.slane %v207_v54, %v8033_v52  ;;  %v8065_v4 = vrot.slane %v207_v54, %v8035_v53 }
  0xf8   :  { %v592_v5 = vadd.f32 %v591_v60, %v399_v43  ;;  %v593_v6 = vadd.f32 %v6557_v39, %v591_v60  ;;  %v542_v7 = vadd.f32 %v541_v61, %v379_v32  ;;  %v543_v8 = vadd.f32 %v6551_v29, %v541_v61  ;;  %v6563_v18 = vpop.f32.mrb[8].mxu1  ;;  %v8074_v61 = vpop.permute.xlu0 %629 }
  0xf9   :  { %v569_v11 = vadd.f32 %v6554_v34, %v567_v62  ;;  %v617_v13 = vadd.f32 %v6560_v55, %v615_v63  ;;  %v616_v14 = vadd.f32 %v615_v63, %v409_v0  ;;  %v568_v15 = vadd.f32 %v567_v62, %v389_v37  ;;  %v419_v39 = vpop.f32.mrb[9].mxu1  ;;  %10429 = vst [vmem:[#allocation33_spill] sm:$0xff] %v8074_v61 }
  0xfa   :  { %vm594_vm4 = vcmp.gt.f32.partialorder %v592_v5, 0.0  ;;  %vm595_vm5 = vcmp.gt.f32.partialorder %v593_v6, 0.0  ;;  %v596_v20 = vmul.f32 0.01, %v592_v5  ;;  %v597_v22 = vmul.f32 0.01, %v593_v6 }
  0xfb   :  { %vm545_vm6 = vcmp.gt.f32.partialorder %v543_v8, 0.0  ;;  %v547_v31 = vmul.f32 0.01, %v543_v8  ;;  %vm571_vm7 = vcmp.gt.f32.partialorder %v569_v11, 0.0  ;;  %v573_v35 = vmul.f32 0.01, %v569_v11 }
  0xfc   :  { %v598_v38 = vsel %vm594_vm4, %v592_v5, %v596_v20  ;;  %v599_v32 = vsel %vm595_vm5, %v593_v6, %v597_v22  ;;  %vm619_vm8 = vcmp.gt.f32.partialorder %v617_v13, 0.0  ;;  %v621_v29 = vmul.f32 0.01, %v617_v13  ;;  %v6566_v43 = vpop.f32.mrb[10].mxu1  ;;  %v8076_v5 = vpop.permute.xlu1 %797 }
  0xfd   :  { %v609_v34 = vadd.f32 %v7992_v21, %v599_v32  ;;  %v549_v42 = vsel %vm545_vm6, %v543_v8, %v547_v31  ;;  %v575_v37 = vsel %vm571_vm7, %v569_v11, %v573_v35  ;;  %vm618_vm9 = vcmp.gt.f32.partialorder %v616_v14, 0.0  ;;  %v429_v62 = vpop.f32.mrb[11].mxu1  ;;  %10430 = vst [vmem:[#allocation34_spill] sm:$0xff] %v8076_v5  ;;  %v8082_v21 = vpop.permute.xlu0 %673 }
  0xfe   :  { %v561_v49 = vadd.f32 %v8017_v41, %v549_v42  ;;  %v585_v54 = vadd.f32 %v7984_v16, %v575_v37  ;;  %v623_v55 = vsel %vm619_vm8, %v617_v13, %v621_v29  ;;  %v620_v60 = vmul.f32 0.01, %v616_v14  ;;  %10431 = vst [vmem:[#allocation35_spill] sm:$0xff] %v8082_v21 }
  0xff   :  { %vm544_vm10 = vcmp.gt.f32.partialorder %v542_v7, 0.0  ;;  %v546_v63 = vmul.f32 0.01, %v542_v7  ;;  %vm570_vm11 = vcmp.gt.f32.partialorder %v568_v15, 0.0  ;;  %v572_v0 = vmul.f32 0.01, %v568_v15 }
 0x100   :  { %v563_v6 = vmax.f32 %v561_v49, -1e+30  ;;  %v622_v8 = vsel %vm618_vm9, %v616_v14, %v620_v60  ;;  %v608_v11 = vadd.f32 %v8067_v10, %v598_v38  ;;  %v641_v20 = vadd.f32 %v6563_v18, %v639_v1  ;;  %v6569_v32 = vpop.f32.mrb[12].mxu1  ;;  %v8085_v38 = vpop.permute.xlu1 %821 }
 0x101   :  { %v632_v22 = vadd.f32 %v7994_v23, %v622_v8  ;;  %v548_v31 = vsel %vm544_vm10, %v542_v7, %v546_v63  ;;  %v574_v35 = vsel %vm570_vm11, %v568_v15, %v572_v0  ;;  %v640_v13 = vadd.f32 %v639_v1, %v419_v39  ;;  %v439_v16 = vpop.f32.mrb[13].mxu1  ;;  %10432 = vst [vmem:[#allocation36_spill] sm:$0xff] %v8085_v38 }
 0x102   :  { %v587_v29 = vmax.f32 %v563_v6, %v585_v54  ;;  %v560_v42 = vadd.f32 %v8008_v33, %v548_v31  ;;  %v584_v37 = vadd.f32 %v7970_v9, %v574_v35  ;;  %vm643_vm12 = vcmp.gt.f32.partialorder %v641_v20, 0.0 }
 0x103   :  { %v645_v49 = vmul.f32 0.01, %v641_v20  ;;  %vm642_vm13 = vcmp.gt.f32.partialorder %v640_v13, 0.0  ;;  %v644_v14 = vmul.f32 0.01, %v640_v13  ;;  %v633_v18 = vadd.f32 %v8074_v61, %v623_v55 }
 0x104   :  { %v562_v7 = vmax.f32 %v560_v42, -1e+30  ;;  %v611_v15 = vmax.f32 %v587_v29, %v609_v34  ;;  %v665_v1 = vadd.f32 %v6566_v43, %v8059_v2  ;;  %v664_v39 = vadd.f32 %v8059_v2, %v429_v62  ;;  %v6572_v6 = vpop.f32.mrb[14].mxu1  ;;  %v8095_v42 = vpop.permute.xlu1 %841 }
 0x105   :  { %v647_v54 = vsel %vm643_vm12, %v641_v20, %v645_v49  ;;  %v646_v60 = vsel %vm642_vm13, %v640_v13, %v644_v14  ;;  %v689_v63 = vadd.f32 %v6569_v32, %v8062_v3  ;;  %v688_v0 = vadd.f32 %v8062_v3, %v439_v16  ;;  %v449_v23 = vpop.f32.mrb[15].mxu1  ;;  %v8093_v20 = vpop.permute.xlu0 %701  ;;  %10434 = vst [vmem:[#allocation38_spill] sm:$0xff] %v8095_v42 }
 0x106   :  { %v586_v8 = vmax.f32 %v562_v7, %v584_v37  ;;  %v657_v31 = vadd.f32 %v7998_v25, %v647_v54  ;;  %v656_v55 = vadd.f32 %v7996_v24, %v646_v60  ;;  %v635_v35 = vmax.f32 %v611_v15, %v633_v18  ;;  %10433 = vst [vmem:[#allocation37_spill] sm:$0xff] %v8093_v20 }
 0x107   :  { %vm667_vm14 = vcmp.gt.f32.partialorder %v665_v1, 0.0  ;;  %v669_v34 = vmul.f32 0.01, %v665_v1  ;;  %vm666_vm15 = vcmp.gt.f32.partialorder %v664_v39, 0.0  ;;  %v668_v43 = vmul.f32 0.01, %v664_v39 }
 0x108   :  { %v610_v29 = vmax.f32 %v586_v8, %v608_v11  ;;  %v659_v2 = vmax.f32 %v635_v35, %v657_v31  ;;  %vm691_vm2 = vcmp.gt.f32.partialorder %v689_v63, 0.0  ;;  %v693_v62 = vmul.f32 0.01, %v689_v63  ;;  %v6575_v32 = vpop.f32.mrb[16].mxu1 }
 0x109   :  { %v671_v13 = vsel %vm667_vm14, %v665_v1, %v669_v34  ;;  %v670_v16 = vsel %vm666_vm15, %v664_v39, %v668_v43  ;;  %vm690_vm3 = vcmp.gt.f32.partialorder %v688_v0, 0.0  ;;  %v692_v3 = vmul.f32 0.01, %v688_v0  ;;  %v459_v7 = vpop.f32.mrb[17].mxu1 }
 0x10a   :  { %v634_v37 = vmax.f32 %v610_v29, %v632_v22  ;;  %v681_v49 = vadd.f32 %v8000_v26, %v671_v13  ;;  %v695_v14 = vsel %vm691_vm2, %v689_v63, %v693_v62  ;;  %v680_v18 = vadd.f32 %v8082_v21, %v670_v16  ;;  %v8104_v22 = vpop.permute.xlu0 %745 }
 0x10b   :  { %v694_v11 = vsel %vm690_vm3, %v688_v0, %v692_v3  ;;  %v713_v15 = vadd.f32 %v6572_v6, %v8065_v4  ;;  %v705_v54 = vadd.f32 %v8093_v20, %v695_v14  ;;  %v712_v1 = vadd.f32 %v8065_v4, %v449_v23  ;;  %10435 = vst [vmem:[#allocation39_spill] sm:$0xff] %v8104_v22 }
 0x10c   :  { %v658_v39 = vmax.f32 %v634_v37, %v656_v55  ;;  %v683_v60 = vmax.f32 %v659_v2, %v681_v49  ;;  %v704_v8 = vadd.f32 %v8002_v27, %v694_v11  ;;  %v737_v31 = vadd.f32 %v6575_v32, %v8039_v56  ;;  %v6578_v43 = vpop.f32.mrb[18].mxu1  ;;  %v8108_v2 = vpop.permute.xlu1 %865 }
 0x10d   :  { %vm715_vm4 = vcmp.gt.f32.partialorder %v713_v15, 0.0  ;;  %v717_v63 = vmul.f32 0.01, %v713_v15  ;;  %vm714_vm5 = vcmp.gt.f32.partialorder %v712_v1, 0.0  ;;  %v716_v35 = vmul.f32 0.01, %v712_v1 }
 0x10e   :  { %v682_v34 = vmax.f32 %v658_v39, %v680_v18  ;;  %v707_v0 = vmax.f32 %v683_v60, %v705_v54  ;;  %vm739_vm6 = vcmp.gt.f32.partialorder %v737_v31, 0.0  ;;  %v741_v6 = vmul.f32 0.01, %v737_v31  ;;  %v469_v55 = vpop.f32.mrb[19].mxu1  ;;  %10436 = vst [vmem:[#allocation40_spill] sm:$0xff] %v8108_v2 }
 0x10f   :  { %v719_v29 = vsel %vm715_vm4, %v713_v15, %v717_v63  ;;  %v718_v62 = vsel %vm714_vm5, %v712_v1, %v716_v35  ;;  %v736_v23 = vadd.f32 %v8039_v56, %v459_v7  ;;  %v761_v4 = vadd.f32 %v6578_v43, %v8043_v57  ;;  %v8114_v15 = vpop.permute.xlu0 %773 }
 0x110   :  { %v706_v13 = vmax.f32 %v682_v34, %v704_v8  ;;  %v729_v16 = vadd.f32 %v8006_v30, %v719_v29  ;;  %v728_v3 = vadd.f32 %v8004_v28, %v718_v62  ;;  %v743_v32 = vsel %vm739_vm6, %v737_v31, %v741_v6  ;;  %v6581_v14 = vpop.f32.mrb[20].mxu1  ;;  %10437 = vst [vmem:[#allocation41_spill] sm:$0xff] %v8114_v15  ;;  %v8122_v43 = vpop.permute.xlu1 %869 }
 0x111   :  { %v753_v37 = vadd.f32 %v8010_v36, %v743_v32  ;;  %vm738_vm7 = vcmp.gt.f32.partialorder %v736_v23, 0.0  ;;  %v740_v49 = vmul.f32 0.01, %v736_v23  ;;  %vm763_vm8 = vcmp.gt.f32.partialorder %v761_v4, 0.0  ;;  %v479_v54 = vpop.f32.mrb[21].mxu1  ;;  %10438 = vst [vmem:[#allocation42_spill] sm:$0xff] %v8122_v43 }
 0x112   :  { %v731_v18 = vmax.f32 %v707_v0, %v729_v16  ;;  %v730_v11 = vmax.f32 %v706_v13, %v728_v3  ;;  %v765_v56 = vmul.f32 0.01, %v761_v4  ;;  %v760_v7 = vadd.f32 %v8043_v57, %v469_v55 }
 0x113   :  { %v742_v1 = vsel %vm738_vm7, %v736_v23, %v740_v49  ;;  %v785_v39 = vadd.f32 %v6581_v14, %v8047_v58  ;;  %v784_v60 = vadd.f32 %v8047_v58, %v479_v54  ;;  %v831_v8 = vrot.slane %v8027_v48, %v8025_v47  ;;  %v8125_v55 = vpop.permute.xlu0 %817 }
 0x114   :  { %v755_v31 = vmax.f32 %v731_v18, %v753_v37  ;;  %v767_v63 = vsel %vm763_vm8, %v761_v4, %v765_v56  ;;  %v752_v35 = vadd.f32 %v8104_v22, %v742_v1  ;;  %vm762_vm9 = vcmp.gt.f32.partialorder %v760_v7, 0.0  ;;  %v6584_v6 = vpop.f32.mrb[22].mxu1  ;;  %10439 = vst [vmem:[#allocation43_spill] sm:$0xff] %v8125_v55  ;;  %v8131_v54 = vpop.permute.xlu1 %893 }
 0x115   :  { %v764_v34 = vmul.f32 0.01, %v760_v7  ;;  %vm787_vm10 = vcmp.gt.f32.partialorder %v785_v39, 0.0  ;;  %v789_v0 = vmul.f32 0.01, %v785_v39  ;;  %v777_v57 = vadd.f32 %v8114_v15, %v767_v63  ;;  %v489_v23 = vpop.f32.mrb[23].mxu1 }
 0x116   :  { %v754_v29 = vmax.f32 %v730_v11, %v752_v35  ;;  %vm786_vm11 = vcmp.gt.f32.partialorder %v784_v60, 0.0  ;;  %v788_v62 = vmul.f32 0.01, %v784_v60  ;;  %v809_v58 = vadd.f32 %v6584_v6, %v8051_v59  ;;  %10440 = vst [vmem:[#allocation44_spill] sm:$0xff] %v8131_v54 }
 0x117   :  { %v766_v4 = vsel %vm762_vm9, %v760_v7, %v764_v34  ;;  %v791_v13 = vsel %vm787_vm10, %v785_v39, %v789_v0  ;;  %v779_v16 = vmax.f32 %v755_v31, %v777_v57  ;;  %v808_v3 = vadd.f32 %v8051_v59, %v489_v23  ;;  %v8136_v6 = vpop.permute.xlu0 %845 }
 0x118   :  { %v776_v32 = vadd.f32 %v8029_v50, %v766_v4  ;;  %v801_v37 = vadd.f32 %v8076_v5, %v791_v13  ;;  %v790_v49 = vsel %vm786_vm11, %v784_v60, %v788_v62  ;;  %vm811_vm12 = vcmp.gt.f32.partialorder %v809_v58, 0.0  ;;  %v6587_v56 = vpop.f32.mrb[24].mxu1  ;;  %10441 = vst [vmem:[#allocation45_spill] sm:$0xff] %v8136_v6 }
 0x119   :  { %v800_v14 = vadd.f32 %v8069_v19, %v790_v49  ;;  %v813_v18 = vmul.f32 0.01, %v809_v58  ;;  %vm810_vm13 = vcmp.gt.f32.partialorder %v808_v3, 0.0  ;;  %v812_v11 = vmul.f32 0.01, %v808_v3  ;;  %v499_v31 = vpop.f32.mrb[25].mxu1  ;;  %v8140_v49 = vpop.permute.xlu1 %913 }
 0x11a   :  { %v778_v1 = vmax.f32 %v754_v29, %v776_v32  ;;  %v803_v7 = vmax.f32 %v779_v16, %v801_v37  ;;  %v833_v39 = vadd.f32 %v6587_v56, %v831_v8  ;;  %v832_v35 = vadd.f32 %v831_v8, %v499_v31  ;;  %10442 = vst [vmem:[#allocation46_spill] sm:$0xff] %v8140_v49 }
 0x11b   :  { %v815_v63 = vsel %vm811_vm12, %v809_v58, %v813_v18  ;;  %v814_v59 = vsel %vm810_vm13, %v808_v3, %v812_v11  ;;  %v855_v34 = vrot.slane %v8027_v48, %v8031_v51  ;;  %v879_v11 = vrot.slane %v8027_v48, %v8033_v52 }
 0x11c   :  { %v802_v60 = vmax.f32 %v778_v1, %v800_v14  ;;  %v825_v0 = vadd.f32 %v8085_v38, %v815_v63  ;;  %vm835_vm14 = vcmp.gt.f32.partialorder %v833_v39, 0.0  ;;  %v837_v57 = vmul.f32 0.01, %v833_v39  ;;  %v6590_v23 = vpop.f32.mrb[26].mxu1 }
 0x11d   :  { %v824_v62 = vadd.f32 %v8125_v55, %v814_v59  ;;  %vm834_vm15 = vcmp.gt.f32.partialorder %v832_v35, 0.0  ;;  %v836_v29 = vmul.f32 0.01, %v832_v35  ;;  %v857_v58 = vadd.f32 %v6590_v23, %v855_v34  ;;  %v509_v16 = vpop.f32.mrb[27].mxu1 }
 0x11e   :  { %v827_v4 = vmax.f32 %v803_v7, %v825_v0  ;;  %v839_v13 = vsel %vm835_vm14, %v833_v39, %v837_v57  ;;  %v856_v37 = vadd.f32 %v855_v34, %v509_v16  ;;  %vm10345_vm10 = vcmask 523264  }
 0x11f   :  { %v826_v8 = vmax.f32 %v802_v60, %v824_v62  ;;  %v838_v3 = vsel %vm834_vm15, %v832_v35, %v836_v29  ;;  %v849_v32 = vadd.f32 %v8136_v6, %v839_v13  ;;  %vm859_vm2 = vcmp.gt.f32.partialorder %v857_v58, 0.0  ;;  %v8145_v35 = vpop.permute.xlu0 %889  ;;  %v8151_v13 = vpop.permute.xlu1 %929 }
 0x120   :  { %v848_v14 = vadd.f32 %v8095_v42, %v838_v3  ;;  %v861_v18 = vmul.f32 0.01, %v857_v58  ;;  %vm858_vm3 = vcmp.gt.f32.partialorder %v856_v37, 0.0  ;;  %v860_v1 = vmul.f32 0.01, %v856_v37  ;;  %v6593_v7 = vpop.f32.mrb[28].mxu1 }
 0x121   :  { %v851_v56 = vmax.f32 %v827_v4, %v849_v32  ;;  %v881_v63 = vadd.f32 %v6593_v7, %v879_v11  ;;  %v519_v59 = vpop.f32.mrb[29].mxu1  ;;  %10443 = vst [vmem:[#allocation47_spill] sm:$0xff] %v8145_v35  ;;  %v903_v29 = vrot.slane %v8027_v48, %v8035_v53  ;;  %10444 = vst [vmem:[#allocation48_spill] sm:$0xff] %v8151_v13  ;;  %vm10347_vm9 = vcmp.eq.s32.totalorder %v8151_v13, 1 }
 0x122   :  { %v850_v39 = vmax.f32 %v826_v8, %v848_v14  ;;  %v863_v31 = vsel %vm859_vm2, %v857_v58, %v861_v18  ;;  %v862_v60 = vsel %vm858_vm3, %v856_v37, %v860_v1  ;;  %v880_v0 = vadd.f32 %v879_v11, %v519_v59 }
 0x123   :  { %v873_v34 = vadd.f32 %v8122_v43, %v863_v31  ;;  %v872_v57 = vadd.f32 %v8108_v2, %v862_v60  ;;  %vm883_vm4 = vcmp.gt.f32.partialorder %v881_v63, 0.0  ;;  %v885_v62 = vmul.f32 0.01, %v881_v63  ;;  %v8155_v7 = vpop.permute.xlu0 %917 }
 0x124   :  { %vm882_vm5 = vcmp.gt.f32.partialorder %v880_v0, 0.0  ;;  %v884_v23 = vmul.f32 0.01, %v880_v0  ;;  %v6596_v4 = vpop.f32.mrb[30].mxu1  ;;  %10445 = vst [vmem:[#allocation49_spill] sm:$0xff] %v8155_v7  ;;  %vm10344_vm11 = vcmask 785408  }
 0x125   :  { %v875_v58 = vmax.f32 %v851_v56, %v873_v34  ;;  %v887_v16 = vsel %vm883_vm4, %v881_v63, %v885_v62  ;;  %v905_v8 = vadd.f32 %v6596_v4, %v903_v29  ;;  %v529_v3 = vpop.f32.mrb[31].mxu1  ;;  %v874_v32 = vmax.f32 %v850_v39, %v872_v57  ;;  %v8157_v63 = vpop.permute.xlu1 %932 }
 0x126   :  { %v897_v37 = vadd.f32 %v8131_v54, %v887_v16  ;;  %v886_v14 = vsel %vm882_vm5, %v880_v0, %v884_v23  ;;  %v904_v18 = vadd.f32 %v903_v29, %v529_v3  ;;  %10446 = vst [vmem:[#allocation50_spill] sm:$0xff] %v8157_v63  ;;  %vm10346_vm8 = vcmp.eq.s32.totalorder %v8157_v63, 1 }
 0x127   :  { %vm907_vm6 = vcmp.gt.f32.partialorder %v905_v8, 0.0  ;;  %v909_v11 = vmul.f32 0.01, %v905_v8  ;;  %v896_v1 = vadd.f32 %v8145_v35, %v886_v14  ;;  %v946_v23 = vsel %vm10354_vm1, %v7771_v12, 0.0  ;;  %v1061_v12 = vld [vmem:[%s10218_s11 + $0x8] sm:$0xff]  ;;  %v1063_v14 = vld [vmem:[%s10218_s11 + $0x18] sm:$0xff] }
 0x128   :  { %vm906_vm7 = vcmp.gt.f32.partialorder %v904_v18, 0.0  ;;  %v908_v48 = vmul.f32 0.01, %v904_v18  ;;  %v899_v31 = vmax.f32 %v875_v58, %v897_v37  ;;  %v947_v4 = vsel %vm10354_vm1, %v7791_v17, 0.0  ;;  %v1062_v17 = vld [vmem:[%s10218_s11 + $0x10] sm:$0xff] }
 0x129   :  { %v911_v59 = vsel %vm907_vm6, %v905_v8, %v909_v11  ;;  %v898_v60 = vmax.f32 %v874_v32, %v896_v1  ;;  %v1060_v32 = vld [vmem:[%s10218_s11] sm:$0xff]  ;;  %v1153_v1 = vld [vmem:[%s10220_s13 + $0x8] sm:$0xff] }
 0x12a   :  { %v910_v56 = vsel %vm906_vm7, %v904_v18, %v908_v48  ;;  %v921_v39 = vadd.f32 %v8155_v7, %v911_v59  ;;  %v7105_v37 = vpack.c.bf16 %v1061_v12, %v1060_v32  ;;  %v7109_v18 = vpack.c.bf16 %v1063_v14, %v1062_v17  ;;  %v1152_v11 = vld [vmem:[%s10220_s13] sm:$0xff]  ;;  %v1431_v59 = vld [vmem:[%s10222_s15 + $0x8] sm:$0xff] }
 0x12b   :  { %v920_v34 = vadd.f32 %v8140_v49, %v910_v56  ;;  %v7113_v48 = vpack.c.bf16 %v1153_v1, %v1152_v11  ;;  %v7453_v12 = vld [vmem:[%s10401_s30] sm:$0xff]  ;;  %v1435_v1 = vld [vmem:[%s10222_s15 + $0x28] sm:$0xff] }
 0x12c   :  { %v923_v0 = vmax.f32 %v899_v31, %v921_v39  ;;  %7106 = vmatprep.subr.bf16.mxu0 %v7105_v37  ;;  %v1430_v31 = vld [vmem:[%s10222_s15] sm:$0xff]  ;;  %v1433_v39 = vld [vmem:[%s10222_s15 + $0x18] sm:$0xff] }
 0x12d   :  { %v922_v57 = vmax.f32 %v898_v60, %v920_v34  ;;  %v1432_v60 = vld [vmem:[%s10222_s15 + $0x10] sm:$0xff]  ;;  %v7121_v56 = vpack.c.bf16 %v1431_v59, %v1430_v31  ;;  %v1434_v11 = vld [vmem:[%s10222_s15 + $0x20] sm:$0xff]  ;;  %v1437_v59 = vld [vmem:[%s10222_s15 + $0x38] sm:$0xff] }
 0x12e   :  { %v937_v62 = vsel %vm10346_vm8, %v923_v0, 0.0  ;;  %v7125_v34 = vpack.c.bf16 %v1433_v39, %v1432_v60  ;;  %v5972_v0 = vld [vmem:[%s10217_s10] ss:$0 sm:$0xff]  ;;  %v7129_v31 = vpack.c.bf16 %v1435_v1, %v1434_v11  ;;  %v1439_v39 = vld [vmem:[%s10222_s15 + $0x48] sm:$0xff]  ;;  %vm10365_vm8 = vcmask 113664  }
 0x12f   :  { %942 = vrot.lane.b32.xlu1 %v937_v62, %s10377_s18  ;;  %v936_v29 = vsel %vm10347_vm9, %v922_v57, 0.0  ;;  %7122 = vmatprep.subr.bf16.mxu1 %v7121_v56  ;;  %vm10364_vm9 = vcmask 121856  }
 0x130   :  { %940 = vrot.lane.b32.xlu0 %v936_v29, %s10377_s18  ;;  %7124 = vmatpush3.bf16.msra.mxu1 %v7121_v56  ;;  %v1438_v56 = vld [vmem:[%s10222_s15 + $0x40] sm:$0xff] }
 0x131   :  { %7126 = vmatprep.subr.bf16.mxu1 %v7125_v34 }
 0x134   :  { %7128 = vmatpush3.bf16.msra.mxu1 %v7125_v34  ;;  %v1440_v34 = vld [vmem:[%s10222_s15 + $0x50] sm:$0xff] }
 0x135   :  { %7130 = vmatprep.subr.bf16.mxu1 %v7129_v31 }
 0x138   :  { %7132 = vmatpush3.bf16.msra.mxu1 %v7129_v31 }
 0x1a1   :  { %v943_v58 = vpop.permute.xlu1 %942 }
 0x1a2   :  { %v941_v16 = vpop.permute.xlu0 %940  ;;  %v950_v3 = vsel %vm10345_vm10, %v947_v4, %v943_v58 }
 0x1a3   :  { %v949_v8 = vsel %vm10345_vm10, %v946_v23, %v941_v16  ;;  %vm10374_vm10 = vcmask 105472  }
 0x1a4   :  { %6621 = vmatprep.mubr.msk.f32.mxu0 %vm10344_vm11, %v949_v8  ;;  %v1154_v8 = vld [vmem:[%s10220_s13 + $0x10] sm:$0xff] }
 0x1a5   :  { %6622 = vmatmul.mubr.msk.f32.vlgmr.msra.gmra.mrb[2].mxu0 %vm10344_vm11, %v950_v3  ;;  %v1155_v3 = vld [vmem:[%s10220_s13 + $0x18] sm:$0xff] }
 0x1a6   :  { %7108 = vmatpush3.bf16.msra.mxu0 %v7105_v37  ;;  %v7454_v37 = vld [vmem:[%s10401_s30 + $0x8] sm:$0xff]  ;;  %s10366_s30 = smov 2  }
 0x1a7   :  { %7110 = vmatprep.subr.bf16.mxu0 %v7109_v18 }
 0x1aa   :  { %7112 = vmatpush3.bf16.msra.mxu0 %v7109_v18  ;;  %v7117_v18 = vpack.c.bf16 %v1155_v3, %v1154_v8  ;;  %v5978_v8 = vld [vmem:[%s10221_s14] ss:$0 sm:$0xff] }
 0x1ab   :  { %7114 = vmatprep.subr.bf16.mxu0 %v7113_v48 }
 0x278   :  { %v6623_v57 = vpop.f32.mrb[2].mxu0 }
 0x279   :  { %v1049_v62 = vadd.f32 %v6623_v57, %v5972_v0  ;;  %v1043_v29 = vpop.f32.mrb[3].mxu0  ;;  %v1441_v57 = vld [vmem:[%s10222_s15 + $0x58] sm:$0xff] }
 0x27a   :  { %v1044_v23 = vadd.f32 %v5972_v0, %v1043_v29  ;;  %v7137_v0 = vpack.c.bf16 %v1439_v39, %v1438_v56 }
 0x27b   :  { %vm1053_vm12 = vcmp.gt.f32.partialorder %v1049_v62, 0.0  ;;  %v1055_v4 = vmul.f32 0.01, %v1049_v62 }
 0x27c   :  { %vm1052_vm13 = vcmp.gt.f32.partialorder %v1044_v23, 0.0  ;;  %v1054_v58 = vmul.f32 0.01, %v1044_v23 }
 0x27d   :  { %v1057_v16 = vsel %vm1053_vm12, %v1049_v62, %v1055_v4  ;;  %v7141_v62 = vpack.c.bf16 %v1441_v57, %v1440_v34 }
 0x27e   :  { %v1056_v32 = vsel %vm1052_vm13, %v1044_v23, %v1054_v58  ;;  %v8224_v14 = vadd.f32 %v7454_v37, %v1057_v16  ;;  %v5975_v23 = vld [vmem:[%s10219_s12] ss:$0 sm:$0xff] }
 0x27f   :  { %v8219_v17 = vadd.f32 %v7453_v12, %v1056_v32 }
 0x280   :  { %10448 = vst [vmem:[#allocation52_spill] sm:$0xff] %v8224_v14 }
 0x281   :  { %10447 = vst [vmem:[#allocation51_spill] sm:$0xff] %v8219_v17  ;;  %6632 = vmatprep.mubr.msk.f32.mxu0 %vm10354_vm1, %v8219_v17 }
 0x282   :  { %6633 = vmatmul.mubr.msk.f32.vlgmr.msra.gmra.mrb[4].mxu0 %vm10354_vm1, %v8224_v14 }
 0x283   :  { %7116 = vmatpush3.bf16.msra.mxu0 %v7113_v48  ;;  %6643 = vmatprep.mubr.msk.f32.mxu0 %vm10354_vm1, %v8219_v17  ;;  %v1436_v48 = vld [vmem:[%s10222_s15 + $0x30] sm:$0xff] }
 0x284   :  { %7118 = vmatprep.subr.bf16.mxu0 %v7117_v18  ;;  %v7133_v60 = vpack.c.bf16 %v1437_v59, %v1436_v48 }
 0x286   :  { %7134 = vmatprep.subr.bf16.mxu1 %v7133_v60 }
 0x287   :  { %7120 = vmatpush3.bf16.msra.mxu0 %v7117_v18  ;;  %7136 = vmatpush3.bf16.msra.mxu1 %v7133_v60 }
 0x288   :  { %7138 = vmatprep.subr.bf16.mxu1 %v7137_v0 }
 0x28a   :  { %6644 = vmatmul.mubr.msk.f32.vlgmr.msra.gmra.mrb[6].mxu0 %vm10354_vm1, %v8224_v14  ;;  %vm10372_vm1 = vcmask 130048  }
 0x28b   :  { %7140 = vmatpush3.bf16.msra.mxu1 %v7137_v0 }
 0x28c   :  { %7142 = vmatprep.subr.bf16.mxu1 %v7141_v62 }
 0x28f   :  { %7144 = vmatpush3.bf16.msra.mxu1 %v7141_v62 }
 0x355   :  { %v6634_v29 = vpop.f32.mrb[4].mxu0 }
 0x356   :  { %v1143_v4 = vpop.f32.mrb[5].mxu0  ;;  %v8261_v58 = vadd.f32 %v6634_v29, %v5975_v23 }
 0x357   :  { %v1144_v16 = vadd.f32 %v5975_v23, %v1143_v4 }
 0x358   :  { %v1397_v2 = vrot.slane %v8261_v58, %v8031_v51  ;;  %v1409_v43 = vrot.slane %v8261_v58, %v8033_v52  ;;  %v1421_v42 = vrot.slane %v8261_v58, %v8035_v53 }
 0x359   :  { %v8267_v3 = vpack.i.bf16 %v8261_v58, %v1144_v16  ;;  %v8270_v32 = vpack.c.bf16 %v8261_v58, %v1144_v16  ;;  %v1241_v37 = vrot.slane %v1144_v16, %v8019_v44  ;;  %v1253_v1 = vrot.slane %v1144_v16, %v8021_v45 }
 0x35a   :  { %v1265_v48 = vrot.slane %v1144_v16, %v8015_v40  ;;  %v1277_v31 = vrot.slane %v1144_v16, %v8023_v46  ;;  %v1301_v63 = vrot.slane %v1144_v16, %v8031_v51  ;;  %v1325_v35 = vrot.slane %v1144_v16, %v8035_v53 }
 0x35b   :  { %10449 = vst [vmem:[#allocation53_spill] sm:$0xff] %v8267_v3  ;;  %10450 = vst [vmem:[#allocation54_spill] sm:$0xff] %v8270_v32 }
 0x35d   :  { %v6645_v12 = vpop.f32.mrb[6].mxu0 }
 0x35e   :  { %v8273_v18 = vadd.f32 %v6645_v12, %v5978_v8  ;;  %v1229_v11 = vpop.f32.mrb[7].mxu0 }
 0x35f   :  { %v8278_v59 = vadd.f32 %v5978_v8, %v1229_v11  ;;  %v1289_v11 = vrot.slane %v1144_v16, %v8025_v47 }
 0x360   :  { %v1243_v60 = vadd.f32 %v1241_v37, %v8273_v18  ;;  %v1255_v56 = vadd.f32 %v1253_v1, %v8273_v18  ;;  %v1267_v39 = vadd.f32 %v1265_v48, %v8273_v18  ;;  %v1279_v34 = vadd.f32 %v1277_v31, %v8273_v18 }
 0x361   :  { %v1242_v0 = vadd.f32 %v1241_v37, %v8278_v59  ;;  %v1254_v57 = vadd.f32 %v1253_v1, %v8278_v59  ;;  %v1266_v62 = vadd.f32 %v1265_v48, %v8278_v59  ;;  %v1278_v29 = vadd.f32 %v1277_v31, %v8278_v59 }
 0x362   :  { %v1247_v23 = vmul.f32 0.2, %v1243_v60  ;;  %vm1245_vm15 = vcmp.gt.f32.partialorder %v1243_v60, 0.0  ;;  %vm1257_vm3 = vcmp.gt.f32.partialorder %v1255_v56, 0.0  ;;  %v1259_v1 = vmul.f32 0.2, %v1255_v56 }
 0x363   :  { %vm1244_vm14 = vcmp.gt.f32.partialorder %v1242_v0, 0.0  ;;  %v1246_v4 = vmul.f32 0.2, %v1242_v0  ;;  %v1258_v8 = vmul.f32 0.2, %v1254_v57  ;;  %vm1256_vm2 = vcmp.gt.f32.partialorder %v1254_v57, 0.0 }
 0x364   :  { %v1249_v37 = vsel %vm1245_vm15, %v1243_v60, %v1247_v23  ;;  %v1313_v48 = vrot.slane %v1144_v16, %v8033_v52  ;;  %v1270_v13 = vmul.f32 0.2, %v1266_v62  ;;  %v1290_v49 = vadd.f32 %v1289_v11, %v8278_v59 }
 0x365   :  { %v1248_v12 = vsel %vm1244_vm14, %v1242_v0, %v1246_v4  ;;  %v1260_v31 = vsel %vm1256_vm2, %v1254_v57, %v1258_v8  ;;  %v1291_v7 = vadd.f32 %v1289_v11, %v8273_v18  ;;  %vm1268_vm4 = vcmp.gt.f32.partialorder %v1266_v62, 0.0 }
 0x366   :  { %6670 = vmatprep.mubr.msk.f32.mxu1 %vm10344_vm11, %v1248_v12  ;;  %v1302_v0 = vadd.f32 %v1301_v63, %v8278_v59  ;;  %v1303_v4 = vadd.f32 %v1301_v63, %v8273_v18  ;;  %v1314_v60 = vadd.f32 %v1313_v48, %v8278_v59  ;;  %v1261_v23 = vsel %vm1257_vm3, %v1255_v56, %v1259_v1 }
 0x367   :  { %6671 = vmatmul.mubr.msk.f32.vlgmr.msra.gmra.mrb[32].mxu1 %vm10344_vm11, %v1249_v37  ;;  %v1271_v12 = vmul.f32 0.2, %v1267_v39  ;;  %v1272_v57 = vsel %vm1268_vm4, %v1266_v62, %v1270_v13  ;;  %vm1269_vm5 = vcmp.gt.f32.partialorder %v1267_v39, 0.0  ;;  %v1282_v8 = vmul.f32 0.2, %v1278_v29 }
 0x368   :  { %6673 = vmatprep.mubr.msk.f32.mxu1 %vm10344_vm11, %v1260_v31  ;;  %v1337_v11 = vrot.slane %v8261_v58, %v8019_v44  ;;  %vm1280_vm6 = vcmp.gt.f32.partialorder %v1278_v29, 0.0  ;;  %v1315_v37 = vadd.f32 %v1313_v48, %v8273_v18  ;;  %v1326_v63 = vadd.f32 %v1325_v35, %v8278_v59 }
 0x369   :  { %v8307_v56 = vadd.f32 %v1325_v35, %v8273_v18  ;;  %v1273_v1 = vsel %vm1269_vm5, %v1267_v39, %v1271_v12  ;;  %v1283_v13 = vmul.f32 0.2, %v1279_v34  ;;  %v1349_v62 = vrot.slane %v8261_v58, %v8021_v45 }
 0x36a   :  { %v8310_v16 = vadd.f32 %v1337_v11, %v8278_v59  ;;  %v1284_v31 = vsel %vm1280_vm6, %v1278_v29, %v1282_v8  ;;  %vm1281_vm7 = vcmp.gt.f32.partialorder %v1279_v34, 0.0  ;;  %v1361_v48 = vrot.slane %v8261_v58, %v8015_v40 }
 0x36b   :  { %6674 = vmatmul.mubr.msk.f32.gmra.mrb[34].mxu1 %vm10344_vm11, %v1261_v23  ;;  %v1294_v23 = vmul.f32 0.2, %v1290_v49  ;;  %vm1292_vm12 = vcmp.gt.f32.partialorder %v1290_v49, 0.0  ;;  %v1339_v35 = vadd.f32 %v1337_v11, %v8273_v18  ;;  %v8323_v39 = vadd.f32 %v1349_v62, %v8273_v18 }
 0x36c   :  { %6676 = vmatprep.mubr.msk.f32.mxu1 %vm10344_vm11, %v1272_v57  ;;  %v8320_v57 = vadd.f32 %v1349_v62, %v8278_v59  ;;  %v8326_v12 = vadd.f32 %v1361_v48, %v8278_v59  ;;  %v1285_v29 = vsel %vm1281_vm7, %v1279_v34, %v1283_v13  ;;  %v1295_v8 = vmul.f32 0.2, %v1291_v7 }
 0x36d   :  { %vm1293_vm13 = vcmp.gt.f32.partialorder %v1291_v7, 0.0  ;;  %v1306_v54 = vmul.f32 0.2, %v1302_v0  ;;  %v1385_v11 = vrot.slane %v8261_v58, %v8025_v47  ;;  %vm1304_vm14 = vcmp.gt.f32.partialorder %v1302_v0, 0.0 }
 0x36e   :  { %v8335_v62 = vadd.f32 %v1361_v48, %v8273_v18  ;;  %vm1305_vm15 = vcmp.gt.f32.partialorder %v1303_v4, 0.0  ;;  %v1318_v48 = vmul.f32 0.2, %v1314_v60  ;;  %vm1316_vm2 = vcmp.gt.f32.partialorder %v1314_v60, 0.0 }
 0x36f   :  { %6677 = vmatmul.mubr.msk.f32.gmra.mrb[36].mxu1 %vm10344_vm11, %v1273_v1  ;;  %v1373_v1 = vrot.slane %v8261_v58, %v8023_v46  ;;  %vm1317_vm3 = vcmp.gt.f32.partialorder %v1315_v37, 0.0  ;;  %vm1328_vm4 = vcmp.gt.f32.partialorder %v1326_v63, 0.0  ;;  %v8369_v6 = vadd.f32 %v1409_v43, %v8273_v18 }
 0x370   :  { %6679 = vmatprep.mubr.msk.f32.mxu1 %vm10344_vm11, %v1284_v31  ;;  %v1296_v31 = vsel %vm1292_vm12, %v1290_v49, %v1294_v23  ;;  %v1297_v49 = vsel %vm1293_vm13, %v1291_v7, %v1295_v8  ;;  %v1307_v23 = vmul.f32 0.2, %v1303_v4  ;;  %v8356_v7 = vadd.f32 %v1397_v2, %v8278_v59 }
 0x371   :  { %v8338_v34 = vadd.f32 %v1373_v1, %v8278_v59  ;;  %v8341_v13 = vadd.f32 %v1373_v1, %v8273_v18  ;;  %v8353_v1 = vadd.f32 %v1385_v11, %v8273_v18  ;;  %v8359_v8 = vadd.f32 %v1397_v2, %v8273_v18 }
 0x372   :  { %v8372_v2 = vadd.f32 %v1421_v42, %v8278_v59  ;;  %v1331_v58 = vmul.f32 0.2, %v8307_v56  ;;  %vm1329_vm5 = vcmp.gt.f32.partialorder %v8307_v56, 0.0  ;;  %vm1340_vm6 = vcmp.gt.f32.partialorder %v8310_v16, 0.0 }
 0x373   :  { %6680 = vmatmul.mubr.msk.f32.gmra.mrb[38].mxu1 %vm10344_vm11, %v1285_v29  ;;  %v8344_v29 = vadd.f32 %v1385_v11, %v8278_v59  ;;  %v1330_v11 = vmul.f32 0.2, %v1326_v63  ;;  %vm1341_vm7 = vcmp.gt.f32.partialorder %v1339_v35, 0.0  ;;  %vm1352_vm12 = vcmp.gt.f32.partialorder %v8320_v57, 0.0 }
 0x374   :  { %6682 = vmatprep.mubr.msk.f32.mxu1 %vm10344_vm11, %v1296_v31  ;;  %v1308_v31 = vsel %vm1304_vm14, %v1302_v0, %v1306_v54  ;;  %v1309_v54 = vsel %vm1305_vm15, %v1303_v4, %v1307_v23  ;;  %v1319_v0 = vmul.f32 0.2, %v1315_v37  ;;  %v8375_v4 = vadd.f32 %v1421_v42, %v8273_v18 }
 0x375   :  { %v1354_v18 = vmul.f32 0.2, %v8320_v57  ;;  %vm1353_vm13 = vcmp.gt.f32.partialorder %v8323_v39, 0.0  ;;  %vm1364_vm14 = vcmp.gt.f32.partialorder %v8326_v12, 0.0  ;;  %vm1365_vm15 = vcmp.gt.f32.partialorder %v8335_v62, 0.0 }
 0x376   :  { %v1321_v23 = vsel %vm1317_vm3, %v1315_v37, %v1319_v0  ;;  %v1367_v0 = vmul.f32 0.2, %v8335_v62  ;;  %vm1377_vm3 = vcmp.gt.f32.partialorder %v8341_v13, 0.0 }
 0x377   :  { %6683 = vmatmul.mubr.msk.f32.gmra.mrb[40].mxu1 %vm10344_vm11, %v1297_v49  ;;  %v8362_v49 = vadd.f32 %v1409_v43, %v8278_v59  ;;  %v1333_v43 = vsel %vm1329_vm5, %v8307_v56, %v1331_v58  ;;  %v1343_v59 = vmul.f32 0.2, %v1339_v35  ;;  %v1366_v56 = vmul.f32 0.2, %v8326_v12 }
 0x378   :  { %6685 = vmatprep.mubr.msk.f32.mxu1 %vm10344_vm11, %v1308_v31  ;;  %v1320_v31 = vsel %vm1316_vm2, %v1314_v60, %v1318_v48  ;;  %v1332_v60 = vsel %vm1328_vm4, %v1326_v63, %v1330_v11  ;;  %v1342_v48 = vmul.f32 0.2, %v8310_v16  ;;  %v1355_v63 = vmul.f32 0.2, %v8323_v39 }
 0x379   :  { %v1345_v37 = vsel %vm1341_vm7, %v1339_v35, %v1343_v59  ;;  %v1368_v35 = vsel %vm1364_vm14, %v8326_v12, %v1366_v56  ;;  %vm1376_vm2 = vcmp.gt.f32.partialorder %v8338_v34, 0.0  ;;  %v1379_v11 = vmul.f32 0.2, %v8341_v13 }
 0x37a   :  { %v1344_v42 = vsel %vm1340_vm6, %v8310_v16, %v1342_v48  ;;  %v1357_v16 = vsel %vm1353_vm13, %v8323_v39, %v1355_v63  ;;  %v1390_v12 = vmul.f32 0.2, %v8344_v29  ;;  %vm1388_vm4 = vcmp.gt.f32.partialorder %v8344_v29, 0.0 }
 0x37b   :  { %6686 = vmatmul.mubr.msk.f32.gmra.mrb[42].mxu1 %vm10344_vm11, %v1309_v54  ;;  %v1356_v54 = vsel %vm1352_vm12, %v8320_v57, %v1354_v18  ;;  %v1378_v57 = vmul.f32 0.2, %v8338_v34  ;;  %v1391_v58 = vmul.f32 0.2, %v8353_v1  ;;  %vm1389_vm5 = vcmp.gt.f32.partialorder %v8353_v1, 0.0 }
 0x37c   :  { %6688 = vmatprep.mubr.msk.f32.mxu1 %vm10344_vm11, %v1320_v31  ;;  %v1369_v31 = vsel %vm1365_vm15, %v8335_v62, %v1367_v0  ;;  %v1392_v62 = vsel %vm1388_vm4, %v8344_v29, %v1390_v12  ;;  %vm1400_vm6 = vcmp.gt.f32.partialorder %v8356_v7, 0.0  ;;  %v1403_v48 = vmul.f32 0.2, %v8359_v8 }
 0x37d   :  { %v1380_v39 = vsel %vm1376_vm2, %v8338_v34, %v1378_v57  ;;  %v1402_v34 = vmul.f32 0.2, %v8356_v7  ;;  %vm1401_vm7 = vcmp.gt.f32.partialorder %v8359_v8, 0.0  ;;  %v1414_v29 = vmul.f32 0.2, %v8362_v49 }
 0x37e   :  { %vm1412_vm12 = vcmp.gt.f32.partialorder %v8362_v49, 0.0  ;;  %v1415_v59 = vmul.f32 0.2, %v8369_v6  ;;  %vm1413_vm13 = vcmp.gt.f32.partialorder %v8369_v6, 0.0  ;;  %vm1424_vm14 = vcmp.gt.f32.partialorder %v8372_v2, 0.0 }
 0x37f   :  { %6689 = vmatmul.mubr.msk.f32.gmra.mrb[44].mxu1 %vm10344_vm11, %v1321_v23  ;;  %v1381_v23 = vsel %vm1377_vm3, %v8341_v13, %v1379_v11  ;;  %v1404_v13 = vsel %vm1400_vm6, %v8356_v7, %v1402_v34  ;;  %v1426_v7 = vmul.f32 0.2, %v8372_v2  ;;  %v1427_v18 = vmul.f32 0.2, %v8375_v4 }
 0x380   :  { %6691 = vmatprep.mubr.msk.f32.mxu1 %vm10344_vm11, %v1332_v60  ;;  %v1393_v60 = vsel %vm1389_vm5, %v8353_v1, %v1391_v58  ;;  %v1416_v1 = vsel %vm1412_vm12, %v8362_v49, %v1414_v29  ;;  %vm1425_vm15 = vcmp.gt.f32.partialorder %v8375_v4, 0.0  ;;  %vm1883_vm2 = vcmask 7168  }
 0x381   :  { %v1429_v49 = vsel %vm1425_vm15, %v8375_v4, %v1427_v18  ;;  %vm1886_vm3 = vcmask 15360   ;;  %vm1889_vm4 = vcmask 23552   ;;  %vm1892_vm5 = vcmask 31744  }
 0x382   :  { %vm1895_vm6 = vcmask 39936   ;;  %vm1901_vm12 = vcmask 56320   ;;  %vm10380_vm15 = vcmask 89088  }
 0x383   :  { %6692 = vmatmul.mubr.msk.f32.gmra.mrb[46].mxu1 %vm10344_vm11, %v1333_v43  ;;  %v1405_v43 = vsel %vm1401_vm7, %v8359_v8, %v1403_v48  ;;  %v1428_v8 = vsel %vm1424_vm14, %v8372_v2, %v1426_v7  ;;  %vm1898_vm7 = vcmask 48128   ;;  %vm10381_vm14 = vcmask 80896  }
 0x384   :  { %6694 = vmatprep.mubr.msk.f32.mxu1 %vm10344_vm11, %v1344_v42  ;;  %v1417_v42 = vsel %vm1413_vm13, %v8369_v6, %v1415_v59  ;;  %vm1906_vm13 = vcmask 72704  }
 0x387   :  { %6695 = vmatmul.mubr.msk.f32.gmra.mrb[48].mxu1 %vm10344_vm11, %v1345_v37 }
 0x388   :  { %6697 = vmatprep.mubr.msk.f32.mxu1 %vm10344_vm11, %v1356_v54 }
 0x38b   :  { %6698 = vmatmul.mubr.msk.f32.gmra.mrb[50].mxu1 %vm10344_vm11, %v1357_v16 }
 0x38c   :  { %6700 = vmatprep.mubr.msk.f32.mxu1 %vm10344_vm11, %v1368_v35 }
 0x38f   :  { %6701 = vmatmul.mubr.msk.f32.gmra.mrb[52].mxu1 %vm10344_vm11, %v1369_v31 }
 0x390   :  { %6703 = vmatprep.mubr.msk.f32.mxu1 %vm10344_vm11, %v1380_v39 }
 0x393   :  { %6704 = vmatmul.mubr.msk.f32.gmra.mrb[54].mxu1 %vm10344_vm11, %v1381_v23 }
 0x394   :  { %6706 = vmatprep.mubr.msk.f32.mxu1 %vm10344_vm11, %v1392_v62 }
 0x397   :  { %6707 = vmatmul.mubr.msk.f32.gmra.mrb[56].mxu1 %vm10344_vm11, %v1393_v60 }
 0x398   :  { %6709 = vmatprep.mubr.msk.f32.mxu1 %vm10344_vm11, %v1404_v13 }
 0x39b   :  { %6710 = vmatmul.mubr.msk.f32.gmra.mrb[58].mxu1 %vm10344_vm11, %v1405_v43 }
 0x39c   :  { %6712 = vmatprep.mubr.msk.f32.mxu1 %vm10344_vm11, %v1416_v1 }
 0x39f   :  { %6713 = vmatmul.mubr.msk.f32.gmra.mrb[60].mxu1 %vm10344_vm11, %v1417_v42 }
 0x3a0   :  { %6715 = vmatprep.mubr.msk.f32.mxu1 %vm10344_vm11, %v1428_v8 }
 0x3a3   :  { %6716 = vmatmul.mubr.msk.f32.gmra.mrb[62].mxu1 %vm10344_vm11, %v1429_v49  ;;  %vm10379_vm11 = vcmask 97280  }
 0x43a   :  { %v8444_v37 = vpop.f32.mrb[32].mxu1 }
 0x43b   :  { %1956 = vrot.lane.b32.xlu1 %v8444_v37, %s10375_s29  ;;  %v8448_v6 = vpop.f32.mrb[33].mxu1 }
 0x43c   :  { %1954 = vrot.lane.b32.xlu0 %v8448_v6, %s10375_s29 }
 0x43e   :  { %v8452_v2 = vpop.f32.mrb[34].mxu1 }
 0x43f   :  { %2268 = vrot.lane.b32.xlu1 %v8444_v37, %s10370_s7  ;;  %v8456_v4 = vpop.f32.mrb[35].mxu1 }
 0x440   :  { %1767 = vrot.lane.b32.xlu0 %v8452_v2, %s10368_s8 }
 0x442   :  { %v8460_v63 = vpop.f32.mrb[36].mxu1 }
 0x443   :  { %2266 = vrot.lane.b32.xlu1 %v8448_v6, %s10370_s7  ;;  %v8464_v54 = vpop.f32.mrb[37].mxu1  ;;  %s10498_s7 = sld [smem:[#allocation80_spill]] }
 0x444   :  { %10451 = vst [vmem:[#allocation55_spill] sm:$0xff] %v8464_v54  ;;  %2274 = vrot.lane.b32.xlu0 %v8452_v2, %s10375_s29 }
 0x446   :  { %v6681_v56 = vpop.f32.mrb[38].mxu1 }
 0x447   :  { %1765 = vrot.lane.b32.xlu1 %v8456_v4, %s10368_s8  ;;  %v1634_v16 = vpop.f32.mrb[39].mxu1 }
 0x448   :  { %2272 = vrot.lane.b32.xlu0 %v8456_v4, %s10375_s29  ;;  %s10590_s29 = smov 5  }
 0x44a   :  { %v6684_v0 = vpop.f32.mrb[40].mxu1 }
 0x44b   :  { %1962 = vrot.lane.b32.xlu1 %v8460_v63, %s10368_s8  ;;  %v1644_v35 = vpop.f32.mrb[41].mxu1 }
 0x44c   :  { %1775 = vrot.lane.b32.xlu0 %v8460_v63, %s10366_s30 }
 0x44e   :  { %v6687_v57 = vpop.f32.mrb[42].mxu1 }
 0x44f   :  { %1773 = vrot.lane.b32.xlu1 %v8464_v54, %s10366_s30  ;;  %v1654_v31 = vpop.f32.mrb[43].mxu1 }
 0x450   :  { %1960 = vrot.lane.b32.xlu0 %v8464_v54, %s10368_s8 }
 0x452   :  { %v6690_v11 = vpop.f32.mrb[44].mxu1 }
 0x453   :  { %1968 = vrot.lane.b32.xlu1 %v6681_v56, %s10366_s30  ;;  %v1664_v39 = vpop.f32.mrb[45].mxu1 }
 0x454   :  { %1783 = vrot.lane.b32.xlu0 %v6681_v56, %s10362_s4 }
 0x456   :  { %v6693_v12 = vpop.f32.mrb[46].mxu1 }
 0x457   :  { %1781 = vrot.lane.b32.xlu1 %v1634_v16, %s10362_s4  ;;  %v1674_v23 = vpop.f32.mrb[47].mxu1 }
 0x458   :  { %2280 = vrot.lane.b32.xlu0 %v6681_v56, %s10368_s8 }
 0x45a   :  { %v6696_v58 = vpop.f32.mrb[48].mxu1 }
 0x45b   :  { %2278 = vrot.lane.b32.xlu1 %v1634_v16, %s10368_s8  ;;  %v1684_v62 = vpop.f32.mrb[49].mxu1  ;;  %s10591_s8 = smov 6  }
 0x45c   :  { %1966 = vrot.lane.b32.xlu0 %v1634_v16, %s10366_s30 }
 0x45e   :  { %v6699_v34 = vpop.f32.mrb[50].mxu1 }
 0x45f   :  { %1974 = vrot.lane.b32.xlu1 %v6684_v0, %s10362_s4  ;;  %v1694_v60 = vpop.f32.mrb[51].mxu1 }
 0x460   :  { %1791 = vrot.lane.b32.xlu0 %v6684_v0, %s10293_s1 }
 0x462   :  { %v6702_v48 = vpop.f32.mrb[52].mxu1 }
 0x463   :  { %1789 = vrot.lane.b32.xlu1 %v1644_v35, %s10293_s1  ;;  %v1704_v13 = vpop.f32.mrb[53].mxu1 }
 0x464   :  { %2286 = vrot.lane.b32.xlu0 %v6684_v0, %s10366_s30 }
 0x466   :  { %v6705_v29 = vpop.f32.mrb[54].mxu1 }
 0x467   :  { %2284 = vrot.lane.b32.xlu1 %v1644_v35, %s10366_s30  ;;  %v8491_v43 = vpop.f32.mrb[55].mxu1  ;;  %s10592_s30 = smov 7  }
 0x468   :  { %1972 = vrot.lane.b32.xlu0 %v1644_v35, %s10362_s4 }
 0x46a   :  { %v8494_v59 = vpop.f32.mrb[56].mxu1 }
 0x46b   :  { %1980 = vrot.lane.b32.xlu1 %v6687_v57, %s10293_s1  ;;  %v8497_v1 = vpop.f32.mrb[57].mxu1 }
 0x46c   :  { %1799 = vrot.lane.b32.xlu0 %v6687_v57, %s10267_s5 }
 0x46e   :  { %v8500_v7 = vpop.f32.mrb[58].mxu1 }
 0x46f   :  { %1797 = vrot.lane.b32.xlu1 %v1654_v31, %s10267_s5  ;;  %v8503_v42 = vpop.f32.mrb[59].mxu1 }
 0x470   :  { %2292 = vrot.lane.b32.xlu0 %v6687_v57, %s10362_s4 }
 0x472   :  { %v8506_v18 = vpop.f32.mrb[60].mxu1 }
 0x473   :  { %2290 = vrot.lane.b32.xlu1 %v1654_v31, %s10362_s4  ;;  %v8509_v8 = vpop.f32.mrb[61].mxu1  ;;  %s10593_s4 = smov 8  }
 0x474   :  { %1978 = vrot.lane.b32.xlu0 %v1654_v31, %s10293_s1 }
 0x476   :  { %v8512_v49 = vpop.f32.mrb[62].mxu1 }
 0x477   :  { %1986 = vrot.lane.b32.xlu1 %v6690_v11, %s10267_s5  ;;  %v8515_v56 = vpop.f32.mrb[63].mxu1 }
 0x478   :  { %1807 = vrot.lane.b32.xlu0 %v6690_v11, %s10279_s26 }
 0x47b   :  { %1805 = vrot.lane.b32.xlu1 %v1664_v39, %s10279_s26 }
 0x47c   :  { %2298 = vrot.lane.b32.xlu0 %v6690_v11, %s10293_s1 }
 0x47f   :  { %2296 = vrot.lane.b32.xlu1 %v1664_v39, %s10293_s1  ;;  %s10348_s1 = smov 15  }
 0x480   :  { %1984 = vrot.lane.b32.xlu0 %v1664_v39, %s10267_s5 }
 0x483   :  { %1992 = vrot.lane.b32.xlu1 %v6693_v12, %s10279_s26 }
 0x484   :  { %1815 = vrot.lane.b32.xlu0 %v6693_v12, %s10269_s27 }
 0x487   :  { %2304 = vrot.lane.b32.xlu1 %v6693_v12, %s10267_s5 }
 0x488   :  { %1990 = vrot.lane.b32.xlu0 %v1674_v23, %s10279_s26 }
 0x48b   :  { %1813 = vrot.lane.b32.xlu1 %v1674_v23, %s10269_s27 }
 0x48c   :  { %1998 = vrot.lane.b32.xlu0 %v6696_v58, %s10269_s27 }
 0x48f   :  { %2302 = vrot.lane.b32.xlu1 %v1674_v23, %s10267_s5  ;;  %s10360_s5 = smov 10  }
 0x490   :  { %1996 = vrot.lane.b32.xlu0 %v1684_v62, %s10269_s27 }
 0x493   :  { %1823 = vrot.lane.b32.xlu1 %v6696_v58, %s10271_s28 }
 0x494   :  { %2308 = vrot.lane.b32.xlu0 %v1684_v62, %s10279_s26 }
 0x497   :  { %2310 = vrot.lane.b32.xlu1 %v6696_v58, %s10279_s26  ;;  %s10350_s26 = smov 14  }
 0x498   :  { %2004 = vrot.lane.b32.xlu0 %v6699_v34, %s10271_s28 }
 0x49b   :  { %1821 = vrot.lane.b32.xlu1 %v1684_v62, %s10271_s28 }
 0x49c   :  { %1829 = vrot.lane.b32.xlu0 %v1694_v60, %s10273_s2 }
 0x49f   :  { %1831 = vrot.lane.b32.xlu1 %v6699_v34, %s10273_s2 }
 0x4a0   :  { %2314 = vrot.lane.b32.xlu0 %v1694_v60, %s10269_s27 }
 0x4a3   :  { %2316 = vrot.lane.b32.xlu1 %v6699_v34, %s10269_s27  ;;  %s10358_s27 = smov 11  }
 0x4a4   :  { %2010 = vrot.lane.b32.xlu0 %v6702_v48, %s10273_s2 }
 0x4a7   :  { %2002 = vrot.lane.b32.xlu1 %v1694_v60, %s10271_s28 }
 0x4a8   :  { %1837 = vrot.lane.b32.xlu0 %v1704_v13, %s10360_s5 }
 0x4ab   :  { %1839 = vrot.lane.b32.xlu1 %v6702_v48, %s10360_s5 }
 0x4ac   :  { %2320 = vrot.lane.b32.xlu0 %v1704_v13, %s10271_s28 }
 0x4ad   :  { %v8544_v16 = vpop.permute.xlu1 %1956 }
 0x4ae   :  { %v8546_v0 = vpop.permute.xlu0 %1954 }
 0x4af   :  { %2322 = vrot.lane.b32.xlu1 %v6702_v48, %s10271_s28  ;;  %s10356_s28 = smov 12  }
 0x4b0   :  { %2016 = vrot.lane.b32.xlu0 %v6705_v29, %s10360_s5 }
 0x4b1   :  { %v8550_v35 = vpop.permute.xlu1 %2268 }
 0x4b2   :  { %v8552_v57 = vpop.permute.xlu0 %1767 }
 0x4b3   :  { %2008 = vrot.lane.b32.xlu1 %v1704_v13, %s10273_s2 }
 0x4b4   :  { %1847 = vrot.lane.b32.xlu0 %v6705_v29, %s10358_s27 }
 0x4b5   :  { %v8556_v31 = vpop.permute.xlu1 %2266 }
 0x4b6   :  { %v8558_v11 = vpop.permute.xlu0 %2274 }
 0x4b7   :  { %2328 = vrot.lane.b32.xlu1 %v6705_v29, %s10273_s2 }
 0x4b8   :  { %1845 = vrot.lane.b32.xlu0 %v8491_v43, %s10358_s27 }
 0x4b9   :  { %v8563_v39 = vpop.permute.xlu1 %1765 }
 0x4ba   :  { %v8565_v12 = vpop.permute.xlu0 %2272 }
 0x4bb   :  { %2014 = vrot.lane.b32.xlu1 %v8491_v43, %s10360_s5 }
 0x4bc   :  { %2326 = vrot.lane.b32.xlu0 %v8491_v43, %s10273_s2  ;;  %s10352_s2 = smov 13  }
 0x4bd   :  { %v8571_v23 = vpop.permute.xlu1 %1962 }
 0x4be   :  { %v8573_v58 = vpop.permute.xlu0 %1775 }
 0x4bf   :  { %2020 = vrot.lane.b32.xlu1 %v8497_v1, %s10358_s27 }
 0x4c0   :  { %2022 = vrot.lane.b32.xlu0 %v8494_v59, %s10358_s27 }
 0x4c1   :  { %v8579_v62 = vpop.permute.xlu1 %1773 }
 0x4c2   :  { %v8581_v34 = vpop.permute.xlu0 %1960 }
 0x4c3   :  { %1853 = vrot.lane.b32.xlu1 %v8497_v1, %s10356_s28 }
 0x4c4   :  { %1855 = vrot.lane.b32.xlu0 %v8494_v59, %s10356_s28 }
 0x4c5   :  { %v8587_v60 = vpop.permute.xlu1 %1968 }
 0x4c6   :  { %v8589_v48 = vpop.permute.xlu0 %1783 }
 0x4c7   :  { %2026 = vrot.lane.b32.xlu1 %v8503_v42, %s10356_s28 }
 0x4c8   :  { %2332 = vrot.lane.b32.xlu0 %v8497_v1, %s10360_s5 }
 0x4c9   :  { %v8595_v13 = vpop.permute.xlu1 %1781 }
 0x4ca   :  { %v8597_v29 = vpop.permute.xlu0 %2280 }
 0x4cb   :  { %10452 = vst [vmem:[#allocation56_spill] sm:$0xff] %v8597_v29  ;;  %1861 = vrot.lane.b32.xlu1 %v8503_v42, %s10352_s2 }
 0x4cc   :  { %2028 = vrot.lane.b32.xlu0 %v8500_v7, %s10356_s28 }
 0x4cd   :  { %v8603_v43 = vpop.permute.xlu1 %2278 }
 0x4ce   :  { %10453 = vst [vmem:[#allocation57_spill] sm:$0xff] %v8603_v43  ;;  %v8605_v55 = vpop.permute.xlu0 %1966 }
 0x4cf   :  { %2032 = vrot.lane.b32.xlu1 %v8509_v8, %s10352_s2 }
 0x4d0   :  { %1863 = vrot.lane.b32.xlu0 %v8500_v7, %s10352_s2 }
 0x4d1   :  { %v8611_v1 = vpop.permute.xlu1 %1974 }
 0x4d2   :  { %v8613_v38 = vpop.permute.xlu0 %1791 }
 0x4d3   :  { %1869 = vrot.lane.b32.xlu1 %v8509_v8, %s10350_s26 }
 0x4d4   :  { %2034 = vrot.lane.b32.xlu0 %v8506_v18, %s10352_s2 }
 0x4d5   :  { %v8619_v19 = vpop.permute.xlu1 %1789 }
 0x4d6   :  { %v8621_v5 = vpop.permute.xlu0 %2286 }
 0x4d7   :  { %10454 = vst [vmem:[#allocation58_spill] sm:$0xff] %v8621_v5  ;;  %2038 = vrot.lane.b32.xlu1 %v8515_v56, %s10350_s26 }
 0x4d8   :  { %1871 = vrot.lane.b32.xlu0 %v8506_v18, %s10350_s26 }
 0x4d9   :  { %v8627_v50 = vpop.permute.xlu1 %2284 }
 0x4da   :  { %10455 = vst [vmem:[#allocation59_spill] sm:$0xff] %v8627_v50  ;;  %v8629_v15 = vpop.permute.xlu0 %1972 }
 0x4db   :  { %2334 = vrot.lane.b32.xlu1 %v8494_v59, %s10360_s5  ;;  %s10594_s5 = smov 9  }
 0x4dc   :  { %2040 = vrot.lane.b32.xlu0 %v8512_v49, %s10350_s26  ;;  %s10588_s26 = smov 3  }
 0x4dd   :  { %v8635_v22 = vpop.permute.xlu1 %1980 }
 0x4de   :  { %v8637_v36 = vpop.permute.xlu0 %1799 }
 0x4df   :  { %1877 = vrot.lane.b32.xlu1 %v8515_v56, %s10348_s1 }
 0x4e0   :  { %1879 = vrot.lane.b32.xlu0 %v8512_v49, %s10348_s1  ;;  %s10355_s1 = smov 96  }
 0x4e1   :  { %v8643_v28 = vpop.permute.xlu1 %1797 }
 0x4e2   :  { %v8645_v30 = vpop.permute.xlu0 %2292 }
 0x4e3   :  { %10456 = vst [vmem:[#allocation60_spill] sm:$0xff] %v8645_v30  ;;  %2340 = vrot.lane.b32.xlu1 %v8500_v7, %s10358_s27 }
 0x4e4   :  { %2338 = vrot.lane.b32.xlu0 %v8503_v42, %s10358_s27  ;;  %s10382_s27 = smov 32  }
 0x4e5   :  { %v8651_v59 = vpop.permute.xlu1 %2290 }
 0x4e6   :  { %10457 = vst [vmem:[#allocation61_spill] sm:$0xff] %v8651_v59  ;;  %v1979_v27 = vpop.permute.xlu0 %1978 }
 0x4e7   :  { %2346 = vrot.lane.b32.xlu1 %v8506_v18, %s10356_s28 }
 0x4e8   :  { %2344 = vrot.lane.b32.xlu0 %v8509_v8, %s10356_s28  ;;  %s10543_s28 = smov 64  }
 0x4e9   :  { %v8657_v20 = vpop.permute.xlu1 %1986 }
 0x4ea   :  { %v8659_v53 = vpop.permute.xlu0 %1807 }
 0x4eb   :  { %2352 = vrot.lane.b32.xlu1 %v8512_v49, %s10352_s2 }
 0x4ec   :  { %2350 = vrot.lane.b32.xlu0 %v8515_v56, %s10352_s2  ;;  %s10471_s2 = sld [smem:[#allocation79_spill]] }
 0x4ed   :  { %v8665_v7 = vpop.permute.xlu1 %1805 }
 0x4ee   :  { %v8667_v42 = vpop.permute.xlu0 %2298 }
 0x4ef   :  { %10458 = vst [vmem:[#allocation62_spill] sm:$0xff] %v8667_v42 }
 0x4f1   :  { %v8669_v21 = vpop.permute.xlu1 %2296 }
 0x4f2   :  { %10459 = vst [vmem:[#allocation63_spill] sm:$0xff] %v8669_v21  ;;  %v1985_v18 = vpop.permute.xlu0 %1984 }
 0x4f5   :  { %v8671_v26 = vpop.permute.xlu1 %1992 }
 0x4f6   :  { %v8673_v8 = vpop.permute.xlu0 %1815 }
 0x4f9   :  { %v8675_v52 = vpop.permute.xlu1 %2304 }
 0x4fa   :  { %10460 = vst [vmem:[#allocation64_spill] sm:$0xff] %v8675_v52  ;;  %v1991_v24 = vpop.permute.xlu0 %1990 }
 0x4fd   :  { %v8677_v25 = vpop.permute.xlu1 %1813 }
 0x4fe   :  { %v8679_v49 = vpop.permute.xlu0 %1998 }
 0x501   :  { %v8681_v51 = vpop.permute.xlu1 %2302 }
 0x502   :  { %10461 = vst [vmem:[#allocation65_spill] sm:$0xff] %v8681_v51  ;;  %v1997_v56 = vpop.permute.xlu0 %1996 }
 0x505   :  { %v8683_v61 = vpop.permute.xlu1 %1823 }
 0x506   :  { %v8685_v10 = vpop.permute.xlu0 %2308 }
 0x507   :  { %10462 = vst [vmem:[#allocation66_spill] sm:$0xff] %v8685_v10 }
 0x509   :  { %v8687_v47 = vpop.permute.xlu1 %2310 }
 0x50a   :  { %10463 = vst [vmem:[#allocation67_spill] sm:$0xff] %v8687_v47  ;;  %v8689_v9 = vpop.permute.xlu0 %2004 }
 0x50d   :  { %v8691_v46 = vpop.permute.xlu1 %1821 }
 0x50e   :  { %v8693_v33 = vpop.permute.xlu0 %1829 }
 0x511   :  { %v8695_v40 = vpop.permute.xlu1 %1831 }
 0x512   :  { %v8697_v41 = vpop.permute.xlu0 %2314 }
 0x513   :  { %10464 = vst [vmem:[#allocation68_spill] sm:$0xff] %v8697_v41 }
 0x515   :  { %v8699_v45 = vpop.permute.xlu1 %2316 }
 0x516   :  { %10465 = vst [vmem:[#allocation69_spill] sm:$0xff] %v8699_v45  ;;  %v8701_v44 = vpop.permute.xlu0 %2010 }
 0x519   :  { %v2003_v14 = vpop.permute.xlu1 %2002 }
 0x51a   :  { %v8703_v17 = vpop.permute.xlu0 %1837 }
 0x51d   :  { %v8705_v32 = vpop.permute.xlu1 %1839 }
 0x51e   :  { %v8707_v3 = vpop.permute.xlu0 %2320 }
 0x51f   :  { %10466 = vst [vmem:[#allocation70_spill] sm:$0xff] %v8707_v3 }
 0x521   :  { %v8709_v10 = vpop.permute.xlu1 %2322 }
 0x522   :  { %10467 = vst [vmem:[#allocation71_spill] sm:$0xff] %v8709_v10  ;;  %v8711_v47 = vpop.permute.xlu0 %2016 }
 0x525   :  { %v2009_v51 = vpop.permute.xlu1 %2008 }
 0x526   :  { %v8713_v52 = vpop.permute.xlu0 %1847 }
 0x529   :  { %v8715_v21 = vpop.permute.xlu1 %2328 }
 0x52a   :  { %10468 = vst [vmem:[#allocation72_spill] sm:$0xff] %v8715_v21  ;;  %v8717_v41 = vpop.permute.xlu0 %1845  ;;  %v2044_v21 = vsel %vm1883_vm2, %v8546_v0, %v8456_v4 }
 0x52b   :  { %v2046_v43 = vsel %vm1886_vm3, %v2044_v21, %v8581_v34  ;;  %v2045_v21 = vsel %vm1883_vm2, %v8544_v16, %v8452_v2 }
 0x52c   :  { %v2048_v29 = vsel %vm1889_vm4, %v2046_v43, %v8605_v55 }
 0x52d   :  { %v2015_v45 = vpop.permute.xlu1 %2014 }
 0x52e   :  { %v8719_v42 = vpop.permute.xlu0 %2326 }
 0x52f   :  { %10469 = vst [vmem:[#allocation73_spill] sm:$0xff] %v8719_v42 }
 0x531   :  { %v2021_v59 = vpop.permute.xlu1 %2020 }
 0x532   :  { %v8721_v30 = vpop.permute.xlu0 %2022 }
 0x535   :  { %v8723_v50 = vpop.permute.xlu1 %1853 }
 0x536   :  { %v8725_v3 = vpop.permute.xlu0 %1855 }
 0x539   :  { %v2027_v10 = vpop.permute.xlu1 %2026 }
 0x53a   :  { %v8727_v5 = vpop.permute.xlu0 %2332 }
 0x53b   :  { %10470 = vst [vmem:[#allocation74_spill] sm:$0xff] %v8727_v5  ;;  %v2050_v5 = vsel %vm1892_vm5, %v2048_v29, %v8629_v15  ;;  %v1885_v15 = vsel %vm1883_vm2, %v8444_v37, %v8552_v57 }
 0x53c   :  { %v2052_v4 = vsel %vm1895_vm6, %v2050_v5, %v1979_v27  ;;  %v1884_v27 = vsel %vm1883_vm2, %v8448_v6, %v8563_v39  ;;  %v2047_v5 = vsel %vm1886_vm3, %v2045_v21, %v8571_v23  ;;  %v1888_v37 = vsel %vm1886_vm3, %v1885_v15, %v8573_v58 }
 0x53d   :  { %v8734_v42 = vpop.permute.xlu1 %1861  ;;  %v2054_v0 = vsel %vm1898_vm7, %v2052_v4, %v1985_v18  ;;  %v1887_v2 = vsel %vm1886_vm3, %v1884_v27, %v8579_v62  ;;  %v2049_v16 = vsel %vm1889_vm4, %v2047_v5, %v8587_v60  ;;  %v1891_v58 = vsel %vm1889_vm4, %v1888_v37, %v8589_v48  ;;  %v10473_v37 = vld [vmem:[#allocation56_spill] sm:$0xff] }
 0x53e   :  { %v8738_v54 = vpop.permute.xlu0 %2028  ;;  %v2056_v34 = vsel %vm1901_vm12, %v2054_v0, %v1991_v24  ;;  %v1890_v6 = vsel %vm1889_vm4, %v1887_v2, %v8595_v13  ;;  %v2051_v24 = vsel %vm1892_vm5, %v2049_v16, %v8611_v1  ;;  %v1894_v48 = vsel %vm1892_vm5, %v1891_v58, %v8613_v38  ;;  %v10472_v2 = vld [vmem:[#allocation55_spill] sm:$0xff] }
 0x53f   :  { %v2058_v43 = vsel %vm216_vm0, %v2056_v34, %v1997_v56  ;;  %v1893_v39 = vsel %vm1892_vm5, %v1890_v6, %v8619_v19  ;;  %v2053_v23 = vsel %vm1895_vm6, %v2051_v24, %v8635_v22  ;;  %v10476_v58 = vld [vmem:[#allocation59_spill] sm:$0xff] }
 0x540   :  { %v2060_v57 = vsel %vm1906_vm13, %v2058_v43, %v2003_v14  ;;  %v1896_v13 = vsel %vm1895_vm6, %v1893_v39, %v8643_v28  ;;  %v2055_v1 = vsel %vm1898_vm7, %v2053_v23, %v8657_v20  ;;  %v10475_v23 = vld [vmem:[#allocation58_spill] sm:$0xff] }
 0x541   :  { %v2033_v55 = vpop.permute.xlu1 %2032  ;;  %v2062_v62 = vsel %vm10381_vm14, %v2060_v57, %v2009_v51  ;;  %v1899_v19 = vsel %vm1898_vm7, %v1896_v13, %v8665_v7  ;;  %v2057_v51 = vsel %vm1901_vm12, %v2055_v1, %v8671_v26  ;;  %v8797_v7 = vld [vmem:[%s10471_s2] sm:$0xff]  ;;  %v1897_v26 = vsel %vm1895_vm6, %v1894_v48, %v8637_v36  ;;  %v10477_v1 = vld [vmem:[#allocation60_spill] sm:$0xff] }
 0x542   :  { %v8756_v29 = vpop.permute.xlu0 %1863  ;;  %v2064_v14 = vsel %vm10380_vm15, %v2062_v62, %v2015_v45  ;;  %v1902_v28 = vsel %vm1901_vm12, %v1899_v19, %v8677_v25  ;;  %v2059_v20 = vsel %vm216_vm0, %v2057_v51, %v8679_v49  ;;  %v10479_v51 = vld [vmem:[#allocation62_spill] sm:$0xff] }
 0x543   :  { %v2066_v22 = vsel %vm10379_vm11, %v2064_v14, %v2021_v59  ;;  %v2061_v59 = vsel %vm1906_vm13, %v2059_v20, %v8689_v9  ;;  %v1904_v38 = vsel %vm216_vm0, %v1902_v28, %v8691_v46 }
 0x544   :  { %v2068_v45 = vsel %vm10374_vm10, %v2066_v22, %v2027_v10  ;;  %v1900_v10 = vsel %vm1898_vm7, %v1897_v26, %v8659_v53  ;;  %v2063_v49 = vsel %vm10381_vm14, %v2061_v59, %v8701_v44  ;;  %v2357_v53 = vsel %vm1883_vm2, %v8550_v35, %v8558_v11  ;;  %v10481_v59 = vld [vmem:[#allocation64_spill] sm:$0xff] }
 0x545   :  { %v1870_v60 = vpop.permute.xlu1 %1869  ;;  %v2070_v25 = vsel %vm10365_vm8, %v2068_v45, %v2033_v55  ;;  %v1903_v36 = vsel %vm1901_vm12, %v1900_v10, %v8673_v8  ;;  %v2065_v9 = vsel %vm10380_vm15, %v2063_v49, %v8711_v47  ;;  %v1907_v0 = vsel %vm1906_vm13, %v1904_v38, %v8693_v33  ;;  %v10480_v45 = vld [vmem:[#allocation63_spill] sm:$0xff] }
 0x546   :  { %v2035_v18 = vpop.permute.xlu0 %2034  ;;  %v1905_v44 = vsel %vm216_vm0, %v1903_v36, %v8683_v61  ;;  %v2067_v55 = vsel %vm10379_vm11, %v2065_v9, %v8721_v30  ;;  %v1910_v47 = vsel %vm10381_vm14, %v1907_v0, %v8703_v17  ;;  %v119_v61 = vld [vmem:[%s10471_s2 + $0x8] sm:$0xff]  ;;  %v2356_v30 = vsel %vm1883_vm2, %v8556_v31, %v8565_v12  ;;  %v10485_v9 = vld [vmem:[#allocation69_spill] sm:$0xff] }
 0x547   :  { %v1908_v8 = vsel %vm1906_vm13, %v1905_v44, %v8695_v40  ;;  %v2069_v15 = vsel %vm10374_vm10, %v2067_v55, %v8738_v54  ;;  %v1913_v17 = vsel %vm10380_vm15, %v1910_v47, %v8717_v41  ;;  %v2359_v41 = vsel %vm1886_vm3, %v2357_v53, %v8460_v63  ;;  %v10474_v63 = vld [vmem:[#allocation57_spill] sm:$0xff]  ;;  %v10483_v49 = vld [vmem:[#allocation67_spill] sm:$0xff]  ;;  %v10486_v44 = vld [vmem:[#allocation68_spill] sm:$0xff] }
 0x548   :  { %v1911_v40 = vsel %vm10381_vm14, %v1908_v8, %v8705_v32  ;;  %v2071_v54 = vsel %vm10365_vm8, %v2069_v15, %v2035_v18  ;;  %v1916_v5 = vsel %vm10379_vm11, %v1913_v17, %v8723_v50  ;;  %v2358_v16 = vsel %vm1886_vm3, %v2356_v30, %v10472_v2  ;;  %v10478_v18 = vld [vmem:[#allocation61_spill] sm:$0xff]  ;;  %v10487_v55 = vld [vmem:[#allocation71_spill] sm:$0xff] }
 0x549   :  { %v2039_v56 = vpop.permute.xlu1 %2038  ;;  %v1914_v11 = vsel %vm10380_vm15, %v1911_v40, %v8713_v52  ;;  %v1919_v32 = vsel %vm10374_vm10, %v1916_v5, %v8734_v42  ;;  %v2361_v6 = vsel %vm1889_vm4, %v2359_v41, %v10473_v37  ;;  %v2360_v39 = vsel %vm1889_vm4, %v2358_v16, %v10474_v63  ;;  %v10489_v40 = vld [vmem:[#allocation72_spill] sm:$0xff] }
 0x54a   :  { %v2072_v4 = vsel %vm10364_vm9, %v2070_v25, %v2039_v56  ;;  %v1872_v21 = vpop.permute.xlu0 %1871  ;;  %v1917_v31 = vsel %vm10379_vm11, %v1914_v11, %v8725_v3  ;;  %v1922_v50 = vsel %vm10365_vm8, %v1919_v32, %v1870_v60  ;;  %v2363_v62 = vsel %vm1892_vm5, %v2361_v6, %v10475_v23  ;;  %v10482_v56 = vld [vmem:[#allocation65_spill] sm:$0xff] }
 0x54b   :  { %v8816_v46 = vadd.f32 %v2072_v4, %v8797_v7  ;;  %v1920_v52 = vsel %vm10374_vm10, %v1917_v31, %v8756_v29  ;;  %v2362_v13 = vsel %vm1892_vm5, %v2360_v39, %v10476_v58  ;;  %v2365_v14 = vsel %vm1895_vm6, %v2363_v62, %v10477_v1 }
 0x54c   :  { %v1923_v3 = vsel %vm10365_vm8, %v1920_v52, %v1872_v21  ;;  %v2364_v19 = vsel %vm1895_vm6, %v2362_v13, %v10478_v18  ;;  %v2367_v22 = vsel %vm1898_vm7, %v2365_v14, %v10479_v51  ;;  %v10484_v21 = vld [vmem:[#allocation66_spill] sm:$0xff] }
 0x54d   :  { %v2335_v27 = vpop.permute.xlu1 %2334  ;;  %v2076_v33 = vsel %vm10372_vm1, %v8816_v46, -inf  ;;  %v2366_v26 = vsel %vm1898_vm7, %v2364_v19, %v10480_v45  ;;  %v2369_v38 = vsel %vm1901_vm12, %v2367_v22, %v10481_v59 }
 0x54e   :  { %v2041_v35 = vpop.permute.xlu0 %2040  ;;  %2077 = vmax.xlane.f32.xlu0 %v2076_v33  ;;  %v2368_v10 = vsel %vm1901_vm12, %v2366_v26, %v10482_v56  ;;  %v2371_v4 = vsel %vm216_vm0, %v2369_v38, %v10483_v49  ;;  %v10488_v33 = vld [vmem:[#allocation70_spill] sm:$0xff]  ;;  %v10492_v49 = vld [vmem:[#allocation53_spill] sm:$0xff] }
 0x54f   :  { %v2073_v34 = vsel %vm10364_vm9, %v2071_v54, %v2041_v35  ;;  %v2370_v36 = vsel %vm216_vm0, %v2368_v10, %v10484_v21  ;;  %v2373_v53 = vsel %vm1906_vm13, %v2371_v4, %v10485_v9  ;;  %v10490_v35 = vld [vmem:[#allocation73_spill] sm:$0xff] }
 0x550   :  { %v2075_v12 = vadd.f32 %v2073_v34, %v119_v61  ;;  %v2372_v0 = vsel %vm1906_vm13, %v2370_v36, %v10486_v44  ;;  %v2375_v8 = vsel %vm10381_vm14, %v2373_v53, %v10487_v55  ;;  %v10491_v34 = vld [vmem:[#allocation74_spill] sm:$0xff] }
 0x551   :  { %v1878_v43 = vpop.permute.xlu1 %1877  ;;  %v2374_v30 = vsel %vm10381_vm14, %v2372_v0, %v10488_v33  ;;  %v2377_v17 = vsel %vm10380_vm15, %v2375_v8, %v10489_v40 }
 0x552   :  { %v1925_v42 = vsel %vm10364_vm9, %v1922_v50, %v1878_v43  ;;  %v1880_v24 = vpop.permute.xlu0 %1879  ;;  %v2079_v57 = vsel %vm10372_vm1, %v2075_v12, -inf  ;;  %v2376_v11 = vsel %vm10380_vm15, %v2374_v30, %v10490_v35  ;;  %v2379_v5 = vsel %vm10379_vm11, %v2377_v17, %v2335_v27 }
 0x553   :  { %v1927_v29 = vadd.f32 %v1925_v42, %v8797_v7  ;;  %v1926_v60 = vsel %vm10364_vm9, %v1923_v3, %v1880_v24  ;;  %2080 = vmax.xlane.f32.xlu1 %v2079_v57  ;;  %v2378_v31 = vsel %vm10379_vm11, %v2376_v11, %v10491_v34  ;;  %v10493_v11 = vld [vmem:[#allocation54_spill] sm:$0xff] }
 0x554   :  { %v1928_v48 = vadd.f32 %v1926_v60, %v119_v61 }
 0x555   :  { %v2341_v28 = vpop.permute.xlu1 %2340  ;;  %v1930_v20 = vsel %vm10372_vm1, %v1927_v29, -inf }
 0x556   :  { %v2339_v25 = vpop.permute.xlu0 %2338  ;;  %1931 = vmax.xlane.f32.xlu0 %v1930_v20  ;;  %v1933_v15 = vsel %vm10372_vm1, %v1928_v48, -inf  ;;  %v2381_v32 = vsel %vm10374_vm10, %v2379_v5, %v2341_v28 }
 0x557   :  { %v2380_v41 = vsel %vm10374_vm10, %v2378_v31, %v2339_v25 }
 0x559   :  { %v2347_v47 = vpop.permute.xlu1 %2346 }
 0x55a   :  { %v2345_v54 = vpop.permute.xlu0 %2344  ;;  %1934 = vmax.xlane.f32.xlu0 %v1933_v15  ;;  %v2383_v2 = vsel %vm10365_vm8, %v2381_v32, %v2347_v47 }
 0x55b   :  { %v2382_v52 = vsel %vm10365_vm8, %v2380_v41, %v2345_v54  ;;  %v6020_v41 = vld [vmem:[%s10400_s3 + $0x20] sm:$0xff] }
 0x55d   :  { %v2353_v16 = vpop.permute.xlu1 %2352 }
 0x55e   :  { %v2385_v50 = vsel %vm10364_vm9, %v2383_v2, %v2353_v16  ;;  %v2351_v43 = vpop.permute.xlu0 %2350  ;;  %v6021_v2 = vld [vmem:[%s10400_s3 + $0x28] sm:$0xff] }
 0x55f   :  { %v2387_v37 = vadd.f32 %v2385_v50, %v119_v61  ;;  %v2384_v6 = vsel %vm10364_vm9, %v2382_v52, %v2351_v43  ;;  %v7157_v50 = vpack.c.bf16 %v6021_v2, %v6020_v41  ;;  %vm10495_vm9 = vcmask 261120   ;;  %v10500_v2 = vld [vmem:[#allocation24_spill] sm:$0xff] }
 0x560   :  { %v2386_v27 = vadd.f32 %v2384_v6, %v8797_v7  ;;  %v6022_v6 = vld [vmem:[%s10400_s3 + $0x30] sm:$0xff]  ;;  %vm10497_vm8 = vmmov %vm10495_vm9 }
 0x561   :  { %v2391_v3 = vsel %vm10372_vm1, %v2387_v37, -inf }
 0x562   :  { %2392 = vmax.xlane.f32.xlu0 %v2391_v3  ;;  %v2388_v42 = vsel %vm10372_vm1, %v2386_v27, -inf }
 0x563   :  { %2389 = vmax.xlane.f32.xlu1 %v2388_v42 }
 0x5db   :  { %v2078_v24 = vpop.xlane.xlu0 %2077 }
 0x5dc   :  { %v2082_v57 = vsub.f32 %v8816_v46, %v2078_v24  ;;  %v10494_v24 = vld [vmem:[#allocation51_spill] sm:$0xff] }
 0x5de   :  { %v2084_v63 = vmul.f32 1.442695, %v2082_v57  ;;  %v6028_v57 = vld [vmem:[%s10398_s6 + $0x8] sm:$0xff] }
 0x5e0   :  { %7393 = vpow2.f32 %v2084_v63  ;;  %v2081_v39 = vpop.xlane.xlu1 %2080  ;;  %v10496_v63 = vld [vmem:[#allocation52_spill] sm:$0xff] }
 0x5e1   :  { %v2083_v23 = vsub.f32 %v2075_v12, %v2081_v39  ;;  %v7455_v39 = vld [vmem:[%s10399_s0] sm:$0xff] }
 0x5e3   :  { %v2086_v62 = vmul.f32 1.442695, %v2083_v23  ;;  %v1932_v60 = vpop.xlane.xlu0 %1931  ;;  %v7456_v23 = vld [vmem:[%s10399_s0 + $0x8] sm:$0xff] }
 0x5e4   :  { %v1936_v61 = vsub.f32 %v1927_v29, %v1932_v60  ;;  %v7458_v60 = vld [vmem:[%s10399_s0 + $0x18] sm:$0xff] }
 0x5e5   :  { %7395 = vpow2.f32 %v2086_v62  ;;  %v7457_v62 = vld [vmem:[%s10399_s0 + $0x10] sm:$0xff] }
 0x5e6   :  { %v1938_v58 = vmul.f32 1.442695, %v1936_v61  ;;  %v7459_v61 = vld [vmem:[%s10399_s0 + $0x20] sm:$0xff] }
 0x5e7   :  { %v1935_v13 = vpop.xlane.xlu0 %1934 }
 0x5e8   :  { %7397 = vpow2.f32 %v1938_v58  ;;  %v1937_v7 = vsub.f32 %v1928_v48, %v1935_v13  ;;  %v7460_v58 = vld [vmem:[%s10399_s0 + $0x28] sm:$0xff]  ;;  %v7461_v13 = vld [vmem:[%s10399_s0 + $0x30] sm:$0xff] }
 0x5ea   :  { %v7394_v1 = vpop.eup %7393  ;;  %v1940_v14 = vmul.f32 1.442695, %v1937_v7  ;;  %v7462_v7 = vld [vmem:[%s10399_s0 + $0x38] sm:$0xff] }
 0x5eb   :  { %v2088_v18 = vsel %vm10372_vm1, %v7394_v1, 0.0 }
 0x5ec   :  { %7399 = vpow2.f32 %v1940_v14  ;;  %2089 = vadd.xlane.f32.xlu1 %v2088_v18  ;;  %v7464_v14 = vld [vmem:[%s10399_s0 + $0x48] sm:$0xff]  ;;  %v7465_v18 = vld [vmem:[%s10399_s0 + $0x50] sm:$0xff] }
 0x5ef   :  { %v7396_v19 = vpop.eup %7395  ;;  %v2393_v46 = vpop.xlane.xlu0 %2392 }
 0x5f0   :  { %v2395_v51 = vsub.f32 %v2387_v37, %v2393_v46  ;;  %v2390_v22 = vpop.xlane.xlu1 %2389  ;;  %v2091_v12 = vsel %vm10372_vm1, %v7396_v19, 0.0  ;;  %v7467_v46 = vld [vmem:[%s10399_s0 + $0x60] sm:$0xff] }
 0x5f1   :  { %v2394_v28 = vsub.f32 %v2386_v27, %v2390_v22  ;;  %2092 = vadd.xlane.f32.xlu0 %v2091_v12  ;;  %v6023_v27 = vld [vmem:[%s10400_s3 + $0x38] sm:$0xff]  ;;  %v7469_v22 = vld [vmem:[%s10399_s0 + $0x70] sm:$0xff] }
 0x5f2   :  { %v7398_v29 = vpop.eup %7397  ;;  %v2398_v20 = vmul.f32 1.442695, %v2395_v51  ;;  %v7161_v42 = vpack.c.bf16 %v6023_v27, %v6022_v6  ;;  %v7468_v51 = vld [vmem:[%s10399_s0 + $0x68] sm:$0xff]  ;;  %v7470_v12 = vld [vmem:[%s10399_s0 + $0x78] sm:$0xff] }
 0x5f3   :  { %v2396_v45 = vmul.f32 1.442695, %v2394_v28  ;;  %v1942_v26 = vsel %vm10372_vm1, %v7398_v29, 0.0  ;;  %v7471_v28 = vld [vmem:[%s10399_s0 + $0x80] sm:$0xff] }
 0x5f4   :  { %7401 = vpow2.f32 %v2398_v20  ;;  %1943 = vadd.xlane.f32.xlu1 %v1942_v26  ;;  %v7473_v20 = vld [vmem:[%s10399_s0 + $0x90] sm:$0xff]  ;;  %v7475_v26 = vld [vmem:[%s10399_s0 + $0xa0] sm:$0xff] }
 0x5f5   :  { %7403 = vpow2.f32 %v2396_v45  ;;  %v7474_v45 = vld [vmem:[%s10399_s0 + $0x98] sm:$0xff] }
 0x5f6   :  { %v7400_v48 = vpop.eup %7399 }
 0x5f7   :  { %v1945_v59 = vsel %vm10372_vm1, %v7400_v48, 0.0 }
 0x5f8   :  { %1946 = vadd.xlane.f32.xlu0 %v1945_v59  ;;  %v7477_v59 = vld [vmem:[%s10399_s0 + $0xb0] sm:$0xff] }
 0x5fe   :  { %v7402_v38 = vpop.eup %7401 }
 0x5ff   :  { %v7404_v25 = vpop.eup %7403  ;;  %v2403_v56 = vsel %vm10372_vm1, %v7402_v38, 0.0 }
 0x600   :  { %2404 = vadd.xlane.f32.xlu0 %v2403_v56  ;;  %v2400_v10 = vsel %vm10372_vm1, %v7404_v25, 0.0  ;;  %v7480_v56 = vld [vmem:[%s10399_s0 + $0xc8] sm:$0xff] }
 0x601   :  { %2401 = vadd.xlane.f32.xlu1 %v2400_v10  ;;  %v7481_v10 = vld [vmem:[%s10399_s0 + $0xd0] sm:$0xff] }
 0x612   :  { %7373 = vrot.lane.b32.xlu1 %v10492_v49, %s10355_s1  ;;  %s10595_s1 = smov 10  }
 0x616   :  { %7378 = vrot.lane.b32.xlu0 %v10492_v49, %s10377_s18  ;;  %v7482_v49 = vld [vmem:[%s10399_s0 + $0xd8] sm:$0xff] }
 0x679   :  { %v2090_v4 = vpop.xlane.xlu1 %2089 }
 0x67a   :  { %7405 = vrcp.f32 %v2090_v4  ;;  %v7483_v4 = vld [vmem:[%s10399_s0 + $0xe0] sm:$0xff] }
 0x67e   :  { %v2093_v9 = vpop.xlane.xlu0 %2092 }
 0x67f   :  { %7407 = vrcp.f32 %v2093_v9  ;;  %v7486_v9 = vld [vmem:[%s10399_s0 + $0xf8] sm:$0xff] }
 0x681   :  { %v1944_v53 = vpop.xlane.xlu1 %1943 }
 0x682   :  { %7409 = vrcp.f32 %v1944_v53  ;;  %v120_v53 = vld [vmem:[%s10498_s7] sm:$0xff] }
 0x683   :  { %6802 = vmatprep.mubr.msk.f32.mxu1 %vm1886_vm3, %v120_v53  ;;  %v10508_v53 = vld [vmem:[#allocation26_spill] sm:$0xff] }
 0x684   :  { %v7406_v21 = vpop.eup %7405 }
 0x685   :  { %v2096_v36 = vmul.f32 %v7406_v21, %v7394_v1  ;;  %v1947_v44 = vpop.xlane.xlu0 %1946  ;;  %v7463_v1 = vld [vmem:[%s10399_s0 + $0x40] sm:$0xff]  ;;  %v7484_v21 = vld [vmem:[%s10399_s0 + $0xe8] sm:$0xff] }
 0x686   :  { %7411 = vrcp.f32 %v1947_v44 }
 0x687   :  { %6722 = vmatprep.mubr.msk.f32.mxu0 %vm10372_vm1, %v2096_v36  ;;  %v7485_v36 = vld [vmem:[%s10399_s0 + $0xf0] sm:$0xff] }
 0x689   :  { %v7408_v40 = vpop.eup %7407 }
 0x68a   :  { %v2097_v5 = vmul.f32 %v7408_v40, %v7396_v19  ;;  %v7466_v19 = vld [vmem:[%s10399_s0 + $0x58] sm:$0xff] }
 0x68c   :  { %v7410_v17 = vpop.eup %7409 }
 0x68d   :  { %v2405_v0 = vpop.xlane.xlu0 %2404  ;;  %v1950_v34 = vmul.f32 %v7410_v17, %v7398_v29  ;;  %v7472_v29 = vld [vmem:[%s10399_s0 + $0x88] sm:$0xff] }
 0x68e   :  { %v2402_v55 = vpop.xlane.xlu1 %2401  ;;  %v121_v17 = vld [vmem:[%s10498_s7 + $0x8] sm:$0xff] }
 0x68f   :  { %7413 = vrcp.f32 %v2402_v55  ;;  %v6019_v55 = vld [vmem:[%s10223_s16] ss:$0 sm:$0xff] }
 0x690   :  { %7415 = vrcp.f32 %v2405_v0  ;;  %v7412_v32 = vpop.eup %7411 }
 0x691   :  { %v7379_v33 = vpop.permute.xlu0 %7378  ;;  %v1951_v52 = vmul.f32 %v7412_v32, %v7400_v48  ;;  %v7476_v48 = vld [vmem:[%s10399_s0 + $0xa8] sm:$0xff] }
 0x692   :  { %v7374_v8 = vpop.permute.xlu1 %7373  ;;  %v7381_v54 = vunpack.i.h.bf16 %v7379_v33  ;;  %v7380_v35 = vunpack.i.l.bf16 %v7379_v33  ;;  %v9093_v33 = vld [vmem:[%s10416_s25 + $0x1] ss:$0 sm:$0xff] }
 0x693   :  { %v7376_v47 = vunpack.i.h.bf16 %v7374_v8  ;;  %v7375_v15 = vunpack.i.l.bf16 %v7374_v8 }
 0x694   :  { %v7153_v31 = vpack.c.bf16 %v7381_v54, %v7380_v35 }
 0x695   :  { %v7145_v30 = vpack.c.bf16 %v7376_v47, %v7375_v15 }
 0x697   :  { %7146 = vmatprep.subr.bf16.mxu0 %v7145_v30 }
 0x698   :  { %7148 = vmatpush3.bf16.msra.mxu0 %v7145_v30 }
 0x699   :  { %7150 = vmatprep.subr.bf16.mxu0 %v10493_v11  ;;  %v7414_v16 = vpop.eup %7413 }
 0x69a   :  { %v2408_v43 = vmul.f32 %v7414_v16, %v7404_v25  ;;  %v7416_v37 = vpop.eup %7415  ;;  %v7479_v25 = vld [vmem:[%s10399_s0 + $0xc0] sm:$0xff] }
 0x69b   :  { %6723 = vmatmul.mubr.msk.f32.vlgmr.msra.gmra.mrb[8].mxu0 %vm10372_vm1, %v2097_v5  ;;  %v2409_v3 = vmul.f32 %v7416_v37, %v7402_v38  ;;  %v7478_v38 = vld [vmem:[%s10399_s0 + $0xb8] sm:$0xff]  ;;  %v10499_v5 = vld [vmem:[#allocation23_spill] sm:$0xff] }
 0x69c   :  { %7152 = vmatpush3.bf16.msra.mxu0 %v10493_v11  ;;  %6729 = vmatprep.mubr.msk.f32.mxu0 %vm10372_vm1, %v1950_v34 }
 0x69d   :  { %7154 = vmatprep.subr.bf16.mxu0 %v7153_v31 }
 0x6a3   :  { %6730 = vmatmul.mubr.msk.f32.vlgmr.msra.gmra.mrb[8].mxu0 %vm10372_vm1, %v1951_v52 }
 0x6a4   :  { %7156 = vmatpush3.bf16.msra.mxu0 %v7153_v31  ;;  %6736 = vmatprep.mubr.msk.f32.mxu0 %vm10372_vm1, %v2408_v43 }
 0x6a5   :  { %7158 = vmatprep.subr.bf16.mxu0 %v7157_v50 }
 0x6ab   :  { %6737 = vmatmul.mubr.msk.f32.vlgmr.msra.gmra.mrb[8].mxu0 %vm10372_vm1, %v2409_v3 }
 0x6ac   :  { %7160 = vmatpush3.bf16.msra.mxu0 %v7157_v50  ;;  %6747 = vmatprep.mubr.msk.f32.mxu0 %vm10495_vm9, %v10494_v24  ;;  %vm10373_vm9 = vcmask 1041408  }
 0x6ad   :  { %7162 = vmatprep.subr.bf16.mxu0 %v7161_v42 }
 0x6b0   :  { %7164 = vmatpush3.bf16.msra.mxu0 %v7161_v42  ;;  %v10501_v42 = vld [vmem:[#allocation22_spill] sm:$0xff] }
 0x6b1   :  { %6750 = vmatprep.subr.mxu0 %v6028_v57 }
 0x6b3   :  { %6748 = vmatmul.mubr.msk.f32.vlgmr.msra.gmra.mrb[10].mxu0 %vm10497_vm8, %v10496_v63 }
 0x6b4   :  { %6751 = vmatpush3.msra.mxu0 %v6028_v57  ;;  %6752 = vmatprep.mubr.msk.f32.mxu0 %vm216_vm0, %v7455_v39 }
 0x6b7   :  { %6753 = vmatmul.mubr.msk.f32.vlgmr.msra.gmra.mrb[12].mxu0 %vm216_vm0, %v7456_v23  ;;  %v10502_v23 = vld [vmem:[#allocation21_spill] sm:$0xff] }
 0x6b8   :  { %6755 = vmatprep.mubr.msk.f32.mxu0 %vm216_vm0, %v7457_v62 }
 0x6bb   :  { %6756 = vmatmul.mubr.msk.f32.gmra.mrb[14].mxu0 %vm216_vm0, %v7458_v60  ;;  %v10503_v60 = vld [vmem:[#allocation19_spill] sm:$0xff] }
 0x6bc   :  { %6758 = vmatprep.mubr.msk.f32.mxu0 %vm216_vm0, %v7459_v61 }
 0x6bf   :  { %6759 = vmatmul.mubr.msk.f32.gmra.mrb[16].mxu0 %vm216_vm0, %v7460_v58 }
 0x6c0   :  { %6761 = vmatprep.mubr.msk.f32.mxu0 %vm216_vm0, %v7461_v13 }
 0x6c3   :  { %6762 = vmatmul.mubr.msk.f32.gmra.mrb[18].mxu0 %vm216_vm0, %v7462_v7 }
 0x6c4   :  { %6764 = vmatprep.mubr.msk.f32.mxu0 %vm216_vm0, %v7463_v1 }
 0x6c7   :  { %6765 = vmatmul.mubr.msk.f32.gmra.mrb[20].mxu0 %vm216_vm0, %v7464_v14 }
 0x6c8   :  { %6767 = vmatprep.mubr.msk.f32.mxu0 %vm216_vm0, %v7465_v18 }
 0x6cb   :  { %6768 = vmatmul.mubr.msk.f32.gmra.mrb[22].mxu0 %vm216_vm0, %v7466_v19 }
 0x6cc   :  { %6770 = vmatprep.mubr.msk.f32.mxu0 %vm216_vm0, %v7467_v46 }
 0x6cf   :  { %6771 = vmatmul.mubr.msk.f32.gmra.mrb[24].mxu0 %vm216_vm0, %v7468_v51  ;;  %v10504_v51 = vld [vmem:[#allocation10_spill] sm:$0xff] }
 0x6d0   :  { %6773 = vmatprep.mubr.msk.f32.mxu0 %vm216_vm0, %v7469_v22 }
 0x6d3   :  { %6774 = vmatmul.mubr.msk.f32.gmra.mrb[26].mxu0 %vm216_vm0, %v7470_v12 }
 0x6d4   :  { %6776 = vmatprep.mubr.msk.f32.mxu0 %vm216_vm0, %v7471_v28  ;;  %v10505_v28 = vld [vmem:[#allocation25_spill] sm:$0xff] }
 0x6d7   :  { %6777 = vmatmul.mubr.msk.f32.gmra.mrb[28].mxu0 %vm216_vm0, %v7472_v29 }
 0x6d8   :  { %6779 = vmatprep.mubr.msk.f32.mxu0 %vm216_vm0, %v7473_v20 }
 0x6db   :  { %6780 = vmatmul.mubr.msk.f32.gmra.mrb[30].mxu0 %vm216_vm0, %v7474_v45 }
 0x6dc   :  { %6782 = vmatprep.mubr.msk.f32.mxu0 %vm216_vm0, %v7475_v26 }
 0x6df   :  { %6783 = vmatmul.mubr.msk.f32.gmra.mrb[32].mxu0 %vm216_vm0, %v7476_v48 }
 0x6e0   :  { %6785 = vmatprep.mubr.msk.f32.mxu0 %vm216_vm0, %v7477_v59 }
 0x6e3   :  { %6786 = vmatmul.mubr.msk.f32.gmra.mrb[34].mxu0 %vm216_vm0, %v7478_v38  ;;  %v10506_v38 = vld [vmem:[#allocation9_spill] sm:$0xff] }
 0x6e4   :  { %6788 = vmatprep.mubr.msk.f32.mxu0 %vm216_vm0, %v7479_v25 }
 0x6e7   :  { %6789 = vmatmul.mubr.msk.f32.gmra.mrb[36].mxu0 %vm216_vm0, %v7480_v56 }
 0x6e8   :  { %6791 = vmatprep.mubr.msk.f32.mxu0 %vm216_vm0, %v7481_v10 }
 0x6eb   :  { %6792 = vmatmul.mubr.msk.f32.gmra.mrb[38].mxu0 %vm216_vm0, %v7482_v49 }
 0x6ec   :  { %6794 = vmatprep.mubr.msk.f32.mxu0 %vm216_vm0, %v7483_v4  ;;  %v10507_v4 = vld [vmem:[#allocation11_spill] sm:$0xff] }
 0x6ef   :  { %6795 = vmatmul.mubr.msk.f32.gmra.mrb[40].mxu0 %vm216_vm0, %v7484_v21 }
 0x6f0   :  { %6797 = vmatprep.mubr.msk.f32.mxu0 %vm216_vm0, %v7485_v36 }
 0x6f3   :  { %6798 = vmatmul.mubr.msk.f32.gmra.mrb[42].mxu0 %vm216_vm0, %v7486_v9 }
 0x77e   :  { %v6738_v44 = vpop.f32.mrb[8].mxu0 }
 0x77f   :  { %v2488_v0 = vpop.f32.mrb[9].mxu0 }
 0x780   :  { %v2497_v8 = vmul.f32 0.33333334, %v2488_v0 }
 0x782   :  { %v2505_v47 = vadd.f32 %v6019_v55, %v2497_v8  ;;  %v10509_v55 = vld [vmem:[#allocation31_spill] sm:$0xff] }
 0x784   :  { %v2507_v15 = vmul.f32 0.01, %v2505_v47  ;;  %vm2506_vm8 = vcmp.gt.f32.partialorder %v2505_v47, 0.0 }
 0x786   :  { %v9095_v30 = vpop.f32.mrb[10].mxu0  ;;  %v2508_v40 = vsel %vm2506_vm8, %v2505_v47, %v2507_v15 }
 0x787   :  { %v2588_v54 = vpop.f32.mrb[11].mxu0  ;;  %6800 = vmatprep.subr.msk.mxu1 %vm10373_vm9, %v2508_v40 }
 0x788   :  { %v9102_v35 = vadd.f32 %v9093_v33, %v2588_v54  ;;  %6801 = vmatpush3.msk.msra.mxu1 %vm10373_vm9, %v2508_v40 }
 0x789   :  { %6803 = vmatmul.mubr.msk.f32.vlgmr.msra.gmra.mrb[64].mxu1 %vm1886_vm3, %v121_v17 }
 0x78a   :  { %v6754_v11 = vpop.f32.mrb[12].mxu0  ;;  %v2827_v34 = vrot.slane %v9102_v35, %v10499_v5  ;;  %v2843_v16 = vrot.slane %v9102_v35, %v10500_v2  ;;  %v2859_v62 = vrot.slane %v9102_v35, %v10502_v23  ;;  %v2875_v29 = vrot.slane %v9102_v35, %v10505_v28 }
 0x78b   :  { %v2665_v31 = vpop.f32.mrb[13].mxu0  ;;  %v2891_v44 = vrot.slane %v9102_v35, %v10508_v53 }
 0x78c   :  { %v2829_v32 = vadd.f32 %v6754_v11, %v2827_v34  ;;  %v2828_v41 = vadd.f32 %v2827_v34, %v2665_v31 }
 0x78e   :  { %vm2831_vm8 = vcmp.gt.f32.partialorder %v2829_v32, 0.0  ;;  %v2833_v52 = vmul.f32 0.01, %v2829_v32  ;;  %vm2830_vm1 = vcmp.gt.f32.partialorder %v2828_v41, 0.0  ;;  %v2832_v50 = vmul.f32 0.01, %v2828_v41 }
 0x78f   :  { %v6757_v43 = vpop.f32.mrb[14].mxu0 }
 0x790   :  { %v2835_v37 = vsel %vm2831_vm8, %v2829_v32, %v2833_v52  ;;  %v2834_v6 = vsel %vm2830_vm1, %v2828_v41, %v2832_v50  ;;  %v2845_v27 = vadd.f32 %v6757_v43, %v2843_v16  ;;  %v2675_v3 = vpop.f32.mrb[15].mxu0  ;;  %v10510_v32 = vld [vmem:[#allocation33_spill] sm:$0xff]  ;;  %v10511_v50 = vld [vmem:[#allocation12_spill] sm:$0xff] }
 0x791   :  { %v2837_v57 = vadd.f32 %v2835_v37, %v10501_v42  ;;  %v2844_v39 = vadd.f32 %v2843_v16, %v2675_v3  ;;  %v2836_v61 = vadd.f32 %v2834_v6, %v10503_v60  ;;  %v10512_v6 = vld [vmem:[#allocation28_spill] sm:$0xff] }
 0x792   :  { %vm2847_vm9 = vcmp.gt.f32.partialorder %v2845_v27, 0.0  ;;  %v2849_v58 = vmul.f32 0.01, %v2845_v27  ;;  %v6760_v13 = vpop.f32.mrb[16].mxu0 }
 0x793   :  { %v2839_v7 = vmax.f32 %v2837_v57, -1e+30  ;;  %vm2846_vm10 = vcmp.gt.f32.partialorder %v2844_v39, 0.0  ;;  %v2861_v1 = vadd.f32 %v6760_v13, %v2859_v62  ;;  %v2685_v14 = vpop.f32.mrb[17].mxu0  ;;  %v2848_v19 = vmul.f32 0.01, %v2844_v39 }
 0x794   :  { %v2851_v18 = vsel %vm2847_vm9, %v2845_v27, %v2849_v58  ;;  %v2860_v46 = vadd.f32 %v2859_v62, %v2685_v14  ;;  %v2838_v20 = vmax.f32 %v2836_v61, -1e+30  ;;  %v2907_v27 = vrot.slane %v9102_v35, %v10512_v6 }
 0x795   :  { %v2853_v22 = vadd.f32 %v2851_v18, %v10504_v51  ;;  %vm2863_vm1 = vcmp.gt.f32.partialorder %v2861_v1, 0.0  ;;  %v2865_v12 = vmul.f32 0.01, %v2861_v1  ;;  %v2850_v45 = vsel %vm2846_vm10, %v2844_v39, %v2848_v19  ;;  %v10514_v19 = vld [vmem:[#allocation13_spill] sm:$0xff] }
 0x796   :  { %vm2862_vm8 = vcmp.gt.f32.partialorder %v2860_v46, 0.0  ;;  %v2864_v26 = vmul.f32 0.01, %v2860_v46  ;;  %v6763_v48 = vpop.f32.mrb[18].mxu0  ;;  %v2852_v25 = vadd.f32 %v2850_v45, %v10506_v38 }
 0x797   :  { %v2855_v59 = vmax.f32 %v2839_v7, %v2853_v22  ;;  %v2867_v56 = vsel %vm2863_vm1, %v2861_v1, %v2865_v12  ;;  %v2877_v10 = vadd.f32 %v6763_v48, %v2875_v29  ;;  %v2695_v49 = vpop.f32.mrb[19].mxu0  ;;  %v10513_v7 = vld [vmem:[#allocation14_spill] sm:$0xff]  ;;  %v10515_v12 = vld [vmem:[#allocation29_spill] sm:$0xff] }
 0x798   :  { %v2869_v21 = vadd.f32 %v2867_v56, %v10507_v4  ;;  %v2866_v36 = vsel %vm2862_vm8, %v2860_v46, %v2864_v26  ;;  %v2876_v9 = vadd.f32 %v2875_v29, %v2695_v49  ;;  %v2854_v0 = vmax.f32 %v2838_v20, %v2852_v25  ;;  %v10516_v49 = vld [vmem:[#allocation15_spill] sm:$0xff] }
 0x799   :  { %v2868_v8 = vadd.f32 %v2866_v36, %v10509_v55  ;;  %vm2879_vm10 = vcmp.gt.f32.partialorder %v2877_v10, 0.0  ;;  %v2881_v47 = vmul.f32 0.01, %v2877_v10  ;;  %v2923_v29 = vrot.slane %v9102_v35, %v10515_v12 }
 0x79a   :  { %v2871_v15 = vmax.f32 %v2855_v59, %v2869_v21  ;;  %vm2878_vm9 = vcmp.gt.f32.partialorder %v2876_v9, 0.0  ;;  %v2880_v40 = vmul.f32 0.01, %v2876_v9  ;;  %v6766_v17 = vpop.f32.mrb[20].mxu0 }
 0x79b   :  { %v2870_v54 = vmax.f32 %v2854_v0, %v2868_v8  ;;  %v2883_v11 = vsel %vm2879_vm10, %v2877_v10, %v2881_v47  ;;  %v2893_v34 = vadd.f32 %v6766_v17, %v2891_v44  ;;  %v2705_v31 = vpop.f32.mrb[21].mxu0  ;;  %v9132_v10 = vadd.f32 %v9095_v30, %v9093_v33  ;;  %v10518_v47 = vld [vmem:[#allocation30_spill] sm:$0xff]  ;;  %v10519_v30 = vld [vmem:[#allocation37_spill] sm:$0xff] }
 0x79c   :  { %v2885_v41 = vadd.f32 %v2883_v11, %v10510_v32  ;;  %v2882_v16 = vsel %vm2878_vm9, %v2876_v9, %v2880_v40  ;;  %v2892_v52 = vadd.f32 %v2891_v44, %v2705_v31  ;;  %v10517_v44 = vld [vmem:[#allocation35_spill] sm:$0xff] }
 0x79d   :  { %v2884_v43 = vadd.f32 %v2882_v16, %v10511_v50  ;;  %vm2895_vm1 = vcmp.gt.f32.partialorder %v2893_v34, 0.0  ;;  %v2897_v37 = vmul.f32 0.01, %v2893_v34 }
 0x79e   :  { %v2887_v3 = vmax.f32 %v2871_v15, %v2885_v41  ;;  %vm2894_vm8 = vcmp.gt.f32.partialorder %v2892_v52, 0.0  ;;  %v2896_v57 = vmul.f32 0.01, %v2892_v52  ;;  %v6769_v39 = vpop.f32.mrb[22].mxu0  ;;  %v2939_v15 = vrot.slane %v9102_v35, %v10518_v47 }
 0x79f   :  { %v2886_v62 = vmax.f32 %v2870_v54, %v2884_v43  ;;  %v2899_v61 = vsel %vm2895_vm1, %v2893_v34, %v2897_v37  ;;  %v2909_v58 = vadd.f32 %v6769_v39, %v2907_v27  ;;  %v2715_v13 = vpop.f32.mrb[23].mxu0  ;;  %v10520_v43 = vld [vmem:[#allocation16_spill] sm:$0xff] }
 0x7a0   :  { %v2901_v1 = vadd.f32 %v2899_v61, %v10513_v7  ;;  %v2898_v14 = vsel %vm2894_vm8, %v2892_v52, %v2896_v57  ;;  %v2908_v18 = vadd.f32 %v2907_v27, %v2715_v13 }
 0x7a1   :  { %v2900_v46 = vadd.f32 %v2898_v14, %v10514_v19  ;;  %vm2911_vm10 = vcmp.gt.f32.partialorder %v2909_v58, 0.0  ;;  %v2913_v22 = vmul.f32 0.01, %v2909_v58 }
 0x7a2   :  { %v2903_v20 = vmax.f32 %v2887_v3, %v2901_v1  ;;  %vm2910_vm9 = vcmp.gt.f32.partialorder %v2908_v18, 0.0  ;;  %v2912_v45 = vmul.f32 0.01, %v2908_v18  ;;  %v6772_v26 = vpop.f32.mrb[24].mxu0  ;;  %v2955_v3 = vrot.slane %v9132_v10, %v10499_v5  ;;  %v10521_v1 = vld [vmem:[#allocation18_spill] sm:$0xff] }
 0x7a3   :  { %v2902_v48 = vmax.f32 %v2886_v62, %v2900_v46  ;;  %v2915_v59 = vsel %vm2911_vm10, %v2909_v58, %v2913_v22  ;;  %v2925_v25 = vadd.f32 %v6772_v26, %v2923_v29  ;;  %v2725_v56 = vpop.f32.mrb[25].mxu0  ;;  %v10522_v22 = vld [vmem:[#allocation17_spill] sm:$0xff] }
 0x7a4   :  { %v2917_v21 = vadd.f32 %v2915_v59, %v10516_v49  ;;  %v2914_v36 = vsel %vm2910_vm9, %v2908_v18, %v2912_v45  ;;  %v2924_v9 = vadd.f32 %v2923_v29, %v2725_v56  ;;  %v2971_v45 = vrot.slane %v9132_v10, %v10500_v2 }
 0x7a5   :  { %v2916_v0 = vadd.f32 %v2914_v36, %v10517_v44  ;;  %vm2927_vm1 = vcmp.gt.f32.partialorder %v2925_v25, 0.0  ;;  %v2929_v8 = vmul.f32 0.01, %v2925_v25 }
 0x7a6   :  { %v2919_v40 = vmax.f32 %v2903_v20, %v2917_v21  ;;  %vm2926_vm8 = vcmp.gt.f32.partialorder %v2924_v9, 0.0  ;;  %v2928_v17 = vmul.f32 0.01, %v2924_v9  ;;  %v6775_v54 = vpop.f32.mrb[26].mxu0 }
 0x7a7   :  { %v2918_v11 = vmax.f32 %v2902_v48, %v2916_v0  ;;  %v2931_v34 = vsel %vm2927_vm1, %v2925_v25, %v2929_v8  ;;  %v2941_v31 = vadd.f32 %v6775_v54, %v2939_v15  ;;  %v2735_v33 = vpop.f32.mrb[27].mxu0 }
 0x7a8   :  { %v2933_v41 = vadd.f32 %v2931_v34, %v10519_v30  ;;  %v2930_v16 = vsel %vm2926_vm8, %v2924_v9, %v2928_v17  ;;  %v2940_v52 = vadd.f32 %v2939_v15, %v2735_v33  ;;  %v10523_v9 = vld [vmem:[#allocation20_spill] sm:$0xff] }
 0x7a9   :  { %v2932_v37 = vadd.f32 %v2930_v16, %v10520_v43  ;;  %vm2943_vm10 = vcmp.gt.f32.partialorder %v2941_v31, 0.0  ;;  %v2945_v27 = vmul.f32 0.01, %v2941_v31 }
 0x7aa   :  { %v2935_v35 = vmax.f32 %v2919_v40, %v2933_v41  ;;  %vm2942_vm9 = vcmp.gt.f32.partialorder %v2940_v52, 0.0  ;;  %v2944_v57 = vmul.f32 0.01, %v2940_v52  ;;  %v6778_v39 = vpop.f32.mrb[28].mxu0  ;;  %v10524_v40 = vld [vmem:[#allocation39_spill] sm:$0xff] }
 0x7ab   :  { %v2934_v62 = vmax.f32 %v2918_v11, %v2932_v37  ;;  %v2947_v61 = vsel %vm2943_vm10, %v2941_v31, %v2945_v27  ;;  %v2957_v58 = vadd.f32 %v6778_v39, %v2955_v3  ;;  %v2745_v13 = vpop.f32.mrb[29].mxu0  ;;  %v2987_v11 = vrot.slane %v9132_v10, %v10502_v23  ;;  %v10525_v27 = vld [vmem:[#allocation41_spill] sm:$0xff]  ;;  %v10526_v39 = vld [vmem:[#allocation27_spill] sm:$0xff] }
 0x7ac   :  { %v2949_v14 = vadd.f32 %v2947_v61, %v10521_v1  ;;  %v2946_v18 = vsel %vm2942_vm9, %v2940_v52, %v2944_v57  ;;  %v2956_v46 = vadd.f32 %v2955_v3, %v2745_v13 }
 0x7ad   :  { %v2948_v29 = vadd.f32 %v2946_v18, %v10522_v22  ;;  %vm2959_vm1 = vcmp.gt.f32.partialorder %v2957_v58, 0.0  ;;  %v2961_v20 = vmul.f32 0.01, %v2957_v58 }
 0x7ae   :  { %v2951_v26 = vmax.f32 %v2935_v35, %v2949_v14  ;;  %vm2958_vm8 = vcmp.gt.f32.partialorder %v2956_v46, 0.0  ;;  %v2960_v48 = vmul.f32 0.01, %v2956_v46  ;;  %v6781_v59 = vpop.f32.mrb[30].mxu0 }
 0x7af   :  { %v2950_v25 = vmax.f32 %v2934_v62, %v2948_v29  ;;  %v2963_v56 = vsel %vm2959_vm1, %v2957_v58, %v2961_v20  ;;  %v2973_v21 = vadd.f32 %v6781_v59, %v2971_v45  ;;  %v2755_v36 = vpop.f32.mrb[31].mxu0  ;;  %v3003_v58 = vrot.slane %v9132_v10, %v10505_v28 }
 0x7b0   :  { %v2965_v0 = vadd.f32 %v2963_v56, %v10523_v9  ;;  %v2962_v8 = vsel %vm2958_vm8, %v2956_v46, %v2960_v48  ;;  %v2972_v15 = vadd.f32 %v2971_v45, %v2755_v36  ;;  %v10528_v56 = vld [vmem:[#allocation32_spill] sm:$0xff] }
 0x7b1   :  { %v2964_v17 = vadd.f32 %v2962_v8, %v10524_v40  ;;  %vm2975_vm10 = vcmp.gt.f32.partialorder %v2973_v21, 0.0  ;;  %v2977_v54 = vmul.f32 0.01, %v2973_v21 }
 0x7b2   :  { %v2967_v34 = vmax.f32 %v2951_v26, %v2965_v0  ;;  %vm2974_vm9 = vcmp.gt.f32.partialorder %v2972_v15, 0.0  ;;  %v2976_v31 = vmul.f32 0.01, %v2972_v15  ;;  %v6784_v33 = vpop.f32.mrb[32].mxu0  ;;  %v10527_v26 = vld [vmem:[#allocation34_spill] sm:$0xff]  ;;  %v3019_v0 = vrot.slane %v9132_v10, %v10508_v53 }
 0x7b3   :  { %v2966_v41 = vmax.f32 %v2950_v25, %v2964_v17  ;;  %v2979_v16 = vsel %vm2975_vm10, %v2973_v21, %v2977_v54  ;;  %v2989_v52 = vadd.f32 %v6784_v33, %v2987_v11  ;;  %v2765_v37 = vpop.f32.mrb[33].mxu0  ;;  %v10529_v33 = vld [vmem:[#allocation36_spill] sm:$0xff] }
 0x7b4   :  { %v2981_v3 = vadd.f32 %v2979_v16, %v10525_v27  ;;  %v2978_v35 = vsel %vm2974_vm9, %v2972_v15, %v2976_v31  ;;  %v2988_v57 = vadd.f32 %v2987_v11, %v2765_v37  ;;  %v10530_v37 = vld [vmem:[#allocation43_spill] sm:$0xff] }
 0x7b5   :  { %v2980_v62 = vadd.f32 %v2978_v35, %v10526_v39  ;;  %vm2991_vm1 = vcmp.gt.f32.partialorder %v2989_v52, 0.0  ;;  %v2993_v61 = vmul.f32 0.01, %v2989_v52 }
 0x7b6   :  { %v2983_v13 = vmax.f32 %v2967_v34, %v2981_v3  ;;  %vm2990_vm8 = vcmp.gt.f32.partialorder %v2988_v57, 0.0  ;;  %v2992_v14 = vmul.f32 0.01, %v2988_v57  ;;  %v6787_v18 = vpop.f32.mrb[34].mxu0 }
 0x7b7   :  { %v2982_v46 = vmax.f32 %v2966_v41, %v2980_v62  ;;  %v2995_v29 = vsel %vm2991_vm1, %v2989_v52, %v2993_v61  ;;  %v3005_v20 = vadd.f32 %v6787_v18, %v3003_v58  ;;  %v2775_v45 = vpop.f32.mrb[35].mxu0 }
 0x7b8   :  { %v2997_v48 = vadd.f32 %v2995_v29, %v10527_v26  ;;  %v2994_v59 = vsel %vm2990_vm8, %v2988_v57, %v2992_v14  ;;  %v3004_v25 = vadd.f32 %v3003_v58, %v2775_v45  ;;  %v3035_v57 = vrot.slane %v9132_v10, %v10512_v6  ;;  %v10531_v29 = vld [vmem:[#allocation45_spill] sm:$0xff] }
 0x7b9   :  { %v2996_v21 = vadd.f32 %v2994_v59, %v10528_v56  ;;  %vm3007_vm10 = vcmp.gt.f32.partialorder %v3005_v20, 0.0  ;;  %v3009_v36 = vmul.f32 0.01, %v3005_v20  ;;  %v10532_v59 = vld [vmem:[#allocation38_spill] sm:$0xff] }
 0x7ba   :  { %v2999_v8 = vmax.f32 %v2983_v13, %v2997_v48  ;;  %vm3006_vm9 = vcmp.gt.f32.partialorder %v3004_v25, 0.0  ;;  %v3008_v15 = vmul.f32 0.01, %v3004_v25  ;;  %v6790_v17 = vpop.f32.mrb[36].mxu0 }
 0x7bb   :  { %v2998_v54 = vmax.f32 %v2982_v46, %v2996_v21  ;;  %v3011_v11 = vsel %vm3007_vm10, %v3005_v20, %v3009_v36  ;;  %v3021_v34 = vadd.f32 %v6790_v17, %v3019_v0  ;;  %v2785_v31 = vpop.f32.mrb[37].mxu0  ;;  %v3051_v36 = vrot.slane %v9132_v10, %v10515_v12 }
 0x7bc   :  { %v3013_v41 = vadd.f32 %v3011_v11, %v10529_v33  ;;  %v3010_v16 = vsel %vm3006_vm9, %v3004_v25, %v3008_v15  ;;  %v3020_v52 = vadd.f32 %v3019_v0, %v2785_v31  ;;  %v10533_v31 = vld [vmem:[#allocation42_spill] sm:$0xff] }
 0x7bd   :  { %v3012_v3 = vadd.f32 %v3010_v16, %v10530_v37  ;;  %vm3023_vm1 = vcmp.gt.f32.partialorder %v3021_v34, 0.0  ;;  %v3025_v35 = vmul.f32 0.01, %v3021_v34 }
 0x7be   :  { %v3015_v62 = vmax.f32 %v2999_v8, %v3013_v41  ;;  %vm3022_vm8 = vcmp.gt.f32.partialorder %v3020_v52, 0.0  ;;  %v3024_v61 = vmul.f32 0.01, %v3020_v52  ;;  %v6793_v58 = vpop.f32.mrb[38].mxu0 }
 0x7bf   :  { %v3014_v13 = vmax.f32 %v2998_v54, %v3012_v3  ;;  %v3027_v14 = vsel %vm3023_vm1, %v3021_v34, %v3025_v35  ;;  %v3037_v18 = vadd.f32 %v6793_v58, %v3035_v57  ;;  %v2795_v46 = vpop.f32.mrb[39].mxu0  ;;  %v10534_v3 = vld [vmem:[#allocation40_spill] sm:$0xff] }
 0x7c0   :  { %v3029_v20 = vadd.f32 %v3027_v14, %v10531_v29  ;;  %v3026_v45 = vsel %vm3022_vm8, %v3020_v52, %v3024_v61  ;;  %v3036_v48 = vadd.f32 %v3035_v57, %v2795_v46  ;;  %v3067_v61 = vrot.slane %v9132_v10, %v10518_v47 }
 0x7c1   :  { %v3028_v25 = vadd.f32 %v3026_v45, %v10532_v59  ;;  %vm3039_vm10 = vcmp.gt.f32.partialorder %v3037_v18, 0.0  ;;  %v3041_v21 = vmul.f32 0.01, %v3037_v18  ;;  %v10535_v45 = vld [vmem:[#allocation44_spill] sm:$0xff] }
 0x7c2   :  { %v3031_v0 = vmax.f32 %v3015_v62, %v3029_v20  ;;  %vm3038_vm9 = vcmp.gt.f32.partialorder %v3036_v48, 0.0  ;;  %v3040_v8 = vmul.f32 0.01, %v3036_v48  ;;  %v6796_v15 = vpop.f32.mrb[40].mxu0 }
 0x7c3   :  { %v3030_v17 = vmax.f32 %v3014_v13, %v3028_v25  ;;  %v3043_v54 = vsel %vm3039_vm10, %v3037_v18, %v3041_v21  ;;  %v3053_v11 = vadd.f32 %v6796_v15, %v3051_v36  ;;  %v2805_v34 = vpop.f32.mrb[41].mxu0 }
 0x7c4   :  { %v3045_v41 = vadd.f32 %v3043_v54, %v10533_v31  ;;  %v3042_v16 = vsel %vm3038_vm9, %v3036_v48, %v3040_v8  ;;  %v3052_v52 = vadd.f32 %v3051_v36, %v2805_v34  ;;  %v10536_v36 = vld [vmem:[#allocation47_spill] sm:$0xff] }
 0x7c5   :  { %v3044_v35 = vadd.f32 %v3042_v16, %v10534_v3  ;;  %vm3055_vm1 = vcmp.gt.f32.partialorder %v3053_v11, 0.0  ;;  %v3057_v57 = vmul.f32 0.01, %v3053_v11 }
 0x7c6   :  { %v3047_v58 = vmax.f32 %v3031_v0, %v3045_v41  ;;  %vm3054_vm8 = vcmp.gt.f32.partialorder %v3052_v52, 0.0  ;;  %v3056_v62 = vmul.f32 0.01, %v3052_v52  ;;  %v6799_v14 = vpop.f32.mrb[42].mxu0  ;;  %v10537_v41 = vld [vmem:[#allocation49_spill] sm:$0xff] }
 0x7c7   :  { %v3046_v46 = vmax.f32 %v3030_v17, %v3044_v35  ;;  %v3059_v13 = vsel %vm3055_vm1, %v3053_v11, %v3057_v57  ;;  %v3069_v18 = vadd.f32 %v6799_v14, %v3067_v61  ;;  %v2815_v20 = vpop.f32.mrb[43].mxu0  ;;  %v10538_v17 = vld [vmem:[#allocation46_spill] sm:$0xff]  ;;  %v10539_v14 = vld [vmem:[#allocation48_spill] sm:$0xff] }
 0x7c8   :  { %v3061_v25 = vadd.f32 %v3059_v13, %v10535_v45  ;;  %v3058_v21 = vsel %vm3054_vm8, %v3052_v52, %v3056_v62  ;;  %v3068_v48 = vadd.f32 %v3067_v61, %v2815_v20  ;;  %vm10540_vm1 = vcmp.eq.s32.totalorder %v10539_v14, 1  ;;  %v6064_v61 = vld [vmem:[%s10216_s9 + $0x60] sm:$0xff]  ;;  %v6066_v62 = vld [vmem:[%s10216_s9 + $0x70] sm:$0xff]  ;;  %v6069_v20 = vld [vmem:[%s10216_s9 + $0x88] sm:$0xff] }
 0x7c9   :  { %v3060_v8 = vadd.f32 %v3058_v21, %v10536_v36  ;;  %vm3071_vm10 = vcmp.gt.f32.partialorder %v3069_v18, 0.0  ;;  %v3073_v15 = vmul.f32 0.01, %v3069_v18  ;;  %v6070_v21 = vld [vmem:[%s10216_s9 + $0x90] sm:$0xff] }
 0x7ca   :  { %vm3070_vm9 = vcmp.gt.f32.partialorder %v3068_v48, 0.0  ;;  %v3072_v54 = vmul.f32 0.01, %v3068_v48  ;;  %v3063_v34 = vmax.f32 %v3047_v58, %v3061_v25  ;;  %v6065_v58 = vld [vmem:[%s10216_s9 + $0x68] sm:$0xff] }
 0x7cb   :  { %v3075_v10 = vsel %vm3071_vm10, %v3069_v18, %v3073_v15  ;;  %v3062_v0 = vmax.f32 %v3046_v46, %v3060_v8  ;;  %v6067_v46 = vld [vmem:[%s10216_s9 + $0x78] sm:$0xff]  ;;  %v6068_v18 = vld [vmem:[%s10216_s9 + $0x80] sm:$0xff]  ;;  %vm10544_vm10 = vcmask 261120  }
 0x7cc   :  { %v3077_v16 = vadd.f32 %v3075_v10, %v10537_v41  ;;  %v3074_v3 = vsel %vm3070_vm9, %v3068_v48, %v3072_v54  ;;  %v7169_v13 = vpack.c.bf16 %v6067_v46, %v6066_v62  ;;  %v7173_v25 = vpack.c.bf16 %v6069_v20, %v6068_v18  ;;  %v6071_v48 = vld [vmem:[%s10216_s9 + $0x98] sm:$0xff]  ;;  %v6072_v15 = vld [vmem:[%s10216_s9 + $0xa0] sm:$0xff]  ;;  %v6073_v54 = vld [vmem:[%s10216_s9 + $0xa8] sm:$0xff] }
 0x7cd   :  { %v3076_v11 = vadd.f32 %v3074_v3, %v10538_v17  ;;  %v7165_v3 = vpack.c.bf16 %v6065_v58, %v6064_v61  ;;  %v7177_v8 = vpack.c.bf16 %v6071_v48, %v6070_v21  ;;  %v6074_v10 = vld [vmem:[%s10216_s9 + $0xb0] sm:$0xff]  ;;  %vm10545_vm9 = vcmask 523264   ;;  %vm10547_vm11 = vmmov %vm10544_vm10  ;;  %v6081_v21 = vld [vmem:[%s10218_s11 + $0x28] sm:$0xff] }
 0x7ce   :  { %v3079_v35 = vmax.f32 %v3063_v34, %v3077_v16  ;;  %v7181_v34 = vpack.c.bf16 %v6073_v54, %v6072_v15  ;;  %vm10548_vm15 = vmmov %vm10545_vm9  ;;  %v6088_v48 = vld [vmem:[%s10220_s13 + $0x20] sm:$0xff]  ;;  %v6089_v15 = vld [vmem:[%s10220_s13 + $0x28] sm:$0xff] }
 0x7cf   :  { %v3078_v57 = vmax.f32 %v3062_v0, %v3076_v11  ;;  %7166 = vmatprep.subr.bf16.mxu0 %v7165_v3  ;;  %v6075_v0 = vld [vmem:[%s10216_s9 + $0xb8] sm:$0xff]  ;;  %v6082_v54 = vld [vmem:[%s10218_s11 + $0x30] sm:$0xff] }
 0x7d0   :  { %7168 = vmatpush3.bf16.msra.mxu0 %v7165_v3  ;;  %v7185_v16 = vpack.c.bf16 %v6075_v0, %v6074_v10  ;;  %v7197_v10 = vpack.c.bf16 %v6089_v15, %v6088_v48  ;;  %v6098_v48 = vld [vmem:[%s10222_s15 + $0x70] sm:$0xff] }
 0x7d1   :  { %v3080_v52 = vsel %vm10540_vm1, %v3078_v57, 0.0  ;;  %7170 = vmatprep.subr.bf16.mxu0 %v7169_v13  ;;  %vm10546_vm1 = vcmask 785408  }
 0x7d2   :  { %3177 = vrot.lane.b32.xlu0 %v3080_v52, %s10377_s18  ;;  %v10541_v52 = vld [vmem:[#allocation50_spill] sm:$0xff]  ;;  %vm10549_vm14 = vmmov %vm10546_vm1  ;;  %s10589_s18 = smov 4  }
 0x7d3   :  { %vm10542_vm8 = vcmp.eq.s32.totalorder %v10541_v52, 1 }
 0x7d4   :  { %7172 = vmatpush3.bf16.msra.mxu0 %v7169_v13  ;;  %v3081_v61 = vsel %vm10542_vm8, %v3079_v35, 0.0  ;;  %v6080_v35 = vld [vmem:[%s10218_s11 + $0x20] sm:$0xff]  ;;  %vm10551_vm8 = vmmov %vm10544_vm10 }
 0x7d5   :  { %7174 = vmatprep.subr.bf16.mxu0 %v7173_v25 }
 0x7d8   :  { %7176 = vmatpush3.bf16.msra.mxu0 %v7173_v25 }
 0x7d9   :  { %7178 = vmatprep.subr.bf16.mxu0 %v7177_v8 }
 0x7dc   :  { %7180 = vmatpush3.bf16.msra.mxu0 %v7177_v8  ;;  %v7189_v8 = vpack.c.bf16 %v6081_v21, %v6080_v35 }
 0x7dd   :  { %7182 = vmatprep.subr.bf16.mxu0 %v7181_v34 }
 0x7de   :  { %7190 = vmatprep.subr.bf16.mxu1 %v7189_v8 }
 0x7df   :  { %7192 = vmatpush3.bf16.msra.mxu1 %v7189_v8  ;;  %v6099_v8 = vld [vmem:[%s10222_s15 + $0x78] sm:$0xff] }
 0x7e0   :  { %7184 = vmatpush3.bf16.msra.mxu0 %v7181_v34  ;;  %v6083_v34 = vld [vmem:[%s10218_s11 + $0x38] sm:$0xff]  ;;  %s10585_s11 = smov 126  }
 0x7e1   :  { %7186 = vmatprep.subr.bf16.mxu0 %v7185_v16  ;;  %v7193_v0 = vpack.c.bf16 %v6083_v34, %v6082_v54 }
 0x7e3   :  { %7194 = vmatprep.subr.bf16.mxu1 %v7193_v0 }
 0x7e4   :  { %7188 = vmatpush3.bf16.msra.mxu0 %v7185_v16  ;;  %v6090_v16 = vld [vmem:[%s10220_s13 + $0x30] sm:$0xff]  ;;  %7196 = vmatpush3.bf16.msra.mxu1 %v7193_v0  ;;  %v6100_v0 = vld [vmem:[%s10222_s15 + $0x80] sm:$0xff] }
 0x7e5   :  { %7198 = vmatprep.subr.bf16.mxu0 %v7197_v10 }
 0x844   :  { %v3178_v3 = vpop.permute.xlu0 %3177 }
 0x85c   :  { %v6804_v11 = vpop.f32.mrb[64].mxu1 }
 0x85d   :  { %3171 = vrot.lane.b32.xlu1 %v6804_v11, %s10382_s27  ;;  %v3158_v57 = vpop.f32.mrb[65].mxu1  ;;  %v6091_v11 = vld [vmem:[%s10220_s13 + $0x38] sm:$0xff]  ;;  %s10586_s13 = smov 1  }
 0x861   :  { %3169 = vrot.lane.b32.xlu1 %v3158_v57, %s10382_s27  ;;  %v7201_v57 = vpack.c.bf16 %v6091_v11, %v6090_v16  ;;  %v6101_v16 = vld [vmem:[%s10222_s15 + $0x88] sm:$0xff]  ;;  %v6103_v11 = vld [vmem:[%s10222_s15 + $0x98] sm:$0xff]  ;;  %s10597_s27 = smov 12  }
 0x865   :  { %3179 = vrot.lane.b32.xlu1 %v3081_v61, %s10543_s28  ;;  %v6096_v61 = vld [vmem:[%s10222_s15 + $0x60] sm:$0xff] }
 0x8cf   :  { %v3172_v58 = vpop.permute.xlu1 %3171 }
 0x8d0   :  { %v3184_v18 = vsel %vm10547_vm11, %v10496_v63, %v3172_v58  ;;  %v6097_v58 = vld [vmem:[%s10222_s15 + $0x68] sm:$0xff] }
 0x8d3   :  { %v3170_v62 = vpop.permute.xlu1 %3169 }
 0x8d4   :  { %v3183_v46 = vsel %vm10544_vm10, %v10494_v24, %v3170_v62  ;;  %v7205_v62 = vpack.c.bf16 %v6097_v58, %v6096_v61  ;;  %v6104_v61 = vld [vmem:[%s10222_s15 + $0xa0] sm:$0xff]  ;;  %v6105_v58 = vld [vmem:[%s10222_s15 + $0xa8] sm:$0xff] }
 0x8d5   :  { %v3185_v13 = vsel %vm10545_vm9, %v3183_v46, %v3178_v3  ;;  %v6077_v3 = vld [vmem:[%s10217_s10 + $0x1] ss:$0 sm:$0xff]  ;;  %vm10553_vm9 = vmmov %vm10551_vm8 }
 0x8d6   :  { %6829 = vmatprep.mubr.msk.f32.mxu0 %vm10546_vm1, %v3185_v13  ;;  %7206 = vmatprep.subr.bf16.mxu1 %v7205_v62 }
 0x8d7   :  { %v3180_v20 = vpop.permute.xlu1 %3179 }
 0x8d8   :  { %v3186_v25 = vsel %vm10548_vm15, %v3184_v18, %v3180_v20  ;;  %vm10550_vm15 = vmmov %vm10544_vm10 }
 0x8d9   :  { %6830 = vmatmul.mubr.msk.f32.vlgmr.msra.gmra.mrb[44].mxu0 %vm10549_vm14, %v3186_v25  ;;  %vm10552_vm10 = vmmov %vm10551_vm8 }
 0x8da   :  { %7200 = vmatpush3.bf16.msra.mxu0 %v7197_v10  ;;  %v7209_v10 = vpack.c.bf16 %v6099_v8, %v6098_v48 }
 0x8db   :  { %7202 = vmatprep.subr.bf16.mxu0 %v7201_v57 }
 0x8de   :  { %7204 = vmatpush3.bf16.msra.mxu0 %v7201_v57 }
 0x9ac   :  { %v6831_v46 = vpop.f32.mrb[44].mxu0 }
 0x9ad   :  { %v3286_v13 = vadd.f32 %v6831_v46, %v6077_v3  ;;  %v3280_v18 = vpop.f32.mrb[45].mxu0  ;;  %v6107_v46 = vld [vmem:[%s10222_s15 + $0xb8] sm:$0xff] }
 0x9ae   :  { %v3281_v20 = vadd.f32 %v6077_v3, %v3280_v18  ;;  %v6106_v3 = vld [vmem:[%s10222_s15 + $0xb0] sm:$0xff]  ;;  %v6085_v18 = vld [vmem:[%s10219_s12 + $0x1] ss:$0 sm:$0xff]  ;;  %s10598_s12 = smov 13  }
 0x9af   :  { %vm3290_vm11 = vcmp.gt.f32.partialorder %v3286_v13, 0.0  ;;  %v3292_v25 = vmul.f32 0.01, %v3286_v13 }
 0x9b0   :  { %vm3289_vm14 = vcmp.gt.f32.partialorder %v3281_v20, 0.0  ;;  %v3291_v35 = vmul.f32 0.01, %v3281_v20 }
 0x9b1   :  { %v3294_v21 = vsel %vm3290_vm11, %v3286_v13, %v3292_v25  ;;  %v7225_v13 = vpack.c.bf16 %v6107_v46, %v6106_v3 }
 0x9b2   :  { %v3293_v15 = vsel %vm3289_vm14, %v3281_v20, %v3291_v35  ;;  %v9269_v34 = vadd.f32 %v3294_v21, %v10496_v63  ;;  %v6102_v63 = vld [vmem:[%s10222_s15 + $0x90] sm:$0xff]  ;;  %v6093_v35 = vld [vmem:[%s10221_s14 + $0x1] ss:$0 sm:$0xff]  ;;  %s10584_s15 = smov 127   ;;  %s10599_s14 = smov 14  }
 0x9b3   :  { %v9266_v54 = vadd.f32 %v3293_v15, %v10494_v24  ;;  %v7213_v24 = vpack.c.bf16 %v6101_v16, %v6100_v0  ;;  %v7217_v57 = vpack.c.bf16 %v6103_v11, %v6102_v63 }
 0x9b5   :  { %6840 = vmatprep.mubr.msk.f32.mxu1 %vm10550_vm15, %v9266_v54  ;;  %6851 = vmatprep.mubr.msk.f32.mxu0 %vm10551_vm8, %v9266_v54  ;;  %vm10554_vm15 = vcmask 785408  }
 0x9b6   :  { %6841 = vmatmul.mubr.msk.f32.vlgmr.msra.gmra.mrb[66].mxu1 %vm10552_vm10, %v9269_v34  ;;  %6852 = vmatmul.mubr.msk.f32.vlgmr.msra.gmra.mrb[46].mxu0 %vm10553_vm9, %v9269_v34  ;;  %vm10555_vm8 = vmmov %vm10554_vm15 }
 0x9b7   :  { %7208 = vmatpush3.bf16.msra.mxu1 %v7205_v62  ;;  %v7221_v62 = vpack.c.bf16 %v6105_v58, %v6104_v61  ;;  %vm10556_vm9 = vmmov %vm10555_vm8 }
 0x9b8   :  { %7210 = vmatprep.subr.bf16.mxu1 %v7209_v10 }
 0x9bb   :  { %7212 = vmatpush3.bf16.msra.mxu1 %v7209_v10 }
 0x9bc   :  { %7214 = vmatprep.subr.bf16.mxu1 %v7213_v24 }
 0x9bf   :  { %7216 = vmatpush3.bf16.msra.mxu1 %v7213_v24 }
 0x9c0   :  { %7218 = vmatprep.subr.bf16.mxu1 %v7217_v57 }
 0x9c3   :  { %7220 = vmatpush3.bf16.msra.mxu1 %v7217_v57 }
 0x9c4   :  { %7222 = vmatprep.subr.bf16.mxu1 %v7221_v62 }
 0x9c7   :  { %7224 = vmatpush3.bf16.msra.mxu1 %v7221_v62 }
 0x9c8   :  { %7226 = vmatprep.subr.bf16.mxu1 %v7225_v13 }
 0x9cb   :  { %7228 = vmatpush3.bf16.msra.mxu1 %v7225_v13 }
 0xa89   :  { %v6842_v20 = vpop.f32.mrb[66].mxu1  ;;  %v6853_v25 = vpop.f32.mrb[46].mxu0 }
 0xa8a   :  { %v3382_v21 = vpop.f32.mrb[67].mxu1  ;;  %v3470_v48 = vpop.f32.mrb[47].mxu0  ;;  %v9311_v15 = vadd.f32 %v6853_v25, %v6093_v35  ;;  %v9337_v14 = vadd.f32 %v6842_v20, %v6085_v18 }
 0xa8b   :  { %v9309_v8 = vadd.f32 %v6085_v18, %v3382_v21  ;;  %v9313_v10 = vadd.f32 %v6093_v35, %v3470_v48 }
 0xa8c   :  { %v3590_v36 = vrot.slane %v9337_v14, %v10500_v2 }
 0xa8d   :  { %v3482_v0 = vrot.slane %v9309_v8, %v10499_v5  ;;  %v3494_v16 = vrot.slane %v9309_v8, %v10500_v2  ;;  %v3506_v24 = vrot.slane %v9309_v8, %v10502_v23  ;;  %v3518_v63 = vrot.slane %v9309_v8, %v10505_v28 }
 0xa8e   :  { %v3530_v48 = vrot.slane %v9309_v8, %v10508_v53  ;;  %v9376_v59 = vadd.f32 %v3590_v36, %v9311_v15 }
 0xa8f   :  { %v3483_v11 = vadd.f32 %v3482_v0, %v9313_v10  ;;  %v3484_v57 = vadd.f32 %v3482_v0, %v9311_v15  ;;  %v3495_v61 = vadd.f32 %v3494_v16, %v9313_v10  ;;  %v3496_v58 = vadd.f32 %v3494_v16, %v9311_v15 }
 0xa90   :  { %v3507_v62 = vadd.f32 %v3506_v24, %v9313_v10  ;;  %v3508_v3 = vadd.f32 %v3506_v24, %v9311_v15  ;;  %v3519_v46 = vadd.f32 %v3518_v63, %v9313_v10  ;;  %v3520_v13 = vadd.f32 %v3518_v63, %v9311_v15 }
 0xa91   :  { %vm3485_vm1 = vcmp.gt.f32.partialorder %v3483_v11, 0.0  ;;  %v3487_v25 = vmul.f32 0.2, %v3483_v11  ;;  %vm3486_vm11 = vcmp.gt.f32.partialorder %v3484_v57, 0.0  ;;  %v3488_v35 = vmul.f32 0.2, %v3484_v57 }
 0xa92   :  { %vm3497_vm14 = vcmp.gt.f32.partialorder %v3495_v61, 0.0  ;;  %v3499_v21 = vmul.f32 0.2, %v3495_v61  ;;  %v3542_v16 = vrot.slane %v9309_v8, %v10512_v6  ;;  %v3554_v24 = vrot.slane %v9309_v8, %v10515_v12 }
 0xa93   :  { %v3489_v0 = vsel %vm3485_vm1, %v3483_v11, %v3487_v25  ;;  %v3490_v52 = vsel %vm3486_vm11, %v3484_v57, %v3488_v35  ;;  %v3500_v63 = vmul.f32 0.2, %v3496_v58  ;;  %vm3498_vm10 = vcmp.gt.f32.partialorder %v3496_v58, 0.0  ;;  %vm10557_vm11 = vmmov %vm10555_vm8 }
 0xa94   :  { %6878 = vmatprep.mubr.msk.f32.mxu1 %vm10554_vm15, %v3489_v0  ;;  %v3501_v17 = vsel %vm3497_vm14, %v3495_v61, %v3499_v21  ;;  %v3511_v41 = vmul.f32 0.2, %v3507_v62  ;;  %vm3509_vm1 = vcmp.gt.f32.partialorder %v3507_v62, 0.0  ;;  %v3531_v11 = vadd.f32 %v3530_v48, %v9313_v10  ;;  %vm10558_vm15 = vmmov %vm10555_vm8 }
 0xa95   :  { %6879 = vmatmul.mubr.msk.f32.vlgmr.msra.gmra.mrb[68].mxu1 %vm10555_vm8, %v3490_v52  ;;  %v3532_v57 = vadd.f32 %v3530_v48, %v9311_v15  ;;  %v3543_v25 = vadd.f32 %v3542_v16, %v9313_v10  ;;  %v3544_v18 = vadd.f32 %v3542_v16, %v9311_v15  ;;  %v3555_v20 = vadd.f32 %v3554_v24, %v9313_v10 }
 0xa96   :  { %6881 = vmatprep.mubr.msk.f32.mxu1 %vm10556_vm9, %v3501_v17  ;;  %v3566_v35 = vrot.slane %v9309_v8, %v10518_v47  ;;  %v3502_v52 = vsel %vm3498_vm10, %v3496_v58, %v3500_v63  ;;  %v3512_v61 = vmul.f32 0.2, %v3508_v3  ;;  %v3578_v21 = vrot.slane %v9337_v14, %v10499_v5  ;;  %vm10559_vm10 = vmmov %vm10556_vm9 }
 0xa97   :  { %v3513_v17 = vsel %vm3509_vm1, %v3507_v62, %v3511_v41  ;;  %vm3510_vm14 = vcmp.gt.f32.partialorder %v3508_v3, 0.0  ;;  %v3523_v0 = vmul.f32 0.2, %v3519_v46  ;;  %vm3521_vm8 = vcmp.gt.f32.partialorder %v3519_v46, 0.0  ;;  %vm10560_vm1 = vmmov %vm10559_vm10 }
 0xa98   :  { %v3556_v48 = vadd.f32 %v3554_v24, %v9311_v15  ;;  %v3567_v16 = vadd.f32 %v3566_v35, %v9313_v10  ;;  %v3602_v58 = vrot.slane %v9337_v14, %v10502_v23  ;;  %v3514_v63 = vsel %vm3510_vm14, %v3508_v3, %v3512_v61  ;;  %vm10561_vm14 = vmmov %vm10560_vm1 }
 0xa99   :  { %6882 = vmatmul.mubr.msk.f32.gmra.mrb[70].mxu1 %vm10557_vm11, %v3502_v52  ;;  %v3524_v45 = vmul.f32 0.2, %v3520_v13  ;;  %v9360_v52 = vadd.f32 %v3566_v35, %v9311_v15  ;;  %v9363_v41 = vadd.f32 %v3578_v21, %v9313_v10  ;;  %v3525_v62 = vsel %vm3521_vm8, %v3519_v46, %v3523_v0  ;;  %vm10562_vm8 = vmmov %vm10560_vm1 }
 0xa9a   :  { %6884 = vmatprep.mubr.msk.f32.mxu1 %vm10558_vm15, %v3513_v17  ;;  %vm3522_vm9 = vcmp.gt.f32.partialorder %v3520_v13, 0.0  ;;  %v3535_v24 = vmul.f32 0.2, %v3531_v11  ;;  %vm3533_vm11 = vcmp.gt.f32.partialorder %v3531_v11, 0.0  ;;  %v9368_v17 = vadd.f32 %v3578_v21, %v9311_v15 }
 0xa9b   :  { %v9371_v3 = vadd.f32 %v3590_v36, %v9313_v10  ;;  %v3614_v35 = vrot.slane %v9337_v14, %v10505_v28  ;;  %v3526_v61 = vsel %vm3522_vm9, %v3520_v13, %v3524_v45  ;;  %v3536_v31 = vmul.f32 0.2, %v3532_v57  ;;  %vm10563_vm9 = vmmov %vm10560_vm1 }
 0xa9c   :  { %v9379_v46 = vadd.f32 %v3602_v58, %v9313_v10  ;;  %v3537_v0 = vsel %vm3533_vm11, %v3531_v11, %v3535_v24  ;;  %vm3534_vm15 = vcmp.gt.f32.partialorder %v3532_v57, 0.0  ;;  %v3547_v21 = vmul.f32 0.2, %v3543_v25 }
 0xa9d   :  { %6885 = vmatmul.mubr.msk.f32.gmra.mrb[72].mxu1 %vm10559_vm10, %v3514_v63  ;;  %vm3545_vm10 = vcmp.gt.f32.partialorder %v3543_v25, 0.0  ;;  %v3548_v63 = vmul.f32 0.2, %v3544_v18  ;;  %v9387_v45 = vadd.f32 %v3614_v35, %v9313_v10  ;;  %v3538_v36 = vsel %vm3534_vm15, %v3532_v57, %v3536_v31 }
 0xa9e   :  { %6887 = vmatprep.mubr.msk.f32.mxu1 %vm10560_vm1, %v3525_v62  ;;  %v9384_v62 = vadd.f32 %v3602_v58, %v9311_v15  ;;  %v3559_v13 = vmul.f32 0.2, %v3555_v20  ;;  %v9390_v29 = vadd.f32 %v3614_v35, %v9311_v15  ;;  %v3626_v11 = vrot.slane %v9337_v14, %v10508_v53 }
 0xa9f   :  { %v3549_v24 = vsel %vm3545_vm10, %v3543_v25, %v3547_v21  ;;  %vm3546_vm1 = vcmp.gt.f32.partialorder %v3544_v18, 0.0  ;;  %vm3557_vm11 = vcmp.gt.f32.partialorder %v3555_v20, 0.0  ;;  %v3638_v31 = vrot.slane %v9337_v14, %v10512_v6  ;;  %vm10565_vm10 = vmmov %vm10562_vm8 }
 0xaa0   :  { %v9397_v58 = vadd.f32 %v3626_v11, %v9313_v10  ;;  %v3650_v57 = vrot.slane %v9337_v14, %v10515_v12  ;;  %v3550_v35 = vsel %vm3546_vm1, %v3544_v18, %v3548_v63  ;;  %vm3558_vm15 = vcmp.gt.f32.partialorder %v3556_v48, 0.0 }
 0xaa1   :  { %6888 = vmatmul.mubr.msk.f32.gmra.mrb[74].mxu1 %vm10561_vm14, %v3526_v61  ;;  %vm10564_vm14 = vmmov %vm10562_vm8  ;;  %v9400_v61 = vadd.f32 %v3626_v11, %v9311_v15  ;;  %v3560_v25 = vmul.f32 0.2, %v3556_v48  ;;  %v3571_v21 = vmul.f32 0.2, %v3567_v16  ;;  %v9424_v63 = vpack.i.bf16 %v9337_v14, %v9309_v8 }
 0xaa2   :  { %6890 = vmatprep.mubr.msk.f32.mxu1 %vm10562_vm8, %v3537_v0  ;;  %v3561_v0 = vsel %vm3557_vm11, %v3555_v20, %v3559_v13  ;;  %v9414_v11 = vadd.f32 %v3650_v57, %v9313_v10  ;;  %v9418_v18 = vadd.f32 %v3650_v57, %v9311_v15  ;;  %v3662_v20 = vrot.slane %v9337_v14, %v10518_v47  ;;  %vm10566_vm11 = vmmov %vm10562_vm8 }
 0xaa3   :  { %v3562_v13 = vsel %vm3558_vm15, %v3556_v48, %v3560_v25  ;;  %vm3570_vm1 = vcmp.gt.f32.partialorder %v9360_v52, 0.0  ;;  %v9440_v48 = vpack.c.bf16 %v9337_v14, %v9309_v8  ;;  %vm10568_vm15 = vmmov %vm10565_vm10  ;;  %v3596_v14 = vmul.f32 0.2, %v9376_v59 }
 0xaa4   :  { %v9431_v57 = vadd.f32 %v3662_v20, %v9313_v10  ;;  %v9434_v37 = vadd.f32 %v3662_v20, %v9311_v15  ;;  %v3608_v20 = vmul.f32 0.2, %v9384_v62 }
 0xaa5   :  { %6891 = vmatmul.mubr.msk.f32.gmra.mrb[76].mxu1 %vm10563_vm9, %v3538_v36  ;;  %v9408_v36 = vadd.f32 %v3638_v31, %v9313_v10  ;;  %vm3569_vm9 = vcmp.gt.f32.partialorder %v3567_v16, 0.0 }
 0xaa6   :  { %6893 = vmatprep.mubr.msk.f32.mxu1 %vm10564_vm14, %v3549_v24  ;;  %v9411_v24 = vadd.f32 %v3638_v31, %v9311_v15  ;;  %v3572_v31 = vmul.f32 0.2, %v9360_v52  ;;  %vm10567_vm14 = vmmov %vm10562_vm8  ;;  %v3595_v15 = vmul.f32 0.2, %v9371_v3 }
 0xaa8   :  { %v3574_v25 = vsel %vm3570_vm1, %v9360_v52, %v3572_v31  ;;  %vm3594_vm1 = vcmp.gt.f32.partialorder %v9376_v59, 0.0  ;;  %v3607_v52 = vmul.f32 0.2, %v9379_v46  ;;  %v3620_v31 = vmul.f32 0.2, %v9390_v29 }
 0xaa9   :  { %6894 = vmatmul.mubr.msk.f32.gmra.mrb[78].mxu1 %vm10562_vm8, %v3550_v35  ;;  %v3573_v35 = vsel %vm3569_vm9, %v3567_v16, %v3571_v21  ;;  %vm3581_vm8 = vcmp.gt.f32.partialorder %v9363_v41, 0.0  ;;  %v3584_v16 = vmul.f32 0.2, %v9368_v17  ;;  %vm10569_vm9 = vmmov %vm10566_vm11 }
 0xaaa   :  { %6896 = vmatprep.mubr.msk.f32.mxu1 %vm10565_vm10, %v3561_v0  ;;  %v3583_v0 = vmul.f32 0.2, %v9363_v41  ;;  %vm3582_vm10 = vcmp.gt.f32.partialorder %v9368_v17, 0.0 }
 0xaab   :  { %v3586_v21 = vsel %vm3582_vm10, %v9368_v17, %v3584_v16  ;;  %vm3606_vm10 = vcmp.gt.f32.partialorder %v9384_v62, 0.0  ;;  %v3644_v16 = vmul.f32 0.2, %v9411_v24 }
 0xaac   :  { %v3585_v10 = vsel %vm3581_vm8, %v9363_v41, %v3583_v0  ;;  %vm10571_vm8 = vmmov %vm10569_vm9  ;;  %v3598_v41 = vsel %vm3594_vm1, %v9376_v59, %v3596_v14  ;;  %vm3618_vm1 = vcmp.gt.f32.partialorder %v9390_v29, 0.0  ;;  %v3632_v0 = vmul.f32 0.2, %v9400_v61 }
 0xaad   :  { %6897 = vmatmul.mubr.msk.f32.gmra.mrb[80].mxu1 %vm10566_vm11, %v3562_v13  ;;  %vm3593_vm11 = vcmp.gt.f32.partialorder %v9371_v3, 0.0  ;;  %v3610_v13 = vsel %vm3606_vm10, %v9384_v62, %v3608_v20  ;;  %vm3630_vm10 = vcmp.gt.f32.partialorder %v9400_v61, 0.0  ;;  %v3668_v14 = vmul.f32 0.2, %v9434_v37 }
 0xaae   :  { %6899 = vmatprep.mubr.msk.f32.mxu1 %vm10567_vm14, %v3573_v35  ;;  %vm10570_vm14 = vmmov %vm10569_vm9  ;;  %v3597_v8 = vsel %vm3593_vm11, %v9371_v3, %v3595_v15  ;;  %v3619_v3 = vmul.f32 0.2, %v9387_v45  ;;  %v3622_v35 = vsel %vm3618_vm1, %v9390_v29, %v3620_v31  ;;  %vm3642_vm1 = vcmp.gt.f32.partialorder %v9411_v24, 0.0 }
 0xaaf   :  { %vm10573_vm11 = vmmov %vm10571_vm8  ;;  %v3656_v15 = vmul.f32 0.2, %v9418_v18 }
 0xab1   :  { %6900 = vmatmul.mubr.msk.f32.gmra.mrb[82].mxu1 %vm10568_vm15, %v3574_v25  ;;  %vm3605_vm15 = vcmp.gt.f32.partialorder %v9379_v46, 0.0  ;;  %v3634_v25 = vsel %vm3630_vm10, %v9400_v61, %v3632_v0  ;;  %vm3654_vm10 = vcmp.gt.f32.partialorder %v9418_v18, 0.0 }
 0xab2   :  { %6902 = vmatprep.mubr.msk.f32.mxu1 %vm10569_vm9, %v3585_v10  ;;  %vm10572_vm9 = vmmov %vm10571_vm8  ;;  %v3609_v17 = vsel %vm3605_vm15, %v9379_v46, %v3607_v52  ;;  %v3631_v46 = vmul.f32 0.2, %v9397_v58  ;;  %v3646_v10 = vsel %vm3642_vm1, %v9411_v24, %v3644_v16  ;;  %vm3666_vm1 = vcmp.gt.f32.partialorder %v9434_v37, 0.0 }
 0xab3   :  { %vm10574_vm15 = vmmov %vm10571_vm8 }
 0xab5   :  { %6903 = vmatmul.mubr.msk.f32.gmra.mrb[84].mxu1 %vm10570_vm14, %v3586_v21  ;;  %vm3617_vm14 = vcmp.gt.f32.partialorder %v9387_v45, 0.0  ;;  %v3658_v21 = vsel %vm3654_vm10, %v9418_v18, %v3656_v15 }
 0xab6   :  { %6905 = vmatprep.mubr.msk.f32.mxu1 %vm10571_vm8, %v3597_v8  ;;  %v3621_v59 = vsel %vm3617_vm14, %v9387_v45, %v3619_v3  ;;  %v3643_v45 = vmul.f32 0.2, %v9408_v36  ;;  %vm10576_vm14 = vmmov %vm10571_vm8  ;;  %v7487_v8 = vld [vmem:[%s10498_s7] sm:$0xff] }
 0xab9   :  { %6906 = vmatmul.mubr.msk.f32.gmra.mrb[86].mxu1 %vm10572_vm9, %v3598_v41  ;;  %vm3629_vm9 = vcmp.gt.f32.partialorder %v9397_v58, 0.0 }
 0xaba   :  { %6908 = vmatprep.mubr.msk.f32.mxu1 %vm10573_vm11, %v3609_v17  ;;  %vm10575_vm11 = vmmov %vm10571_vm8  ;;  %v3633_v62 = vsel %vm3629_vm9, %v9397_v58, %v3631_v46  ;;  %v3655_v58 = vmul.f32 0.2, %v9414_v11 }
 0xabb   :  { %vm10578_vm9 = vmmov %vm10575_vm11 }
 0xabd   :  { %6909 = vmatmul.mubr.msk.f32.gmra.mrb[88].mxu1 %vm10571_vm8, %v3610_v13  ;;  %vm3641_vm8 = vcmp.gt.f32.partialorder %v9408_v36, 0.0 }
 0xabe   :  { %6911 = vmatprep.mubr.msk.f32.mxu1 %vm10574_vm15, %v3621_v59  ;;  %vm10577_vm15 = vmmov %vm10575_vm11  ;;  %v3645_v29 = vsel %vm3641_vm8, %v9408_v36, %v3643_v45  ;;  %v3667_v36 = vmul.f32 0.2, %v9431_v57 }
 0xabf   :  { %vm10580_vm8 = vmmov %vm10578_vm9 }
 0xac1   :  { %6912 = vmatmul.mubr.msk.f32.gmra.mrb[90].mxu1 %vm10575_vm11, %v3622_v35  ;;  %vm3653_vm11 = vcmp.gt.f32.partialorder %v9414_v11, 0.0 }
 0xac2   :  { %6914 = vmatprep.mubr.msk.f32.mxu1 %vm10576_vm14, %v3633_v62  ;;  %vm10579_vm14 = vmmov %vm10578_vm9  ;;  %v3657_v61 = vsel %vm3653_vm11, %v9414_v11, %v3655_v58  ;;  %v3670_v11 = vsel %vm3666_vm1, %v9434_v37, %v3668_v14 }
 0xac3   :  { %vm10583_vm11 = vmmov %vm10580_vm8 }
 0xac5   :  { %6915 = vmatmul.mubr.msk.f32.gmra.mrb[92].mxu1 %vm10577_vm15, %v3634_v25  ;;  %vm3665_vm15 = vcmp.gt.f32.partialorder %v9431_v57, 0.0 }
 0xac6   :  { %6917 = vmatprep.mubr.msk.f32.mxu1 %vm10578_vm9, %v3645_v29  ;;  %vm10581_vm9 = vmmov %vm10580_vm8  ;;  %v3669_v24 = vsel %vm3665_vm15, %v9431_v57, %v3667_v36 }
 0xac9   :  { %6918 = vmatmul.mubr.msk.f32.gmra.mrb[94].mxu1 %vm10579_vm14, %v3646_v10  ;;  %vm10582_vm14 = vmmov %vm10580_vm8 }
 0xaca   :  { %6920 = vmatprep.mubr.msk.f32.mxu1 %vm10580_vm8, %v3657_v61  ;;  %vm10607_vm8 = vcmask 121856  }
 0xacd   :  { %6921 = vmatmul.mubr.msk.f32.gmra.mrb[96].mxu1 %vm10581_vm9, %v3658_v21 }
 0xace   :  { %6923 = vmatprep.mubr.msk.f32.mxu1 %vm10582_vm14, %v3669_v24 }
 0xad1   :  { %6924 = vmatmul.mubr.msk.f32.gmra.mrb[98].mxu1 %vm10583_vm11, %v3670_v11  ;;  %vm10612_vm11 = vcmask 130048  }
 0xad2   :  { %7010 = vmatprep.mubr.msk.f32.mxu1 %vm1886_vm3, %v7487_v8 }
 0xb68   :  { %v9510_v18 = vpop.f32.mrb[68].mxu1 }
 0xb69   :  { %4183 = vrot.lane.b32.xlu1 %v9510_v18, %s10584_s15  ;;  %v9514_v57 = vpop.f32.mrb[69].mxu1 }
 0xb6a   :  { %4181 = vrot.lane.b32.xlu0 %v9514_v57, %s10584_s15 }
 0xb6c   :  { %v9518_v52 = vpop.f32.mrb[70].mxu1 }
 0xb6d   :  { %4495 = vrot.lane.b32.xlu1 %v9510_v18, %s10585_s11  ;;  %v9522_v37 = vpop.f32.mrb[71].mxu1 }
 0xb6e   :  { %4009 = vrot.lane.b32.xlu0 %v9518_v52, %s10586_s13 }
 0xb70   :  { %v9526_v41 = vpop.f32.mrb[72].mxu1 }
 0xb71   :  { %4493 = vrot.lane.b32.xlu1 %v9514_v57, %s10585_s11  ;;  %v9530_v20 = vpop.f32.mrb[73].mxu1  ;;  %s10600_s11 = smov 15  }
 0xb72   :  { %4501 = vrot.lane.b32.xlu0 %v9518_v52, %s10584_s15 }
 0xb74   :  { %v6889_v17 = vpop.f32.mrb[74].mxu1 }
 0xb75   :  { %4007 = vrot.lane.b32.xlu1 %v9522_v37, %s10586_s13  ;;  %v3876_v3 = vpop.f32.mrb[75].mxu1 }
 0xb76   :  { %4499 = vrot.lane.b32.xlu0 %v9522_v37, %s10584_s15 }
 0xb78   :  { %v6892_v13 = vpop.f32.mrb[76].mxu1 }
 0xb79   :  { %4189 = vrot.lane.b32.xlu1 %v9526_v41, %s10586_s13  ;;  %v3886_v31 = vpop.f32.mrb[77].mxu1 }
 0xb7a   :  { %4017 = vrot.lane.b32.xlu0 %v9526_v41, %s10587_s22 }
 0xb7c   :  { %v6895_v59 = vpop.f32.mrb[78].mxu1 }
 0xb7d   :  { %4015 = vrot.lane.b32.xlu1 %v9530_v20, %s10587_s22  ;;  %v3896_v46 = vpop.f32.mrb[79].mxu1 }
 0xb7e   :  { %4187 = vrot.lane.b32.xlu0 %v9530_v20, %s10586_s13 }
 0xb80   :  { %v6898_v35 = vpop.f32.mrb[80].mxu1 }
 0xb81   :  { %4195 = vrot.lane.b32.xlu1 %v6889_v17, %s10587_s22  ;;  %v3906_v0 = vpop.f32.mrb[81].mxu1 }
 0xb82   :  { %4025 = vrot.lane.b32.xlu0 %v6889_v17, %s10588_s26 }
 0xb84   :  { %v6901_v62 = vpop.f32.mrb[82].mxu1 }
 0xb85   :  { %4023 = vrot.lane.b32.xlu1 %v3876_v3, %s10588_s26  ;;  %v3916_v45 = vpop.f32.mrb[83].mxu1 }
 0xb86   :  { %4507 = vrot.lane.b32.xlu0 %v6889_v17, %s10586_s13 }
 0xb88   :  { %v6904_v25 = vpop.f32.mrb[84].mxu1 }
 0xb89   :  { %4505 = vrot.lane.b32.xlu1 %v3876_v3, %s10586_s13  ;;  %v3926_v16 = vpop.f32.mrb[85].mxu1 }
 0xb8a   :  { %4193 = vrot.lane.b32.xlu0 %v3876_v3, %s10587_s22 }
 0xb8c   :  { %v6907_v29 = vpop.f32.mrb[86].mxu1 }
 0xb8d   :  { %4201 = vrot.lane.b32.xlu1 %v6892_v13, %s10588_s26  ;;  %v3936_v58 = vpop.f32.mrb[87].mxu1 }
 0xb8e   :  { %4033 = vrot.lane.b32.xlu0 %v6892_v13, %s10589_s18 }
 0xb90   :  { %v6910_v10 = vpop.f32.mrb[88].mxu1 }
 0xb91   :  { %4031 = vrot.lane.b32.xlu1 %v3886_v31, %s10589_s18  ;;  %v3946_v15 = vpop.f32.mrb[89].mxu1 }
 0xb92   :  { %4513 = vrot.lane.b32.xlu0 %v6892_v13, %s10587_s22 }
 0xb94   :  { %v6913_v61 = vpop.f32.mrb[90].mxu1 }
 0xb95   :  { %4511 = vrot.lane.b32.xlu1 %v3886_v31, %s10587_s22  ;;  %v3956_v36 = vpop.f32.mrb[91].mxu1 }
 0xb96   :  { %4199 = vrot.lane.b32.xlu0 %v3886_v31, %s10588_s26 }
 0xb98   :  { %v9558_v21 = vpop.f32.mrb[92].mxu1 }
 0xb99   :  { %4207 = vrot.lane.b32.xlu1 %v6895_v59, %s10589_s18  ;;  %v9561_v14 = vpop.f32.mrb[93].mxu1 }
 0xb9a   :  { %4041 = vrot.lane.b32.xlu0 %v6895_v59, %s10590_s29 }
 0xb9c   :  { %v9564_v24 = vpop.f32.mrb[94].mxu1 }
 0xb9d   :  { %4039 = vrot.lane.b32.xlu1 %v3896_v46, %s10590_s29  ;;  %v9567_v11 = vpop.f32.mrb[95].mxu1 }
 0xb9e   :  { %4519 = vrot.lane.b32.xlu0 %v6895_v59, %s10588_s26 }
 0xba0   :  { %v9570_v8 = vpop.f32.mrb[96].mxu1 }
 0xba1   :  { %4517 = vrot.lane.b32.xlu1 %v3896_v46, %s10588_s26  ;;  %v9573_v17 = vpop.f32.mrb[97].mxu1 }
 0xba2   :  { %4205 = vrot.lane.b32.xlu0 %v3896_v46, %s10589_s18 }
 0xba4   :  { %v9576_v3 = vpop.f32.mrb[98].mxu1 }
 0xba5   :  { %4213 = vrot.lane.b32.xlu1 %v6898_v35, %s10590_s29  ;;  %v9579_v13 = vpop.f32.mrb[99].mxu1 }
 0xba6   :  { %4049 = vrot.lane.b32.xlu0 %v6898_v35, %s10591_s8 }
 0xba9   :  { %4047 = vrot.lane.b32.xlu1 %v3906_v0, %s10591_s8 }
 0xbaa   :  { %4525 = vrot.lane.b32.xlu0 %v6898_v35, %s10589_s18 }
 0xbad   :  { %4523 = vrot.lane.b32.xlu1 %v3906_v0, %s10589_s18  ;;  %s10684_s18 = smov 32  }
 0xbae   :  { %4211 = vrot.lane.b32.xlu0 %v3906_v0, %s10590_s29 }
 0xbb1   :  { %4219 = vrot.lane.b32.xlu1 %v6901_v62, %s10591_s8 }
 0xbb2   :  { %4057 = vrot.lane.b32.xlu0 %v6901_v62, %s10592_s30 }
 0xbb5   :  { %4531 = vrot.lane.b32.xlu1 %v6901_v62, %s10590_s29 }
 0xbb6   :  { %4217 = vrot.lane.b32.xlu0 %v3916_v45, %s10591_s8 }
 0xbb9   :  { %4055 = vrot.lane.b32.xlu1 %v3916_v45, %s10592_s30 }
 0xbba   :  { %4225 = vrot.lane.b32.xlu0 %v6904_v25, %s10592_s30 }
 0xbbd   :  { %4529 = vrot.lane.b32.xlu1 %v3916_v45, %s10590_s29 }
 0xbbe   :  { %4223 = vrot.lane.b32.xlu0 %v3926_v16, %s10592_s30 }
 0xbc1   :  { %4065 = vrot.lane.b32.xlu1 %v6904_v25, %s10593_s4 }
 0xbc2   :  { %4535 = vrot.lane.b32.xlu0 %v3926_v16, %s10591_s8 }
 0xbc5   :  { %4537 = vrot.lane.b32.xlu1 %v6904_v25, %s10591_s8 }
 0xbc6   :  { %4231 = vrot.lane.b32.xlu0 %v6907_v29, %s10593_s4 }
 0xbc9   :  { %4063 = vrot.lane.b32.xlu1 %v3926_v16, %s10593_s4 }
 0xbca   :  { %4071 = vrot.lane.b32.xlu0 %v3936_v58, %s10594_s5 }
 0xbcd   :  { %4073 = vrot.lane.b32.xlu1 %v6907_v29, %s10594_s5 }
 0xbce   :  { %4541 = vrot.lane.b32.xlu0 %v3936_v58, %s10592_s30 }
 0xbd1   :  { %4543 = vrot.lane.b32.xlu1 %v6907_v29, %s10592_s30 }
 0xbd2   :  { %4237 = vrot.lane.b32.xlu0 %v6910_v10, %s10594_s5 }
 0xbd5   :  { %4229 = vrot.lane.b32.xlu1 %v3936_v58, %s10593_s4 }
 0xbd6   :  { %4079 = vrot.lane.b32.xlu0 %v3946_v15, %s10595_s1 }
 0xbd9   :  { %4081 = vrot.lane.b32.xlu1 %v6910_v10, %s10595_s1 }
 0xbda   :  { %4547 = vrot.lane.b32.xlu0 %v3946_v15, %s10593_s4 }
 0xbdb   :  { %v4184_v31 = vpop.permute.xlu1 %4183 }
 0xbdc   :  { %v4182_v59 = vpop.permute.xlu0 %4181 }
 0xbdd   :  { %4549 = vrot.lane.b32.xlu1 %v6910_v10, %s10593_s4  ;;  %v4271_v26 = vsel %vm1883_vm2, %v4182_v59, %v9522_v37 }
 0xbde   :  { %4243 = vrot.lane.b32.xlu0 %v6913_v61, %s10595_s1 }
 0xbdf   :  { %v4496_v46 = vpop.permute.xlu1 %4495 }
 0xbe0   :  { %v4010_v35 = vpop.permute.xlu0 %4009 }
 0xbe1   :  { %4235 = vrot.lane.b32.xlu1 %v3946_v15, %s10594_s5  ;;  %v4126_v37 = vsel %vm1883_vm2, %v9510_v18, %v4010_v35 }
 0xbe2   :  { %4089 = vrot.lane.b32.xlu0 %v6913_v61, %s10596_s24 }
 0xbe3   :  { %v4494_v0 = vpop.permute.xlu1 %4493 }
 0xbe4   :  { %v4502_v62 = vpop.permute.xlu0 %4501 }
 0xbe5   :  { %4555 = vrot.lane.b32.xlu1 %v6913_v61, %s10594_s5 }
 0xbe6   :  { %4087 = vrot.lane.b32.xlu0 %v3956_v36, %s10596_s24 }
 0xbe7   :  { %v4008_v45 = vpop.permute.xlu1 %4007 }
 0xbe8   :  { %v4500_v25 = vpop.permute.xlu0 %4499  ;;  %v4125_v18 = vsel %vm1883_vm2, %v9514_v57, %v4008_v45 }
 0xbe9   :  { %4241 = vrot.lane.b32.xlu1 %v3956_v36, %s10595_s1  ;;  %v4583_v33 = vsel %vm1883_vm2, %v4494_v0, %v4500_v25  ;;  %v4272_v0 = vsel %vm1883_vm2, %v4184_v31, %v9518_v52 }
 0xbea   :  { %4553 = vrot.lane.b32.xlu0 %v3956_v36, %s10594_s5  ;;  %v4585_v39 = vsel %vm1886_vm3, %v4583_v33, %v9530_v20  ;;  %v4584_v33 = vsel %vm1883_vm2, %v4496_v46, %v4502_v62 }
 0xbeb   :  { %v4190_v16 = vpop.permute.xlu1 %4189  ;;  %v4586_v35 = vsel %vm1886_vm3, %v4584_v33, %v9526_v41 }
 0xbec   :  { %v4018_v29 = vpop.permute.xlu0 %4017  ;;  %v4274_v59 = vsel %vm1886_vm3, %v4272_v0, %v4190_v16 }
 0xbed   :  { %4247 = vrot.lane.b32.xlu1 %v9561_v14, %s10596_s24 }
 0xbee   :  { %4249 = vrot.lane.b32.xlu0 %v9558_v21, %s10596_s24 }
 0xbef   :  { %v4016_v58 = vpop.permute.xlu1 %4015 }
 0xbf0   :  { %v4188_v10 = vpop.permute.xlu0 %4187  ;;  %v4127_v31 = vsel %vm1886_vm3, %v4125_v18, %v4016_v58 }
 0xbf1   :  { %4095 = vrot.lane.b32.xlu1 %v9561_v14, %s10597_s27  ;;  %v4273_v40 = vsel %vm1886_vm3, %v4271_v26, %v4188_v10  ;;  %v4128_v26 = vsel %vm1886_vm3, %v4126_v37, %v4018_v29 }
 0xbf2   :  { %4097 = vrot.lane.b32.xlu0 %v9558_v21, %s10597_s27 }
 0xbf3   :  { %v4196_v15 = vpop.permute.xlu1 %4195 }
 0xbf4   :  { %v4026_v61 = vpop.permute.xlu0 %4025 }
 0xbf5   :  { %4253 = vrot.lane.b32.xlu1 %v9567_v11, %s10597_s27 }
 0xbf6   :  { %4559 = vrot.lane.b32.xlu0 %v9561_v14, %s10595_s1 }
 0xbf7   :  { %v4024_v36 = vpop.permute.xlu1 %4023 }
 0xbf8   :  { %v4508_v56 = vpop.permute.xlu0 %4507  ;;  %v4129_v46 = vsel %vm1889_vm4, %v4127_v31, %v4024_v36 }
 0xbf9   :  { %4103 = vrot.lane.b32.xlu1 %v9567_v11, %s10598_s12  ;;  %v4588_v16 = vsel %vm1889_vm4, %v4586_v35, %v4508_v56 }
 0xbfa   :  { %4255 = vrot.lane.b32.xlu0 %v9564_v24, %s10597_s27 }
 0xbfb   :  { %v4506_v27 = vpop.permute.xlu1 %4505 }
 0xbfc   :  { %v4587_v14 = vsel %vm1889_vm4, %v4585_v39, %v4506_v27  ;;  %v4194_v9 = vpop.permute.xlu0 %4193  ;;  %v4276_v27 = vsel %vm1889_vm4, %v4274_v59, %v4196_v15 }
 0xbfd   :  { %v4275_v25 = vsel %vm1889_vm4, %v4273_v40, %v4194_v9  ;;  %4259 = vrot.lane.b32.xlu1 %v9573_v17, %s10598_s12  ;;  %v4130_v9 = vsel %vm1889_vm4, %v4128_v26, %v4026_v61  ;;  %vm10601_vm4 = vcmask 80896  }
 0xbfe   :  { %4105 = vrot.lane.b32.xlu0 %v9564_v24, %s10598_s12  ;;  %vm10606_vm10 = vmmov %vm10601_vm4 }
 0xbff   :  { %v4202_v39 = vpop.permute.xlu1 %4201  ;;  %vm10610_vm1 = vmmov %vm10601_vm4 }
 0xc00   :  { %v4278_v40 = vsel %vm1892_vm5, %v4276_v27, %v4202_v39  ;;  %v4034_v52 = vpop.permute.xlu0 %4033 }
 0xc01   :  { %v4132_v20 = vsel %vm1892_vm5, %v4130_v9, %v4034_v52  ;;  %4111 = vrot.lane.b32.xlu1 %v9573_v17, %s10599_s14 }
 0xc02   :  { %4261 = vrot.lane.b32.xlu0 %v9570_v8, %s10598_s12 }
 0xc03   :  { %v4032_v62 = vpop.permute.xlu1 %4031 }
 0xc04   :  { %v4131_v57 = vsel %vm1892_vm5, %v4129_v46, %v4032_v62  ;;  %v4514_v45 = vpop.permute.xlu0 %4513 }
 0xc05   :  { %v4590_v29 = vsel %vm1892_vm5, %v4588_v16, %v4514_v45  ;;  %4265 = vrot.lane.b32.xlu1 %v9579_v13, %s10599_s14 }
 0xc06   :  { %4113 = vrot.lane.b32.xlu0 %v9570_v8, %s10599_s14 }
 0xc07   :  { %v4512_v58 = vpop.permute.xlu1 %4511 }
 0xc08   :  { %v4589_v10 = vsel %vm1892_vm5, %v4587_v14, %v4512_v58  ;;  %v4200_v15 = vpop.permute.xlu0 %4199 }
 0xc09   :  { %v4277_v41 = vsel %vm1892_vm5, %v4275_v25, %v4200_v15  ;;  %4561 = vrot.lane.b32.xlu1 %v9558_v21, %s10595_s1  ;;  %vm10602_vm5 = vcmask 89088  }
 0xc0a   :  { %4267 = vrot.lane.b32.xlu0 %v9576_v3, %s10599_s14  ;;  %vm10608_vm15 = vmmov %vm10602_vm5 }
 0xc0b   :  { %v4208_v56 = vpop.permute.xlu1 %4207 }
 0xc0c   :  { %v4280_v61 = vsel %vm1895_vm6, %v4278_v40, %v4208_v56  ;;  %v4042_v36 = vpop.permute.xlu0 %4041 }
 0xc0d   :  { %v4134_v0 = vsel %vm1895_vm6, %v4132_v20, %v4042_v36  ;;  %4119 = vrot.lane.b32.xlu1 %v9579_v13, %s10600_s11 }
 0xc0e   :  { %4121 = vrot.lane.b32.xlu0 %v9576_v3, %s10600_s11 }
 0xc0f   :  { %v4040_v14 = vpop.permute.xlu1 %4039 }
 0xc10   :  { %v4133_v25 = vsel %vm1895_vm6, %v4131_v57, %v4040_v14  ;;  %v4520_v37 = vpop.permute.xlu0 %4519 }
 0xc11   :  { %v4592_v21 = vsel %vm1895_vm6, %v4590_v29, %v4520_v37  ;;  %4567 = vrot.lane.b32.xlu1 %v9564_v24, %s10596_s24 }
 0xc12   :  { %4565 = vrot.lane.b32.xlu0 %v9567_v11, %s10596_s24 }
 0xc13   :  { %v4518_v59 = vpop.permute.xlu1 %4517 }
 0xc14   :  { %v4591_v26 = vsel %vm1895_vm6, %v4589_v10, %v4518_v59  ;;  %v4206_v27 = vpop.permute.xlu0 %4205 }
 0xc15   :  { %v4279_v39 = vsel %vm1895_vm6, %v4277_v41, %v4206_v27  ;;  %4573 = vrot.lane.b32.xlu1 %v9570_v8, %s10597_s27  ;;  %vm10603_vm6 = vcmask 97280  }
 0xc16   :  { %4571 = vrot.lane.b32.xlu0 %v9573_v17, %s10597_s27  ;;  %vm10609_vm9 = vmmov %vm10603_vm6 }
 0xc17   :  { %v4214_v33 = vpop.permute.xlu1 %4213 }
 0xc18   :  { %v4282_v9 = vsel %vm1898_vm7, %v4280_v61, %v4214_v33  ;;  %v4050_v40 = vpop.permute.xlu0 %4049 }
 0xc19   :  { %v4136_v24 = vsel %vm1898_vm7, %v4134_v0, %v4050_v40  ;;  %4579 = vrot.lane.b32.xlu1 %v9576_v3, %s10598_s12 }
 0xc1a   :  { %4577 = vrot.lane.b32.xlu0 %v9579_v13, %s10598_s12 }
 0xc1b   :  { %v4048_v11 = vpop.permute.xlu1 %4047 }
 0xc1c   :  { %v4135_v52 = vsel %vm1898_vm7, %v4133_v25, %v4048_v11  ;;  %v4526_v18 = vpop.permute.xlu0 %4525 }
 0xc1d   :  { %v4594_v8 = vsel %vm1898_vm7, %v4592_v21, %v4526_v18 }
 0xc1f   :  { %v4524_v20 = vpop.permute.xlu1 %4523 }
 0xc20   :  { %v4593_v17 = vsel %vm1898_vm7, %v4591_v26, %v4524_v20  ;;  %v4212_v31 = vpop.permute.xlu0 %4211 }
 0xc21   :  { %v4281_v46 = vsel %vm1898_vm7, %v4279_v39, %v4212_v31  ;;  %vm10604_vm7 = vcmask 105472  }
 0xc22   :  { %vm10611_vm14 = vmmov %vm10604_vm7 }
 0xc23   :  { %v4220_v35 = vpop.permute.xlu1 %4219 }
 0xc24   :  { %v4284_v62 = vsel %vm1901_vm12, %v4282_v9, %v4220_v35  ;;  %v4058_v16 = vpop.permute.xlu0 %4057 }
 0xc25   :  { %v4138_v3 = vsel %vm1901_vm12, %v4136_v24, %v4058_v16 }
 0xc27   :  { %v4532_v57 = vpop.permute.xlu1 %4531 }
 0xc28   :  { %v4596_v13 = vsel %vm1901_vm12, %v4594_v8, %v4532_v57  ;;  %v4218_v45 = vpop.permute.xlu0 %4217 }
 0xc29   :  { %v4283_v29 = vsel %vm1901_vm12, %v4281_v46, %v4218_v45 }
 0xc2b   :  { %v4056_v58 = vpop.permute.xlu1 %4055 }
 0xc2c   :  { %v4137_v10 = vsel %vm1901_vm12, %v4135_v52, %v4056_v58  ;;  %v4226_v15 = vpop.permute.xlu0 %4225 }
 0xc2d   :  { %v4286_v41 = vsel %vm216_vm0, %v4284_v62, %v4226_v15 }
 0xc2f   :  { %v4530_v56 = vpop.permute.xlu1 %4529 }
 0xc30   :  { %v4595_v61 = vsel %vm1901_vm12, %v4593_v17, %v4530_v56  ;;  %v4224_v36 = vpop.permute.xlu0 %4223  ;;  %vm10605_vm12 = vcmask 113664  }
 0xc31   :  { %v4285_v0 = vsel %vm216_vm0, %v4283_v29, %v4224_v36 }
 0xc33   :  { %v4066_v14 = vpop.permute.xlu1 %4065 }
 0xc34   :  { %v4140_v25 = vsel %vm216_vm0, %v4138_v3, %v4066_v14  ;;  %v4536_v37 = vpop.permute.xlu0 %4535 }
 0xc35   :  { %v4597_v21 = vsel %vm216_vm0, %v4595_v61, %v4536_v37 }
 0xc37   :  { %v4538_v59 = vpop.permute.xlu1 %4537 }
 0xc38   :  { %v4598_v26 = vsel %vm216_vm0, %v4596_v13, %v4538_v59  ;;  %v4232_v27 = vpop.permute.xlu0 %4231 }
 0xc39   :  { %v4288_v47 = vsel %vm1906_vm13, %v4286_v41, %v4232_v27 }
 0xc3b   :  { %v4064_v39 = vpop.permute.xlu1 %4063 }
 0xc3c   :  { %v4072_v33 = vpop.permute.xlu0 %4071  ;;  %v4139_v44 = vsel %vm216_vm0, %v4137_v10, %v4064_v39 }
 0xc3f   :  { %v4074_v9 = vpop.permute.xlu1 %4073 }
 0xc40   :  { %v4542_v40 = vpop.permute.xlu0 %4541  ;;  %v4142_v10 = vsel %vm1906_vm13, %v4140_v25, %v4074_v9 }
 0xc41   :  { %v9718_v24 = vsel %vm1906_vm13, %v4597_v21, %v4542_v40 }
 0xc43   :  { %v4544_v11 = vpop.permute.xlu1 %4543 }
 0xc44   :  { %v9721_v52 = vsel %vm1906_vm13, %v4598_v26, %v4544_v11  ;;  %v4238_v18 = vpop.permute.xlu0 %4237 }
 0xc45   :  { %v4290_v19 = vsel %vm10606_vm10, %v4288_v47, %v4238_v18  ;;  %vm10618_vm10 = vmmov %vm10609_vm9 }
 0xc47   :  { %v4230_v8 = vpop.permute.xlu1 %4229 }
 0xc48   :  { %v4080_v20 = vpop.permute.xlu0 %4079  ;;  %v4287_v26 = vsel %vm1906_vm13, %v4285_v0, %v4230_v8 }
 0xc4b   :  { %v4082_v17 = vpop.permute.xlu1 %4081 }
 0xc4c   :  { %v9723_v31 = vpop.permute.xlu0 %4547 }
 0xc4f   :  { %v9725_v46 = vpop.permute.xlu1 %4549 }
 0xc50   :  { %v4244_v35 = vpop.permute.xlu0 %4243 }
 0xc53   :  { %v4236_v62 = vpop.permute.xlu1 %4235 }
 0xc54   :  { %v4090_v16 = vpop.permute.xlu0 %4089  ;;  %v4289_v40 = vsel %vm10601_vm4, %v4287_v26, %v4236_v62  ;;  %v4292_v62 = vsel %vm10608_vm15, %v4290_v19, %v4244_v35  ;;  %vm10613_vm4 = vmmov %vm10610_vm1 }
 0xc55   :  { %v4144_v19 = vsel %vm10613_vm4, %v4142_v10, %v4082_v17  ;;  %v7489_v17 = vld [vmem:[%s10471_s2 + $0x8] sm:$0xff] }
 0xc57   :  { %v9727_v3 = vpop.permute.xlu1 %4555 }
 0xc58   :  { %v4088_v57 = vpop.permute.xlu0 %4087 }
 0xc5b   :  { %v4242_v13 = vpop.permute.xlu1 %4241 }
 0xc5c   :  { %v9729_v45 = vpop.permute.xlu0 %4553  ;;  %v4291_v22 = vsel %vm10602_vm5, %v4289_v40, %v4242_v13 }
 0xc5f   :  { %v4248_v29 = vpop.permute.xlu1 %4247 }
 0xc60   :  { %v4250_v58 = vpop.permute.xlu0 %4249  ;;  %v4293_v43 = vsel %vm10603_vm6, %v4291_v22, %v4248_v29  ;;  %v7488_v22 = vld [vmem:[%s10471_s2] sm:$0xff]  ;;  %vm10614_vm6 = vmmov %vm10605_vm12  ;;  %s10646_s2 = smov 96  }
 0xc61   :  { %v4294_v41 = vsel %vm10609_vm9, %v4292_v62, %v4250_v58 }
 0xc63   :  { %v4096_v15 = vpop.permute.xlu1 %4095 }
 0xc64   :  { %v4098_v56 = vpop.permute.xlu0 %4097 }
 0xc67   :  { %v4254_v61 = vpop.permute.xlu1 %4253 }
 0xc68   :  { %v9731_v36 = vpop.permute.xlu0 %4559  ;;  %v4295_v30 = vsel %vm10604_vm7, %v4293_v43, %v4254_v61  ;;  %v4141_v43 = vsel %vm1906_vm13, %v4139_v44, %v4072_v33  ;;  %vm10615_vm7 = vmmov %vm10602_vm5 }
 0xc69   :  { %v4146_v44 = vsel %vm10615_vm7, %v4144_v19, %v4090_v16  ;;  %vm10617_vm13 = vmmov %vm10607_vm8 }
 0xc6a   :  { %v4148_v9 = vsel %vm10618_vm10, %v4146_v44, %v4098_v56  ;;  %vm10624_vm4 = vmmov %vm10617_vm13 }
 0xc6b   :  { %v4104_v14 = vpop.permute.xlu1 %4103 }
 0xc6c   :  { %v4256_v37 = vpop.permute.xlu0 %4255 }
 0xc6d   :  { %v4296_v47 = vsel %vm10611_vm14, %v4294_v41, %v4256_v37 }
 0xc6f   :  { %v4260_v21 = vpop.permute.xlu1 %4259 }
 0xc70   :  { %v4106_v59 = vpop.permute.xlu0 %4105  ;;  %v4297_v49 = vsel %vm10605_vm12, %v4295_v30, %v4260_v21  ;;  %v4143_v30 = vsel %vm10610_vm1, %v4141_v43, %v4080_v20  ;;  %vm10616_vm12 = vmmov %vm10609_vm9 }
 0xc71   :  { %vm10621_vm9 = vmmov %vm10614_vm6 }
 0xc72   :  { %vm10622_vm1 = vmmov %vm10614_vm6 }
 0xc73   :  { %v4112_v11 = vpop.permute.xlu1 %4111 }
 0xc74   :  { %v4262_v1 = vpop.permute.xlu0 %4261 }
 0xc75   :  { %v4298_v39 = vsel %vm10614_vm6, %v4296_v47, %v4262_v1  ;;  %vm10626_vm6 = vcmask 80896  }
 0xc77   :  { %v4266_v12 = vpop.permute.xlu1 %4265 }
 0xc78   :  { %v4299_v0 = vsel %vm10607_vm8, %v4297_v49, %v4266_v12  ;;  %v4114_v8 = vpop.permute.xlu0 %4113  ;;  %v4145_v49 = vsel %vm10602_vm5, %v4143_v30, %v4088_v57  ;;  %vm10619_vm8 = vmmov %vm10611_vm14 }
 0xc79   :  { %v4301_v13 = vadd.f32 %v7488_v22, %v4299_v0  ;;  %v4147_v33 = vsel %vm10616_vm12, %v4145_v49, %v4096_v15  ;;  %vm10620_vm15 = vmmov %vm10619_vm8 }
 0xc7a   :  { %v4149_v20 = vsel %vm10619_vm8, %v4147_v33, %v4104_v14  ;;  %v4150_v57 = vsel %vm10620_vm15, %v4148_v9, %v4106_v59  ;;  %vm10623_vm14 = vmmov %vm10617_vm13  ;;  %v4602_v59 = vsel %vm10626_vm6, %v9721_v52, %v9725_v46  ;;  %vm10631_vm8 = vcmask 97280  }
 0xc7b   :  { %v4562_v27 = vpop.permute.xlu1 %4561  ;;  %v4303_v12 = vsel %vm10612_vm11, %v4301_v13, -inf  ;;  %v4151_v1 = vsel %vm10621_vm9, %v4149_v20, %v4112_v11  ;;  %v4152_v16 = vsel %vm10622_vm1, %v4150_v57, %v4114_v8  ;;  %vm10625_vm5 = vmmov %vm10612_vm11  ;;  %vm10633_vm9 = vcmask 105472  }
 0xc7c   :  { %v4268_v18 = vpop.permute.xlu0 %4267  ;;  %4304 = vmax.xlane.f32.xlu0 %v4303_v12  ;;  %vm10627_vm7 = vmmov %vm10625_vm5 }
 0xc7d   :  { %v4300_v25 = vsel %vm10617_vm13, %v4298_v39, %v4268_v18  ;;  %vm10628_vm12 = vmmov %vm10626_vm6  ;;  %vm10629_vm13 = vcmask 89088  }
 0xc7e   :  { %v4302_v35 = vadd.f32 %v7489_v17, %v4300_v25  ;;  %v4601_v8 = vsel %vm10628_vm12, %v9718_v24, %v9723_v31  ;;  %v4604_v62 = vsel %vm10629_vm13, %v4602_v59, %v9727_v3  ;;  %vm10630_vm10 = vmmov %vm10629_vm13 }
 0xc7f   :  { %v4120_v29 = vpop.permute.xlu1 %4119  ;;  %v4603_v41 = vsel %vm10630_vm10, %v4601_v8, %v9729_v45  ;;  %v4606_v10 = vsel %vm10631_vm8, %v4604_v62, %v4562_v27  ;;  %vm10632_vm15 = vmmov %vm10631_vm8 }
 0xc80   :  { %v4153_v58 = vsel %vm10623_vm14, %v4151_v1, %v4120_v29  ;;  %v4122_v15 = vpop.permute.xlu0 %4121  ;;  %v4306_v61 = vsel %vm10612_vm11, %v4302_v35, -inf  ;;  %v4605_v52 = vsel %vm10632_vm15, %v4603_v41, %v9731_v36  ;;  %vm10634_vm1 = vmmov %vm10633_vm9  ;;  %vm10635_vm14 = vcmask 113664  }
 0xc81   :  { %v4155_v56 = vadd.f32 %v7488_v22, %v4153_v58  ;;  %v4154_v14 = vsel %vm10624_vm4, %v4152_v16, %v4122_v15  ;;  %4307 = vmax.xlane.f32.xlu1 %v4306_v61  ;;  %vm10636_vm11 = vmmov %vm10635_vm14 }
 0xc82   :  { %v4156_v37 = vadd.f32 %v7489_v17, %v4154_v14  ;;  %vm10638_vm6 = vmmov %vm10627_vm7 }
 0xc83   :  { %v4568_v21 = vpop.permute.xlu1 %4567  ;;  %v4157_v26 = vsel %vm10625_vm5, %v4155_v56, -inf  ;;  %vm10637_vm5 = vmmov %vm10624_vm4 }
 0xc84   :  { %v4566_v40 = vpop.permute.xlu0 %4565  ;;  %4158 = vmax.xlane.f32.xlu0 %v4157_v26  ;;  %v4160_v0 = vsel %vm10627_vm7, %v4156_v37, -inf  ;;  %v4608_v46 = vsel %vm10633_vm9, %v4606_v10, %v4568_v21  ;;  %vm10639_vm7 = vmmov %vm10638_vm6 }
 0xc85   :  { %v4607_v30 = vsel %vm10634_vm1, %v4605_v52, %v4566_v40  ;;  %vm10640_vm12 = vmmov %vm10638_vm6 }
 0xc86   :  { %vm10641_vm13 = vmmov %vm10638_vm6 }
 0xc87   :  { %v4574_v11 = vpop.permute.xlu1 %4573  ;;  %vm10642_vm10 = vmmov %vm10638_vm6 }
 0xc88   :  { %v4572_v43 = vpop.permute.xlu0 %4571  ;;  %4161 = vmax.xlane.f32.xlu0 %v4160_v0  ;;  %v4610_v47 = vsel %vm10635_vm14, %v4608_v46, %v4574_v11  ;;  %vm10643_vm8 = vmmov %vm10638_vm6 }
 0xc89   :  { %v4609_v31 = vsel %vm10636_vm11, %v4607_v30, %v4572_v43  ;;  %vm10644_vm15 = vmmov %vm10638_vm6 }
 0xc8a   :  { %vm10645_vm9 = vmmov %vm10638_vm6 }
 0xc8b   :  { %v4580_v24 = vpop.permute.xlu1 %4579  ;;  %vm10647_vm1 = vmmov %vm10638_vm6 }
 0xc8c   :  { %v4612_v3 = vsel %vm10624_vm4, %v4610_v47, %v4580_v24  ;;  %v4578_v12 = vpop.permute.xlu0 %4577  ;;  %vm10648_vm14 = vmmov %vm10647_vm1 }
 0xc8d   :  { %v4614_v19 = vadd.f32 %v7489_v17, %v4612_v3  ;;  %v4611_v45 = vsel %vm10637_vm5, %v4609_v31, %v4578_v12  ;;  %vm10649_vm11 = vmmov %vm10647_vm1 }
 0xc8e   :  { %v4613_v49 = vadd.f32 %v7488_v22, %v4611_v45  ;;  %vm10650_vm4 = vmmov %vm10647_vm1 }
 0xc8f   :  { %v4618_v27 = vsel %vm10638_vm6, %v4614_v19, -inf  ;;  %vm10651_vm5 = vmmov %vm10647_vm1 }
 0xc90   :  { %4619 = vmax.xlane.f32.xlu0 %v4618_v27  ;;  %v4615_v36 = vsel %vm10639_vm7, %v4613_v49, -inf  ;;  %vm10652_vm6 = vmmov %vm10647_vm1  ;;  %vm10653_vm7 = vcmask 261120  }
 0xc91   :  { %4616 = vmax.xlane.f32.xlu1 %v4615_v36 }
 0xd09   :  { %v4305_v39 = vpop.xlane.xlu0 %4304 }
 0xd0a   :  { %v4309_v18 = vsub.f32 %v4301_v13, %v4305_v39 }
 0xd0c   :  { %v4311_v44 = vmul.f32 1.442695, %v4309_v18 }
 0xd0e   :  { %7417 = vpow2.f32 %v4311_v44  ;;  %v4308_v33 = vpop.xlane.xlu1 %4307 }
 0xd0f   :  { %v4310_v25 = vsub.f32 %v4302_v35, %v4308_v33 }
 0xd11   :  { %v4313_v9 = vmul.f32 1.442695, %v4310_v25  ;;  %v4159_v20 = vpop.xlane.xlu0 %4158 }
 0xd12   :  { %v4163_v57 = vsub.f32 %v4155_v56, %v4159_v20  ;;  %v6149_v20 = vld [vmem:[%s10400_s3 + $0x48] sm:$0xff] }
 0xd13   :  { %7419 = vpow2.f32 %v4313_v9  ;;  %v6148_v9 = vld [vmem:[%s10400_s3 + $0x40] sm:$0xff] }
 0xd14   :  { %v4165_v17 = vmul.f32 1.442695, %v4163_v57 }
 0xd15   :  { %v4162_v1 = vpop.xlane.xlu0 %4161 }
 0xd16   :  { %7421 = vpow2.f32 %v4165_v17  ;;  %v4164_v22 = vsub.f32 %v4156_v37, %v4162_v1  ;;  %v7241_v1 = vpack.c.bf16 %v6149_v20, %v6148_v9 }
 0xd18   :  { %v7418_v29 = vpop.eup %7417  ;;  %v4167_v16 = vmul.f32 1.442695, %v4164_v22 }
 0xd19   :  { %v4315_v58 = vsel %vm10640_vm12, %v7418_v29, 0.0  ;;  %vm10654_vm12 = vmmov %vm10653_vm7 }
 0xd1a   :  { %7423 = vpow2.f32 %v4167_v16  ;;  %4316 = vadd.xlane.f32.xlu1 %v4315_v58  ;;  %v6151_v16 = vld [vmem:[%s10400_s3 + $0x58] sm:$0xff] }
 0xd1d   :  { %v7420_v15 = vpop.eup %7419  ;;  %v4620_v13 = vpop.xlane.xlu0 %4619 }
 0xd1e   :  { %v4622_v61 = vsub.f32 %v4614_v19, %v4620_v13  ;;  %v4617_v14 = vpop.xlane.xlu1 %4616  ;;  %v4318_v35 = vsel %vm10641_vm13, %v7420_v15, 0.0  ;;  %v6156_v13 = vld [vmem:[%s10398_s6 + $0x10] sm:$0xff] }
 0xd1f   :  { %v4621_v21 = vsub.f32 %v4613_v49, %v4617_v14  ;;  %4319 = vadd.xlane.f32.xlu0 %v4318_v35  ;;  %v7491_v14 = vld [vmem:[%s10399_s0 + $0x8] sm:$0xff]  ;;  %v7492_v35 = vld [vmem:[%s10399_s0 + $0x10] sm:$0xff] }
 0xd20   :  { %v7422_v56 = vpop.eup %7421  ;;  %v4625_v26 = vmul.f32 1.442695, %v4622_v61  ;;  %v7490_v61 = vld [vmem:[%s10399_s0] sm:$0xff] }
 0xd21   :  { %v4623_v40 = vmul.f32 1.442695, %v4621_v21  ;;  %v4169_v59 = vsel %vm10642_vm10, %v7422_v56, 0.0  ;;  %v7493_v21 = vld [vmem:[%s10399_s0 + $0x18] sm:$0xff] }
 0xd22   :  { %7425 = vpow2.f32 %v4625_v26  ;;  %4170 = vadd.xlane.f32.xlu1 %v4169_v59  ;;  %v7495_v26 = vld [vmem:[%s10399_s0 + $0x28] sm:$0xff]  ;;  %v7497_v59 = vld [vmem:[%s10399_s0 + $0x38] sm:$0xff] }
 0xd23   :  { %7427 = vpow2.f32 %v4623_v40  ;;  %v7496_v40 = vld [vmem:[%s10399_s0 + $0x30] sm:$0xff] }
 0xd24   :  { %v7424_v37 = vpop.eup %7423 }
 0xd25   :  { %v4172_v11 = vsel %vm10643_vm8, %v7424_v37, 0.0 }
 0xd26   :  { %4173 = vadd.xlane.f32.xlu0 %v4172_v11  ;;  %v7499_v11 = vld [vmem:[%s10399_s0 + $0x48] sm:$0xff] }
 0xd2c   :  { %v7426_v0 = vpop.eup %7425 }
 0xd2d   :  { %v7428_v8 = vpop.eup %7427  ;;  %v4630_v62 = vsel %vm10644_vm15, %v7426_v0, 0.0 }
 0xd2e   :  { %4631 = vadd.xlane.f32.xlu0 %v4630_v62  ;;  %v4627_v43 = vsel %vm10645_vm9, %v7428_v8, 0.0  ;;  %v7502_v62 = vld [vmem:[%s10399_s0 + $0x60] sm:$0xff] }
 0xd2f   :  { %4628 = vadd.xlane.f32.xlu1 %v4627_v43  ;;  %v7503_v43 = vld [vmem:[%s10399_s0 + $0x68] sm:$0xff] }
 0xd40   :  { %7383 = vrot.lane.b32.xlu1 %v9424_v63, %s10646_s2 }
 0xd44   :  { %7388 = vrot.lane.b32.xlu0 %v9424_v63, %s10543_s28 }
 0xda7   :  { %v4317_v41 = vpop.xlane.xlu1 %4316 }
 0xda8   :  { %7429 = vrcp.f32 %v4317_v41  ;;  %v7504_v41 = vld [vmem:[%s10399_s0 + $0x70] sm:$0xff] }
 0xdac   :  { %v4320_v46 = vpop.xlane.xlu0 %4319 }
 0xdad   :  { %7431 = vrcp.f32 %v4320_v46  ;;  %v7507_v46 = vld [vmem:[%s10399_s0 + $0x88] sm:$0xff] }
 0xdaf   :  { %v4171_v30 = vpop.xlane.xlu1 %4170 }
 0xdb0   :  { %7433 = vrcp.f32 %v4171_v30  ;;  %v7508_v30 = vld [vmem:[%s10399_s0 + $0x90] sm:$0xff] }
 0xdb2   :  { %v7430_v10 = vpop.eup %7429 }
 0xdb3   :  { %v4323_v52 = vmul.f32 %v7430_v10, %v7418_v29  ;;  %v4174_v47 = vpop.xlane.xlu0 %4173  ;;  %v6150_v29 = vld [vmem:[%s10400_s3 + $0x50] sm:$0xff]  ;;  %v7505_v10 = vld [vmem:[%s10399_s0 + $0x78] sm:$0xff] }
 0xdb4   :  { %7435 = vrcp.f32 %v4174_v47  ;;  %v7509_v47 = vld [vmem:[%s10399_s0 + $0x98] sm:$0xff] }
 0xdb5   :  { %6930 = vmatprep.mubr.msk.f32.mxu0 %vm10647_vm1, %v4323_v52  ;;  %v7506_v52 = vld [vmem:[%s10399_s0 + $0x80] sm:$0xff] }
 0xdb7   :  { %v7432_v49 = vpop.eup %7431 }
 0xdb8   :  { %v4324_v18 = vmul.f32 %v7432_v49, %v7420_v15  ;;  %v7245_v15 = vpack.c.bf16 %v6151_v16, %v6150_v29  ;;  %v7517_v49 = vld [vmem:[%s10399_s0 + $0xd8] sm:$0xff]  ;;  %v9976_v16 = vld [vmem:[%s10498_s7 + $0x8] sm:$0xff] }
 0xdba   :  { %v7434_v27 = vpop.eup %7433 }
 0xdbb   :  { %v4632_v24 = vpop.xlane.xlu0 %4631  ;;  %v4177_v44 = vmul.f32 %v7434_v27, %v7422_v56  ;;  %v7494_v56 = vld [vmem:[%s10399_s0 + $0x20] sm:$0xff] }
 0xdbc   :  { %v4629_v31 = vpop.xlane.xlu1 %4628  ;;  %v7518_v27 = vld [vmem:[%s10399_s0 + $0xe0] sm:$0xff] }
 0xdbd   :  { %7437 = vrcp.f32 %v4629_v31  ;;  %v7511_v31 = vld [vmem:[%s10399_s0 + $0xa8] sm:$0xff] }
 0xdbe   :  { %7439 = vrcp.f32 %v4632_v24  ;;  %v7436_v25 = vpop.eup %7435  ;;  %v7510_v24 = vld [vmem:[%s10399_s0 + $0xa0] sm:$0xff] }
 0xdbf   :  { %v7389_v45 = vpop.permute.xlu0 %7388  ;;  %v4178_v17 = vmul.f32 %v7436_v25, %v7424_v37  ;;  %v7498_v37 = vld [vmem:[%s10399_s0 + $0x40] sm:$0xff] }
 0xdc0   :  { %v7384_v3 = vpop.permute.xlu1 %7383  ;;  %v7391_v36 = vunpack.i.h.bf16 %v7389_v45  ;;  %v7390_v39 = vunpack.i.l.bf16 %v7389_v45  ;;  %v7515_v45 = vld [vmem:[%s10399_s0 + $0xc8] sm:$0xff]  ;;  %v6147_v25 = vld [vmem:[%s10223_s16 + $0x1] ss:$0 sm:$0xff] }
 0xdc1   :  { %v7386_v12 = vunpack.i.h.bf16 %v7384_v3  ;;  %v7385_v19 = vunpack.i.l.bf16 %v7384_v3  ;;  %v7512_v3 = vld [vmem:[%s10399_s0 + $0xb0] sm:$0xff] }
 0xdc2   :  { %v7237_v33 = vpack.c.bf16 %v7391_v36, %v7390_v39  ;;  %v7519_v36 = vld [vmem:[%s10399_s0 + $0xe8] sm:$0xff]  ;;  %v7520_v39 = vld [vmem:[%s10399_s0 + $0xf0] sm:$0xff] }
 0xdc3   :  { %v7229_v63 = vpack.c.bf16 %v7386_v12, %v7385_v19  ;;  %v7513_v12 = vld [vmem:[%s10399_s0 + $0xb8] sm:$0xff]  ;;  %v7514_v19 = vld [vmem:[%s10399_s0 + $0xc0] sm:$0xff] }
 0xdc5   :  { %7230 = vmatprep.subr.bf16.mxu0 %v7229_v63 }
 0xdc6   :  { %7232 = vmatpush3.bf16.msra.mxu0 %v7229_v63  ;;  %v7516_v63 = vld [vmem:[%s10399_s0 + $0xd0] sm:$0xff] }
 0xdc7   :  { %7234 = vmatprep.subr.bf16.mxu0 %v9440_v48  ;;  %v7438_v57 = vpop.eup %7437 }
 0xdc8   :  { %v4635_v22 = vmul.f32 %v7438_v57, %v7428_v8  ;;  %v7501_v8 = vld [vmem:[%s10399_s0 + $0x58] sm:$0xff] }
 0xdc9   :  { %6931 = vmatmul.mubr.msk.f32.vlgmr.msra.gmra.mrb[48].mxu0 %vm10648_vm14, %v4324_v18  ;;  %v7521_v18 = vld [vmem:[%s10399_s0 + $0xf8] sm:$0xff] }
 0xdca   :  { %7236 = vmatpush3.bf16.msra.mxu0 %v9440_v48  ;;  %6937 = vmatprep.mubr.msk.f32.mxu0 %vm10649_vm11, %v4177_v44  ;;  %v7440_v48 = vpop.eup %7439 }
 0xdcb   :  { %7238 = vmatprep.subr.bf16.mxu0 %v7237_v33  ;;  %v4636_v58 = vmul.f32 %v7440_v48, %v7426_v0  ;;  %v7500_v0 = vld [vmem:[%s10399_s0 + $0x50] sm:$0xff] }
 0xdd1   :  { %6938 = vmatmul.mubr.msk.f32.vlgmr.msra.gmra.mrb[48].mxu0 %vm10650_vm4, %v4178_v17  ;;  %v9964_v17 = vld [vmem:[%s10416_s25 + $0x2] ss:$0 sm:$0xff] }
 0xdd2   :  { %7240 = vmatpush3.bf16.msra.mxu0 %v7237_v33  ;;  %6944 = vmatprep.mubr.msk.f32.mxu0 %vm10651_vm5, %v4635_v22 }
 0xdd3   :  { %7242 = vmatprep.subr.bf16.mxu0 %v7241_v1 }
 0xdd9   :  { %6945 = vmatmul.mubr.msk.f32.vlgmr.msra.gmra.mrb[48].mxu0 %vm10652_vm6, %v4636_v58 }
 0xdda   :  { %7244 = vmatpush3.bf16.msra.mxu0 %v7241_v1  ;;  %6955 = vmatprep.mubr.msk.f32.mxu0 %vm10653_vm7, %v9266_v54 }
 0xddb   :  { %7246 = vmatprep.subr.bf16.mxu0 %v7245_v15 }
 0xdde   :  { %7248 = vmatpush3.bf16.msra.mxu0 %v7245_v15 }
 0xddf   :  { %6958 = vmatprep.subr.mxu0 %v6156_v13 }
 0xde1   :  { %6956 = vmatmul.mubr.msk.f32.vlgmr.msra.gmra.mrb[50].mxu0 %vm10654_vm12, %v9269_v34 }
 0xde2   :  { %6959 = vmatpush3.msra.mxu0 %v6156_v13  ;;  %6960 = vmatprep.mubr.msk.f32.mxu0 %vm216_vm0, %v7490_v61 }
 0xde5   :  { %6961 = vmatmul.mubr.msk.f32.vlgmr.msra.gmra.mrb[52].mxu0 %vm216_vm0, %v7491_v14 }
 0xde6   :  { %6963 = vmatprep.mubr.msk.f32.mxu0 %vm216_vm0, %v7492_v35 }
 0xde9   :  { %6964 = vmatmul.mubr.msk.f32.gmra.mrb[54].mxu0 %vm216_vm0, %v7493_v21 }
 0xdea   :  { %6966 = vmatprep.mubr.msk.f32.mxu0 %vm216_vm0, %v7494_v56 }
 0xded   :  { %6967 = vmatmul.mubr.msk.f32.gmra.mrb[56].mxu0 %vm216_vm0, %v7495_v26 }
 0xdee   :  { %6969 = vmatprep.mubr.msk.f32.mxu0 %vm216_vm0, %v7496_v40 }
 0xdf1   :  { %6970 = vmatmul.mubr.msk.f32.gmra.mrb[58].mxu0 %vm216_vm0, %v7497_v59 }
 0xdf2   :  { %6972 = vmatprep.mubr.msk.f32.mxu0 %vm216_vm0, %v7498_v37 }
 0xdf5   :  { %6973 = vmatmul.mubr.msk.f32.gmra.mrb[60].mxu0 %vm216_vm0, %v7499_v11 }
 0xdf6   :  { %6975 = vmatprep.mubr.msk.f32.mxu0 %vm216_vm0, %v7500_v0 }
 0xdf9   :  { %6976 = vmatmul.mubr.msk.f32.gmra.mrb[62].mxu0 %vm216_vm0, %v7501_v8 }
 0xdfa   :  { %6978 = vmatprep.mubr.msk.f32.mxu0 %vm216_vm0, %v7502_v62 }
 0xdfd   :  { %6979 = vmatmul.mubr.msk.f32.gmra.mrb[64].mxu0 %vm216_vm0, %v7503_v43 }
 0xdfe   :  { %6981 = vmatprep.mubr.msk.f32.mxu0 %vm216_vm0, %v7504_v41 }
 0xe01   :  { %6982 = vmatmul.mubr.msk.f32.gmra.mrb[66].mxu0 %vm216_vm0, %v7505_v10 }
 0xe02   :  { %6984 = vmatprep.mubr.msk.f32.mxu0 %vm216_vm0, %v7506_v52 }
 0xe05   :  { %6985 = vmatmul.mubr.msk.f32.gmra.mrb[68].mxu0 %vm216_vm0, %v7507_v46 }
 0xe06   :  { %6987 = vmatprep.mubr.msk.f32.mxu0 %vm216_vm0, %v7508_v30 }
 0xe09   :  { %6988 = vmatmul.mubr.msk.f32.gmra.mrb[70].mxu0 %vm216_vm0, %v7509_v47 }
 0xe0a   :  { %6990 = vmatprep.mubr.msk.f32.mxu0 %vm216_vm0, %v7510_v24 }
 0xe0d   :  { %6991 = vmatmul.mubr.msk.f32.gmra.mrb[72].mxu0 %vm216_vm0, %v7511_v31 }
 0xe0e   :  { %6993 = vmatprep.mubr.msk.f32.mxu0 %vm216_vm0, %v7512_v3 }
 0xe11   :  { %6994 = vmatmul.mubr.msk.f32.gmra.mrb[74].mxu0 %vm216_vm0, %v7513_v12 }
 0xe12   :  { %6996 = vmatprep.mubr.msk.f32.mxu0 %vm216_vm0, %v7514_v19 }
 0xe15   :  { %6997 = vmatmul.mubr.msk.f32.gmra.mrb[76].mxu0 %vm216_vm0, %v7515_v45 }
 0xe16   :  { %6999 = vmatprep.mubr.msk.f32.mxu0 %vm216_vm0, %v7516_v63 }
 0xe19   :  { %7000 = vmatmul.mubr.msk.f32.gmra.mrb[78].mxu0 %vm216_vm0, %v7517_v49 }
 0xe1a   :  { %7002 = vmatprep.mubr.msk.f32.mxu0 %vm216_vm0, %v7518_v27 }
 0xe1d   :  { %7003 = vmatmul.mubr.msk.f32.gmra.mrb[80].mxu0 %vm216_vm0, %v7519_v36 }
 0xe1e   :  { %7005 = vmatprep.mubr.msk.f32.mxu0 %vm216_vm0, %v7520_v39 }
 0xe21   :  { %7006 = vmatmul.mubr.msk.f32.gmra.mrb[82].mxu0 %vm216_vm0, %v7521_v18  ;;  %vm10655_vm0 = vcmask 1041408  }
 0xe22   :  { %vm10656_vm10 = vmmov %vm10655_vm0 }
 0xeac   :  { %v6946_v44 = vpop.f32.mrb[48].mxu0 }
 0xead   :  { %v4715_v33 = vpop.f32.mrb[49].mxu0 }
 0xeae   :  { %v4724_v9 = vmul.f32 0.33333334, %v4715_v33 }
 0xeb0   :  { %v4733_v20 = vadd.f32 %v6147_v25, %v4724_v9 }
 0xeb2   :  { %v4735_v57 = vmul.f32 0.01, %v4733_v20  ;;  %vm4734_vm13 = vcmp.gt.f32.partialorder %v4733_v20, 0.0 }
 0xeb4   :  { %v9966_v1 = vpop.f32.mrb[50].mxu0  ;;  %v4736_v22 = vsel %vm4734_vm13, %v4733_v20, %v4735_v57 }
 0xeb5   :  { %v4816_v48 = vpop.f32.mrb[51].mxu0  ;;  %7008 = vmatprep.subr.msk.mxu1 %vm10655_vm0, %v4736_v22 }
 0xeb6   :  { %v9970_v29 = vadd.f32 %v9964_v17, %v4816_v48  ;;  %7009 = vmatpush3.msk.msra.mxu1 %vm10656_vm10, %v4736_v22 }
 0xeb7   :  { %7011 = vmatmul.mubr.msk.f32.vlgmr.msra.gmra.mrb[100].mxu1 %vm1886_vm3, %v9976_v16 }
 0xeb8   :  { %v6962_v58 = vpop.f32.mrb[52].mxu0  ;;  %v5055_v15 = vrot.slane %v9970_v29, %v10499_v5  ;;  %v5071_v35 = vrot.slane %v9970_v29, %v10500_v2  ;;  %v5087_v62 = vrot.slane %v9970_v29, %v10502_v23  ;;  %v5103_v12 = vrot.slane %v9970_v29, %v10505_v28 }
 0xeb9   :  { %v4893_v13 = vpop.f32.mrb[53].mxu0  ;;  %v5119_v25 = vrot.slane %v9970_v29, %v10508_v53 }
 0xeba   :  { %v5057_v61 = vadd.f32 %v6962_v58, %v5055_v15  ;;  %v5056_v14 = vadd.f32 %v5055_v15, %v4893_v13 }
 0xebc   :  { %vm5059_vm8 = vcmp.gt.f32.partialorder %v5057_v61, 0.0  ;;  %v5061_v21 = vmul.f32 0.01, %v5057_v61  ;;  %vm5058_vm15 = vcmp.gt.f32.partialorder %v5056_v14, 0.0  ;;  %v5060_v56 = vmul.f32 0.01, %v5056_v14 }
 0xebd   :  { %v6965_v26 = vpop.f32.mrb[54].mxu0 }
 0xebe   :  { %v5063_v40 = vsel %vm5059_vm8, %v5057_v61, %v5061_v21  ;;  %v5062_v59 = vsel %vm5058_vm15, %v5056_v14, %v5060_v56  ;;  %v5073_v37 = vadd.f32 %v6965_v26, %v5071_v35  ;;  %v4903_v11 = vpop.f32.mrb[55].mxu0 }
 0xebf   :  { %v5065_v0 = vadd.f32 %v5063_v40, %v10501_v42  ;;  %v5072_v8 = vadd.f32 %v5071_v35, %v4903_v11  ;;  %v5064_v43 = vadd.f32 %v5062_v59, %v10503_v60 }
 0xec0   :  { %vm5075_vm3 = vcmp.gt.f32.partialorder %v5073_v37, 0.0  ;;  %v5077_v41 = vmul.f32 0.01, %v5073_v37  ;;  %v6968_v10 = vpop.f32.mrb[56].mxu0 }
 0xec1   :  { %v5067_v52 = vmax.f32 %v5065_v0, -1e+30  ;;  %vm5074_vm9 = vcmp.gt.f32.partialorder %v5072_v8, 0.0  ;;  %v5089_v46 = vadd.f32 %v6968_v10, %v5087_v62  ;;  %v4913_v30 = vpop.f32.mrb[57].mxu0  ;;  %v5076_v24 = vmul.f32 0.01, %v5072_v8 }
 0xec2   :  { %v5079_v47 = vsel %vm5075_vm3, %v5073_v37, %v5077_v41  ;;  %v5088_v31 = vadd.f32 %v5087_v62, %v4913_v30  ;;  %v5066_v19 = vmax.f32 %v5064_v43, -1e+30  ;;  %v10657_v41 = vld [vmem:[#allocation13_spill] sm:$0xff] }
 0xec3   :  { %v5081_v3 = vadd.f32 %v5079_v47, %v10504_v51  ;;  %vm5091_vm1 = vcmp.gt.f32.partialorder %v5089_v46, 0.0  ;;  %v5093_v42 = vmul.f32 0.01, %v5089_v46  ;;  %v5078_v45 = vsel %vm5074_vm9, %v5072_v8, %v5076_v24 }
 0xec4   :  { %vm5090_vm14 = vcmp.gt.f32.partialorder %v5088_v31, 0.0  ;;  %v5092_v60 = vmul.f32 0.01, %v5088_v31  ;;  %v6971_v63 = vpop.f32.mrb[58].mxu0  ;;  %v5080_v27 = vadd.f32 %v5078_v45, %v10506_v38 }
 0xec5   :  { %v5083_v49 = vmax.f32 %v5067_v52, %v5081_v3  ;;  %v5095_v36 = vsel %vm5091_vm1, %v5089_v46, %v5093_v42  ;;  %v5105_v39 = vadd.f32 %v6971_v63, %v5103_v12  ;;  %v4923_v18 = vpop.f32.mrb[59].mxu0  ;;  %v10658_v52 = vld [vmem:[#allocation29_spill] sm:$0xff] }
 0xec6   :  { %v5097_v44 = vadd.f32 %v5095_v36, %v10507_v4  ;;  %v5094_v33 = vsel %vm5090_vm14, %v5088_v31, %v5092_v60  ;;  %v5104_v51 = vadd.f32 %v5103_v12, %v4923_v18  ;;  %v5082_v9 = vmax.f32 %v5066_v19, %v5080_v27  ;;  %v10659_v19 = vld [vmem:[#allocation15_spill] sm:$0xff] }
 0xec7   :  { %v5096_v20 = vadd.f32 %v5094_v33, %v10509_v55  ;;  %vm5107_vm11 = vcmp.gt.f32.partialorder %v5105_v39, 0.0  ;;  %v5109_v57 = vmul.f32 0.01, %v5105_v39  ;;  %v5135_v55 = vrot.slane %v9970_v29, %v10512_v6 }
 0xec8   :  { %v5099_v22 = vmax.f32 %v5083_v49, %v5097_v44  ;;  %vm5106_vm4 = vcmp.gt.f32.partialorder %v5104_v51, 0.0  ;;  %v5108_v48 = vmul.f32 0.01, %v5104_v51  ;;  %v6974_v58 = vpop.f32.mrb[60].mxu0  ;;  %v5151_v46 = vrot.slane %v9970_v29, %v10658_v52  ;;  %v10660_v49 = vld [vmem:[#allocation35_spill] sm:$0xff] }
 0xec9   :  { %v5098_v38 = vmax.f32 %v5082_v9, %v5096_v20  ;;  %v5111_v15 = vsel %vm5107_vm11, %v5105_v39, %v5109_v57  ;;  %v5121_v13 = vadd.f32 %v6974_v58, %v5119_v25  ;;  %v4933_v61 = vpop.f32.mrb[61].mxu0  ;;  %v10661_v39 = vld [vmem:[#allocation30_spill] sm:$0xff]  ;;  %v10663_v58 = vld [vmem:[#allocation16_spill] sm:$0xff] }
 0xeca   :  { %v5113_v4 = vadd.f32 %v5111_v15, %v10510_v32  ;;  %v5110_v14 = vsel %vm5106_vm4, %v5104_v51, %v5108_v48  ;;  %v5120_v35 = vadd.f32 %v5119_v25, %v4933_v61  ;;  %v5167_v18 = vrot.slane %v9970_v29, %v10661_v39 }
 0xecb   :  { %v5112_v21 = vadd.f32 %v5110_v14, %v10511_v50  ;;  %vm5123_vm5 = vcmp.gt.f32.partialorder %v5121_v13, 0.0  ;;  %v5125_v56 = vmul.f32 0.01, %v5121_v13 }
 0xecc   :  { %v5115_v26 = vmax.f32 %v5099_v22, %v5113_v4  ;;  %vm5122_vm6 = vcmp.gt.f32.partialorder %v5120_v35, 0.0  ;;  %v5124_v40 = vmul.f32 0.01, %v5120_v35  ;;  %v6977_v59 = vpop.f32.mrb[62].mxu0 }
 0xecd   :  { %v5114_v37 = vmax.f32 %v5098_v38, %v5112_v21  ;;  %v5127_v11 = vsel %vm5123_vm5, %v5121_v13, %v5125_v56  ;;  %v5137_v0 = vadd.f32 %v6977_v59, %v5135_v55  ;;  %v4943_v8 = vpop.f32.mrb[63].mxu0 }
 0xece   :  { %v5129_v62 = vadd.f32 %v5127_v11, %v10513_v7  ;;  %v5126_v32 = vsel %vm5122_vm6, %v5120_v35, %v5124_v40  ;;  %v5136_v43 = vadd.f32 %v5135_v55, %v4943_v8  ;;  %v10006_v7 = vadd.f32 %v9966_v1, %v9964_v17  ;;  %v10662_v1 = vld [vmem:[#allocation37_spill] sm:$0xff]  ;;  %v10664_v55 = vld [vmem:[#allocation18_spill] sm:$0xff] }
 0xecf   :  { %v5128_v10 = vadd.f32 %v5126_v32, %v10657_v41  ;;  %vm5139_vm7 = vcmp.gt.f32.partialorder %v5137_v0, 0.0  ;;  %v5141_v50 = vmul.f32 0.01, %v5137_v0 }
 0xed0   :  { %v5131_v30 = vmax.f32 %v5115_v26, %v5129_v62  ;;  %vm5138_vm12 = vcmp.gt.f32.partialorder %v5136_v43, 0.0  ;;  %v5140_v47 = vmul.f32 0.01, %v5136_v43  ;;  %v6980_v24 = vpop.f32.mrb[64].mxu0  ;;  %v5183_v13 = vrot.slane %v10006_v7, %v10499_v5 }
 0xed1   :  { %v5130_v31 = vmax.f32 %v5114_v37, %v5128_v10  ;;  %v5143_v3 = vsel %vm5139_vm7, %v5137_v0, %v5141_v50  ;;  %v5153_v42 = vadd.f32 %v6980_v24, %v5151_v46  ;;  %v4953_v12 = vpop.f32.mrb[65].mxu0  ;;  %v10665_v37 = vld [vmem:[#allocation17_spill] sm:$0xff]  ;;  %v5199_v8 = vrot.slane %v10006_v7, %v10500_v2 }
 0xed2   :  { %v5145_v45 = vadd.f32 %v5143_v3, %v10659_v19  ;;  %v5142_v60 = vsel %vm5138_vm12, %v5136_v43, %v5140_v47  ;;  %v5152_v63 = vadd.f32 %v5151_v46, %v4953_v12  ;;  %v10666_v46 = vld [vmem:[#allocation20_spill] sm:$0xff]  ;;  %v5215_v12 = vrot.slane %v10006_v7, %v10502_v23 }
 0xed3   :  { %v5144_v27 = vadd.f32 %v5142_v60, %v10660_v49  ;;  %vm5155_vm13 = vcmp.gt.f32.partialorder %v5153_v42, 0.0  ;;  %v5157_v36 = vmul.f32 0.01, %v5153_v42 }
 0xed4   :  { %v5147_v44 = vmax.f32 %v5131_v30, %v5145_v45  ;;  %vm5154_vm0 = vcmp.gt.f32.partialorder %v5152_v63, 0.0  ;;  %v5156_v33 = vmul.f32 0.01, %v5152_v63  ;;  %v6983_v51 = vpop.f32.mrb[66].mxu0 }
 0xed5   :  { %v5146_v25 = vmax.f32 %v5130_v31, %v5144_v27  ;;  %v5159_v9 = vsel %vm5155_vm13, %v5153_v42, %v5157_v36  ;;  %v5169_v20 = vadd.f32 %v6983_v51, %v5167_v18  ;;  %v4963_v17 = vpop.f32.mrb[67].mxu0  ;;  %v10667_v31 = vld [vmem:[#allocation39_spill] sm:$0xff]  ;;  %v10668_v36 = vld [vmem:[#allocation41_spill] sm:$0xff] }
 0xed6   :  { %v5161_v57 = vadd.f32 %v5159_v9, %v10662_v1  ;;  %v5158_v22 = vsel %vm5154_vm0, %v5152_v63, %v5156_v33  ;;  %v5168_v48 = vadd.f32 %v5167_v18, %v4963_v17  ;;  %v10669_v51 = vld [vmem:[#allocation27_spill] sm:$0xff] }
 0xed7   :  { %v5160_v38 = vadd.f32 %v5158_v22, %v10663_v58  ;;  %vm5171_vm10 = vcmp.gt.f32.partialorder %v5169_v20, 0.0  ;;  %v5173_v15 = vmul.f32 0.01, %v5169_v20 }
 0xed8   :  { %v5163_v29 = vmax.f32 %v5147_v44, %v5161_v57  ;;  %vm5170_vm8 = vcmp.gt.f32.partialorder %v5168_v48, 0.0  ;;  %v5172_v61 = vmul.f32 0.01, %v5168_v48  ;;  %v6986_v4 = vpop.f32.mrb[68].mxu0 }
 0xed9   :  { %v5162_v14 = vmax.f32 %v5146_v25, %v5160_v38  ;;  %v5175_v35 = vsel %vm5171_vm10, %v5169_v20, %v5173_v15  ;;  %v5185_v21 = vadd.f32 %v6986_v4, %v5183_v13  ;;  %v4973_v56 = vpop.f32.mrb[69].mxu0  ;;  %v5231_v20 = vrot.slane %v10006_v7, %v10505_v28  ;;  %v10670_v38 = vld [vmem:[#allocation34_spill] sm:$0xff] }
 0xeda   :  { %v5177_v26 = vadd.f32 %v5175_v35, %v10664_v55  ;;  %v5174_v40 = vsel %vm5170_vm8, %v5168_v48, %v5172_v61  ;;  %v5184_v59 = vadd.f32 %v5183_v13, %v4973_v56  ;;  %v10671_v61 = vld [vmem:[#allocation32_spill] sm:$0xff]  ;;  %v5247_v35 = vrot.slane %v10006_v7, %v10508_v53 }
 0xedb   :  { %v5176_v11 = vadd.f32 %v5174_v40, %v10665_v37  ;;  %vm5187_vm15 = vcmp.gt.f32.partialorder %v5185_v21, 0.0  ;;  %v5189_v0 = vmul.f32 0.01, %v5185_v21  ;;  %v10672_v37 = vld [vmem:[#allocation36_spill] sm:$0xff] }
 0xedc   :  { %v5179_v5 = vmax.f32 %v5163_v29, %v5177_v26  ;;  %vm5186_vm3 = vcmp.gt.f32.partialorder %v5184_v59, 0.0  ;;  %v5188_v62 = vmul.f32 0.01, %v5184_v59  ;;  %v6989_v32 = vpop.f32.mrb[70].mxu0 }
 0xedd   :  { %v5178_v43 = vmax.f32 %v5162_v14, %v5176_v11  ;;  %v5191_v41 = vsel %vm5187_vm15, %v5185_v21, %v5189_v0  ;;  %v5201_v10 = vadd.f32 %v6989_v32, %v5199_v8  ;;  %v4983_v50 = vpop.f32.mrb[71].mxu0 }
 0xede   :  { %v5193_v30 = vadd.f32 %v5191_v41, %v10666_v46  ;;  %v5190_v47 = vsel %vm5186_vm3, %v5184_v59, %v5188_v62  ;;  %v5200_v24 = vadd.f32 %v5199_v8, %v4983_v50 }
 0xedf   :  { %v5192_v3 = vadd.f32 %v5190_v47, %v10667_v31  ;;  %vm5203_vm9 = vcmp.gt.f32.partialorder %v5201_v10, 0.0  ;;  %v5205_v42 = vmul.f32 0.01, %v5201_v10 }
 0xee0   :  { %v5195_v2 = vmax.f32 %v5179_v5, %v5193_v30  ;;  %vm5202_vm1 = vcmp.gt.f32.partialorder %v5200_v24, 0.0  ;;  %v5204_v19 = vmul.f32 0.01, %v5200_v24  ;;  %v6992_v45 = vpop.f32.mrb[72].mxu0  ;;  %v10673_v5 = vld [vmem:[#allocation43_spill] sm:$0xff] }
 0xee1   :  { %v5194_v60 = vmax.f32 %v5178_v43, %v5192_v3  ;;  %v5207_v63 = vsel %vm5203_vm9, %v5201_v10, %v5205_v42  ;;  %v5217_v49 = vadd.f32 %v6992_v45, %v5215_v12  ;;  %v4993_v27 = vpop.f32.mrb[73].mxu0  ;;  %v5263_v43 = vrot.slane %v10006_v7, %v10512_v6 }
 0xee2   :  { %v5209_v18 = vadd.f32 %v5207_v63, %v10668_v36  ;;  %v5206_v44 = vsel %vm5202_vm1, %v5200_v24, %v5204_v19  ;;  %v5216_v33 = vadd.f32 %v5215_v12, %v4993_v27  ;;  %v10674_v24 = vld [vmem:[#allocation45_spill] sm:$0xff]  ;;  %v10675_v12 = vld [vmem:[#allocation38_spill] sm:$0xff]  ;;  %v5279_v45 = vrot.slane %v10006_v7, %v10658_v52 }
 0xee3   :  { %v5208_v25 = vadd.f32 %v5206_v44, %v10669_v51  ;;  %vm5219_vm14 = vcmp.gt.f32.partialorder %v5217_v49, 0.0  ;;  %v5221_v9 = vmul.f32 0.01, %v5217_v49  ;;  %v10676_v44 = vld [vmem:[#allocation42_spill] sm:$0xff]  ;;  %vm10687_vm1 = vcmask 261120  }
 0xee4   :  { %v5211_v23 = vmax.f32 %v5195_v2, %v5209_v18  ;;  %vm5218_vm11 = vcmp.gt.f32.partialorder %v5216_v33, 0.0  ;;  %v5220_v17 = vmul.f32 0.01, %v5216_v33  ;;  %v6995_v1 = vpop.f32.mrb[74].mxu0 }
 0xee5   :  { %v5210_v57 = vmax.f32 %v5194_v60, %v5208_v25  ;;  %v5223_v22 = vsel %vm5219_vm14, %v5217_v49, %v5221_v9  ;;  %v5233_v48 = vadd.f32 %v6995_v1, %v5231_v20  ;;  %v5003_v58 = vpop.f32.mrb[75].mxu0  ;;  %v10677_v9 = vld [vmem:[#allocation40_spill] sm:$0xff]  ;;  %vm10688_vm14 = vcmask 523264  }
 0xee6   :  { %v5225_v15 = vadd.f32 %v5223_v22, %v10670_v38  ;;  %v5222_v13 = vsel %vm5218_vm11, %v5216_v33, %v5220_v17  ;;  %v5232_v29 = vadd.f32 %v5231_v20, %v5003_v58  ;;  %v5295_v17 = vrot.slane %v10006_v7, %v10661_v39 }
 0xee7   :  { %v5224_v4 = vadd.f32 %v5222_v13, %v10671_v61  ;;  %vm5235_vm4 = vcmp.gt.f32.partialorder %v5233_v48, 0.0  ;;  %v5237_v14 = vmul.f32 0.01, %v5233_v48  ;;  %vm10689_vm11 = vcmask 785408  }
 0xee8   :  { %v5227_v28 = vmax.f32 %v5211_v23, %v5225_v15  ;;  %vm5234_vm5 = vcmp.gt.f32.partialorder %v5232_v29, 0.0  ;;  %v5236_v21 = vmul.f32 0.01, %v5232_v29  ;;  %v6998_v56 = vpop.f32.mrb[76].mxu0  ;;  %v10678_v15 = vld [vmem:[#allocation44_spill] sm:$0xff] }
 0xee9   :  { %v5226_v55 = vmax.f32 %v5210_v57, %v5224_v4  ;;  %v5239_v26 = vsel %vm5235_vm4, %v5233_v48, %v5237_v14  ;;  %v5249_v40 = vadd.f32 %v6998_v56, %v5247_v35  ;;  %v5013_v59 = vpop.f32.mrb[77].mxu0  ;;  %v10679_v4 = vld [vmem:[#allocation47_spill] sm:$0xff]  ;;  %v10680_v56 = vld [vmem:[#allocation49_spill] sm:$0xff]  ;;  %vm10690_vm4 = vmmov %vm10687_vm1 }
 0xeea   :  { %v5241_v11 = vadd.f32 %v5239_v26, %v10672_v37  ;;  %v5238_v0 = vsel %vm5234_vm5, %v5232_v29, %v5236_v21  ;;  %v5248_v8 = vadd.f32 %v5247_v35, %v5013_v59  ;;  %v7523_v37 = vld [vmem:[%s10498_s7] sm:$0xff]  ;;  %vm10691_vm5 = vmmov %vm10688_vm14 }
 0xeeb   :  { %v5240_v62 = vadd.f32 %v5238_v0, %v10673_v5  ;;  %vm5251_vm6 = vcmp.gt.f32.partialorder %v5249_v40, 0.0  ;;  %v5253_v32 = vmul.f32 0.01, %v5249_v40  ;;  %v10682_v5 = vld [vmem:[#allocation48_spill] sm:$0xff] }
 0xeec   :  { %v5243_v53 = vmax.f32 %v5227_v28, %v5241_v11  ;;  %vm5250_vm7 = vcmp.gt.f32.partialorder %v5248_v8, 0.0  ;;  %v5252_v41 = vmul.f32 0.01, %v5248_v8  ;;  %v7001_v10 = vpop.f32.mrb[78].mxu0  ;;  %v6214_v11 = vadd.f32 -1.0, %v7523_v37 }
 0xeed   :  { %v5242_v50 = vmax.f32 %v5226_v55, %v5240_v62  ;;  %v5255_v46 = vsel %vm5251_vm6, %v5249_v40, %v5253_v32  ;;  %v5265_v30 = vadd.f32 %v7001_v10, %v5263_v43  ;;  %v5023_v47 = vpop.f32.mrb[79].mxu0  ;;  %v10681_v40 = vld [vmem:[#allocation46_spill] sm:$0xff]  ;;  %vm10683_vm3 = vcmp.eq.s32.totalorder %v10682_v5, 1  ;;  %vm10692_vm6 = vmmov %vm10689_vm11 }
 0xeee   :  { %v5257_v31 = vadd.f32 %v5255_v46, %v10674_v24  ;;  %v5254_v3 = vsel %vm5250_vm7, %v5248_v8, %v5252_v41  ;;  %v5264_v42 = vadd.f32 %v5263_v43, %v5023_v47  ;;  %v10053_v32 = vmul.f32 1e+30, %v6214_v11  ;;  %v6192_v43 = vld [vmem:[%s10216_s9 + $0xc0] sm:$0xff]  ;;  %v6194_v41 = vld [vmem:[%s10216_s9 + $0xd0] sm:$0xff]  ;;  %v6197_v47 = vld [vmem:[%s10216_s9 + $0xe8] sm:$0xff] }
 0xeef   :  { %v5256_v2 = vadd.f32 %v5254_v3, %v10675_v12  ;;  %vm5267_vm12 = vcmp.gt.f32.partialorder %v5265_v30, 0.0  ;;  %v5269_v19 = vmul.f32 0.01, %v5265_v30  ;;  %v6199_v3 = vld [vmem:[%s10216_s9 + $0xf8] sm:$0xff]  ;;  %v6200_v12 = vld [vmem:[%s10216_s9 + $0x100] sm:$0xff] }
 0xef0   :  { %v5259_v6 = vmax.f32 %v5243_v53, %v5257_v31  ;;  %vm5266_vm13 = vcmp.gt.f32.partialorder %v5264_v42, 0.0  ;;  %v5268_v60 = vmul.f32 0.01, %v5264_v42  ;;  %v7004_v63 = vpop.f32.mrb[80].mxu0  ;;  %v6193_v53 = vld [vmem:[%s10216_s9 + $0xc8] sm:$0xff]  ;;  %v6198_v31 = vld [vmem:[%s10216_s9 + $0xf0] sm:$0xff] }
 0xef1   :  { %v5258_v49 = vmax.f32 %v5242_v50, %v5256_v2  ;;  %v5271_v27 = vsel %vm5267_vm12, %v5265_v30, %v5269_v19  ;;  %v5281_v36 = vadd.f32 %v7004_v63, %v5279_v45  ;;  %v5033_v18 = vpop.f32.mrb[81].mxu0  ;;  %v7249_v10 = vpack.c.bf16 %v6193_v53, %v6192_v43  ;;  %v6195_v50 = vld [vmem:[%s10216_s9 + $0xd8] sm:$0xff]  ;;  %v6196_v30 = vld [vmem:[%s10216_s9 + $0xe0] sm:$0xff]  ;;  %v6201_v2 = vld [vmem:[%s10216_s9 + $0x108] sm:$0xff] }
 0xef2   :  { %v5273_v33 = vadd.f32 %v5271_v27, %v10676_v44  ;;  %v5270_v51 = vsel %vm5266_vm13, %v5264_v42, %v5268_v60  ;;  %v5280_v25 = vadd.f32 %v5279_v45, %v5033_v18  ;;  %v7253_v46 = vpack.c.bf16 %v6195_v50, %v6194_v41  ;;  %v6202_v45 = vld [vmem:[%s10216_s9 + $0x110] sm:$0xff]  ;;  %v10685_v27 = vld [vmem:[#allocation50_spill] sm:$0xff]  ;;  %vm10693_vm13 = vmmov %vm10687_vm1 }
 0xef3   :  { %v5272_v20 = vadd.f32 %v5270_v51, %v10677_v9  ;;  %vm5283_vm0 = vcmp.gt.f32.partialorder %v5281_v36, 0.0  ;;  %v5285_v23 = vmul.f32 0.01, %v5281_v36  ;;  %7250 = vmatprep.subr.bf16.mxu0 %v7249_v10  ;;  %v7257_v24 = vpack.c.bf16 %v6197_v47, %v6196_v30  ;;  %v6208_v37 = vld [vmem:[#allocation2] ss:$0 sm:$0xff] }
 0xef4   :  { %v5275_v52 = vmax.f32 %v5259_v6, %v5273_v33  ;;  %vm5282_vm10 = vcmp.gt.f32.partialorder %v5280_v25, 0.0  ;;  %v5284_v1 = vmul.f32 0.01, %v5280_v25  ;;  %v7007_v57 = vpop.f32.mrb[82].mxu0  ;;  %7252 = vmatpush3.bf16.msra.mxu0 %v7249_v10  ;;  %v7261_v42 = vpack.c.bf16 %v6199_v3, %v6198_v31  ;;  %v6203_v6 = vld [vmem:[%s10216_s9 + $0x118] sm:$0xff] }
 0xef5   :  { %v5274_v22 = vmax.f32 %v5258_v49, %v5272_v20  ;;  %v5287_v48 = vsel %vm5283_vm0, %v5281_v36, %v5285_v23  ;;  %v5297_v58 = vadd.f32 %v7007_v57, %v5295_v17  ;;  %v5043_v38 = vpop.f32.mrb[83].mxu0  ;;  %7254 = vmatprep.subr.bf16.mxu0 %v7253_v46  ;;  %v7265_v19 = vpack.c.bf16 %v6201_v2, %v6200_v12  ;;  %vm10694_vm0 = vmmov %vm10687_vm1 }
 0xef6   :  { %v5289_v13 = vadd.f32 %v5287_v48, %v10678_v15  ;;  %v5286_v29 = vsel %vm5282_vm10, %v5280_v25, %v5284_v1  ;;  %v5296_v61 = vadd.f32 %v5295_v17, %v5043_v38  ;;  %v7269_v60 = vpack.c.bf16 %v6203_v6, %v6202_v45  ;;  %v5518_v17 = vld [vmem:[%s10224_s17] sm:$0xff]  ;;  %v5520_v48 = vld [vmem:[%s10224_s17 + $0x10] sm:$0xff]  ;;  %vm10695_vm10 = vmmov %vm10694_vm0 }
 0xef7   :  { %v5288_v14 = vadd.f32 %v5286_v29, %v10679_v4  ;;  %vm5299_vm8 = vcmp.gt.f32.partialorder %v5297_v58, 0.0  ;;  %v5301_v35 = vmul.f32 0.01, %v5297_v58  ;;  %vm10686_vm9 = vcmp.eq.s32.totalorder %v10685_v27, 1  ;;  %v5610_v1 = vld [vmem:[%s10226_s19] sm:$0xff]  ;;  %v5612_v29 = vld [vmem:[%s10226_s19 + $0x10] sm:$0xff] }
 0xef8   :  { %vm5298_vm15 = vcmp.gt.f32.partialorder %v5296_v61, 0.0  ;;  %v5300_v28 = vmul.f32 0.01, %v5296_v61  ;;  %v5291_v21 = vmax.f32 %v5275_v52, %v5289_v13  ;;  %7256 = vmatpush3.bf16.msra.mxu0 %v7253_v46  ;;  %v5519_v52 = vld [vmem:[%s10224_s17 + $0x8] sm:$0xff]  ;;  %v6215_v38 = vadd.f32 -1.0, %v9976_v16 }
 0xef9   :  { %v5303_v7 = vsel %vm5299_vm8, %v5297_v58, %v5301_v35  ;;  %v5290_v39 = vmax.f32 %v5274_v22, %v5288_v14  ;;  %7258 = vmatprep.subr.bf16.mxu0 %v7257_v24  ;;  %v7273_v57 = vpack.c.bf16 %v5519_v52, %v5518_v17  ;;  %v5611_v22 = vld [vmem:[%s10226_s19 + $0x8] sm:$0xff]  ;;  %v5521_v58 = vld [vmem:[%s10224_s17 + $0x18] sm:$0xff]  ;;  %v6205_v16 = vld [vmem:[%s10217_s10 + $0x2] ss:$0 sm:$0xff] }
 0xefa   :  { %v5305_v55 = vadd.f32 %v5303_v7, %v10680_v56  ;;  %v5302_v26 = vsel %vm5298_vm15, %v5296_v61, %v5300_v28  ;;  %v7281_v15 = vpack.c.bf16 %v5611_v22, %v5610_v1  ;;  %v7277_v13 = vpack.c.bf16 %v5521_v58, %v5520_v48  ;;  %v5613_v61 = vld [vmem:[%s10226_s19 + $0x18] sm:$0xff]  ;;  %vm10696_vm8 = vmmov %vm10694_vm0 }
 0xefb   :  { %v5304_v59 = vadd.f32 %v5302_v26, %v10681_v40  ;;  %7274 = vmatprep.subr.bf16.mxu1 %v7273_v57  ;;  %v7285_v4 = vpack.c.bf16 %v5613_v61, %v5612_v29  ;;  %v5705_v14 = vmul.f32 1e+30, %v6215_v38  ;;  %vm10697_vm15 = vmmov %vm10694_vm0 }
 0xefc   :  { %v5307_v0 = vmax.f32 %v5291_v21, %v5305_v55  ;;  %7260 = vmatpush3.bf16.msra.mxu0 %v7257_v24  ;;  %7276 = vmatpush3.bf16.msra.mxu1 %v7273_v57 }
 0xefd   :  { %v5306_v8 = vmax.f32 %v5290_v39, %v5304_v59  ;;  %7262 = vmatprep.subr.bf16.mxu0 %v7261_v42  ;;  %7278 = vmatprep.subr.bf16.mxu1 %v7277_v13 }
 0xefe   :  { %v5309_v36 = vsel %vm10686_vm9, %v5307_v0, 0.0 }
 0xeff   :  { %v5308_v62 = vsel %vm10683_vm3, %v5306_v8, 0.0  ;;  %vm10698_vm3 = vmmov %vm10694_vm0 }
 0xf00   :  { %5398 = vrot.lane.b32.xlu0 %v5308_v62, %s10543_s28  ;;  %7264 = vmatpush3.bf16.msra.mxu0 %v7261_v42 }
 0xf01   :  { %7266 = vmatprep.subr.bf16.mxu0 %v7265_v19  ;;  %7280 = vmatpush3.bf16.msra.mxu1 %v7277_v13 }
 0xf04   :  { %5758 = vrot.lane.b32.xlu0 %v10053_v32, %s10584_s15  ;;  %7268 = vmatpush3.bf16.msra.mxu0 %v7265_v19 }
 0xf05   :  { %7270 = vmatprep.subr.bf16.mxu0 %v7269_v60 }
 0xf08   :  { %7272 = vmatpush3.bf16.msra.mxu0 %v7269_v60 }
 0xf09   :  { %7282 = vmatprep.subr.bf16.mxu0 %v7281_v15 }
 0xf72   :  { %v5399_v33 = vpop.permute.xlu0 %5398 }
 0xf76   :  { %v5759_v0 = vpop.permute.xlu0 %5758 }
 0xf8a   :  { %v7012_v63 = vpop.f32.mrb[100].mxu1 }
 0xf8b   :  { %5392 = vrot.lane.b32.xlu1 %v7012_v63, %s10684_s18  ;;  %v5379_v49 = vpop.f32.mrb[101].mxu1 }
 0xf8f   :  { %5390 = vrot.lane.b32.xlu1 %v5379_v49, %s10684_s18 }
 0xf93   :  { %5400 = vrot.lane.b32.xlu1 %v5309_v36, %s10543_s28 }
 0xf97   :  { %5760 = vrot.lane.b32.xlu1 %v5705_v14, %s10584_s15 }
 0xffd   :  { %v5393_v18 = vpop.permute.xlu1 %5392 }
 0xffe   :  { %v5405_v9 = vsel %vm10690_vm4, %v9269_v34, %v5393_v18  ;;  %vm10701_vm4 = vmmov %vm10694_vm0 }
0x1001   :  { %v5391_v44 = vpop.permute.xlu1 %5390 }
0x1002   :  { %v5404_v51 = vsel %vm10687_vm1, %v9266_v54, %v5391_v44 }
0x1003   :  { %v5406_v25 = vsel %vm10688_vm14, %v5404_v51, %v5399_v33  ;;  %vm10699_vm14 = vmmov %vm10694_vm0 }
0x1004   :  { %7037 = vmatprep.mubr.msk.f32.mxu0 %vm10689_vm11, %v5406_v25  ;;  %vm10700_vm11 = vmmov %vm10694_vm0 }
0x1005   :  { %v5401_v20 = vpop.permute.xlu1 %5400 }
0x1006   :  { %v5407_v23 = vsel %vm10691_vm5, %v5405_v9, %v5401_v20  ;;  %vm10702_vm5 = vmmov %vm10694_vm0 }
0x1007   :  { %7038 = vmatmul.mubr.msk.f32.vlgmr.msra.gmra.mrb[84].mxu0 %vm10692_vm6, %v5407_v23  ;;  %vm5814_vm6 = vcmask 1040384  }
0x1008   :  { %7284 = vmatpush3.bf16.msra.mxu0 %v7281_v15 }
0x1009   :  { %7286 = vmatprep.subr.bf16.mxu0 %v7285_v4  ;;  %v5761_v11 = vpop.permute.xlu1 %5760 }
0x100c   :  { %7288 = vmatpush3.bf16.msra.mxu0 %v7285_v4 }
0x10da   :  { %v7039_v35 = vpop.f32.mrb[84].mxu0 }
0x10db   :  { %v5507_v28 = vadd.f32 %v7039_v35, %v6205_v16  ;;  %v5501_v21 = vpop.f32.mrb[85].mxu0 }
0x10dc   :  { %v5502_v7 = vadd.f32 %v6205_v16, %v5501_v21 }
0x10dd   :  { %vm5511_vm7 = vcmp.gt.f32.partialorder %v5507_v28, 0.0  ;;  %v5513_v39 = vmul.f32 0.01, %v5507_v28 }
0x10de   :  { %vm5510_vm12 = vcmp.gt.f32.partialorder %v5502_v7, 0.0  ;;  %v5512_v56 = vmul.f32 0.01, %v5502_v7 }
0x10df   :  { %v5515_v55 = vsel %vm5511_vm7, %v5507_v28, %v5513_v39  ;;  %vm10703_vm7 = vmmov %vm10694_vm0 }
0x10e0   :  { %v5517_v26 = vadd.f32 %v5515_v55, %v9269_v34  ;;  %v5514_v40 = vsel %vm5510_vm12, %v5502_v7, %v5512_v56 }
0x10e1   :  { %v5516_v59 = vadd.f32 %v5514_v40, %v9266_v54 }
0x10e2   :  { %5904 = vst.msk [vmem:[#allocation3 + $0x8] sm:$0xff] %vm10693_vm13, %v5517_v26 }
0x10e3   :  { %5903 = vst.msk [vmem:[#allocation3] sm:$0xff] %vm10694_vm0, %v5516_v59  ;;  %7048 = vmatprep.mubr.msk.f32.mxu1 %vm10695_vm10, %v5516_v59  ;;  %7059 = vmatprep.mubr.msk.f32.mxu0 %vm10696_vm8, %v5516_v59 }
0x10e4   :  { %7049 = vmatmul.mubr.msk.f32.vlgmr.msra.gmra.mrb[102].mxu1 %vm10697_vm15, %v5517_v26  ;;  %7060 = vmatmul.mubr.msk.f32.vlgmr.msra.gmra.mrb[86].mxu0 %vm10698_vm3, %v5517_v26 }
0x11b7   :  { %v7050_v8 = vpop.f32.mrb[102].mxu1  ;;  %v10144_v34 = vpop.f32.mrb[86].mxu0 }
0x11b8   :  { %v5607_v5 = vadd.f32 %v7050_v8, %v6208_v37  ;;  %v5601_v54 = vpop.f32.mrb[103].mxu1  ;;  %v10146_v62 = vpop.f32.mrb[87].mxu0  ;;  %v5816_v8 = vld [vmem:[%s10228_s21] sm:$0xff] }
0x11b9   :  { %v5602_v43 = vadd.f32 %v6208_v37, %v5601_v54  ;;  %v5818_v54 = vld [vmem:[%s10228_s21 + $0x10] sm:$0xff] }
0x11ba   :  { %v5707_v53 = vadd.f32 %v5705_v14, %v5607_v5  ;;  %v5765_v41 = vadd.f32 %v5761_v11, %v5607_v5  ;;  %v5817_v5 = vld [vmem:[%s10228_s21 + $0x8] sm:$0xff] }
0x11bb   :  { %v5706_v10 = vadd.f32 %v10053_v32, %v5602_v43  ;;  %v5764_v50 = vadd.f32 %v5759_v0, %v5602_v43  ;;  %v7608_v43 = vmov 0.0|0.0  }
0x11bc   :  { %v5709_v46 = vsel %vm1883_vm2, %v5707_v53, -inf  ;;  %v5767_v30 = vsel %vm1883_vm2, %v5765_v41, -inf  ;;  %7289 = vmatprep.subr.bf16.mxu1 %v7608_v43 }
0x11bd   :  { %v5708_v47 = vsel %vm1883_vm2, %v5706_v10, -inf  ;;  %v5766_v24 = vsel %vm1883_vm2, %v5764_v50, -inf }
0x11be   :  { %v5710_v31 = vmax.f32 %v5708_v47, %v5709_v46  ;;  %v5768_v3 = vmax.f32 %v5766_v24, %v5767_v30  ;;  %v6211_v46 = vld [vmem:[%s10227_s20] ss:$0 sm:$0xff]  ;;  %s7611_s20 = smov [#allocation3]  }
0x11bf   :  { %v5693_v30 = vadd.f32 %v10144_v34, %v6211_v46  ;;  %v5688_v47 = vadd.f32 %v6211_v46, %v10146_v62 }
0x11c0   :  { %v5711_v42 = vrot.slane %v5710_v31, 4  ;;  %v5769_v12 = vrot.slane %v5768_v3, 4 }
0x11c1   :  { %v5699_v24 = vmul.f32 0.01, %v5693_v30  ;;  %vm5696_vm9 = vcmp.gt.f32.partialorder %v5688_v47, 0.0  ;;  %vm5697_vm1 = vcmp.gt.f32.partialorder %v5693_v30, 0.0 }
0x11c2   :  { %v5712_v2 = vmax.f32 %v5710_v31, %v5711_v42  ;;  %v5770_v19 = vmax.f32 %v5768_v3, %v5769_v12  ;;  %v5698_v31 = vmul.f32 0.01, %v5688_v47 }
0x11c3   :  { %v5701_v12 = vsel %vm5697_vm1, %v5693_v30, %v5699_v24 }
0x11c4   :  { %v5713_v45 = vrot.slane %v5712_v2, 2  ;;  %v5771_v6 = vrot.slane %v5770_v19, 2  ;;  %v5700_v3 = vsel %vm5696_vm9, %v5688_v47, %v5698_v31 }
0x11c6   :  { %v5714_v60 = vmax.f32 %v5712_v2, %v5713_v45  ;;  %v5772_v63 = vmax.f32 %v5770_v19, %v5771_v6 }
0x11c8   :  { %v5715_v32 = vrot.slane %v5714_v60, 1  ;;  %v5773_v49 = vrot.slane %v5772_v63, 1 }
0x11ca   :  { %v5716_v27 = vmax.f32 %v5714_v60, %v5715_v32  ;;  %v5774_v36 = vmax.f32 %v5772_v63, %v5773_v49 }
0x11cc   :  { %v5717_v18 = vsub.f32 %v5706_v10, %v5716_v27  ;;  %v5718_v44 = vsub.f32 %v5707_v53, %v5716_v27  ;;  %v5775_v33 = vsub.f32 %v5764_v50, %v5774_v36  ;;  %v5776_v51 = vsub.f32 %v5765_v41, %v5774_v36  ;;  %v5819_v41 = vld [vmem:[%s10228_s21 + $0x18] sm:$0xff]  ;;  %s5912_s21 = sshll.u32 %s7611_s20, 4  ;;  %s5913_s21 = int_to_ptr.vmem [resolvable:$true] %s5912_s21 }
0x11cd   :  { %v7290_v53 = vpack.c.bf16 %v5817_v5, %v5816_v8  ;;  %v7610_v10 = vmov 0.0   ;;  %v7293_v50 = vpack.c.bf16 %v5819_v41, %v5818_v54  ;;  %s7524_s28 = scalar_lea.vmem %s5913_s21, 256  ;;  %p7529_p1 = scmp.lt.s32.totalorder %s5913_s21, %s5913_s21 }
0x11ce   :  { %v5719_v25 = vmul.f32 1.442695, %v5717_v18  ;;  %v5721_v9 = vmul.f32 1.442695, %v5718_v44  ;;  %v5777_v20 = vmul.f32 1.442695, %v5775_v33  ;;  %p7525_p0 = scmp.ne.s32.totalorder %s5913_s21, %s7524_s28  ;;  %p7530_p2 = scmp.lt.s32.totalorder %s7524_s28, %s7524_s28 }
0x11cf   :  { %v5779_v23 = vmul.f32 1.442695, %v5776_v51  ;;  %7291 = vmatpush3.bf16.msra.mxu1 %v7290_v53 }
0x11d0   :  { %7441 = vpow2.f32 %v5719_v25  ;;  %7292 = vmatprep.subr.bf16.mxu1 %v7608_v43  ;;  %p7531_p3 = por %p7530_p2, %p7529_p1 }
0x11d1   :  { %7443 = vpow2.f32 %v5721_v9 }
0x11d2   :  { %7445 = vpow2.f32 %v5777_v20  ;;  %p7532_p4 = pnand %p7531_p3, %p7525_p0 }
0x11d3   :  { %7447 = vpow2.f32 %v5779_v23  ;;  %7294 = vmatpush3.bf16.msra.mxu1 %v7293_v50 }
0x11da   :  { %v7442_v17 = vpop.eup %7441 }
0x11db   :  { %v7444_v52 = vpop.eup %7443  ;;  %v5723_v1 = vsel %vm1883_vm2, %v7442_v17, 0.0 }
0x11dc   :  { %v7446_v57 = vpop.eup %7445  ;;  %v5724_v22 = vsel %vm1883_vm2, %v7444_v52, 0.0 }
0x11dd   :  { %v7448_v48 = vpop.eup %7447  ;;  %v5725_v58 = vadd.f32 %v5724_v22, %v5723_v1  ;;  %v5781_v38 = vsel %vm1883_vm2, %v7446_v57, 0.0 }
0x11de   :  { %v5782_v15 = vsel %vm1883_vm2, %v7448_v48, 0.0  ;;  %vm7609_vm2 = vmmov 0  }
0x11df   :  { %v5726_v13 = vrot.slane %v5725_v58, 4  ;;  %v5783_v29 = vadd.f32 %v5782_v15, %v5781_v38  ;;  %7070 = vmatprep.mubr.msk.f32.mxu1 %vm7609_vm2, %v7610_v10 }
0x11e1   :  { %v5727_v61 = vadd.f32 %v5726_v13, %v5725_v58  ;;  %v5784_v4 = vrot.slane %v5783_v29, 4 }
0x11e3   :  { %v5728_v14 = vrot.slane %v5727_v61, 2  ;;  %v5785_v16 = vadd.f32 %v5784_v4, %v5783_v29 }
0x11e5   :  { %v5786_v35 = vrot.slane %v5785_v16, 2  ;;  %v5729_v28 = vadd.f32 %v5728_v14, %v5727_v61 }
0x11e7   :  { %v5787_v21 = vadd.f32 %v5786_v35, %v5785_v16  ;;  %v5730_v7 = vrot.slane %v5729_v28, 1 }
0x11e9   :  { %v5731_v39 = vadd.f32 %v5730_v7, %v5729_v28  ;;  %v5788_v56 = vrot.slane %v5787_v21, 1 }
0x11eb   :  { %7449 = vrcp.f32 %v5731_v39  ;;  %v5789_v55 = vadd.f32 %v5788_v56, %v5787_v21 }
0x11ed   :  { %7451 = vrcp.f32 %v5789_v55 }
0x11f5   :  { %v7450_v26 = vpop.eup %7449 }
0x11f6   :  { %v5734_v40 = vmul.f32 %v7450_v26, %v7444_v52  ;;  %v5733_v59 = vmul.f32 %v7450_v26, %v7442_v17 }
0x11f7   :  { %v7452_v37 = vpop.eup %7451 }
0x11f8   :  { %5742 = vperm.xlu1 %7371, %v5734_v40   ;;  %5737 = vperm.xlu0 %7392, %v5733_v59   ;;  %v5792_v11 = vmul.f32 %v7452_v37, %v7448_v48  ;;  %v5791_v0 = vmul.f32 %v7452_v37, %v7446_v57 }
0x11fc   :  { %5800 = vperm.xlu0 %7392, %v5792_v11   ;;  %5795 = vperm.xlu1 %7371, %v5791_v0  }
0x1277   :  { %v5738_v42 = vpop.permute.xlu0 %5737  ;;  %v5743_v2 = vpop.permute.xlu1 %5742 }
0x1278   :  { %v5745_v19 = vmul.f32 %v5738_v42, %v5700_v3  ;;  %v5746_v45 = vmul.f32 %v5743_v2, %v5701_v12 }
0x127a   :  { %v5747_v6 = vsel %vm10699_vm14, %v5745_v19, 0.0  ;;  %v5748_v60 = vsel %vm10700_vm11, %v5746_v45, 0.0 }
0x127b   :  { %v5749_v63 = vadd.f32 %v5748_v60, %v5747_v6  ;;  %v5801_v32 = vpop.permute.xlu0 %5800  ;;  %v5796_v49 = vpop.permute.xlu1 %5795 }
0x127c   :  { %v5804_v34 = vmul.f32 %v5801_v32, %v5701_v12  ;;  %v5803_v27 = vmul.f32 %v5796_v49, %v5700_v3 }
0x127d   :  { %v5750_v62 = vrot.slane %v5749_v63, 4 }
0x127e   :  { %v5806_v36 = vsel %vm10701_vm4, %v5804_v34, 0.0  ;;  %v5805_v18 = vsel %vm10702_vm5, %v5803_v27, 0.0 }
0x127f   :  { %v5751_v44 = vadd.f32 %v5750_v62, %v5749_v63  ;;  %v5807_v33 = vadd.f32 %v5806_v36, %v5805_v18 }
0x1281   :  { %v5752_v51 = vrot.slane %v5751_v44, 2  ;;  %v5808_v25 = vrot.slane %v5807_v33, 4 }
0x1283   :  { %v5753_v9 = vadd.f32 %v5752_v51, %v5751_v44  ;;  %v5809_v20 = vadd.f32 %v5808_v25, %v5807_v33 }
0x1285   :  { %v5810_v23 = vrot.slane %v5809_v20, 2  ;;  %v5754_v17 = vrot.slane %v5753_v9, 1 }
0x1287   :  { %v5811_v52 = vadd.f32 %v5810_v23, %v5809_v20  ;;  %v5755_v57 = vadd.f32 %v5754_v17, %v5753_v9 }
0x1289   :  { %v5812_v1 = vrot.slane %v5811_v52, 1 }
0x128b   :  { %v5813_v22 = vadd.f32 %v5812_v1, %v5811_v52 }
0x128d   :  { %v5815_v48 = vsel %vm5814_vm6, %v5755_v57, %v5813_v22 }
0x128e   :  { %7071 = vmatmul.mubr.msk.f32.vlgmr.msra.gmra.mrb[104].mxu1 %vm10703_vm7, %v5815_v48 }
0x128f   :  { %7535 = shalt.err (!%p7532_p4)
}
0x1290   :  { %s7536_s2 = scalar_lea.hbm %s10230_s23, 256 }
0x1291   :  { %p7537_p5 = scmp.ne.s32.totalorder %s10230_s23, %s7536_s2  ;;  %p7540_p6 = scmp.lt.u32.totalorder %s7536_s2, %s10230_s23 }
0x1293   :  { %p7542_p7 = pnand %p7540_p6, %p7537_p5 }
0x1295   :  { %7545 = shalt.err (!%p7542_p7)
}
0x1296   :  { %s7612_s1 = smov 128   ;;  %s10704_s11 = sld [smem:[#allocation84_spill]]  ;;  %vm5905_vm13 = vcmask 254976  }
0x1297   :  { %5918 = dma.vmem_to_hbm [thread:$0]  %s5913_s21, 256, %s10230_s23, [#allocation4], %s7612_s1, %s7612_s1, %s10593_s4  }
0x1298   :  { %s7613_s16 = smov [#allocation5]  }
0x1299   :  { %s5925_s17 = sshll.u32 %s7613_s16, 4  ;;  %s5926_s17 = int_to_ptr.vmem [resolvable:$true] %s5925_s17 }
0x129a   :  { %s7546_s0 = scalar_lea.vmem %s5926_s17, 32  ;;  %p7551_p9 = scmp.lt.s32.totalorder %s5926_s17, %s5926_s17 }
0x129b   :  { %p7547_p8 = scmp.ne.s32.totalorder %s5926_s17, %s7546_s0  ;;  %p7552_p10 = scmp.lt.s32.totalorder %s7546_s0, %s7546_s0 }
0x129c   :  { %v6216_v58 = vld [vmem:[%s10704_s11] ss:$0 sm:$0xff] }
0x129d   :  { %p7553_p11 = por %p7552_p10, %p7551_p9 }
0x129f   :  { %p7554_p12 = pnand %p7553_p11, %p7547_p8 }
0x1361   :  { %v5896_v38 = vpop.f32.mrb[104].mxu1 }
0x1362   :  { %v5897_v15 = vadd.f32 %v6216_v58, %v5896_v38  ;;  %v7072_v13 = vpop.f32.mrb[105].mxu1 }
0x1364   :  { %v5901_v29 = vmul.f32 0.01, %v5897_v15  ;;  %vm5900_vm12 = vcmp.gt.f32.partialorder %v5897_v15, 0.0 }
0x1366   :  { %v5902_v61 = vsel %vm5900_vm12, %v5897_v15, %v5901_v29 }
0x1367   :  { %5906 = vst.msk [vmem:[#allocation5] sm:$0x3] %vm5905_vm13, %v5902_v61 }
0x1368   :  { %7557 = shalt.err (!%p7554_p12)
}
0x1369   :  { %s10705_s10 = sld [smem:[#allocation85_spill]] }
0x136f   :  { %s7558_s19 = scalar_lea.hbm %s10705_s10, 32 }
0x1370   :  { %p7559_p13 = scmp.ne.s32.totalorder %s10705_s10, %s7558_s19  ;;  %p7562_p0 = scmp.lt.u32.totalorder %s7558_s19, %s10705_s10 }
0x1372   :  { %p7564_p1 = pnand %p7562_p0, %p7559_p13 }
0x1374   :  { %7567 = shalt.err (!%p7564_p1)
}
0x1375   :  { %5928 = dma.vmem_to_hbm [thread:$0]  %s5926_s17, 32, %s10705_s10, [#allocation6]  }
0x1376   :  { %7568 = dma.done.wait [#allocation4], 256  }
0x1377   :  { %7569 = vsyncadd [#allocation4], 4294967040 }
0x1378   :  { %7570 = dma.done.wait [#allocation6], 32  }
0x1379   :  { %7571 = vsyncadd [#allocation6], 4294967264 }
0x137a   :  { %5935 = vsyncpa [#allocation4], 1 }
0x137b   :  { %5936 = vsyncpa [#allocation6], 1 }

</bundles_post_ra>
